<compile_context>
chip_gen: v5e
topology: v5e:2x2
jax: 0.10.0
libtpu: 0.0.40
codegen_flags: <defaults>
</compile_context>

<pallas_src>
import functools

import jax
import jax.numpy as jnp
from jax.experimental import pallas as pl
from jax.experimental.pallas import tpu as pltpu


def _round_up(x, m):
    return ((x + m - 1) // m) * m


def _choose_tile_m(m):
    """Rows per grid step: one tile for small M, 256-row tiles for large M."""
    m16 = _round_up(max(m, 16), 16)
    return m16 if m16 <= 1024 else 256


# ---------------------------------------------------------------------------
# Kernel 1: out = relu?(A @ W + b)
#   A:[tm,K] bf16 (new tile per step)  W:[K,N] bf16, b:[1,N] f32 (resident)
# ---------------------------------------------------------------------------
def _matmul_bias_kernel(a_ref, w_ref, b_ref, o_ref, *, relu):
    acc = jnp.dot(a_ref[...], w_ref[...], preferred_element_type=jnp.float32)
    acc = acc + b_ref[...]
    if relu:
        acc = jnp.maximum(acc, 0.0)
    o_ref[...] = acc.astype(o_ref.dtype)


def pallas_matmul_bias(a, w, b, *, relu, out_dtype):
    """relu?(a @ w + b) via an M-tiled Pallas matmul; W/b stay VMEM-resident."""
    m, k = a.shape
    k2, n = w.shape
    assert k == k2
    a = a.astype(jnp.bfloat16)
    tm = _choose_tile_m(m)
    mp = _round_up(m, tm)
    if mp != m:
        a = jnp.pad(a, ((0, mp - m), (0, 0)))  # zero rows: exact, sliced off

    out = pl.pallas_call(
        functools.partial(_matmul_bias_kernel, relu=relu),
        out_shape=jax.ShapeDtypeStruct((mp, n), out_dtype),
        grid=(mp // tm,),
        in_specs=[
            pl.BlockSpec((tm, k), lambda i: (i, 0)),   # A tile per grid step
            pl.BlockSpec((k, n), lambda i: (0, 0)),    # W resident
            pl.BlockSpec((1, n), lambda i: (0, 0)),    # bias resident
        ],
        out_specs=pl.BlockSpec((tm, n), lambda i: (i, 0)),
        compiler_params=pltpu.CompilerParams(
            dimension_semantics=("parallel",)),
    )(a, w, b)
    return out[:m] if mp != m else out


# ---------------------------------------------------------------------------
# Kernel 2: fused MLP head  q = relu(x @ W1 + b1) @ W2 + b2
#   (the tiny 512x4 q matmul rides along for free; no HBM round-trip of h)
# ---------------------------------------------------------------------------
def _mlp_head_kernel(x_ref, w1_ref, b1_ref, w2_ref, b2_ref, o_ref):
    h = jnp.dot(x_ref[...], w1_ref[...], preferred_element_type=jnp.float32)
    h = jnp.maximum(h + b1_ref[...], 0.0)
    q = jnp.dot(h.astype(w2_ref.dtype), w2_ref[...],
                preferred_element_type=jnp.float32)
    o_ref[...] = (q + b2_ref[...]).astype(o_ref.dtype)


def pallas_mlp_head(x, w1, b1, w2, b2):
    m, k1 = x.shape
    _, n1 = w1.shape
    _, n2 = w2.shape
    x = x.astype(jnp.bfloat16)
    tm = _choose_tile_m(m)
    mp = _round_up(m, tm)
    if mp != m:
        x = jnp.pad(x, ((0, mp - m), (0, 0)))

    out = pl.pallas_call(
        _mlp_head_kernel,
        out_shape=jax.ShapeDtypeStruct((mp, n2), jnp.float32),
        grid=(mp // tm,),
        in_specs=[
            pl.BlockSpec((tm, k1), lambda i: (i, 0)),  # x tile per step
            pl.BlockSpec((k1, n1), lambda i: (0, 0)),  # W1 resident (~3.2 MiB)
            pl.BlockSpec((1, n1), lambda i: (0, 0)),   # b1 resident
            pl.BlockSpec((n1, n2), lambda i: (0, 0)),  # W2 resident
            pl.BlockSpec((1, n2), lambda i: (0, 0)),   # b2 resident
        ],
        out_specs=pl.BlockSpec((tm, n2), lambda i: (i, 0)),
        compiler_params=pltpu.CompilerParams(
            dimension_semantics=("parallel",)),
    )(x, w1, b1, w2, b2)
    return out[:m] if mp != m else out


# ---------------------------------------------------------------------------
# im2col glue (plain JAX, XLA-fused): NHWC -> [B,Ho,Wo,kh*kw*C] with (kh,kw,C)
# ordering of the patch axis, matching the [kh,kw,Cin,Cout] weight packing.
# ---------------------------------------------------------------------------
def im2col(x_nhwc, kh, kw, sh, sw):
    B, H, W, C = x_nhwc.shape
    Ho = (H - kh) // sh + 1
    Wo = (W - kw) // sw + 1
    patches = []
    for i in range(kh):
        for j in range(kw):
            patches.append(x_nhwc[:, i:i + Ho * sh:sh, j:j + Wo * sw:sw, :])
    p = jnp.stack(patches, axis=3)                 # [B,Ho,Wo,kh*kw,C]
    return p.reshape(B, Ho, Wo, kh * kw * C), (Ho, Wo)


def conv2d_relu(x_nhwc, w_mat, b, kh, kw, stride):
    """Valid conv (PyTorch Conv2d, no padding) + ReLU via im2col + Pallas matmul."""
    sh, sw = stride
    B, _, _, C = x_nhwc.shape
    cout = w_mat.shape[1]
    cols, (Ho, Wo) = im2col(x_nhwc, kh, kw, sh, sw)
    a = cols.reshape(B * Ho * Wo, kh * kw * C)
    out = pallas_matmul_bias(a, w_mat, b, relu=True, out_dtype=jnp.bfloat16)
    return out.reshape(B, Ho, Wo, cout)


# ---------------------------------------------------------------------------
# One-time weight pre-packing (outside the forward hot path).
# ---------------------------------------------------------------------------
def prepack_params(params):
    def pack_conv(w):  # [Cout,Cin,kh,kw] -> [kh*kw*Cin, Cout] bf16
        cout = w.shape[0]
        return jnp.transpose(w, (2, 3, 1, 0)).reshape(-1, cout).astype(jnp.bfloat16)

    def pack_bias(b):
        return b.reshape(1, -1).astype(jnp.float32)

    # fc1 rows are in PyTorch CHW-flatten order (c*H*W + h*W + w).  Permute to
    # HWC order so the NHWC conv3 output can be flattened with a plain reshape.
    c3 = params["conv3_w"].shape[0]
    flat = params["fc1_w"].shape[0]
    side = int(round((flat // c3) ** 0.5))
    fc1_hwc = (params["fc1_w"].reshape(c3, side, side, -1)
               .transpose(1, 2, 0, 3).reshape(flat, -1))

    return {
        "c1_w": pack_conv(params["conv1_w"]), "c1_b": pack_bias(params["conv1_b"]),
        "c2_w": pack_conv(params["conv2_w"]), "c2_b": pack_bias(params["conv2_b"]),
        "c3_w": pack_conv(params["conv3_w"]), "c3_b": pack_bias(params["conv3_b"]),
        "fc1_w": fc1_hwc.astype(jnp.bfloat16), "fc1_b": pack_bias(params["fc1_b"]),
        "q_w": params["q_w"].astype(jnp.bfloat16), "q_b": pack_bias(params["q_b"]),
    }


# ---------------------------------------------------------------------------
# DQN forward (matches the PyTorch module, including the CHW flatten order
# which is absorbed into the pre-permuted fc1 weight).
# ---------------------------------------------------------------------------
def dqn_forward(x_nchw, pk):
    x = jnp.transpose(x_nchw, (0, 2, 3, 1)).astype(jnp.bfloat16)      # NHWC
    x = conv2d_relu(x, pk["c1_w"], pk["c1_b"], 8, 8, (4, 4))          # [B,20,20,32]
    x = conv2d_relu(x, pk["c2_w"], pk["c2_b"], 4, 4, (2, 2))          # [B,9,9,64]
    x = conv2d_relu(x, pk["c3_w"], pk["c3_b"], 3, 3, (1, 1))          # [B,7,7,64]
    B = x.shape[0]
    x_flat = x.reshape(B, -1)                                         # HWC flatten
    return pallas_mlp_head(x_flat, pk["fc1_w"], pk["fc1_b"],
                           pk["q_w"], pk["q_b"])                      # [B, 4]


dqn_forward_jit = jax.jit(dqn_forward)


def init_params(key):
    action_size = 4
    state_size = (84, 84, 1)
    dim1 = ((state_size[0] - 8) // 4 + 1, (state_size[1] - 8) // 4 + 1)   # (20,20)
    dim2 = ((dim1[0] - 4) // 2 + 1, (dim1[1] - 4) // 2 + 1)               # (9,9)
    dim3 = ((dim2[0] - 3) // 1 + 1, (dim2[1] - 3) // 1 + 1)               # (7,7)
    flat = 64 * dim3[0] * dim3[1]                                          # 3136

    ks = jax.random.split(key, 10)
    s = 0.05
    return {
        "conv1_w": jax.random.normal(ks[0], (32, 1, 8, 8), jnp.float32) * s,
        "conv1_b": jax.random.normal(ks[1], (32,), jnp.float32) * s,
        "conv2_w": jax.random.normal(ks[2], (64, 32, 4, 4), jnp.float32) * s,
        "conv2_b": jax.random.normal(ks[3], (64,), jnp.float32) * s,
        "conv3_w": jax.random.normal(ks[4], (64, 64, 3, 3), jnp.float32) * s,
        "conv3_b": jax.random.normal(ks[5], (64,), jnp.float32) * s,
        "fc1_w": jax.random.normal(ks[6], (flat, 512), jnp.float32) * s,
        "fc1_b": jax.random.normal(ks[7], (512,), jnp.float32) * s,
        "q_w": jax.random.normal(ks[8], (512, action_size), jnp.float32) * s,
        "q_b": jax.random.normal(ks[9], (action_size,), jnp.float32) * s,
    }


if __name__ == "__main__":
    key = jax.random.PRNGKey(0)
    pkey, xkey = jax.random.split(key)
    params = init_params(pkey)
    packed = prepack_params(params)          # one-time weight packing

    # The module hard-codes 84x84x1 inputs (fc1 depends on it): batch=2, NCHW.
    x = jax.random.normal(xkey, (2, 1, 84, 84), jnp.float32)

    q_values = dqn_forward_jit(x, packed)
    jax.block_until_ready(q_values)
    assert q_values.shape == (2, 4), q_values.shape

    # Reference check against plain-JAX f32 conv/linear (same math path).
    def ref_forward(x_nchw, p):
        y = jax.lax.conv_general_dilated(
            x_nchw, p["conv1_w"], (4, 4), "VALID",
            dimension_numbers=("NCHW", "OIHW", "NCHW"))
        y = jax.nn.relu(y + p["conv1_b"][None, :, None, None])
        y = jax.lax.conv_general_dilated(
            y, p["conv2_w"], (2, 2), "VALID",
            dimension_numbers=("NCHW", "OIHW", "NCHW"))
        y = jax.nn.relu(y + p["conv2_b"][None, :, None, None])
        y = jax.lax.conv_general_dilated(
            y, p["conv3_w"], (1, 1), "VALID",
            dimension_numbers=("NCHW", "OIHW", "NCHW"))
        y = jax.nn.relu(y + p["conv3_b"][None, :, None, None])
        y = y.reshape(y.shape[0], -1)
        y = jax.nn.relu(y @ p["fc1_w"] + p["fc1_b"])
        return y @ p["q_w"] + p["q_b"]

    ref = jax.block_until_ready(ref_forward(x, params))
    # bf16 matmul operands (f32 accumulation) -> compare with a bf16-level tolerance.
    assert jnp.allclose(q_values, ref, atol=2e-2, rtol=2e-2), (
        float(jnp.max(jnp.abs(q_values - ref))))

    print("KERNEL_OK")
</pallas_src>

<mosaic_0001>
module attributes {stable_mosaic.version = 11 : i64} {
  func.func @_matmul_bias_kernel(%arg0: i32, %arg1: memref<800x64xbf16, #tpu.memory_space<vmem>>, %arg2: memref<64x32xbf16, #tpu.memory_space<vmem>>, %arg3: memref<1x32xf32, #tpu.memory_space<vmem>>, %arg4: memref<800x32xbf16, #tpu.memory_space<vmem>>) attributes {dimension_semantics = [#tpu.dimension_semantics<parallel>], iteration_bounds = array<i64: 1>, scalar_prefetch = 0 : i64, scratch_operands = 0 : i64, tpu.core_type = #tpu.core_type<tc>, window_params = [{transform_indices = @transform_0, window_bounds = array<i64: 800, 64>}, {pipeline_mode = #tpu.pipeline_mode<synchronous>, transform_indices = @transform_1, window_bounds = array<i64: 64, 32>}, {pipeline_mode = #tpu.pipeline_mode<synchronous>, transform_indices = @transform_2, window_bounds = array<i64: 1, 32>}, {transform_indices = @transform_3, window_bounds = array<i64: 800, 32>}]} {
    %c0 = arith.constant 0 : index
    %c0_0 = arith.constant 0 : index
    %0 = vector.load %arg1[%c0, %c0_0] : memref<800x64xbf16, #tpu.memory_space<vmem>>, vector<800x64xbf16>
    %c0_1 = arith.constant 0 : index
    %c0_2 = arith.constant 0 : index
    %1 = vector.load %arg2[%c0_1, %c0_2] : memref<64x32xbf16, #tpu.memory_space<vmem>>, vector<64x32xbf16>
    %cst = arith.constant dense<0.000000e+00> : vector<800x32xf32>
    %2 = tpu.matmul %0, %1, %cst {dimension_numbers = #tpu.dot_dimension_numbers<[1], [0], [0], [1], [0, 0, 1, 1], [], []>} : vector<800x64xbf16>, vector<64x32xbf16>, vector<800x32xf32> -> vector<800x32xf32>
    %c0_3 = arith.constant 0 : index
    %c0_4 = arith.constant 0 : index
    %3 = vector.load %arg3[%c0_3, %c0_4] : memref<1x32xf32, #tpu.memory_space<vmem>>, vector<1x32xf32>
    %4 = vector.broadcast %3 : vector<1x32xf32> to vector<800x32xf32>
    %5 = arith.addf %2, %4 : vector<800x32xf32>
    %cst_5 = arith.constant 0.000000e+00 : f32
    %6 = vector.broadcast %cst_5 : f32 to vector<800x32xf32>
    %7 = arith.maximumf %5, %6 : vector<800x32xf32>
    %8 = arith.truncf %7 : vector<800x32xf32> to vector<800x32xbf16>
    %c0_6 = arith.constant 0 : index
    %c0_7 = arith.constant 0 : index
    %9 = vector.load %arg4[%c0_6, %c0_7] : memref<800x32xbf16, #tpu.memory_space<vmem>>, vector<800x32xbf16>
    tpu.vector_store %arg4[%c0_6, %c0_7], %8 {strides = array<i32>} : memref<800x32xbf16, #tpu.memory_space<vmem>>, vector<800x32xbf16>,
    return
  }
  func.func @transform_0(%arg0: i32) -> (i32, i32) {
    %c0_i32 = arith.constant 0 : i32
    %c0_i32_0 = arith.constant 0 : i32
    return %arg0, %c0_i32 : i32, i32
  }
  func.func @transform_1(%arg0: i32) -> (i32, i32) {
    %c0_i32 = arith.constant 0 : i32
    %c0_i32_0 = arith.constant 0 : i32
    %c0_i32_1 = arith.constant 0 : i32
    return %c0_i32, %c0_i32_0 : i32, i32
  }
  func.func @transform_2(%arg0: i32) -> (i32, i32) {
    %c0_i32 = arith.constant 0 : i32
    %c0_i32_0 = arith.constant 0 : i32
    %c0_i32_1 = arith.constant 0 : i32
    return %c0_i32, %c0_i32_0 : i32, i32
  }
  func.func @transform_3(%arg0: i32) -> (i32, i32) {
    %c0_i32 = arith.constant 0 : i32
    %c0_i32_0 = arith.constant 0 : i32
    return %arg0, %c0_i32 : i32, i32
  }
}

module attributes {stable_mosaic.version = 11 : i64} {
  func.func @_matmul_bias_kernel(%arg0: i32, %arg1: memref<176x512xbf16, #tpu.memory_space<vmem>>, %arg2: memref<512x64xbf16, #tpu.memory_space<vmem>>, %arg3: memref<1x64xf32, #tpu.memory_space<vmem>>, %arg4: memref<176x64xbf16, #tpu.memory_space<vmem>>) attributes {dimension_semantics = [#tpu.dimension_semantics<parallel>], iteration_bounds = array<i64: 1>, scalar_prefetch = 0 : i64, scratch_operands = 0 : i64, tpu.core_type = #tpu.core_type<tc>, window_params = [{transform_indices = @transform_0, window_bounds = array<i64: 176, 512>}, {pipeline_mode = #tpu.pipeline_mode<synchronous>, transform_indices = @transform_1, window_bounds = array<i64: 512, 64>}, {pipeline_mode = #tpu.pipeline_mode<synchronous>, transform_indices = @transform_2, window_bounds = array<i64: 1, 64>}, {transform_indices = @transform_3, window_bounds = array<i64: 176, 64>}]} {
    %c0 = arith.constant 0 : index
    %c0_0 = arith.constant 0 : index
    %0 = vector.load %arg1[%c0, %c0_0] : memref<176x512xbf16, #tpu.memory_space<vmem>>, vector<176x512xbf16>
    %c0_1 = arith.constant 0 : index
    %c0_2 = arith.constant 0 : index
    %1 = vector.load %arg2[%c0_1, %c0_2] : memref<512x64xbf16, #tpu.memory_space<vmem>>, vector<512x64xbf16>
    %cst = arith.constant dense<0.000000e+00> : vector<176x64xf32>
    %2 = tpu.matmul %0, %1, %cst {dimension_numbers = #tpu.dot_dimension_numbers<[1], [0], [0], [1], [0, 0, 1, 1], [], []>} : vector<176x512xbf16>, vector<512x64xbf16>, vector<176x64xf32> -> vector<176x64xf32>
    %c0_3 = arith.constant 0 : index
    %c0_4 = arith.constant 0 : index
    %3 = vector.load %arg3[%c0_3, %c0_4] : memref<1x64xf32, #tpu.memory_space<vmem>>, vector<1x64xf32>
    %4 = vector.broadcast %3 : vector<1x64xf32> to vector<176x64xf32>
    %5 = arith.addf %2, %4 : vector<176x64xf32>
    %cst_5 = arith.constant 0.000000e+00 : f32
    %6 = vector.broadcast %cst_5 : f32 to vector<176x64xf32>
    %7 = arith.maximumf %5, %6 : vector<176x64xf32>
    %8 = arith.truncf %7 : vector<176x64xf32> to vector<176x64xbf16>
    %c0_6 = arith.constant 0 : index
    %c0_7 = arith.constant 0 : index
    %9 = vector.load %arg4[%c0_6, %c0_7] : memref<176x64xbf16, #tpu.memory_space<vmem>>, vector<176x64xbf16>
    tpu.vector_store %arg4[%c0_6, %c0_7], %8 {strides = array<i32>} : memref<176x64xbf16, #tpu.memory_space<vmem>>, vector<176x64xbf16>,
    return
  }
  func.func @transform_0(%arg0: i32) -> (i32, i32) {
    %c0_i32 = arith.constant 0 : i32
    %c0_i32_0 = arith.constant 0 : i32
    return %arg0, %c0_i32 : i32, i32
  }
  func.func @transform_1(%arg0: i32) -> (i32, i32) {
    %c0_i32 = arith.constant 0 : i32
    %c0_i32_0 = arith.constant 0 : i32
    %c0_i32_1 = arith.constant 0 : i32
    return %c0_i32, %c0_i32_0 : i32, i32
  }
  func.func @transform_2(%arg0: i32) -> (i32, i32) {
    %c0_i32 = arith.constant 0 : i32
    %c0_i32_0 = arith.constant 0 : i32
    %c0_i32_1 = arith.constant 0 : i32
    return %c0_i32, %c0_i32_0 : i32, i32
  }
  func.func @transform_3(%arg0: i32) -> (i32, i32) {
    %c0_i32 = arith.constant 0 : i32
    %c0_i32_0 = arith.constant 0 : i32
    return %arg0, %c0_i32 : i32, i32
  }
}

module attributes {stable_mosaic.version = 11 : i64} {
  func.func @_matmul_bias_kernel(%arg0: i32, %arg1: memref<112x576xbf16, #tpu.memory_space<vmem>>, %arg2: memref<576x64xbf16, #tpu.memory_space<vmem>>, %arg3: memref<1x64xf32, #tpu.memory_space<vmem>>, %arg4: memref<112x64xbf16, #tpu.memory_space<vmem>>) attributes {dimension_semantics = [#tpu.dimension_semantics<parallel>], iteration_bounds = array<i64: 1>, scalar_prefetch = 0 : i64, scratch_operands = 0 : i64, tpu.core_type = #tpu.core_type<tc>, window_params = [{transform_indices = @transform_0, window_bounds = array<i64: 112, 576>}, {pipeline_mode = #tpu.pipeline_mode<synchronous>, transform_indices = @transform_1, window_bounds = array<i64: 576, 64>}, {pipeline_mode = #tpu.pipeline_mode<synchronous>, transform_indices = @transform_2, window_bounds = array<i64: 1, 64>}, {transform_indices = @transform_3, window_bounds = array<i64: 112, 64>}]} {
    %c0 = arith.constant 0 : index
    %c0_0 = arith.constant 0 : index
    %0 = vector.load %arg1[%c0, %c0_0] : memref<112x576xbf16, #tpu.memory_space<vmem>>, vector<112x576xbf16>
    %c0_1 = arith.constant 0 : index
    %c0_2 = arith.constant 0 : index
    %1 = vector.load %arg2[%c0_1, %c0_2] : memref<576x64xbf16, #tpu.memory_space<vmem>>, vector<576x64xbf16>
    %cst = arith.constant dense<0.000000e+00> : vector<112x64xf32>
    %2 = tpu.matmul %0, %1, %cst {dimension_numbers = #tpu.dot_dimension_numbers<[1], [0], [0], [1], [0, 0, 1, 1], [], []>} : vector<112x576xbf16>, vector<576x64xbf16>, vector<112x64xf32> -> vector<112x64xf32>
    %c0_3 = arith.constant 0 : index
    %c0_4 = arith.constant 0 : index
    %3 = vector.load %arg3[%c0_3, %c0_4] : memref<1x64xf32, #tpu.memory_space<vmem>>, vector<1x64xf32>
    %4 = vector.broadcast %3 : vector<1x64xf32> to vector<112x64xf32>
    %5 = arith.addf %2, %4 : vector<112x64xf32>
    %cst_5 = arith.constant 0.000000e+00 : f32
    %6 = vector.broadcast %cst_5 : f32 to vector<112x64xf32>
    %7 = arith.maximumf %5, %6 : vector<112x64xf32>
    %8 = arith.truncf %7 : vector<112x64xf32> to vector<112x64xbf16>
    %c0_6 = arith.constant 0 : index
    %c0_7 = arith.constant 0 : index
    %9 = vector.load %arg4[%c0_6, %c0_7] : memref<112x64xbf16, #tpu.memory_space<vmem>>, vector<112x64xbf16>
    tpu.vector_store %arg4[%c0_6, %c0_7], %8 {strides = array<i32>} : memref<112x64xbf16, #tpu.memory_space<vmem>>, vector<112x64xbf16>,
    return
  }
  func.func @transform_0(%arg0: i32) -> (i32, i32) {
    %c0_i32 = arith.constant 0 : i32
    %c0_i32_0 = arith.constant 0 : i32
    return %arg0, %c0_i32 : i32, i32
  }
  func.func @transform_1(%arg0: i32) -> (i32, i32) {
    %c0_i32 = arith.constant 0 : i32
    %c0_i32_0 = arith.constant 0 : i32
    %c0_i32_1 = arith.constant 0 : i32
    return %c0_i32, %c0_i32_0 : i32, i32
  }
  func.func @transform_2(%arg0: i32) -> (i32, i32) {
    %c0_i32 = arith.constant 0 : i32
    %c0_i32_0 = arith.constant 0 : i32
    %c0_i32_1 = arith.constant 0 : i32
    return %c0_i32, %c0_i32_0 : i32, i32
  }
  func.func @transform_3(%arg0: i32) -> (i32, i32) {
    %c0_i32 = arith.constant 0 : i32
    %c0_i32_0 = arith.constant 0 : i32
    return %arg0, %c0_i32 : i32, i32
  }
}

module attributes {stable_mosaic.version = 11 : i64} {
  func.func @_mlp_head_kernel(%arg0: i32, %arg1: memref<16x3136xbf16, #tpu.memory_space<vmem>>, %arg2: memref<3136x512xbf16, #tpu.memory_space<vmem>>, %arg3: memref<1x512xf32, #tpu.memory_space<vmem>>, %arg4: memref<512x4xbf16, #tpu.memory_space<vmem>>, %arg5: memref<1x4xf32, #tpu.memory_space<vmem>>, %arg6: memref<16x4xf32, #tpu.memory_space<vmem>>) attributes {dimension_semantics = [#tpu.dimension_semantics<parallel>], iteration_bounds = array<i64: 1>, scalar_prefetch = 0 : i64, scratch_operands = 0 : i64, tpu.core_type = #tpu.core_type<tc>, window_params = [{transform_indices = @transform_0, window_bounds = array<i64: 16, 3136>}, {pipeline_mode = #tpu.pipeline_mode<synchronous>, transform_indices = @transform_1, window_bounds = array<i64: 3136, 512>}, {pipeline_mode = #tpu.pipeline_mode<synchronous>, transform_indices = @transform_2, window_bounds = array<i64: 1, 512>}, {pipeline_mode = #tpu.pipeline_mode<synchronous>, transform_indices = @transform_3, window_bounds = array<i64: 512, 4>}, {pipeline_mode = #tpu.pipeline_mode<synchronous>, transform_indices = @transform_4, window_bounds = array<i64: 1, 4>}, {transform_indices = @transform_5, window_bounds = array<i64: 16, 4>}]} {
    %c0 = arith.constant 0 : index
    %c0_0 = arith.constant 0 : index
    %0 = vector.load %arg1[%c0, %c0_0] : memref<16x3136xbf16, #tpu.memory_space<vmem>>, vector<16x3136xbf16>
    %c0_1 = arith.constant 0 : index
    %c0_2 = arith.constant 0 : index
    %1 = vector.load %arg2[%c0_1, %c0_2] : memref<3136x512xbf16, #tpu.memory_space<vmem>>, vector<3136x512xbf16>
    %cst = arith.constant dense<0.000000e+00> : vector<16x512xf32>
    %2 = tpu.matmul %0, %1, %cst {dimension_numbers = #tpu.dot_dimension_numbers<[1], [0], [0], [1], [0, 0, 1, 1], [], []>} : vector<16x3136xbf16>, vector<3136x512xbf16>, vector<16x512xf32> -> vector<16x512xf32>
    %c0_3 = arith.constant 0 : index
    %c0_4 = arith.constant 0 : index
    %3 = vector.load %arg3[%c0_3, %c0_4] : memref<1x512xf32, #tpu.memory_space<vmem>>, vector<1x512xf32>
    %4 = vector.broadcast %3 : vector<1x512xf32> to vector<16x512xf32>
    %5 = arith.addf %2, %4 : vector<16x512xf32>
    %cst_5 = arith.constant 0.000000e+00 : f32
    %6 = vector.broadcast %cst_5 : f32 to vector<16x512xf32>
    %7 = arith.maximumf %5, %6 : vector<16x512xf32>
    %8 = arith.truncf %7 : vector<16x512xf32> to vector<16x512xbf16>
    %c0_6 = arith.constant 0 : index
    %c0_7 = arith.constant 0 : index
    %9 = vector.load %arg4[%c0_6, %c0_7] : memref<512x4xbf16, #tpu.memory_space<vmem>>, vector<512x4xbf16>
    %cst_8 = arith.constant dense<0.000000e+00> : vector<16x4xf32>
    %10 = tpu.matmul %8, %9, %cst_8 {dimension_numbers = #tpu.dot_dimension_numbers<[1], [0], [0], [1], [0, 0, 1, 1], [], []>} : vector<16x512xbf16>, vector<512x4xbf16>, vector<16x4xf32> -> vector<16x4xf32>
    %c0_9 = arith.constant 0 : index
    %c0_10 = arith.constant 0 : index
    %11 = vector.load %arg5[%c0_9, %c0_10] : memref<1x4xf32, #tpu.memory_space<vmem>>, vector<1x4xf32>
    %12 = vector.broadcast %11 : vector<1x4xf32> to vector<16x4xf32>
    %13 = arith.addf %10, %12 : vector<16x4xf32>
    %c0_11 = arith.constant 0 : index
    %c0_12 = arith.constant 0 : index
    %14 = vector.load %arg6[%c0_11, %c0_12] : memref<16x4xf32, #tpu.memory_space<vmem>>, vector<16x4xf32>
    tpu.vector_store %arg6[%c0_11, %c0_12], %13 {strides = array<i32>} : memref<16x4xf32, #tpu.memory_space<vmem>>, vector<16x4xf32>,
    return
  }
  func.func @transform_0(%arg0: i32) -> (i32, i32) {
    %c0_i32 = arith.constant 0 : i32
    %c0_i32_0 = arith.constant 0 : i32
    return %arg0, %c0_i32 : i32, i32
  }
  func.func @transform_1(%arg0: i32) -> (i32, i32) {
    %c0_i32 = arith.constant 0 : i32
    %c0_i32_0 = arith.constant 0 : i32
    %c0_i32_1 = arith.constant 0 : i32
    return %c0_i32, %c0_i32_0 : i32, i32
  }
  func.func @transform_2(%arg0: i32) -> (i32, i32) {
    %c0_i32 = arith.constant 0 : i32
    %c0_i32_0 = arith.constant 0 : i32
    %c0_i32_1 = arith.constant 0 : i32
    return %c0_i32, %c0_i32_0 : i32, i32
  }
  func.func @transform_3(%arg0: i32) -> (i32, i32) {
    %c0_i32 = arith.constant 0 : i32
    %c0_i32_0 = arith.constant 0 : i32
    %c0_i32_1 = arith.constant 0 : i32
    return %c0_i32, %c0_i32_0 : i32, i32
  }
  func.func @transform_4(%arg0: i32) -> (i32, i32) {
    %c0_i32 = arith.constant 0 : i32
    %c0_i32_0 = arith.constant 0 : i32
    %c0_i32_1 = arith.constant 0 : i32
    return %c0_i32, %c0_i32_0 : i32, i32
  }
  func.func @transform_5(%arg0: i32) -> (i32, i32) {
    %c0_i32 = arith.constant 0 : i32
    %c0_i32_0 = arith.constant 0 : i32
    return %arg0, %c0_i32 : i32, i32
  }
}

</mosaic_0001>

<bundles_post_ra>
// kernel: dqn_forward.4
= control target key start
LH: loop header
LB: loop body
LE: loop exit
PB: predicated region body
PF: predicated region fallthrough
CT: control target
= control target key end

     0   :  { %vm401_vm0 = vcmask 523264   ;;  %vm1011_vm1 = vcmask 257024   ;;  %s2185_s1 = inlined_call_operand.vmem [shape: bf16[64,32], index: 1, kind: input, shape index: {}]   ;;  %s2186_s2 = inlined_call_operand.vmem [shape: f32[1,32], index: 2, kind: input, shape index: {}]   ;;  %s2187_s0 = inlined_call_operand.vmem [shape: bf16[800,64], index: 0, kind: input, shape index: {}]   ;;  %s2188_s3 = inlined_call_operand.vmem [shape: bf16[800,32], index: 3, kind: output, shape index: {}]  }
   0x1   :  { %v1435_v0 = vld [vmem:[%s2185_s1 + $0x18] sm:$0xff]  ;;  %v1434_v1 = vld [vmem:[%s2185_s1 + $0x10] sm:$0xff]  ;;  %v1433_v2 = vld [vmem:[%s2185_s1 + $0x8] sm:$0xff] }
   0x2   :  { %1436 = vmatpush.bf16.msra.mxu1 %v1435_v0  ;;  %1437 = vmatpush.bf16.msra.mxu2 %v1435_v0  ;;  %v1432_v3 = vld [vmem:[%s2185_s1] sm:$0xff]  ;;  %v1407_v5 = vld [vmem:[%s2187_s0 + $0xc8] sm:$0xff]  ;;  %v1420_v6 = vld [vmem:[%s2187_s0 + $0x130] sm:$0xff] }
   0x3   :  { %1438 = vmatpush.bf16.msra.mxu3 %v1435_v0  ;;  %556 = vmatpush.bf16.msra.mxu0 %v1435_v0  ;;  %v1394_v4 = vld [vmem:[%s2187_s0 + $0x60] sm:$0xff]  ;;  %v1395_v8 = vld [vmem:[%s2187_s0 + $0x68] sm:$0xff]  ;;  %v1408_v9 = vld [vmem:[%s2187_s0 + $0xd0] sm:$0xff] }
   0x4   :  { %v1382_v7 = vld [vmem:[%s2187_s0] sm:$0xff]  ;;  %v1421_v10 = vld [vmem:[%s2187_s0 + $0x138] sm:$0xff]  ;;  %v1383_v11 = vld [vmem:[%s2187_s0 + $0x8] sm:$0xff] }
   0x5   :  { %v1396_v12 = vld [vmem:[%s2187_s0 + $0x70] sm:$0xff]  ;;  %v1409_v13 = vld [vmem:[%s2187_s0 + $0xd8] sm:$0xff]  ;;  %v1422_v14 = vld [vmem:[%s2187_s0 + $0x140] sm:$0xff] }
   0x6   :  { %1439 = vmatpush.bf16.msra.mxu1 %v1434_v1  ;;  %1440 = vmatpush.bf16.msra.mxu2 %v1434_v1  ;;  %v1384_v15 = vld [vmem:[%s2187_s0 + $0x10] sm:$0xff]  ;;  %v1397_v16 = vld [vmem:[%s2187_s0 + $0x78] sm:$0xff]  ;;  %v1410_v17 = vld [vmem:[%s2187_s0 + $0xe0] sm:$0xff] }
   0x7   :  { %1441 = vmatpush.bf16.msra.mxu3 %v1434_v1  ;;  %557 = vmatpush.bf16.msra.mxu0 %v1434_v1  ;;  %v1423_v18 = vld [vmem:[%s2187_s0 + $0x148] sm:$0xff]  ;;  %v1385_v19 = vld [vmem:[%s2187_s0 + $0x18] sm:$0xff]  ;;  %v1398_v20 = vld [vmem:[%s2187_s0 + $0x80] sm:$0xff] }
   0x8   :  { %v1411_v21 = vld [vmem:[%s2187_s0 + $0xe8] sm:$0xff]  ;;  %v1424_v22 = vld [vmem:[%s2187_s0 + $0x150] sm:$0xff]  ;;  %v1386_v23 = vld [vmem:[%s2187_s0 + $0x20] sm:$0xff] }
   0x9   :  { %v1399_v24 = vld [vmem:[%s2187_s0 + $0x88] sm:$0xff]  ;;  %v1412_v25 = vld [vmem:[%s2187_s0 + $0xf0] sm:$0xff]  ;;  %v1425_v26 = vld [vmem:[%s2187_s0 + $0x158] sm:$0xff] }
   0xa   :  { %1442 = vmatpush.bf16.msra.mxu1 %v1433_v2  ;;  %1443 = vmatpush.bf16.msra.mxu2 %v1433_v2  ;;  %v1387_v27 = vld [vmem:[%s2187_s0 + $0x28] sm:$0xff]  ;;  %v1400_v28 = vld [vmem:[%s2187_s0 + $0x90] sm:$0xff]  ;;  %v1413_v29 = vld [vmem:[%s2187_s0 + $0xf8] sm:$0xff] }
   0xb   :  { %1444 = vmatpush.bf16.msra.mxu3 %v1433_v2  ;;  %558 = vmatpush.bf16.msra.mxu0 %v1433_v2  ;;  %v1426_v30 = vld [vmem:[%s2187_s0 + $0x160] sm:$0xff]  ;;  %v1388_v31 = vld [vmem:[%s2187_s0 + $0x30] sm:$0xff]  ;;  %v1401_v32 = vld [vmem:[%s2187_s0 + $0x98] sm:$0xff] }
   0xc   :  { %v1414_v33 = vld [vmem:[%s2187_s0 + $0x100] sm:$0xff]  ;;  %v1427_v34 = vld [vmem:[%s2187_s0 + $0x168] sm:$0xff]  ;;  %v1389_v35 = vld [vmem:[%s2187_s0 + $0x38] sm:$0xff] }
   0xd   :  { %v1613_v36 = vld [vmem:[%s2186_s2] ss:$0 sm:$0xff]  ;;  %v1415_v38 = vld [vmem:[%s2187_s0 + $0x108] sm:$0xff]  ;;  %v1428_v40 = vld [vmem:[%s2187_s0 + $0x170] sm:$0xff] }
   0xe   :  { %1445 = vmatpush.bf16.msra.mxu1 %v1432_v3  ;;  %1446 = vmatpush.bf16.msra.mxu2 %v1432_v3  ;;  %v1402_v37 = vld [vmem:[%s2187_s0 + $0xa0] sm:$0xff] }
   0xf   :  { %1447 = vmatpush.bf16.msra.mxu3 %v1432_v3  ;;  %559 = vmatpush.bf16.msra.mxu0 %v1432_v3  ;;  %v1390_v41 = vld [vmem:[%s2187_s0 + $0x40] sm:$0xff]  ;;  %v1403_v3 = vld [vmem:[%s2187_s0 + $0xa8] sm:$0xff] }
  0x11   :  { %1344 = vmatmul.msk.bf16.vlgmr.msra.gmra.mxu1 %vm401_vm0, %v1394_v4  ;;  %1357 = vmatmul.msk.bf16.vlgmr.msra.gmra.mxu2 %vm401_vm0, %v1407_v5  ;;  %v1416_v4 = vld [vmem:[%s2187_s0 + $0x110] sm:$0xff] }
  0x12   :  { %1370 = vmatmul.msk.bf16.vlgmr.msra.gmra.mxu3 %vm401_vm0, %v1420_v6  ;;  %1332 = vmatmul.msk.bf16.vlgmr.msra.gmra.mxu0 %vm401_vm0, %v1382_v7 }
  0x21   :  { %1345 = vmatmul.msk.bf16.gmra.mxu1 %vm401_vm0, %v1395_v8  ;;  %1358 = vmatmul.msk.bf16.gmra.mxu2 %vm401_vm0, %v1408_v9  ;;  %v1429_v8 = vld [vmem:[%s2187_s0 + $0x178] sm:$0xff]  ;;  %v1391_v9 = vld [vmem:[%s2187_s0 + $0x48] sm:$0xff] }
  0x22   :  { %1371 = vmatmul.msk.bf16.gmra.mxu3 %vm401_vm0, %v1421_v10  ;;  %1333 = vmatmul.msk.bf16.gmra.mxu0 %vm401_vm0, %v1383_v11 }
  0x31   :  { %1346 = vmatmul.msk.bf16.gmra.mxu1 %vm401_vm0, %v1396_v12  ;;  %1359 = vmatmul.msk.bf16.gmra.mxu2 %vm401_vm0, %v1409_v13 }
  0x32   :  { %1372 = vmatmul.msk.bf16.gmra.mxu3 %vm401_vm0, %v1422_v14  ;;  %1334 = vmatmul.msk.bf16.gmra.mxu0 %vm401_vm0, %v1384_v15 }
  0x41   :  { %1347 = vmatmul.msk.bf16.gmra.mxu1 %vm401_vm0, %v1397_v16  ;;  %1360 = vmatmul.msk.bf16.gmra.mxu2 %vm401_vm0, %v1410_v17 }
  0x42   :  { %1373 = vmatmul.msk.bf16.gmra.mxu3 %vm401_vm0, %v1423_v18  ;;  %1335 = vmatmul.msk.bf16.gmra.mxu0 %vm401_vm0, %v1385_v19 }
  0x51   :  { %1348 = vmatmul.msk.bf16.gmra.mxu1 %vm401_vm0, %v1398_v20  ;;  %1361 = vmatmul.msk.bf16.gmra.mxu2 %vm401_vm0, %v1411_v21 }
  0x52   :  { %1374 = vmatmul.msk.bf16.gmra.mxu3 %vm401_vm0, %v1424_v22  ;;  %1336 = vmatmul.msk.bf16.gmra.mxu0 %vm401_vm0, %v1386_v23 }
  0x61   :  { %1349 = vmatmul.msk.bf16.gmra.mxu1 %vm401_vm0, %v1399_v24  ;;  %1362 = vmatmul.msk.bf16.gmra.mxu2 %vm401_vm0, %v1412_v25 }
  0x62   :  { %1375 = vmatmul.msk.bf16.gmra.mxu3 %vm401_vm0, %v1425_v26  ;;  %1337 = vmatmul.msk.bf16.gmra.mxu0 %vm401_vm0, %v1387_v27 }
  0x71   :  { %1350 = vmatmul.msk.bf16.gmra.mxu1 %vm401_vm0, %v1400_v28  ;;  %1363 = vmatmul.msk.bf16.gmra.mxu2 %vm401_vm0, %v1413_v29 }
  0x72   :  { %1376 = vmatmul.msk.bf16.gmra.mxu3 %vm401_vm0, %v1426_v30  ;;  %1338 = vmatmul.msk.bf16.gmra.mxu0 %vm401_vm0, %v1388_v31 }
  0x81   :  { %1351 = vmatmul.msk.bf16.gmra.mxu1 %vm401_vm0, %v1401_v32  ;;  %1364 = vmatmul.msk.bf16.gmra.mxu2 %vm401_vm0, %v1414_v33 }
  0x82   :  { %1377 = vmatmul.msk.bf16.gmra.mxu3 %vm401_vm0, %v1427_v34  ;;  %1339 = vmatmul.msk.bf16.gmra.mxu0 %vm401_vm0, %v1389_v35 }
  0x8e   :  { %v621_v39 = vpop.f32.mrf.mxu1 }
  0x8f   :  { %v622_v42 = vadd.f32 %v1613_v36, %v621_v39  ;;  %v561_v43 = vpop.f32.mrf.mxu0 }
  0x90   :  { %v562_v44 = vadd.f32 %v1613_v36, %v561_v43 }
  0x91   :  { %v835_v45 = vmax.f32 %v622_v42, 0.0  ;;  %1352 = vmatmul.msk.bf16.gmra.mxu1 %vm401_vm0, %v1402_v37  ;;  %1365 = vmatmul.msk.bf16.gmra.mxu2 %vm401_vm0, %v1415_v38 }
  0x92   :  { %1378 = vmatmul.msk.bf16.gmra.mxu3 %vm401_vm0, %v1428_v40  ;;  %v811_v46 = vmax.f32 %v562_v44, 0.0  ;;  %1340 = vmatmul.msk.bf16.gmra.mxu0 %vm401_vm0, %v1390_v41  ;;  %v1404_v40 = vld [vmem:[%s2187_s0 + $0xb0] sm:$0xff]  ;;  %v1417_v41 = vld [vmem:[%s2187_s0 + $0x118] sm:$0xff] }
  0x93   :  { %v935_v47 = vpack.c.bf16 %v835_v45, %v835_v45  ;;  %v1430_v45 = vld [vmem:[%s2187_s0 + $0x180] sm:$0xff] }
  0x94   :  { %v686_v48 = vpop.f32.mrf.mxu2  ;;  %v911_v49 = vpack.c.bf16 %v811_v46, %v811_v46  ;;  %v1392_v46 = vld [vmem:[%s2187_s0 + $0x50] sm:$0xff] }
  0x95   :  { %1036 = vst.msk [vmem:[%s2188_s3 + $0x60] sm:$0xf] %vm1011_vm1, %v935_v47  ;;  %v687_v50 = vadd.f32 %v1613_v36, %v686_v48  ;;  %v751_v51 = vpop.f32.mrf.mxu3 }
  0x96   :  { %v623_v52 = vpop.f32.mrf.mxu1  ;;  %1012 = vst.msk [vmem:[%s2188_s3] sm:$0xf] %vm1011_vm1, %v911_v49  ;;  %v752_v53 = vadd.f32 %v1613_v36, %v751_v51 }
  0x97   :  { %v861_v54 = vmax.f32 %v687_v50, 0.0  ;;  %v624_v55 = vadd.f32 %v1613_v36, %v623_v52  ;;  %v563_v56 = vpop.f32.mrf.mxu0 }
  0x98   :  { %v887_v57 = vmax.f32 %v752_v53, 0.0  ;;  %v564_v58 = vadd.f32 %v1613_v36, %v563_v56 }
  0x99   :  { %v961_v59 = vpack.c.bf16 %v861_v54, %v861_v54  ;;  %v836_v60 = vmax.f32 %v624_v55, 0.0 }
  0x9a   :  { %v987_v61 = vpack.c.bf16 %v887_v57, %v887_v57  ;;  %v812_v62 = vmax.f32 %v564_v58, 0.0 }
  0x9b   :  { %1062 = vst.msk [vmem:[%s2188_s3 + $0xc8] sm:$0xf] %vm1011_vm1, %v961_v59  ;;  %v936_v63 = vpack.c.bf16 %v836_v60, %v836_v60 }
  0x9c   :  { %v688_v0 = vpop.f32.mrf.mxu2  ;;  %1088 = vst.msk [vmem:[%s2188_s3 + $0x130] sm:$0xf] %vm1011_vm1, %v987_v61  ;;  %v912_v1 = vpack.c.bf16 %v812_v62, %v812_v62 }
  0x9d   :  { %1037 = vst.msk [vmem:[%s2188_s3 + $0x64] sm:$0xf] %vm1011_vm1, %v936_v63  ;;  %v689_v2 = vadd.f32 %v1613_v36, %v688_v0  ;;  %v753_v5 = vpop.f32.mrf.mxu3 }
  0x9e   :  { %v626_v6 = vpop.f32.mrf.mxu1  ;;  %1013 = vst.msk [vmem:[%s2188_s3 + $0x4] sm:$0xf] %vm1011_vm1, %v912_v1  ;;  %v754_v7 = vadd.f32 %v1613_v36, %v753_v5 }
  0x9f   :  { %v862_v10 = vmax.f32 %v689_v2, 0.0  ;;  %v627_v11 = vadd.f32 %v1613_v36, %v626_v6  ;;  %v566_v12 = vpop.f32.mrf.mxu0 }
  0xa0   :  { %v888_v13 = vmax.f32 %v754_v7, 0.0  ;;  %v567_v14 = vadd.f32 %v1613_v36, %v566_v12  ;;  %v1405_v12 = vld [vmem:[%s2187_s0 + $0xb8] sm:$0xff] }
  0xa1   :  { %v962_v15 = vpack.c.bf16 %v862_v10, %v862_v10  ;;  %v837_v16 = vmax.f32 %v627_v11, 0.0  ;;  %1353 = vmatmul.msk.bf16.gmra.mxu1 %vm401_vm0, %v1403_v3  ;;  %1366 = vmatmul.msk.bf16.gmra.mxu2 %vm401_vm0, %v1416_v4 }
  0xa2   :  { %v988_v17 = vpack.c.bf16 %v888_v13, %v888_v13  ;;  %1379 = vmatmul.msk.bf16.gmra.mxu3 %vm401_vm0, %v1429_v8  ;;  %v813_v18 = vmax.f32 %v567_v14, 0.0  ;;  %1341 = vmatmul.msk.bf16.gmra.mxu0 %vm401_vm0, %v1391_v9  ;;  %v1418_v13 = vld [vmem:[%s2187_s0 + $0x120] sm:$0xff] }
  0xa3   :  { %1063 = vst.msk [vmem:[%s2188_s3 + $0xcc] sm:$0xf] %vm1011_vm1, %v962_v15  ;;  %v937_v19 = vpack.c.bf16 %v837_v16, %v837_v16 }
  0xa4   :  { %v691_v20 = vpop.f32.mrf.mxu2  ;;  %1089 = vst.msk [vmem:[%s2188_s3 + $0x134] sm:$0xf] %vm1011_vm1, %v988_v17  ;;  %v913_v21 = vpack.c.bf16 %v813_v18, %v813_v18  ;;  %v1431_v17 = vld [vmem:[%s2187_s0 + $0x188] sm:$0xff]  ;;  %v1393_v18 = vld [vmem:[%s2187_s0 + $0x58] sm:$0xff] }
  0xa5   :  { %1038 = vst.msk [vmem:[%s2188_s3 + $0x68] sm:$0xf] %vm1011_vm1, %v937_v19  ;;  %v692_v22 = vadd.f32 %v1613_v36, %v691_v20  ;;  %v756_v23 = vpop.f32.mrf.mxu3 }
  0xa6   :  { %v628_v24 = vpop.f32.mrf.mxu1  ;;  %1014 = vst.msk [vmem:[%s2188_s3 + $0x8] sm:$0xf] %vm1011_vm1, %v913_v21  ;;  %v757_v25 = vadd.f32 %v1613_v36, %v756_v23 }
  0xa7   :  { %v863_v26 = vmax.f32 %v692_v22, 0.0  ;;  %v629_v27 = vadd.f32 %v1613_v36, %v628_v24  ;;  %v568_v28 = vpop.f32.mrf.mxu0 }
  0xa8   :  { %v889_v29 = vmax.f32 %v757_v25, 0.0  ;;  %v569_v30 = vadd.f32 %v1613_v36, %v568_v28 }
  0xa9   :  { %v963_v31 = vpack.c.bf16 %v863_v26, %v863_v26  ;;  %v838_v32 = vmax.f32 %v629_v27, 0.0 }
  0xaa   :  { %v989_v33 = vpack.c.bf16 %v889_v29, %v889_v29  ;;  %v814_v34 = vmax.f32 %v569_v30, 0.0 }
  0xab   :  { %1064 = vst.msk [vmem:[%s2188_s3 + $0xd0] sm:$0xf] %vm1011_vm1, %v963_v31  ;;  %v938_v35 = vpack.c.bf16 %v838_v32, %v838_v32 }
  0xac   :  { %v693_v37 = vpop.f32.mrf.mxu2  ;;  %1090 = vst.msk [vmem:[%s2188_s3 + $0x138] sm:$0xf] %vm1011_vm1, %v989_v33  ;;  %v914_v38 = vpack.c.bf16 %v814_v34, %v814_v34 }
  0xad   :  { %1039 = vst.msk [vmem:[%s2188_s3 + $0x6c] sm:$0xf] %vm1011_vm1, %v938_v35  ;;  %v694_v39 = vadd.f32 %v1613_v36, %v693_v37  ;;  %v758_v42 = vpop.f32.mrf.mxu3 }
  0xae   :  { %v631_v43 = vpop.f32.mrf.mxu1  ;;  %1015 = vst.msk [vmem:[%s2188_s3 + $0xc] sm:$0xf] %vm1011_vm1, %v914_v38  ;;  %v759_v44 = vadd.f32 %v1613_v36, %v758_v42 }
  0xaf   :  { %v864_v47 = vmax.f32 %v694_v39, 0.0  ;;  %v632_v48 = vadd.f32 %v1613_v36, %v631_v43  ;;  %v571_v49 = vpop.f32.mrf.mxu0 }
  0xb0   :  { %v890_v50 = vmax.f32 %v759_v44, 0.0  ;;  %v572_v51 = vadd.f32 %v1613_v36, %v571_v49  ;;  %v1406_v49 = vld [vmem:[%s2187_s0 + $0xc0] sm:$0xff] }
  0xb1   :  { %v964_v52 = vpack.c.bf16 %v864_v47, %v864_v47  ;;  %v839_v53 = vmax.f32 %v632_v48, 0.0  ;;  %1354 = vmatmul.msk.bf16.gmra.mxu1 %vm401_vm0, %v1404_v40  ;;  %1367 = vmatmul.msk.bf16.gmra.mxu2 %vm401_vm0, %v1417_v41 }
  0xb2   :  { %v990_v54 = vpack.c.bf16 %v890_v50, %v890_v50  ;;  %1380 = vmatmul.msk.bf16.gmra.mxu3 %vm401_vm0, %v1430_v45  ;;  %v815_v55 = vmax.f32 %v572_v51, 0.0  ;;  %1342 = vmatmul.msk.bf16.gmra.mxu0 %vm401_vm0, %v1392_v46  ;;  %v1419_v50 = vld [vmem:[%s2187_s0 + $0x128] sm:$0xff] }
  0xb3   :  { %1065 = vst.msk [vmem:[%s2188_s3 + $0xd4] sm:$0xf] %vm1011_vm1, %v964_v52  ;;  %v939_v56 = vpack.c.bf16 %v839_v53, %v839_v53 }
  0xb4   :  { %v696_v57 = vpop.f32.mrf.mxu2  ;;  %1091 = vst.msk [vmem:[%s2188_s3 + $0x13c] sm:$0xf] %vm1011_vm1, %v990_v54  ;;  %v915_v58 = vpack.c.bf16 %v815_v55, %v815_v55 }
  0xb5   :  { %1040 = vst.msk [vmem:[%s2188_s3 + $0x70] sm:$0xf] %vm1011_vm1, %v939_v56  ;;  %v697_v59 = vadd.f32 %v1613_v36, %v696_v57  ;;  %v761_v60 = vpop.f32.mrf.mxu3 }
  0xb6   :  { %v633_v61 = vpop.f32.mrf.mxu1  ;;  %1016 = vst.msk [vmem:[%s2188_s3 + $0x10] sm:$0xf] %vm1011_vm1, %v915_v58  ;;  %v762_v62 = vadd.f32 %v1613_v36, %v761_v60 }
  0xb7   :  { %v865_v63 = vmax.f32 %v697_v59, 0.0  ;;  %v634_v0 = vadd.f32 %v1613_v36, %v633_v61  ;;  %v573_v1 = vpop.f32.mrf.mxu0 }
  0xb8   :  { %v891_v2 = vmax.f32 %v762_v62, 0.0  ;;  %v574_v3 = vadd.f32 %v1613_v36, %v573_v1 }
  0xb9   :  { %v965_v4 = vpack.c.bf16 %v865_v63, %v865_v63  ;;  %v840_v5 = vmax.f32 %v634_v0, 0.0 }
  0xba   :  { %v991_v6 = vpack.c.bf16 %v891_v2, %v891_v2  ;;  %v816_v7 = vmax.f32 %v574_v3, 0.0 }
  0xbb   :  { %1066 = vst.msk [vmem:[%s2188_s3 + $0xd8] sm:$0xf] %vm1011_vm1, %v965_v4  ;;  %v940_v8 = vpack.c.bf16 %v840_v5, %v840_v5 }
  0xbc   :  { %v698_v9 = vpop.f32.mrf.mxu2  ;;  %1092 = vst.msk [vmem:[%s2188_s3 + $0x140] sm:$0xf] %vm1011_vm1, %v991_v6  ;;  %v916_v10 = vpack.c.bf16 %v816_v7, %v816_v7 }
  0xbd   :  { %1041 = vst.msk [vmem:[%s2188_s3 + $0x74] sm:$0xf] %vm1011_vm1, %v940_v8  ;;  %v699_v11 = vadd.f32 %v1613_v36, %v698_v9  ;;  %v763_v14 = vpop.f32.mrf.mxu3 }
  0xbe   :  { %v636_v15 = vpop.f32.mrf.mxu1  ;;  %1017 = vst.msk [vmem:[%s2188_s3 + $0x14] sm:$0xf] %vm1011_vm1, %v916_v10  ;;  %v764_v16 = vadd.f32 %v1613_v36, %v763_v14 }
  0xbf   :  { %v866_v19 = vmax.f32 %v699_v11, 0.0  ;;  %v637_v20 = vadd.f32 %v1613_v36, %v636_v15  ;;  %v576_v21 = vpop.f32.mrf.mxu0 }
  0xc0   :  { %v892_v22 = vmax.f32 %v764_v16, 0.0  ;;  %v577_v23 = vadd.f32 %v1613_v36, %v576_v21 }
  0xc1   :  { %v966_v24 = vpack.c.bf16 %v866_v19, %v866_v19  ;;  %v841_v25 = vmax.f32 %v637_v20, 0.0  ;;  %1355 = vmatmul.msk.bf16.gmra.mxu1 %vm401_vm0, %v1405_v12  ;;  %1368 = vmatmul.msk.bf16.gmra.mxu2 %vm401_vm0, %v1418_v13 }
  0xc2   :  { %v992_v26 = vpack.c.bf16 %v892_v22, %v892_v22  ;;  %1381 = vmatmul.msk.bf16.gmra.mxu3 %vm401_vm0, %v1431_v17  ;;  %v817_v27 = vmax.f32 %v577_v23, 0.0  ;;  %1343 = vmatmul.msk.bf16.gmra.mxu0 %vm401_vm0, %v1393_v18 }
  0xc3   :  { %1067 = vst.msk [vmem:[%s2188_s3 + $0xdc] sm:$0xf] %vm1011_vm1, %v966_v24  ;;  %v941_v28 = vpack.c.bf16 %v841_v25, %v841_v25 }
  0xc4   :  { %v701_v29 = vpop.f32.mrf.mxu2  ;;  %1093 = vst.msk [vmem:[%s2188_s3 + $0x144] sm:$0xf] %vm1011_vm1, %v992_v26  ;;  %v917_v30 = vpack.c.bf16 %v817_v27, %v817_v27 }
  0xc5   :  { %1042 = vst.msk [vmem:[%s2188_s3 + $0x78] sm:$0xf] %vm1011_vm1, %v941_v28  ;;  %v702_v31 = vadd.f32 %v1613_v36, %v701_v29  ;;  %v766_v32 = vpop.f32.mrf.mxu3 }
  0xc6   :  { %v638_v33 = vpop.f32.mrf.mxu1  ;;  %1018 = vst.msk [vmem:[%s2188_s3 + $0x18] sm:$0xf] %vm1011_vm1, %v917_v30  ;;  %v767_v34 = vadd.f32 %v1613_v36, %v766_v32 }
  0xc7   :  { %v867_v35 = vmax.f32 %v702_v31, 0.0  ;;  %v639_v37 = vadd.f32 %v1613_v36, %v638_v33  ;;  %v578_v38 = vpop.f32.mrf.mxu0 }
  0xc8   :  { %v893_v39 = vmax.f32 %v767_v34, 0.0  ;;  %v579_v40 = vadd.f32 %v1613_v36, %v578_v38 }
  0xc9   :  { %v967_v41 = vpack.c.bf16 %v867_v35, %v867_v35  ;;  %v842_v42 = vmax.f32 %v639_v37, 0.0 }
  0xca   :  { %v993_v43 = vpack.c.bf16 %v893_v39, %v893_v39  ;;  %v818_v44 = vmax.f32 %v579_v40, 0.0 }
  0xcb   :  { %1068 = vst.msk [vmem:[%s2188_s3 + $0xe0] sm:$0xf] %vm1011_vm1, %v967_v41  ;;  %v942_v45 = vpack.c.bf16 %v842_v42, %v842_v42 }
  0xcc   :  { %v703_v46 = vpop.f32.mrf.mxu2  ;;  %1094 = vst.msk [vmem:[%s2188_s3 + $0x148] sm:$0xf] %vm1011_vm1, %v993_v43  ;;  %v918_v47 = vpack.c.bf16 %v818_v44, %v818_v44 }
  0xcd   :  { %1043 = vst.msk [vmem:[%s2188_s3 + $0x7c] sm:$0xf] %vm1011_vm1, %v942_v45  ;;  %v704_v48 = vadd.f32 %v1613_v36, %v703_v46  ;;  %v768_v51 = vpop.f32.mrf.mxu3 }
  0xce   :  { %v641_v52 = vpop.f32.mrf.mxu1  ;;  %1019 = vst.msk [vmem:[%s2188_s3 + $0x1c] sm:$0xf] %vm1011_vm1, %v918_v47  ;;  %v769_v53 = vadd.f32 %v1613_v36, %v768_v51 }
  0xcf   :  { %v868_v54 = vmax.f32 %v704_v48, 0.0  ;;  %v642_v55 = vadd.f32 %v1613_v36, %v641_v52  ;;  %v581_v56 = vpop.f32.mrf.mxu0 }
  0xd0   :  { %v894_v57 = vmax.f32 %v769_v53, 0.0  ;;  %v582_v58 = vadd.f32 %v1613_v36, %v581_v56 }
  0xd1   :  { %v968_v59 = vpack.c.bf16 %v868_v54, %v868_v54  ;;  %v843_v60 = vmax.f32 %v642_v55, 0.0  ;;  %1356 = vmatmul.msk.bf16.gmra.mxu1 %vm401_vm0, %v1406_v49  ;;  %1369 = vmatmul.msk.bf16.gmra.mxu2 %vm401_vm0, %v1419_v50 }
  0xd2   :  { %v994_v61 = vpack.c.bf16 %v894_v57, %v894_v57  ;;  %v819_v62 = vmax.f32 %v582_v58, 0.0 }
  0xd3   :  { %1069 = vst.msk [vmem:[%s2188_s3 + $0xe4] sm:$0xf] %vm1011_vm1, %v968_v59  ;;  %v943_v63 = vpack.c.bf16 %v843_v60, %v843_v60 }
  0xd4   :  { %v706_v0 = vpop.f32.mrf.mxu2  ;;  %1095 = vst.msk [vmem:[%s2188_s3 + $0x14c] sm:$0xf] %vm1011_vm1, %v994_v61  ;;  %v919_v1 = vpack.c.bf16 %v819_v62, %v819_v62 }
  0xd5   :  { %1044 = vst.msk [vmem:[%s2188_s3 + $0x80] sm:$0xf] %vm1011_vm1, %v943_v63  ;;  %v707_v2 = vadd.f32 %v1613_v36, %v706_v0  ;;  %v771_v3 = vpop.f32.mrf.mxu3 }
  0xd6   :  { %v643_v4 = vpop.f32.mrf.mxu1  ;;  %1020 = vst.msk [vmem:[%s2188_s3 + $0x20] sm:$0xf] %vm1011_vm1, %v919_v1  ;;  %v772_v5 = vadd.f32 %v1613_v36, %v771_v3 }
  0xd7   :  { %v869_v6 = vmax.f32 %v707_v2, 0.0  ;;  %v644_v7 = vadd.f32 %v1613_v36, %v643_v4  ;;  %v583_v8 = vpop.f32.mrf.mxu0 }
  0xd8   :  { %v895_v9 = vmax.f32 %v772_v5, 0.0  ;;  %v584_v10 = vadd.f32 %v1613_v36, %v583_v8 }
  0xd9   :  { %v969_v11 = vpack.c.bf16 %v869_v6, %v869_v6  ;;  %v844_v12 = vmax.f32 %v644_v7, 0.0 }
  0xda   :  { %v995_v13 = vpack.c.bf16 %v895_v9, %v895_v9  ;;  %v820_v14 = vmax.f32 %v584_v10, 0.0 }
  0xdb   :  { %1070 = vst.msk [vmem:[%s2188_s3 + $0xe8] sm:$0xf] %vm1011_vm1, %v969_v11  ;;  %v944_v15 = vpack.c.bf16 %v844_v12, %v844_v12 }
  0xdc   :  { %v708_v16 = vpop.f32.mrf.mxu2  ;;  %1096 = vst.msk [vmem:[%s2188_s3 + $0x150] sm:$0xf] %vm1011_vm1, %v995_v13  ;;  %v920_v17 = vpack.c.bf16 %v820_v14, %v820_v14 }
  0xdd   :  { %1045 = vst.msk [vmem:[%s2188_s3 + $0x84] sm:$0xf] %vm1011_vm1, %v944_v15  ;;  %v709_v18 = vadd.f32 %v1613_v36, %v708_v16  ;;  %v773_v19 = vpop.f32.mrf.mxu3 }
  0xde   :  { %v646_v20 = vpop.f32.mrf.mxu1  ;;  %1021 = vst.msk [vmem:[%s2188_s3 + $0x24] sm:$0xf] %vm1011_vm1, %v920_v17  ;;  %v774_v21 = vadd.f32 %v1613_v36, %v773_v19 }
  0xdf   :  { %v870_v22 = vmax.f32 %v709_v18, 0.0  ;;  %v647_v23 = vadd.f32 %v1613_v36, %v646_v20  ;;  %v586_v24 = vpop.f32.mrf.mxu0 }
  0xe0   :  { %v896_v25 = vmax.f32 %v774_v21, 0.0  ;;  %v587_v26 = vadd.f32 %v1613_v36, %v586_v24 }
  0xe1   :  { %v970_v27 = vpack.c.bf16 %v870_v22, %v870_v22  ;;  %v845_v28 = vmax.f32 %v647_v23, 0.0 }
  0xe2   :  { %v996_v29 = vpack.c.bf16 %v896_v25, %v896_v25  ;;  %v821_v30 = vmax.f32 %v587_v26, 0.0 }
  0xe3   :  { %1071 = vst.msk [vmem:[%s2188_s3 + $0xec] sm:$0xf] %vm1011_vm1, %v970_v27  ;;  %v945_v31 = vpack.c.bf16 %v845_v28, %v845_v28 }
  0xe4   :  { %v711_v32 = vpop.f32.mrf.mxu2  ;;  %1097 = vst.msk [vmem:[%s2188_s3 + $0x154] sm:$0xf] %vm1011_vm1, %v996_v29  ;;  %v921_v33 = vpack.c.bf16 %v821_v30, %v821_v30 }
  0xe5   :  { %1046 = vst.msk [vmem:[%s2188_s3 + $0x88] sm:$0xf] %vm1011_vm1, %v945_v31  ;;  %v712_v34 = vadd.f32 %v1613_v36, %v711_v32  ;;  %v776_v35 = vpop.f32.mrf.mxu3 }
  0xe6   :  { %v648_v37 = vpop.f32.mrf.mxu1  ;;  %1022 = vst.msk [vmem:[%s2188_s3 + $0x28] sm:$0xf] %vm1011_vm1, %v921_v33  ;;  %v777_v38 = vadd.f32 %v1613_v36, %v776_v35 }
  0xe7   :  { %v871_v39 = vmax.f32 %v712_v34, 0.0  ;;  %v649_v40 = vadd.f32 %v1613_v36, %v648_v37  ;;  %v588_v41 = vpop.f32.mrf.mxu0 }
  0xe8   :  { %v897_v42 = vmax.f32 %v777_v38, 0.0  ;;  %v589_v43 = vadd.f32 %v1613_v36, %v588_v41 }
  0xe9   :  { %v971_v44 = vpack.c.bf16 %v871_v39, %v871_v39  ;;  %v846_v45 = vmax.f32 %v649_v40, 0.0 }
  0xea   :  { %v997_v46 = vpack.c.bf16 %v897_v42, %v897_v42  ;;  %v822_v47 = vmax.f32 %v589_v43, 0.0 }
  0xeb   :  { %1072 = vst.msk [vmem:[%s2188_s3 + $0xf0] sm:$0xf] %vm1011_vm1, %v971_v44  ;;  %v946_v48 = vpack.c.bf16 %v846_v45, %v846_v45 }
  0xec   :  { %v713_v49 = vpop.f32.mrf.mxu2  ;;  %1098 = vst.msk [vmem:[%s2188_s3 + $0x158] sm:$0xf] %vm1011_vm1, %v997_v46  ;;  %v922_v50 = vpack.c.bf16 %v822_v47, %v822_v47 }
  0xed   :  { %1047 = vst.msk [vmem:[%s2188_s3 + $0x8c] sm:$0xf] %vm1011_vm1, %v946_v48  ;;  %v714_v51 = vadd.f32 %v1613_v36, %v713_v49  ;;  %v778_v52 = vpop.f32.mrf.mxu3 }
  0xee   :  { %v651_v53 = vpop.f32.mrf.mxu1  ;;  %1023 = vst.msk [vmem:[%s2188_s3 + $0x2c] sm:$0xf] %vm1011_vm1, %v922_v50  ;;  %v779_v54 = vadd.f32 %v1613_v36, %v778_v52 }
  0xef   :  { %v872_v55 = vmax.f32 %v714_v51, 0.0  ;;  %v652_v56 = vadd.f32 %v1613_v36, %v651_v53  ;;  %v591_v57 = vpop.f32.mrf.mxu0 }
  0xf0   :  { %v898_v58 = vmax.f32 %v779_v54, 0.0  ;;  %v592_v59 = vadd.f32 %v1613_v36, %v591_v57 }
  0xf1   :  { %v972_v60 = vpack.c.bf16 %v872_v55, %v872_v55  ;;  %v847_v61 = vmax.f32 %v652_v56, 0.0 }
  0xf2   :  { %v998_v62 = vpack.c.bf16 %v898_v58, %v898_v58  ;;  %v823_v63 = vmax.f32 %v592_v59, 0.0 }
  0xf3   :  { %1073 = vst.msk [vmem:[%s2188_s3 + $0xf4] sm:$0xf] %vm1011_vm1, %v972_v60  ;;  %v947_v0 = vpack.c.bf16 %v847_v61, %v847_v61 }
  0xf4   :  { %v716_v1 = vpop.f32.mrf.mxu2  ;;  %1099 = vst.msk [vmem:[%s2188_s3 + $0x15c] sm:$0xf] %vm1011_vm1, %v998_v62  ;;  %v923_v2 = vpack.c.bf16 %v823_v63, %v823_v63 }
  0xf5   :  { %1048 = vst.msk [vmem:[%s2188_s3 + $0x90] sm:$0xf] %vm1011_vm1, %v947_v0  ;;  %v717_v3 = vadd.f32 %v1613_v36, %v716_v1  ;;  %v781_v4 = vpop.f32.mrf.mxu3 }
  0xf6   :  { %v653_v5 = vpop.f32.mrf.mxu1  ;;  %1024 = vst.msk [vmem:[%s2188_s3 + $0x30] sm:$0xf] %vm1011_vm1, %v923_v2  ;;  %v782_v6 = vadd.f32 %v1613_v36, %v781_v4 }
  0xf7   :  { %v873_v7 = vmax.f32 %v717_v3, 0.0  ;;  %v654_v8 = vadd.f32 %v1613_v36, %v653_v5  ;;  %v593_v9 = vpop.f32.mrf.mxu0 }
  0xf8   :  { %v899_v10 = vmax.f32 %v782_v6, 0.0  ;;  %v594_v11 = vadd.f32 %v1613_v36, %v593_v9 }
  0xf9   :  { %v973_v12 = vpack.c.bf16 %v873_v7, %v873_v7  ;;  %v848_v13 = vmax.f32 %v654_v8, 0.0 }
  0xfa   :  { %v999_v14 = vpack.c.bf16 %v899_v10, %v899_v10  ;;  %v824_v15 = vmax.f32 %v594_v11, 0.0 }
  0xfb   :  { %1074 = vst.msk [vmem:[%s2188_s3 + $0xf8] sm:$0xf] %vm1011_vm1, %v973_v12  ;;  %v948_v16 = vpack.c.bf16 %v848_v13, %v848_v13 }
  0xfc   :  { %v718_v17 = vpop.f32.mrf.mxu2  ;;  %1100 = vst.msk [vmem:[%s2188_s3 + $0x160] sm:$0xf] %vm1011_vm1, %v999_v14  ;;  %v924_v18 = vpack.c.bf16 %v824_v15, %v824_v15 }
  0xfd   :  { %1049 = vst.msk [vmem:[%s2188_s3 + $0x94] sm:$0xf] %vm1011_vm1, %v948_v16  ;;  %v719_v19 = vadd.f32 %v1613_v36, %v718_v17  ;;  %v783_v20 = vpop.f32.mrf.mxu3 }
  0xfe   :  { %v656_v21 = vpop.f32.mrf.mxu1  ;;  %1025 = vst.msk [vmem:[%s2188_s3 + $0x34] sm:$0xf] %vm1011_vm1, %v924_v18  ;;  %v784_v22 = vadd.f32 %v1613_v36, %v783_v20 }
  0xff   :  { %v874_v23 = vmax.f32 %v719_v19, 0.0  ;;  %v657_v24 = vadd.f32 %v1613_v36, %v656_v21  ;;  %v596_v25 = vpop.f32.mrf.mxu0 }
 0x100   :  { %v900_v26 = vmax.f32 %v784_v22, 0.0  ;;  %v597_v27 = vadd.f32 %v1613_v36, %v596_v25 }
 0x101   :  { %v974_v28 = vpack.c.bf16 %v874_v23, %v874_v23  ;;  %v849_v29 = vmax.f32 %v657_v24, 0.0 }
 0x102   :  { %v1000_v30 = vpack.c.bf16 %v900_v26, %v900_v26  ;;  %v825_v31 = vmax.f32 %v597_v27, 0.0 }
 0x103   :  { %1075 = vst.msk [vmem:[%s2188_s3 + $0xfc] sm:$0xf] %vm1011_vm1, %v974_v28  ;;  %v949_v32 = vpack.c.bf16 %v849_v29, %v849_v29 }
 0x104   :  { %v721_v33 = vpop.f32.mrf.mxu2  ;;  %1101 = vst.msk [vmem:[%s2188_s3 + $0x164] sm:$0xf] %vm1011_vm1, %v1000_v30  ;;  %v925_v34 = vpack.c.bf16 %v825_v31, %v825_v31 }
 0x105   :  { %1050 = vst.msk [vmem:[%s2188_s3 + $0x98] sm:$0xf] %vm1011_vm1, %v949_v32  ;;  %v722_v35 = vadd.f32 %v1613_v36, %v721_v33  ;;  %v786_v37 = vpop.f32.mrf.mxu3 }
 0x106   :  { %v658_v38 = vpop.f32.mrf.mxu1  ;;  %1026 = vst.msk [vmem:[%s2188_s3 + $0x38] sm:$0xf] %vm1011_vm1, %v925_v34  ;;  %v787_v39 = vadd.f32 %v1613_v36, %v786_v37 }
 0x107   :  { %v875_v40 = vmax.f32 %v722_v35, 0.0  ;;  %v659_v41 = vadd.f32 %v1613_v36, %v658_v38  ;;  %v598_v42 = vpop.f32.mrf.mxu0 }
 0x108   :  { %v901_v43 = vmax.f32 %v787_v39, 0.0  ;;  %v599_v44 = vadd.f32 %v1613_v36, %v598_v42 }
 0x109   :  { %v975_v45 = vpack.c.bf16 %v875_v40, %v875_v40  ;;  %v850_v46 = vmax.f32 %v659_v41, 0.0 }
 0x10a   :  { %v1001_v47 = vpack.c.bf16 %v901_v43, %v901_v43  ;;  %v826_v48 = vmax.f32 %v599_v44, 0.0 }
 0x10b   :  { %1076 = vst.msk [vmem:[%s2188_s3 + $0x100] sm:$0xf] %vm1011_vm1, %v975_v45  ;;  %v950_v49 = vpack.c.bf16 %v850_v46, %v850_v46 }
 0x10c   :  { %v723_v50 = vpop.f32.mrf.mxu2  ;;  %1102 = vst.msk [vmem:[%s2188_s3 + $0x168] sm:$0xf] %vm1011_vm1, %v1001_v47  ;;  %v926_v51 = vpack.c.bf16 %v826_v48, %v826_v48 }
 0x10d   :  { %1051 = vst.msk [vmem:[%s2188_s3 + $0x9c] sm:$0xf] %vm1011_vm1, %v950_v49  ;;  %v724_v52 = vadd.f32 %v1613_v36, %v723_v50  ;;  %v788_v53 = vpop.f32.mrf.mxu3 }
 0x10e   :  { %v661_v54 = vpop.f32.mrf.mxu1  ;;  %1027 = vst.msk [vmem:[%s2188_s3 + $0x3c] sm:$0xf] %vm1011_vm1, %v926_v51  ;;  %v789_v55 = vadd.f32 %v1613_v36, %v788_v53 }
 0x10f   :  { %v876_v56 = vmax.f32 %v724_v52, 0.0  ;;  %v662_v57 = vadd.f32 %v1613_v36, %v661_v54  ;;  %v601_v58 = vpop.f32.mrf.mxu0 }
 0x110   :  { %v902_v59 = vmax.f32 %v789_v55, 0.0  ;;  %v602_v60 = vadd.f32 %v1613_v36, %v601_v58 }
 0x111   :  { %v976_v61 = vpack.c.bf16 %v876_v56, %v876_v56  ;;  %v851_v62 = vmax.f32 %v662_v57, 0.0 }
 0x112   :  { %v1002_v63 = vpack.c.bf16 %v902_v59, %v902_v59  ;;  %v827_v0 = vmax.f32 %v602_v60, 0.0 }
 0x113   :  { %1077 = vst.msk [vmem:[%s2188_s3 + $0x104] sm:$0xf] %vm1011_vm1, %v976_v61  ;;  %v951_v1 = vpack.c.bf16 %v851_v62, %v851_v62 }
 0x114   :  { %v726_v2 = vpop.f32.mrf.mxu2  ;;  %1103 = vst.msk [vmem:[%s2188_s3 + $0x16c] sm:$0xf] %vm1011_vm1, %v1002_v63  ;;  %v927_v3 = vpack.c.bf16 %v827_v0, %v827_v0 }
 0x115   :  { %1052 = vst.msk [vmem:[%s2188_s3 + $0xa0] sm:$0xf] %vm1011_vm1, %v951_v1  ;;  %v727_v4 = vadd.f32 %v1613_v36, %v726_v2  ;;  %v791_v5 = vpop.f32.mrf.mxu3 }
 0x116   :  { %v663_v6 = vpop.f32.mrf.mxu1  ;;  %1028 = vst.msk [vmem:[%s2188_s3 + $0x40] sm:$0xf] %vm1011_vm1, %v927_v3  ;;  %v792_v7 = vadd.f32 %v1613_v36, %v791_v5 }
 0x117   :  { %v877_v8 = vmax.f32 %v727_v4, 0.0  ;;  %v664_v9 = vadd.f32 %v1613_v36, %v663_v6  ;;  %v603_v10 = vpop.f32.mrf.mxu0 }
 0x118   :  { %v903_v11 = vmax.f32 %v792_v7, 0.0  ;;  %v604_v12 = vadd.f32 %v1613_v36, %v603_v10 }
 0x119   :  { %v977_v13 = vpack.c.bf16 %v877_v8, %v877_v8  ;;  %v852_v14 = vmax.f32 %v664_v9, 0.0 }
 0x11a   :  { %v1003_v15 = vpack.c.bf16 %v903_v11, %v903_v11  ;;  %v828_v16 = vmax.f32 %v604_v12, 0.0 }
 0x11b   :  { %1078 = vst.msk [vmem:[%s2188_s3 + $0x108] sm:$0xf] %vm1011_vm1, %v977_v13  ;;  %v952_v17 = vpack.c.bf16 %v852_v14, %v852_v14 }
 0x11c   :  { %v728_v18 = vpop.f32.mrf.mxu2  ;;  %1104 = vst.msk [vmem:[%s2188_s3 + $0x170] sm:$0xf] %vm1011_vm1, %v1003_v15  ;;  %v928_v19 = vpack.c.bf16 %v828_v16, %v828_v16 }
 0x11d   :  { %1053 = vst.msk [vmem:[%s2188_s3 + $0xa4] sm:$0xf] %vm1011_vm1, %v952_v17  ;;  %v729_v20 = vadd.f32 %v1613_v36, %v728_v18  ;;  %v793_v21 = vpop.f32.mrf.mxu3 }
 0x11e   :  { %v666_v22 = vpop.f32.mrf.mxu1  ;;  %1029 = vst.msk [vmem:[%s2188_s3 + $0x44] sm:$0xf] %vm1011_vm1, %v928_v19  ;;  %v794_v23 = vadd.f32 %v1613_v36, %v793_v21 }
 0x11f   :  { %v878_v24 = vmax.f32 %v729_v20, 0.0  ;;  %v667_v25 = vadd.f32 %v1613_v36, %v666_v22  ;;  %v606_v26 = vpop.f32.mrf.mxu0 }
 0x120   :  { %v904_v27 = vmax.f32 %v794_v23, 0.0  ;;  %v607_v28 = vadd.f32 %v1613_v36, %v606_v26 }
 0x121   :  { %v978_v29 = vpack.c.bf16 %v878_v24, %v878_v24  ;;  %v853_v30 = vmax.f32 %v667_v25, 0.0 }
 0x122   :  { %v1004_v31 = vpack.c.bf16 %v904_v27, %v904_v27  ;;  %v829_v32 = vmax.f32 %v607_v28, 0.0 }
 0x123   :  { %1079 = vst.msk [vmem:[%s2188_s3 + $0x10c] sm:$0xf] %vm1011_vm1, %v978_v29  ;;  %v953_v33 = vpack.c.bf16 %v853_v30, %v853_v30 }
 0x124   :  { %v731_v34 = vpop.f32.mrf.mxu2  ;;  %1105 = vst.msk [vmem:[%s2188_s3 + $0x174] sm:$0xf] %vm1011_vm1, %v1004_v31  ;;  %v929_v35 = vpack.c.bf16 %v829_v32, %v829_v32 }
 0x125   :  { %1054 = vst.msk [vmem:[%s2188_s3 + $0xa8] sm:$0xf] %vm1011_vm1, %v953_v33  ;;  %v732_v37 = vadd.f32 %v1613_v36, %v731_v34  ;;  %v796_v38 = vpop.f32.mrf.mxu3 }
 0x126   :  { %v668_v39 = vpop.f32.mrf.mxu1  ;;  %1030 = vst.msk [vmem:[%s2188_s3 + $0x48] sm:$0xf] %vm1011_vm1, %v929_v35  ;;  %v797_v40 = vadd.f32 %v1613_v36, %v796_v38 }
 0x127   :  { %v879_v41 = vmax.f32 %v732_v37, 0.0  ;;  %v669_v42 = vadd.f32 %v1613_v36, %v668_v39  ;;  %v608_v43 = vpop.f32.mrf.mxu0 }
 0x128   :  { %v905_v44 = vmax.f32 %v797_v40, 0.0  ;;  %v609_v45 = vadd.f32 %v1613_v36, %v608_v43 }
 0x129   :  { %v979_v46 = vpack.c.bf16 %v879_v41, %v879_v41  ;;  %v854_v47 = vmax.f32 %v669_v42, 0.0 }
 0x12a   :  { %v1005_v48 = vpack.c.bf16 %v905_v44, %v905_v44  ;;  %v830_v49 = vmax.f32 %v609_v45, 0.0 }
 0x12b   :  { %1080 = vst.msk [vmem:[%s2188_s3 + $0x110] sm:$0xf] %vm1011_vm1, %v979_v46  ;;  %v954_v50 = vpack.c.bf16 %v854_v47, %v854_v47 }
 0x12c   :  { %v733_v51 = vpop.f32.mrf.mxu2  ;;  %1106 = vst.msk [vmem:[%s2188_s3 + $0x178] sm:$0xf] %vm1011_vm1, %v1005_v48  ;;  %v930_v52 = vpack.c.bf16 %v830_v49, %v830_v49 }
 0x12d   :  { %1055 = vst.msk [vmem:[%s2188_s3 + $0xac] sm:$0xf] %vm1011_vm1, %v954_v50  ;;  %v734_v53 = vadd.f32 %v1613_v36, %v733_v51  ;;  %v798_v54 = vpop.f32.mrf.mxu3 }
 0x12e   :  { %v671_v55 = vpop.f32.mrf.mxu1  ;;  %1031 = vst.msk [vmem:[%s2188_s3 + $0x4c] sm:$0xf] %vm1011_vm1, %v930_v52  ;;  %v799_v56 = vadd.f32 %v1613_v36, %v798_v54 }
 0x12f   :  { %v880_v57 = vmax.f32 %v734_v53, 0.0  ;;  %v672_v58 = vadd.f32 %v1613_v36, %v671_v55  ;;  %v611_v59 = vpop.f32.mrf.mxu0 }
 0x130   :  { %v906_v60 = vmax.f32 %v799_v56, 0.0  ;;  %v612_v61 = vadd.f32 %v1613_v36, %v611_v59 }
 0x131   :  { %v980_v62 = vpack.c.bf16 %v880_v57, %v880_v57  ;;  %v855_v63 = vmax.f32 %v672_v58, 0.0  ;;  %v1449_v57 = vld [vmem:[%s2186_s2] ss:$0 sm:$0xff] }
 0x132   :  { %v1006_v0 = vpack.c.bf16 %v906_v60, %v906_v60  ;;  %v831_v1 = vmax.f32 %v612_v61, 0.0 }
 0x133   :  { %1081 = vst.msk [vmem:[%s2188_s3 + $0x114] sm:$0xf] %vm1011_vm1, %v980_v62  ;;  %v955_v2 = vpack.c.bf16 %v855_v63, %v855_v63 }
 0x134   :  { %v736_v3 = vpop.f32.mrf.mxu2  ;;  %1107 = vst.msk [vmem:[%s2188_s3 + $0x17c] sm:$0xf] %vm1011_vm1, %v1006_v0  ;;  %v931_v4 = vpack.c.bf16 %v831_v1, %v831_v1 }
 0x135   :  { %1056 = vst.msk [vmem:[%s2188_s3 + $0xb0] sm:$0xf] %vm1011_vm1, %v955_v2  ;;  %v737_v5 = vadd.f32 %v1613_v36, %v736_v3  ;;  %v801_v6 = vpop.f32.mrf.mxu3 }
 0x136   :  { %v673_v7 = vpop.f32.mrf.mxu1  ;;  %1032 = vst.msk [vmem:[%s2188_s3 + $0x50] sm:$0xf] %vm1011_vm1, %v931_v4  ;;  %v802_v8 = vadd.f32 %v1613_v36, %v801_v6 }
 0x137   :  { %v881_v9 = vmax.f32 %v737_v5, 0.0  ;;  %v674_v10 = vadd.f32 %v1613_v36, %v673_v7  ;;  %v613_v11 = vpop.f32.mrf.mxu0 }
 0x138   :  { %v907_v12 = vmax.f32 %v802_v8, 0.0  ;;  %v614_v13 = vadd.f32 %v1613_v36, %v613_v11 }
 0x139   :  { %v981_v14 = vpack.c.bf16 %v881_v9, %v881_v9  ;;  %v856_v15 = vmax.f32 %v674_v10, 0.0 }
 0x13a   :  { %v1007_v16 = vpack.c.bf16 %v907_v12, %v907_v12  ;;  %v832_v17 = vmax.f32 %v614_v13, 0.0 }
 0x13b   :  { %1082 = vst.msk [vmem:[%s2188_s3 + $0x118] sm:$0xf] %vm1011_vm1, %v981_v14  ;;  %v956_v18 = vpack.c.bf16 %v856_v15, %v856_v15 }
 0x13c   :  { %v738_v19 = vpop.f32.mrf.mxu2  ;;  %1108 = vst.msk [vmem:[%s2188_s3 + $0x180] sm:$0xf] %vm1011_vm1, %v1007_v16  ;;  %v932_v20 = vpack.c.bf16 %v832_v17, %v832_v17 }
 0x13d   :  { %1057 = vst.msk [vmem:[%s2188_s3 + $0xb4] sm:$0xf] %vm1011_vm1, %v956_v18  ;;  %v739_v21 = vadd.f32 %v1613_v36, %v738_v19  ;;  %v803_v22 = vpop.f32.mrf.mxu3 }
 0x13e   :  { %v676_v23 = vpop.f32.mrf.mxu1  ;;  %1033 = vst.msk [vmem:[%s2188_s3 + $0x54] sm:$0xf] %vm1011_vm1, %v932_v20  ;;  %v804_v24 = vadd.f32 %v1613_v36, %v803_v22 }
 0x13f   :  { %v882_v25 = vmax.f32 %v739_v21, 0.0  ;;  %v677_v26 = vadd.f32 %v1613_v36, %v676_v23  ;;  %v616_v27 = vpop.f32.mrf.mxu0 }
 0x140   :  { %v908_v28 = vmax.f32 %v804_v24, 0.0  ;;  %v617_v29 = vadd.f32 %v1613_v36, %v616_v27 }
 0x141   :  { %v982_v30 = vpack.c.bf16 %v882_v25, %v882_v25  ;;  %v857_v31 = vmax.f32 %v677_v26, 0.0 }
 0x142   :  { %v1008_v32 = vpack.c.bf16 %v908_v28, %v908_v28  ;;  %v833_v33 = vmax.f32 %v617_v29, 0.0 }
 0x143   :  { %1083 = vst.msk [vmem:[%s2188_s3 + $0x11c] sm:$0xf] %vm1011_vm1, %v982_v30  ;;  %v957_v34 = vpack.c.bf16 %v857_v31, %v857_v31 }
 0x144   :  { %v741_v35 = vpop.f32.mrf.mxu2  ;;  %1109 = vst.msk [vmem:[%s2188_s3 + $0x184] sm:$0xf] %vm1011_vm1, %v1008_v32  ;;  %v933_v37 = vpack.c.bf16 %v833_v33, %v833_v33 }
 0x145   :  { %1058 = vst.msk [vmem:[%s2188_s3 + $0xb8] sm:$0xf] %vm1011_vm1, %v957_v34  ;;  %v742_v38 = vadd.f32 %v1613_v36, %v741_v35  ;;  %v806_v39 = vpop.f32.mrf.mxu3 }
 0x146   :  { %v678_v40 = vpop.f32.mrf.mxu1  ;;  %1034 = vst.msk [vmem:[%s2188_s3 + $0x58] sm:$0xf] %vm1011_vm1, %v933_v37  ;;  %v807_v41 = vadd.f32 %v1613_v36, %v806_v39 }
 0x147   :  { %v883_v42 = vmax.f32 %v742_v38, 0.0  ;;  %v679_v43 = vadd.f32 %v1613_v36, %v678_v40  ;;  %v618_v44 = vpop.f32.mrf.mxu0 }
 0x148   :  { %v909_v45 = vmax.f32 %v807_v41, 0.0  ;;  %v619_v46 = vadd.f32 %v1613_v36, %v618_v44 }
 0x149   :  { %v983_v47 = vpack.c.bf16 %v883_v42, %v883_v42  ;;  %v858_v48 = vmax.f32 %v679_v43, 0.0 }
 0x14a   :  { %v1009_v49 = vpack.c.bf16 %v909_v45, %v909_v45  ;;  %v834_v50 = vmax.f32 %v619_v46, 0.0 }
 0x14b   :  { %1084 = vst.msk [vmem:[%s2188_s3 + $0x120] sm:$0xf] %vm1011_vm1, %v983_v47  ;;  %v958_v51 = vpack.c.bf16 %v858_v48, %v858_v48 }
 0x14c   :  { %v743_v52 = vpop.f32.mrf.mxu2  ;;  %1110 = vst.msk [vmem:[%s2188_s3 + $0x188] sm:$0xf] %vm1011_vm1, %v1009_v49  ;;  %v934_v53 = vpack.c.bf16 %v834_v50, %v834_v50 }
 0x14d   :  { %1059 = vst.msk [vmem:[%s2188_s3 + $0xbc] sm:$0xf] %vm1011_vm1, %v958_v51  ;;  %v744_v54 = vadd.f32 %v1613_v36, %v743_v52  ;;  %v808_v55 = vpop.f32.mrf.mxu3 }
 0x14e   :  { %v681_v56 = vpop.f32.mrf.mxu1  ;;  %1035 = vst.msk [vmem:[%s2188_s3 + $0x5c] sm:$0xf] %vm1011_vm1, %v934_v53  ;;  %v809_v58 = vadd.f32 %v1449_v57, %v808_v55 }
 0x14f   :  { %v884_v59 = vmax.f32 %v744_v54, 0.0  ;;  %v682_v60 = vadd.f32 %v1449_v57, %v681_v56 }
 0x150   :  { %v910_v61 = vmax.f32 %v809_v58, 0.0 }
 0x151   :  { %v984_v62 = vpack.c.bf16 %v884_v59, %v884_v59  ;;  %v859_v63 = vmax.f32 %v682_v60, 0.0 }
 0x152   :  { %v1010_v0 = vpack.c.bf16 %v910_v61, %v910_v61 }
 0x153   :  { %1085 = vst.msk [vmem:[%s2188_s3 + $0x124] sm:$0xf] %vm1011_vm1, %v984_v62  ;;  %v959_v36 = vpack.c.bf16 %v859_v63, %v859_v63 }
 0x154   :  { %v746_v1 = vpop.f32.mrf.mxu2  ;;  %1111 = vst.msk [vmem:[%s2188_s3 + $0x18c] sm:$0xf] %vm1011_vm1, %v1010_v0 }
 0x155   :  { %1060 = vst.msk [vmem:[%s2188_s3 + $0xc0] sm:$0xf] %vm1011_vm1, %v959_v36  ;;  %v747_v2 = vadd.f32 %v1449_v57, %v746_v1 }
 0x156   :  { %v683_v3 = vpop.f32.mrf.mxu1 }
 0x157   :  { %v885_v4 = vmax.f32 %v747_v2, 0.0  ;;  %v684_v5 = vadd.f32 %v1449_v57, %v683_v3 }
 0x159   :  { %v985_v6 = vpack.c.bf16 %v885_v4, %v885_v4  ;;  %v860_v7 = vmax.f32 %v684_v5, 0.0 }
 0x15b   :  { %1086 = vst.msk [vmem:[%s2188_s3 + $0x128] sm:$0xf] %vm1011_vm1, %v985_v6  ;;  %v960_v8 = vpack.c.bf16 %v860_v7, %v860_v7 }
 0x15c   :  { %v748_v9 = vpop.f32.mrf.mxu2 }
 0x15d   :  { %1061 = vst.msk [vmem:[%s2188_s3 + $0xc4] sm:$0xf] %vm1011_vm1, %v960_v8  ;;  %v749_v10 = vadd.f32 %v1449_v57, %v748_v9 }
 0x15f   :  { %v886_v11 = vmax.f32 %v749_v10, 0.0 }
 0x161   :  { %v986_v12 = vpack.c.bf16 %v886_v11, %v886_v11 }
 0x163   :  { %1087 = vst.msk [vmem:[%s2188_s3 + $0x12c] sm:$0xf] %vm1011_vm1, %v986_v12 }

// kernel: dqn_forward.5
= control target key start
LH: loop header
LB: loop body
LE: loop exit
PB: predicated region body
PF: predicated region fallthrough
CT: control target
= control target key end

     0   :  { %vm838_vm0 = vcmask 519168   ;;  %s1741_s1 = inlined_call_operand.vmem [shape: bf16[512,64], index: 1, kind: input, shape index: {}]   ;;  %s1742_s2 = inlined_call_operand.vmem [shape: f32[1,64], index: 2, kind: input, shape index: {}]   ;;  %s1743_s0 = inlined_call_operand.vmem [shape: bf16[176,512], index: 0, kind: input, shape index: {}]   ;;  %s1744_s3 = inlined_call_operand.vmem [shape: bf16[176,64], index: 3, kind: output, shape index: {}]  }
   0x1   :  { %v1220_v0 = vld [vmem:[%s1741_s1 + $0x38] sm:$0xff]  ;;  %v1219_v4 = vld [vmem:[%s1741_s1 + $0x30] sm:$0xff]  ;;  %v1218_v8 = vld [vmem:[%s1741_s1 + $0x28] sm:$0xff] }
   0x2   :  { %v1228_v1 = vld [vmem:[%s1741_s1 + $0x78] sm:$0xff]  ;;  %538 = vmatpush.bf16.msra.mxu0 %v1220_v0  ;;  %v1227_v5 = vld [vmem:[%s1741_s1 + $0x70] sm:$0xff]  ;;  %v1226_v9 = vld [vmem:[%s1741_s1 + $0x68] sm:$0xff] }
   0x3   :  { %v1236_v2 = vld [vmem:[%s1741_s1 + $0xb8] sm:$0xff]  ;;  %602 = vmatpush.bf16.msra.mxu1 %v1228_v1  ;;  %v1235_v6 = vld [vmem:[%s1741_s1 + $0xb0] sm:$0xff]  ;;  %v1234_v10 = vld [vmem:[%s1741_s1 + $0xa8] sm:$0xff] }
   0x4   :  { %v1244_v3 = vld [vmem:[%s1741_s1 + $0xf8] sm:$0xff]  ;;  %666 = vmatpush.bf16.msra.mxu2 %v1236_v2  ;;  %v1243_v7 = vld [vmem:[%s1741_s1 + $0xf0] sm:$0xff]  ;;  %v1242_v11 = vld [vmem:[%s1741_s1 + $0xe8] sm:$0xff] }
   0x5   :  { %730 = vmatpush.bf16.msra.mxu3 %v1244_v3  ;;  %v1217_v12 = vld [vmem:[%s1741_s1 + $0x20] sm:$0xff]  ;;  %v1216_v16 = vld [vmem:[%s1741_s1 + $0x18] sm:$0xff]  ;;  %v1215_v20 = vld [vmem:[%s1741_s1 + $0x10] sm:$0xff] }
   0x6   :  { %539 = vmatpush.bf16.msra.mxu0 %v1219_v4  ;;  %v1225_v13 = vld [vmem:[%s1741_s1 + $0x60] sm:$0xff]  ;;  %v1224_v17 = vld [vmem:[%s1741_s1 + $0x58] sm:$0xff]  ;;  %v1223_v21 = vld [vmem:[%s1741_s1 + $0x50] sm:$0xff] }
   0x7   :  { %603 = vmatpush.bf16.msra.mxu1 %v1227_v5  ;;  %v1233_v14 = vld [vmem:[%s1741_s1 + $0xa0] sm:$0xff]  ;;  %v1232_v18 = vld [vmem:[%s1741_s1 + $0x98] sm:$0xff]  ;;  %v1231_v22 = vld [vmem:[%s1741_s1 + $0x90] sm:$0xff] }
   0x8   :  { %667 = vmatpush.bf16.msra.mxu2 %v1235_v6  ;;  %v1241_v15 = vld [vmem:[%s1741_s1 + $0xe0] sm:$0xff]  ;;  %v1240_v19 = vld [vmem:[%s1741_s1 + $0xd8] sm:$0xff]  ;;  %v1239_v23 = vld [vmem:[%s1741_s1 + $0xd0] sm:$0xff] }
   0x9   :  { %731 = vmatpush.bf16.msra.mxu3 %v1243_v7  ;;  %v1214_v24 = vld [vmem:[%s1741_s1 + $0x8] sm:$0xff]  ;;  %v1213_v28 = vld [vmem:[%s1741_s1] sm:$0xff]  ;;  %v1171_v33 = vld [vmem:[%s1743_s0 + $0xc] sm:$0xf0] }
   0xa   :  { %540 = vmatpush.bf16.msra.mxu0 %v1218_v8  ;;  %v1222_v25 = vld [vmem:[%s1741_s1 + $0x48] sm:$0xff]  ;;  %v1221_v29 = vld [vmem:[%s1741_s1 + $0x40] sm:$0xff]  ;;  %v869_v35 = vld [vmem:[%s1743_s0 + $0x10] sm:$0xf0] }
   0xb   :  { %604 = vmatpush.bf16.msra.mxu1 %v1226_v9  ;;  %v1230_v26 = vld [vmem:[%s1741_s1 + $0x88] sm:$0xff]  ;;  %v1229_v30 = vld [vmem:[%s1741_s1 + $0x80] sm:$0xff]  ;;  %v1172_v37 = vld [vmem:[%s1743_s0 + $0x14] sm:$0xf0] }
   0xc   :  { %668 = vmatpush.bf16.msra.mxu2 %v1234_v10  ;;  %v1238_v27 = vld [vmem:[%s1741_s1 + $0xc8] sm:$0xff]  ;;  %v1237_v31 = vld [vmem:[%s1741_s1 + $0xc0] sm:$0xff]  ;;  %v877_v39 = vld [vmem:[%s1743_s0 + $0x18] sm:$0xf0] }
   0xd   :  { %732 = vmatpush.bf16.msra.mxu3 %v1242_v11  ;;  %v867_v32 = vld [vmem:[%s1743_s0] sm:$0xf]  ;;  %v1169_v34 = vld [vmem:[%s1743_s0 + $0x4] sm:$0xf]  ;;  %v875_v36 = vld [vmem:[%s1743_s0 + $0x8] sm:$0xf] }
   0xe   :  { %541 = vmatpush.bf16.msra.mxu0 %v1217_v12  ;;  %v1170_v38 = vld [vmem:[%s1743_s0 + $0xc] sm:$0xf]  ;;  %v868_v40 = vor.u32 %v1171_v33, %v867_v32  ;;  %v872_v41 = vor.u32 %v1169_v34, %v869_v35  ;;  %v876_v42 = vor.u32 %v1172_v37, %v875_v36  ;;  %v883_v44 = vld [vmem:[%s1743_s0 + $0x20] sm:$0xf]  ;;  %v1175_v45 = vld [vmem:[%s1743_s0 + $0x2c] sm:$0xf0] }
   0xf   :  { %605 = vmatpush.bf16.msra.mxu1 %v1225_v13  ;;  %v880_v43 = vor.u32 %v1170_v38, %v877_v39  ;;  %v1173_v46 = vld [vmem:[%s1743_s0 + $0x24] sm:$0xf]  ;;  %v885_v47 = vld [vmem:[%s1743_s0 + $0x30] sm:$0xf0]  ;;  %v891_v48 = vld [vmem:[%s1743_s0 + $0x28] sm:$0xf]  ;;  %v884_v52 = vor.u32 %v1175_v45, %v883_v44 }
  0x10   :  { %669 = vmatpush.bf16.msra.mxu2 %v1233_v14  ;;  %v1176_v49 = vld [vmem:[%s1743_s0 + $0x34] sm:$0xf0]  ;;  %v1174_v50 = vld [vmem:[%s1743_s0 + $0x2c] sm:$0xf]  ;;  %v893_v51 = vld [vmem:[%s1743_s0 + $0x38] sm:$0xf0]  ;;  %v888_v53 = vor.u32 %v1173_v46, %v885_v47 }
  0x11   :  { %733 = vmatpush.bf16.msra.mxu3 %v1241_v15  ;;  %v892_v54 = vor.u32 %v1176_v49, %v891_v48  ;;  %v896_v55 = vor.u32 %v1174_v50, %v893_v51  ;;  %v899_v56 = vld [vmem:[%s1743_s0 + $0x40] sm:$0xf]  ;;  %v1179_v57 = vld [vmem:[%s1743_s0 + $0x4c] sm:$0xf0]  ;;  %v1177_v58 = vld [vmem:[%s1743_s0 + $0x44] sm:$0xf] }
  0x12   :  { %542 = vmatpush.bf16.msra.mxu0 %v1216_v16  ;;  %v901_v59 = vld [vmem:[%s1743_s0 + $0x50] sm:$0xf0]  ;;  %v907_v60 = vld [vmem:[%s1743_s0 + $0x48] sm:$0xf]  ;;  %v1180_v61 = vld [vmem:[%s1743_s0 + $0x54] sm:$0xf0]  ;;  %v900_v0 = vor.u32 %v1179_v57, %v899_v56 }
  0x13   :  { %606 = vmatpush.bf16.msra.mxu1 %v1224_v17  ;;  %v1178_v62 = vld [vmem:[%s1743_s0 + $0x4c] sm:$0xf]  ;;  %v909_v63 = vld [vmem:[%s1743_s0 + $0x58] sm:$0xf0]  ;;  %v904_v1 = vor.u32 %v1177_v58, %v901_v59  ;;  %v908_v2 = vor.u32 %v1180_v61, %v907_v60  ;;  %v915_v4 = vld [vmem:[%s1743_s0 + $0x60] sm:$0xf] }
  0x14   :  { %670 = vmatpush.bf16.msra.mxu2 %v1232_v18  ;;  %v912_v3 = vor.u32 %v1178_v62, %v909_v63  ;;  %v1183_v5 = vld [vmem:[%s1743_s0 + $0x6c] sm:$0xf0]  ;;  %v1181_v6 = vld [vmem:[%s1743_s0 + $0x64] sm:$0xf]  ;;  %v917_v7 = vld [vmem:[%s1743_s0 + $0x70] sm:$0xf0] }
  0x15   :  { %734 = vmatpush.bf16.msra.mxu3 %v1240_v19  ;;  %v923_v8 = vld [vmem:[%s1743_s0 + $0x68] sm:$0xf]  ;;  %v1184_v9 = vld [vmem:[%s1743_s0 + $0x74] sm:$0xf0]  ;;  %v1182_v10 = vld [vmem:[%s1743_s0 + $0x6c] sm:$0xf]  ;;  %v916_v12 = vor.u32 %v1183_v5, %v915_v4  ;;  %v920_v13 = vor.u32 %v1181_v6, %v917_v7 }
  0x16   :  { %543 = vmatpush.bf16.msra.mxu0 %v1215_v20  ;;  %v925_v11 = vld [vmem:[%s1743_s0 + $0x78] sm:$0xf0]  ;;  %v924_v14 = vor.u32 %v1184_v9, %v923_v8  ;;  %v931_v16 = vld [vmem:[%s1743_s0 + $0x80] sm:$0xf]  ;;  %v1187_v17 = vld [vmem:[%s1743_s0 + $0x8c] sm:$0xf0] }
  0x17   :  { %607 = vmatpush.bf16.msra.mxu1 %v1223_v21  ;;  %v928_v15 = vor.u32 %v1182_v10, %v925_v11  ;;  %v1185_v18 = vld [vmem:[%s1743_s0 + $0x84] sm:$0xf]  ;;  %v933_v19 = vld [vmem:[%s1743_s0 + $0x90] sm:$0xf0]  ;;  %v939_v20 = vld [vmem:[%s1743_s0 + $0x88] sm:$0xf] }
  0x18   :  { %671 = vmatpush.bf16.msra.mxu2 %v1231_v22  ;;  %v1188_v21 = vld [vmem:[%s1743_s0 + $0x94] sm:$0xf0]  ;;  %v1186_v22 = vld [vmem:[%s1743_s0 + $0x8c] sm:$0xf]  ;;  %v955_v32 = vld [vmem:[%s1743_s0 + $0xa8] sm:$0xf] }
  0x19   :  { %735 = vmatpush.bf16.msra.mxu3 %v1239_v23  ;;  %v941_v23 = vld [vmem:[%s1743_s0 + $0x98] sm:$0xf0]  ;;  %v1192_v33 = vld [vmem:[%s1743_s0 + $0xb4] sm:$0xf0]  ;;  %v1190_v34 = vld [vmem:[%s1743_s0 + $0xac] sm:$0xf] }
  0x1a   :  { %544 = vmatpush.bf16.msra.mxu0 %v1214_v24  ;;  %v932_v24 = vor.u32 %v1187_v17, %v931_v16  ;;  %v957_v35 = vld [vmem:[%s1743_s0 + $0xb8] sm:$0xf0]  ;;  %v956_v38 = vor.u32 %v1192_v33, %v955_v32  ;;  %v971_v44 = vld [vmem:[%s1743_s0 + $0xc8] sm:$0xf]  ;;  %v1196_v45 = vld [vmem:[%s1743_s0 + $0xd4] sm:$0xf0] }
  0x1b   :  { %608 = vmatpush.bf16.msra.mxu1 %v1222_v25  ;;  %v936_v25 = vor.u32 %v1185_v18, %v933_v19  ;;  %v960_v39 = vor.u32 %v1190_v34, %v957_v35  ;;  %v1194_v46 = vld [vmem:[%s1743_s0 + $0xcc] sm:$0xf]  ;;  %v973_v47 = vld [vmem:[%s1743_s0 + $0xd8] sm:$0xf0]  ;;  %v972_v50 = vor.u32 %v1196_v45, %v971_v44  ;;  %v987_v56 = vld [vmem:[%s1743_s0 + $0xe8] sm:$0xf] }
  0x1c   :  { %672 = vmatpush.bf16.msra.mxu2 %v1230_v26  ;;  %v940_v26 = vor.u32 %v1188_v21, %v939_v20  ;;  %v976_v51 = vor.u32 %v1194_v46, %v973_v47  ;;  %v1200_v57 = vld [vmem:[%s1743_s0 + $0xf4] sm:$0xf0]  ;;  %v1198_v58 = vld [vmem:[%s1743_s0 + $0xec] sm:$0xf]  ;;  %v989_v59 = vld [vmem:[%s1743_s0 + $0xf8] sm:$0xf0] }
  0x1d   :  { %736 = vmatpush.bf16.msra.mxu3 %v1238_v27  ;;  %v944_v27 = vor.u32 %v1186_v22, %v941_v23  ;;  %v988_v62 = vor.u32 %v1200_v57, %v987_v56  ;;  %v992_v63 = vor.u32 %v1198_v58, %v989_v59  ;;  %v997_v4 = vld [vmem:[%s1743_s0 + $0x110] sm:$0xf0]  ;;  %v1003_v5 = vld [vmem:[%s1743_s0 + $0x108] sm:$0xf]  ;;  %v1204_v6 = vld [vmem:[%s1743_s0 + $0x114] sm:$0xf0] }
  0x1e   :  { %545 = vmatpush.bf16.msra.mxu0 %v1213_v28  ;;  %v947_v28 = vld [vmem:[%s1743_s0 + $0xa0] sm:$0xf]  ;;  %v1202_v7 = vld [vmem:[%s1743_s0 + $0x10c] sm:$0xf]  ;;  %v1005_v8 = vld [vmem:[%s1743_s0 + $0x118] sm:$0xf0] }
  0x1f   :  { %609 = vmatpush.bf16.msra.mxu1 %v1221_v29  ;;  %v1191_v29 = vld [vmem:[%s1743_s0 + $0xac] sm:$0xf0]  ;;  %v1021_v32 = vld [vmem:[%s1743_s0 + $0x138] sm:$0xf0]  ;;  %v1027_v56 = vld [vmem:[%s1743_s0 + $0x140] sm:$0xf] }
  0x20   :  { %673 = vmatpush.bf16.msra.mxu2 %v1229_v30  ;;  %v1189_v30 = vld [vmem:[%s1743_s0 + $0xa4] sm:$0xf]  ;;  %v948_v36 = vor.u32 %v1191_v29, %v947_v28  ;;  %v1013_v28 = vld [vmem:[%s1743_s0 + $0x130] sm:$0xf0]  ;;  %v1019_v29 = vld [vmem:[%s1743_s0 + $0x128] sm:$0xf] }
  0x21   :  { %737 = vmatpush.bf16.msra.mxu3 %v1237_v31  ;;  %546 = vmatmul.bf16.vlgmr.msra.gmra.mxu0 %v868_v40  ;;  %v949_v31 = vld [vmem:[%s1743_s0 + $0xb0] sm:$0xf0]  ;;  %v963_v40 = vld [vmem:[%s1743_s0 + $0xc0] sm:$0xf]  ;;  %v1211_v57 = vld [vmem:[%s1743_s0 + $0x14c] sm:$0xf0] }
  0x22   :  { %610 = vmatmul.bf16.vlgmr.msra.gmra.mxu1 %v872_v41  ;;  %v952_v37 = vor.u32 %v1189_v30, %v949_v31  ;;  %v1195_v41 = vld [vmem:[%s1743_s0 + $0xcc] sm:$0xf0]  ;;  %v1208_v30 = vld [vmem:[%s1743_s0 + $0x134] sm:$0xf0]  ;;  %v1206_v31 = vld [vmem:[%s1743_s0 + $0x12c] sm:$0xf] }
  0x23   :  { %674 = vmatmul.bf16.vlgmr.msra.gmra.mxu2 %v876_v42  ;;  %v1193_v42 = vld [vmem:[%s1743_s0 + $0xc4] sm:$0xf]  ;;  %v964_v48 = vor.u32 %v1195_v41, %v963_v40 }
  0x24   :  { %738 = vmatmul.bf16.vlgmr.msra.gmra.mxu3 %v880_v43  ;;  %v965_v43 = vld [vmem:[%s1743_s0 + $0xd0] sm:$0xf0]  ;;  %v1209_v58 = vld [vmem:[%s1743_s0 + $0x144] sm:$0xf] }
  0x25   :  { %v968_v49 = vor.u32 %v1193_v42, %v965_v43  ;;  %v1020_v42 = vor.u32 %v1208_v30, %v1019_v29  ;;  %v1024_v43 = vor.u32 %v1206_v31, %v1021_v32 }
  0x31   :  { %551 = vmatmul.bf16.gmra.mxu0 %v884_v52  ;;  %v979_v52 = vld [vmem:[%s1743_s0 + $0xe0] sm:$0xf] }
  0x32   :  { %615 = vmatmul.bf16.gmra.mxu1 %v888_v53  ;;  %v1199_v53 = vld [vmem:[%s1743_s0 + $0xec] sm:$0xf0] }
  0x33   :  { %679 = vmatmul.bf16.gmra.mxu2 %v892_v54  ;;  %v1197_v54 = vld [vmem:[%s1743_s0 + $0xe4] sm:$0xf]  ;;  %v980_v60 = vor.u32 %v1199_v53, %v979_v52 }
  0x34   :  { %743 = vmatmul.bf16.gmra.mxu3 %v896_v55  ;;  %v981_v55 = vld [vmem:[%s1743_s0 + $0xf0] sm:$0xf0] }
  0x35   :  { %v984_v61 = vor.u32 %v1197_v54, %v981_v55 }
  0x41   :  { %556 = vmatmul.bf16.gmra.mxu0 %v900_v0  ;;  %v1557_v0 = vld [vmem:[%s1742_s2] ss:$0 sm:$0xff] }
  0x42   :  { %620 = vmatmul.bf16.gmra.mxu1 %v904_v1  ;;  %v995_v1 = vld [vmem:[%s1743_s0 + $0x100] sm:$0xf] }
  0x43   :  { %684 = vmatmul.bf16.gmra.mxu2 %v908_v2  ;;  %v1203_v2 = vld [vmem:[%s1743_s0 + $0x10c] sm:$0xf0] }
  0x44   :  { %748 = vmatmul.bf16.gmra.mxu3 %v912_v3  ;;  %v1201_v3 = vld [vmem:[%s1743_s0 + $0x104] sm:$0xf]  ;;  %v996_v9 = vor.u32 %v1203_v2, %v995_v1  ;;  %v1037_v1 = vld [vmem:[%s1743_s0 + $0x158] sm:$0xf0] }
  0x45   :  { %v1000_v10 = vor.u32 %v1201_v3, %v997_v4 }
  0x51   :  { %561 = vmatmul.bf16.gmra.mxu0 %v916_v12 }
  0x52   :  { %625 = vmatmul.bf16.gmra.mxu1 %v920_v13  ;;  %v1004_v13 = vor.u32 %v1204_v6, %v1003_v5  ;;  %v1028_v6 = vor.u32 %v1211_v57, %v1027_v56 }
  0x53   :  { %689 = vmatmul.bf16.gmra.mxu2 %v924_v14  ;;  %v1008_v14 = vor.u32 %v1202_v7, %v1005_v8 }
  0x54   :  { %753 = vmatmul.bf16.gmra.mxu3 %v928_v15 }
  0x61   :  { %566 = vmatmul.bf16.gmra.mxu0 %v932_v24  ;;  %v1011_v24 = vld [vmem:[%s1743_s0 + $0x120] sm:$0xf] }
  0x62   :  { %630 = vmatmul.bf16.gmra.mxu1 %v936_v25  ;;  %v1207_v25 = vld [vmem:[%s1743_s0 + $0x12c] sm:$0xf0] }
  0x63   :  { %694 = vmatmul.bf16.gmra.mxu2 %v940_v26  ;;  %v1205_v26 = vld [vmem:[%s1743_s0 + $0x124] sm:$0xf] }
  0x64   :  { %758 = vmatmul.bf16.gmra.mxu3 %v944_v27 }
  0x71   :  { %571 = vmatmul.bf16.gmra.mxu0 %v948_v36 }
  0x72   :  { %635 = vmatmul.bf16.gmra.mxu1 %v952_v37  ;;  %v1012_v37 = vor.u32 %v1207_v25, %v1011_v24 }
  0x73   :  { %699 = vmatmul.bf16.gmra.mxu2 %v956_v38  ;;  %v1016_v38 = vor.u32 %v1205_v26, %v1013_v28 }
  0x74   :  { %763 = vmatmul.bf16.gmra.mxu3 %v960_v39 }
  0x81   :  { %576 = vmatmul.bf16.gmra.mxu0 %v964_v48 }
  0x82   :  { %640 = vmatmul.bf16.gmra.mxu1 %v968_v49 }
  0x83   :  { %704 = vmatmul.bf16.gmra.mxu2 %v972_v50 }
  0x84   :  { %768 = vmatmul.bf16.gmra.mxu3 %v976_v51 }
  0x91   :  { %581 = vmatmul.bf16.gmra.mxu0 %v980_v60  ;;  %v1029_v60 = vld [vmem:[%s1743_s0 + $0x150] sm:$0xf0] }
  0x92   :  { %645 = vmatmul.bf16.gmra.mxu1 %v984_v61  ;;  %v1035_v61 = vld [vmem:[%s1743_s0 + $0x148] sm:$0xf]  ;;  %v1032_v7 = vor.u32 %v1209_v58, %v1029_v60 }
  0x93   :  { %709 = vmatmul.bf16.gmra.mxu2 %v988_v62  ;;  %v1212_v62 = vld [vmem:[%s1743_s0 + $0x154] sm:$0xf0] }
  0x94   :  { %773 = vmatmul.bf16.gmra.mxu3 %v992_v63  ;;  %v1210_v63 = vld [vmem:[%s1743_s0 + $0x14c] sm:$0xf] }
  0x9e   :  { %v547_v11 = vpop.f32.mrf.mxu0 }
  0x9f   :  { %v611_v12 = vpop.f32.mrf.mxu1  ;;  %v548_v15 = vadd.f32 %v1557_v0, %v547_v11  ;;  %v1036_v11 = vor.u32 %v1212_v62, %v1035_v61 }
  0xa1   :  { %586 = vmatmul.bf16.gmra.mxu0 %v996_v9  ;;  %v612_v16 = vadd.f32 %v611_v12, %v548_v15  ;;  %v1040_v12 = vor.u32 %v1210_v63, %v1037_v1 }
  0xa2   :  { %650 = vmatmul.bf16.gmra.mxu1 %v1000_v10 }
  0xa3   :  { %714 = vmatmul.bf16.gmra.mxu2 %v1004_v13 }
  0xa4   :  { %778 = vmatmul.bf16.gmra.mxu3 %v1008_v14 }
  0xa6   :  { %v675_v17 = vpop.f32.mrf.mxu2  ;;  %v549_v20 = vpop.f32.mrf.mxu0 }
  0xa7   :  { %v739_v18 = vpop.f32.mrf.mxu3  ;;  %v676_v19 = vadd.f32 %v675_v17, %v612_v16  ;;  %v613_v21 = vpop.f32.mrf.mxu1  ;;  %v550_v23 = vadd.f32 %v1557_v0, %v549_v20 }
  0xa9   :  { %v740_v22 = vadd.f32 %v739_v18, %v676_v19  ;;  %v614_v34 = vadd.f32 %v613_v21, %v550_v23 }
  0xab   :  { %v794_v27 = vmax.f32 %v740_v22, 0.0 }
  0xad   :  { %v816_v33 = vpack.c.bf16 %v794_v27, %v794_v27 }
  0xae   :  { %v677_v35 = vpop.f32.mrf.mxu2  ;;  %v552_v40 = vpop.f32.mrf.mxu0 }
  0xaf   :  { %v741_v36 = vpop.f32.mrf.mxu3  ;;  %839 = vst.msk [vmem:[%s1744_s3] sm:$0xf] %vm838_vm0, %v816_v33  ;;  %v678_v39 = vadd.f32 %v677_v35, %v614_v34  ;;  %v616_v41 = vpop.f32.mrf.mxu1  ;;  %v553_v44 = vadd.f32 %v1557_v0, %v552_v40 }
  0xb1   :  { %v742_v45 = vadd.f32 %v741_v36, %v678_v39  ;;  %591 = vmatmul.bf16.gmra.mxu0 %v1012_v37  ;;  %v617_v47 = vadd.f32 %v616_v41, %v553_v44 }
  0xb2   :  { %655 = vmatmul.bf16.gmra.mxu1 %v1016_v38 }
  0xb3   :  { %v795_v46 = vmax.f32 %v742_v45, 0.0  ;;  %719 = vmatmul.bf16.gmra.mxu2 %v1020_v42 }
  0xb4   :  { %783 = vmatmul.bf16.gmra.mxu3 %v1024_v43 }
  0xb5   :  { %v817_v48 = vpack.c.bf16 %v795_v46, %v795_v46 }
  0xb6   :  { %v680_v49 = vpop.f32.mrf.mxu2  ;;  %v554_v52 = vpop.f32.mrf.mxu0 }
  0xb7   :  { %v744_v50 = vpop.f32.mrf.mxu3  ;;  %840 = vst.msk [vmem:[%s1744_s3 + $0x4] sm:$0xf] %vm838_vm0, %v817_v48  ;;  %v681_v51 = vadd.f32 %v680_v49, %v617_v47  ;;  %v618_v53 = vpop.f32.mrf.mxu1  ;;  %v555_v55 = vadd.f32 %v1557_v0, %v554_v52 }
  0xb9   :  { %v745_v54 = vadd.f32 %v744_v50, %v681_v51  ;;  %v619_v3 = vadd.f32 %v618_v53, %v555_v55 }
  0xbb   :  { %v796_v59 = vmax.f32 %v745_v54, 0.0 }
  0xbd   :  { %v818_v2 = vpack.c.bf16 %v796_v59, %v796_v59 }
  0xbe   :  { %v682_v4 = vpop.f32.mrf.mxu2  ;;  %v557_v9 = vpop.f32.mrf.mxu0 }
  0xbf   :  { %v746_v5 = vpop.f32.mrf.mxu3  ;;  %841 = vst.msk [vmem:[%s1744_s3 + $0x8] sm:$0xf] %vm838_vm0, %v818_v2  ;;  %v683_v8 = vadd.f32 %v682_v4, %v619_v3  ;;  %v621_v10 = vpop.f32.mrf.mxu1  ;;  %v558_v13 = vadd.f32 %v1557_v0, %v557_v9 }
  0xc1   :  { %v747_v14 = vadd.f32 %v746_v5, %v683_v8  ;;  %596 = vmatmul.bf16.gmra.mxu0 %v1028_v6  ;;  %v622_v16 = vadd.f32 %v621_v10, %v558_v13 }
  0xc2   :  { %660 = vmatmul.bf16.gmra.mxu1 %v1032_v7 }
  0xc3   :  { %v797_v15 = vmax.f32 %v747_v14, 0.0  ;;  %724 = vmatmul.bf16.gmra.mxu2 %v1036_v11 }
  0xc4   :  { %788 = vmatmul.bf16.gmra.mxu3 %v1040_v12 }
  0xc5   :  { %v819_v17 = vpack.c.bf16 %v797_v15, %v797_v15 }
  0xc6   :  { %v685_v18 = vpop.f32.mrf.mxu2  ;;  %v559_v21 = vpop.f32.mrf.mxu0 }
  0xc7   :  { %v749_v19 = vpop.f32.mrf.mxu3  ;;  %842 = vst.msk [vmem:[%s1744_s3 + $0xc] sm:$0xf] %vm838_vm0, %v819_v17  ;;  %v686_v20 = vadd.f32 %v685_v18, %v622_v16  ;;  %v623_v22 = vpop.f32.mrf.mxu1  ;;  %v560_v24 = vadd.f32 %v1557_v0, %v559_v21 }
  0xc9   :  { %v750_v23 = vadd.f32 %v749_v19, %v686_v20  ;;  %v624_v27 = vadd.f32 %v623_v22, %v560_v24 }
  0xcb   :  { %v798_v25 = vmax.f32 %v750_v23, 0.0 }
  0xcd   :  { %v820_v26 = vpack.c.bf16 %v798_v25, %v798_v25 }
  0xce   :  { %v687_v28 = vpop.f32.mrf.mxu2  ;;  %v562_v31 = vpop.f32.mrf.mxu0 }
  0xcf   :  { %v751_v29 = vpop.f32.mrf.mxu3  ;;  %843 = vst.msk [vmem:[%s1744_s3 + $0x10] sm:$0xf] %vm838_vm0, %v820_v26  ;;  %v688_v30 = vadd.f32 %v687_v28, %v624_v27  ;;  %v626_v32 = vpop.f32.mrf.mxu1  ;;  %v563_v33 = vadd.f32 %v1557_v0, %v562_v31 }
  0xd1   :  { %v752_v34 = vadd.f32 %v751_v29, %v688_v30  ;;  %v627_v36 = vadd.f32 %v626_v32, %v563_v33 }
  0xd3   :  { %v799_v35 = vmax.f32 %v752_v34, 0.0 }
  0xd5   :  { %v821_v37 = vpack.c.bf16 %v799_v35, %v799_v35 }
  0xd6   :  { %v690_v38 = vpop.f32.mrf.mxu2  ;;  %v564_v41 = vpop.f32.mrf.mxu0 }
  0xd7   :  { %v754_v39 = vpop.f32.mrf.mxu3  ;;  %844 = vst.msk [vmem:[%s1744_s3 + $0x14] sm:$0xf] %vm838_vm0, %v821_v37  ;;  %v691_v40 = vadd.f32 %v690_v38, %v627_v36  ;;  %v628_v42 = vpop.f32.mrf.mxu1  ;;  %v565_v44 = vadd.f32 %v1557_v0, %v564_v41 }
  0xd9   :  { %v755_v43 = vadd.f32 %v754_v39, %v691_v40  ;;  %v629_v47 = vadd.f32 %v628_v42, %v565_v44 }
  0xdb   :  { %v800_v45 = vmax.f32 %v755_v43, 0.0 }
  0xdd   :  { %v822_v46 = vpack.c.bf16 %v800_v45, %v800_v45 }
  0xde   :  { %v692_v48 = vpop.f32.mrf.mxu2  ;;  %v567_v51 = vpop.f32.mrf.mxu0 }
  0xdf   :  { %v756_v49 = vpop.f32.mrf.mxu3  ;;  %845 = vst.msk [vmem:[%s1744_s3 + $0x18] sm:$0xf] %vm838_vm0, %v822_v46  ;;  %v693_v50 = vadd.f32 %v692_v48, %v629_v47  ;;  %v631_v52 = vpop.f32.mrf.mxu1  ;;  %v568_v53 = vadd.f32 %v1557_v0, %v567_v51 }
  0xe1   :  { %v757_v54 = vadd.f32 %v756_v49, %v693_v50  ;;  %v632_v56 = vadd.f32 %v631_v52, %v568_v53 }
  0xe3   :  { %v801_v55 = vmax.f32 %v757_v54, 0.0 }
  0xe5   :  { %v823_v57 = vpack.c.bf16 %v801_v55, %v801_v55 }
  0xe6   :  { %v695_v58 = vpop.f32.mrf.mxu2  ;;  %v569_v61 = vpop.f32.mrf.mxu0 }
  0xe7   :  { %v759_v59 = vpop.f32.mrf.mxu3  ;;  %846 = vst.msk [vmem:[%s1744_s3 + $0x1c] sm:$0xf] %vm838_vm0, %v823_v57  ;;  %v696_v60 = vadd.f32 %v695_v58, %v632_v56  ;;  %v633_v62 = vpop.f32.mrf.mxu1  ;;  %v570_v1 = vadd.f32 %v1557_v0, %v569_v61 }
  0xe9   :  { %v760_v63 = vadd.f32 %v759_v59, %v696_v60  ;;  %v634_v4 = vadd.f32 %v633_v62, %v570_v1 }
  0xeb   :  { %v802_v2 = vmax.f32 %v760_v63, 0.0 }
  0xed   :  { %v824_v3 = vpack.c.bf16 %v802_v2, %v802_v2 }
  0xee   :  { %v697_v5 = vpop.f32.mrf.mxu2  ;;  %v572_v8 = vpop.f32.mrf.mxu0 }
  0xef   :  { %v761_v6 = vpop.f32.mrf.mxu3  ;;  %847 = vst.msk [vmem:[%s1744_s3 + $0x20] sm:$0xf] %vm838_vm0, %v824_v3  ;;  %v698_v7 = vadd.f32 %v697_v5, %v634_v4  ;;  %v636_v9 = vpop.f32.mrf.mxu1  ;;  %v573_v10 = vadd.f32 %v1557_v0, %v572_v8 }
  0xf1   :  { %v762_v11 = vadd.f32 %v761_v6, %v698_v7  ;;  %v637_v13 = vadd.f32 %v636_v9, %v573_v10 }
  0xf3   :  { %v803_v12 = vmax.f32 %v762_v11, 0.0 }
  0xf5   :  { %v825_v14 = vpack.c.bf16 %v803_v12, %v803_v12 }
  0xf6   :  { %v700_v15 = vpop.f32.mrf.mxu2  ;;  %v574_v18 = vpop.f32.mrf.mxu0 }
  0xf7   :  { %v764_v16 = vpop.f32.mrf.mxu3  ;;  %848 = vst.msk [vmem:[%s1744_s3 + $0x24] sm:$0xf] %vm838_vm0, %v825_v14  ;;  %v701_v17 = vadd.f32 %v700_v15, %v637_v13  ;;  %v638_v19 = vpop.f32.mrf.mxu1  ;;  %v575_v21 = vadd.f32 %v1557_v0, %v574_v18 }
  0xf9   :  { %v765_v20 = vadd.f32 %v764_v16, %v701_v17  ;;  %v639_v24 = vadd.f32 %v638_v19, %v575_v21 }
  0xfb   :  { %v804_v22 = vmax.f32 %v765_v20, 0.0 }
  0xfd   :  { %v826_v23 = vpack.c.bf16 %v804_v22, %v804_v22 }
  0xfe   :  { %v702_v25 = vpop.f32.mrf.mxu2  ;;  %v577_v28 = vpop.f32.mrf.mxu0 }
  0xff   :  { %v766_v26 = vpop.f32.mrf.mxu3  ;;  %849 = vst.msk [vmem:[%s1744_s3 + $0x28] sm:$0xf] %vm838_vm0, %v826_v23  ;;  %v703_v27 = vadd.f32 %v702_v25, %v639_v24  ;;  %v641_v29 = vpop.f32.mrf.mxu1  ;;  %v578_v30 = vadd.f32 %v1557_v0, %v577_v28 }
 0x101   :  { %v767_v31 = vadd.f32 %v766_v26, %v703_v27  ;;  %v642_v33 = vadd.f32 %v641_v29, %v578_v30 }
 0x103   :  { %v805_v32 = vmax.f32 %v767_v31, 0.0 }
 0x105   :  { %v827_v34 = vpack.c.bf16 %v805_v32, %v805_v32 }
 0x106   :  { %v705_v35 = vpop.f32.mrf.mxu2  ;;  %v579_v38 = vpop.f32.mrf.mxu0 }
 0x107   :  { %v769_v36 = vpop.f32.mrf.mxu3  ;;  %850 = vst.msk [vmem:[%s1744_s3 + $0x2c] sm:$0xf] %vm838_vm0, %v827_v34  ;;  %v706_v37 = vadd.f32 %v705_v35, %v642_v33  ;;  %v643_v39 = vpop.f32.mrf.mxu1  ;;  %v580_v41 = vadd.f32 %v1557_v0, %v579_v38 }
 0x109   :  { %v770_v40 = vadd.f32 %v769_v36, %v706_v37  ;;  %v644_v44 = vadd.f32 %v643_v39, %v580_v41 }
 0x10b   :  { %v806_v42 = vmax.f32 %v770_v40, 0.0 }
 0x10d   :  { %v828_v43 = vpack.c.bf16 %v806_v42, %v806_v42 }
 0x10e   :  { %v707_v45 = vpop.f32.mrf.mxu2  ;;  %v582_v48 = vpop.f32.mrf.mxu0 }
 0x10f   :  { %v771_v46 = vpop.f32.mrf.mxu3  ;;  %851 = vst.msk [vmem:[%s1744_s3 + $0x30] sm:$0xf] %vm838_vm0, %v828_v43  ;;  %v708_v47 = vadd.f32 %v707_v45, %v644_v44  ;;  %v646_v49 = vpop.f32.mrf.mxu1  ;;  %v583_v50 = vadd.f32 %v1557_v0, %v582_v48 }
 0x111   :  { %v772_v51 = vadd.f32 %v771_v46, %v708_v47  ;;  %v647_v53 = vadd.f32 %v646_v49, %v583_v50 }
 0x113   :  { %v807_v52 = vmax.f32 %v772_v51, 0.0 }
 0x115   :  { %v829_v54 = vpack.c.bf16 %v807_v52, %v807_v52 }
 0x116   :  { %v710_v55 = vpop.f32.mrf.mxu2  ;;  %v584_v58 = vpop.f32.mrf.mxu0 }
 0x117   :  { %v774_v56 = vpop.f32.mrf.mxu3  ;;  %852 = vst.msk [vmem:[%s1744_s3 + $0x34] sm:$0xf] %vm838_vm0, %v829_v54  ;;  %v711_v57 = vadd.f32 %v710_v55, %v647_v53  ;;  %v648_v59 = vpop.f32.mrf.mxu1  ;;  %v585_v61 = vadd.f32 %v1557_v0, %v584_v58 }
 0x119   :  { %v775_v60 = vadd.f32 %v774_v56, %v711_v57  ;;  %v649_v1 = vadd.f32 %v648_v59, %v585_v61 }
 0x11b   :  { %v808_v62 = vmax.f32 %v775_v60, 0.0 }
 0x11d   :  { %v830_v63 = vpack.c.bf16 %v808_v62, %v808_v62 }
 0x11e   :  { %v712_v2 = vpop.f32.mrf.mxu2  ;;  %v587_v5 = vpop.f32.mrf.mxu0 }
 0x11f   :  { %v776_v3 = vpop.f32.mrf.mxu3  ;;  %853 = vst.msk [vmem:[%s1744_s3 + $0x38] sm:$0xf] %vm838_vm0, %v830_v63  ;;  %v713_v4 = vadd.f32 %v712_v2, %v649_v1  ;;  %v651_v6 = vpop.f32.mrf.mxu1  ;;  %v588_v7 = vadd.f32 %v1557_v0, %v587_v5 }
 0x121   :  { %v777_v8 = vadd.f32 %v776_v3, %v713_v4  ;;  %v652_v10 = vadd.f32 %v651_v6, %v588_v7 }
 0x123   :  { %v809_v9 = vmax.f32 %v777_v8, 0.0 }
 0x125   :  { %v831_v11 = vpack.c.bf16 %v809_v9, %v809_v9 }
 0x126   :  { %v715_v12 = vpop.f32.mrf.mxu2  ;;  %v589_v15 = vpop.f32.mrf.mxu0 }
 0x127   :  { %v779_v13 = vpop.f32.mrf.mxu3  ;;  %854 = vst.msk [vmem:[%s1744_s3 + $0x3c] sm:$0xf] %vm838_vm0, %v831_v11  ;;  %v716_v14 = vadd.f32 %v715_v12, %v652_v10  ;;  %v653_v16 = vpop.f32.mrf.mxu1  ;;  %v590_v18 = vadd.f32 %v1557_v0, %v589_v15 }
 0x129   :  { %v780_v17 = vadd.f32 %v779_v13, %v716_v14  ;;  %v654_v21 = vadd.f32 %v653_v16, %v590_v18 }
 0x12b   :  { %v810_v19 = vmax.f32 %v780_v17, 0.0 }
 0x12d   :  { %v832_v20 = vpack.c.bf16 %v810_v19, %v810_v19 }
 0x12e   :  { %v717_v22 = vpop.f32.mrf.mxu2  ;;  %v592_v25 = vpop.f32.mrf.mxu0 }
 0x12f   :  { %v781_v23 = vpop.f32.mrf.mxu3  ;;  %855 = vst.msk [vmem:[%s1744_s3 + $0x40] sm:$0xf] %vm838_vm0, %v832_v20  ;;  %v718_v24 = vadd.f32 %v717_v22, %v654_v21  ;;  %v656_v26 = vpop.f32.mrf.mxu1  ;;  %v593_v27 = vadd.f32 %v1557_v0, %v592_v25 }
 0x131   :  { %v782_v28 = vadd.f32 %v781_v23, %v718_v24  ;;  %v657_v30 = vadd.f32 %v656_v26, %v593_v27 }
 0x133   :  { %v811_v29 = vmax.f32 %v782_v28, 0.0 }
 0x135   :  { %v833_v31 = vpack.c.bf16 %v811_v29, %v811_v29 }
 0x136   :  { %v720_v32 = vpop.f32.mrf.mxu2  ;;  %v594_v35 = vpop.f32.mrf.mxu0 }
 0x137   :  { %v784_v33 = vpop.f32.mrf.mxu3  ;;  %856 = vst.msk [vmem:[%s1744_s3 + $0x44] sm:$0xf] %vm838_vm0, %v833_v31  ;;  %v721_v34 = vadd.f32 %v720_v32, %v657_v30  ;;  %v658_v36 = vpop.f32.mrf.mxu1  ;;  %v595_v38 = vadd.f32 %v1557_v0, %v594_v35 }
 0x139   :  { %v785_v37 = vadd.f32 %v784_v33, %v721_v34  ;;  %v659_v41 = vadd.f32 %v658_v36, %v595_v38 }
 0x13b   :  { %v812_v39 = vmax.f32 %v785_v37, 0.0 }
 0x13d   :  { %v834_v40 = vpack.c.bf16 %v812_v39, %v812_v39 }
 0x13e   :  { %v722_v42 = vpop.f32.mrf.mxu2  ;;  %v597_v45 = vpop.f32.mrf.mxu0 }
 0x13f   :  { %v786_v43 = vpop.f32.mrf.mxu3  ;;  %857 = vst.msk [vmem:[%s1744_s3 + $0x48] sm:$0xf] %vm838_vm0, %v834_v40  ;;  %v723_v44 = vadd.f32 %v722_v42, %v659_v41  ;;  %v598_v46 = vadd.f32 %v1557_v0, %v597_v45  ;;  %v661_v48 = vpop.f32.mrf.mxu1 }
 0x141   :  { %v787_v47 = vadd.f32 %v786_v43, %v723_v44  ;;  %v662_v50 = vadd.f32 %v661_v48, %v598_v46 }
 0x143   :  { %v813_v49 = vmax.f32 %v787_v47, 0.0 }
 0x145   :  { %v835_v51 = vpack.c.bf16 %v813_v49, %v813_v49 }
 0x146   :  { %v725_v52 = vpop.f32.mrf.mxu2  ;;  %v599_v55 = vpop.f32.mrf.mxu0 }
 0x147   :  { %v789_v53 = vpop.f32.mrf.mxu3  ;;  %858 = vst.msk [vmem:[%s1744_s3 + $0x4c] sm:$0xf] %vm838_vm0, %v835_v51  ;;  %v726_v54 = vadd.f32 %v725_v52, %v662_v50  ;;  %v600_v57 = vadd.f32 %v1557_v0, %v599_v55  ;;  %v663_v59 = vpop.f32.mrf.mxu1 }
 0x149   :  { %v790_v56 = vadd.f32 %v789_v53, %v726_v54  ;;  %v664_v61 = vadd.f32 %v663_v59, %v600_v57 }
 0x14b   :  { %v814_v58 = vmax.f32 %v790_v56, 0.0 }
 0x14d   :  { %v836_v60 = vpack.c.bf16 %v814_v58, %v814_v58 }
 0x14e   :  { %v727_v62 = vpop.f32.mrf.mxu2 }
 0x14f   :  { %859 = vst.msk [vmem:[%s1744_s3 + $0x50] sm:$0xf] %vm838_vm0, %v836_v60  ;;  %v728_v63 = vadd.f32 %v727_v62, %v664_v61  ;;  %v791_v1 = vpop.f32.mrf.mxu3 }
 0x151   :  { %v792_v2 = vadd.f32 %v791_v1, %v728_v63 }
 0x153   :  { %v815_v3 = vmax.f32 %v792_v2, 0.0 }
 0x155   :  { %v837_v4 = vpack.c.bf16 %v815_v3, %v815_v3 }
 0x157   :  { %860 = vst.msk [vmem:[%s1744_s3 + $0x54] sm:$0xf] %vm838_vm0, %v837_v4 }

// kernel: dqn_forward.6
= control target key start
LH: loop header
LB: loop body
LE: loop exit
PB: predicated region body
PF: predicated region fallthrough
CT: control target
= control target key end

     0   :  { %vm524_vm0 = vcmask 523264   ;;  %vm794_vm1 = vcmask 519168   ;;  %s1650_s1 = inlined_call_operand.vmem [shape: bf16[576,64], index: 1, kind: input, shape index: {}]   ;;  %s1651_s2 = inlined_call_operand.vmem [shape: f32[1,64], index: 2, kind: input, shape index: {}]   ;;  %s1652_s0 = inlined_call_operand.vmem [shape: bf16[112,576], index: 0, kind: input, shape index: {}]   ;;  %s1653_s3 = inlined_call_operand.vmem [shape: bf16[112,64], index: 3, kind: output, shape index: {}]  }
   0x1   :  { %v1146_v0 = vld [vmem:[%s1650_s1 + $0x38] sm:$0xff]  ;;  %v1145_v1 = vld [vmem:[%s1650_s1 + $0x30] sm:$0xff]  ;;  %v1144_v2 = vld [vmem:[%s1650_s1 + $0x28] sm:$0xff] }
   0x2   :  { %1175 = vmatpush.bf16.msra.mxu1 %v1146_v0  ;;  %1176 = vmatpush.bf16.msra.mxu2 %v1146_v0  ;;  %v1143_v3 = vld [vmem:[%s1650_s1 + $0x20] sm:$0xff]  ;;  %v1142_v4 = vld [vmem:[%s1650_s1 + $0x18] sm:$0xff]  ;;  %v1141_v5 = vld [vmem:[%s1650_s1 + $0x10] sm:$0xff] }
   0x3   :  { %1177 = vmatpush.bf16.msra.mxu3 %v1146_v0  ;;  %546 = vmatpush.bf16.msra.mxu0 %v1146_v0  ;;  %v1140_v6 = vld [vmem:[%s1650_s1 + $0x8] sm:$0xff]  ;;  %v1139_v7 = vld [vmem:[%s1650_s1] sm:$0xff]  ;;  %v855_v8 = vld [vmem:[%s1652_s0 + $0x50] sm:$0xf] }
   0x4   :  { %v1116_v9 = vld [vmem:[%s1652_s0 + $0x60] sm:$0xf0]  ;;  %v895_v10 = vld [vmem:[%s1652_s0 + $0xa0] sm:$0xf]  ;;  %v1126_v11 = vld [vmem:[%s1652_s0 + $0xb0] sm:$0xf0] }
   0x5   :  { %v1170_v12 = vld [vmem:[%s1650_s1 + $0xf8] sm:$0xff]  ;;  %v815_v13 = vld [vmem:[%s1652_s0] sm:$0xf]  ;;  %v1106_v14 = vld [vmem:[%s1652_s0 + $0x10] sm:$0xf0]  ;;  %v856_v18 = vor.u32 %v1116_v9, %v855_v8  ;;  %v896_v19 = vor.u32 %v1126_v11, %v895_v10 }
   0x6   :  { %1178 = vmatpush.bf16.msra.mxu1 %v1145_v1  ;;  %1179 = vmatpush.bf16.msra.mxu2 %v1145_v1  ;;  %v1162_v15 = vld [vmem:[%s1650_s1 + $0xb8] sm:$0xff]  ;;  %v935_v16 = vld [vmem:[%s1652_s0 + $0xf0] sm:$0xf]  ;;  %v1136_v17 = vld [vmem:[%s1652_s0 + $0x100] sm:$0xf0]  ;;  %v816_v21 = vor.u32 %v1106_v14, %v815_v13 }
   0x7   :  { %1180 = vmatpush.bf16.msra.mxu3 %v1145_v1  ;;  %547 = vmatpush.bf16.msra.mxu0 %v1145_v1  ;;  %v1154_v20 = vld [vmem:[%s1650_s1 + $0x78] sm:$0xff]  ;;  %v936_v22 = vor.u32 %v1136_v17, %v935_v16  ;;  %v1169_v24 = vld [vmem:[%s1650_s1 + $0xf0] sm:$0xff]  ;;  %v1168_v28 = vld [vmem:[%s1650_s1 + $0xe8] sm:$0xff] }
   0x8   :  { %v1174_v23 = vld [vmem:[%s1650_s1 + $0x118] sm:$0xff]  ;;  %v1161_v25 = vld [vmem:[%s1650_s1 + $0xb0] sm:$0xff]  ;;  %v1160_v29 = vld [vmem:[%s1650_s1 + $0xa8] sm:$0xff] }
   0x9   :  { %v1153_v26 = vld [vmem:[%s1650_s1 + $0x70] sm:$0xff]  ;;  %v1152_v30 = vld [vmem:[%s1650_s1 + $0x68] sm:$0xff]  ;;  %v1167_v32 = vld [vmem:[%s1650_s1 + $0xe0] sm:$0xff] }
   0xa   :  { %1181 = vmatpush.bf16.msra.mxu1 %v1144_v2  ;;  %1182 = vmatpush.bf16.msra.mxu2 %v1144_v2  ;;  %v1173_v27 = vld [vmem:[%s1650_s1 + $0x110] sm:$0xff]  ;;  %v1172_v31 = vld [vmem:[%s1650_s1 + $0x108] sm:$0xff]  ;;  %v1159_v33 = vld [vmem:[%s1650_s1 + $0xa0] sm:$0xff] }
   0xb   :  { %1183 = vmatpush.bf16.msra.mxu3 %v1144_v2  ;;  %548 = vmatpush.bf16.msra.mxu0 %v1144_v2  ;;  %v1151_v34 = vld [vmem:[%s1650_s1 + $0x60] sm:$0xff]  ;;  %v875_v35 = vld [vmem:[%s1652_s0 + $0x78] sm:$0xf]  ;;  %v1121_v36 = vld [vmem:[%s1652_s0 + $0x88] sm:$0xf0] }
   0xc   :  { %v915_v37 = vld [vmem:[%s1652_s0 + $0xc8] sm:$0xf]  ;;  %v1131_v38 = vld [vmem:[%s1652_s0 + $0xd8] sm:$0xf0]  ;;  %v1171_v41 = vld [vmem:[%s1650_s1 + $0x100] sm:$0xff]  ;;  %v876_v44 = vor.u32 %v1121_v36, %v875_v35 }
   0xd   :  { %v835_v39 = vld [vmem:[%s1652_s0 + $0x28] sm:$0xf]  ;;  %v1111_v40 = vld [vmem:[%s1652_s0 + $0x38] sm:$0xf0]  ;;  %v916_v45 = vor.u32 %v1131_v38, %v915_v37  ;;  %v1165_v48 = vld [vmem:[%s1650_s1 + $0xd0] sm:$0xff] }
   0xe   :  { %1184 = vmatpush.bf16.msra.mxu1 %v1143_v3  ;;  %1185 = vmatpush.bf16.msra.mxu2 %v1143_v3  ;;  %v1166_v42 = vld [vmem:[%s1650_s1 + $0xd8] sm:$0xff]  ;;  %v836_v47 = vor.u32 %v1111_v40, %v835_v39  ;;  %v1157_v49 = vld [vmem:[%s1650_s1 + $0x90] sm:$0xff]  ;;  %v1164_v51 = vld [vmem:[%s1650_s1 + $0xc8] sm:$0xff] }
   0xf   :  { %1186 = vmatpush.bf16.msra.mxu3 %v1143_v3  ;;  %549 = vmatpush.bf16.msra.mxu0 %v1143_v3  ;;  %v1158_v43 = vld [vmem:[%s1650_s1 + $0x98] sm:$0xff]  ;;  %v1149_v50 = vld [vmem:[%s1650_s1 + $0x50] sm:$0xff]  ;;  %v1156_v52 = vld [vmem:[%s1650_s1 + $0x88] sm:$0xff] }
  0x10   :  { %v1150_v46 = vld [vmem:[%s1650_s1 + $0x58] sm:$0xff]  ;;  %v1148_v53 = vld [vmem:[%s1650_s1 + $0x48] sm:$0xff]  ;;  %v1163_v54 = vld [vmem:[%s1650_s1 + $0xc0] sm:$0xff] }
  0x11   :  { %v1155_v55 = vld [vmem:[%s1650_s1 + $0x80] sm:$0xff]  ;;  %v1105_v56 = vld [vmem:[%s1652_s0 + $0xc] sm:$0xf]  ;;  %v817_v60 = vld [vmem:[%s1652_s0 + $0x14] sm:$0xf0] }
  0x12   :  { %1187 = vmatpush.bf16.msra.mxu1 %v1142_v4  ;;  %1188 = vmatpush.bf16.msra.mxu2 %v1142_v4  ;;  %v825_v57 = vld [vmem:[%s1652_s0 + $0x1c] sm:$0xf0]  ;;  %v1104_v59 = vld [vmem:[%s1652_s0 + $0x4] sm:$0xf]  ;;  %v823_v61 = vld [vmem:[%s1652_s0 + $0x8] sm:$0xf] }
  0x13   :  { %1189 = vmatpush.bf16.msra.mxu3 %v1142_v4  ;;  %550 = vmatpush.bf16.msra.mxu0 %v1142_v4  ;;  %v1147_v58 = vld [vmem:[%s1650_s1 + $0x40] sm:$0xff]  ;;  %v1107_v62 = vld [vmem:[%s1652_s0 + $0x18] sm:$0xf0]  ;;  %v828_v63 = vor.u32 %v1105_v56, %v825_v57  ;;  %v831_v0 = vld [vmem:[%s1652_s0 + $0x10] sm:$0xf]  ;;  %v820_v2 = vor.u32 %v1104_v59, %v817_v60 }
  0x14   :  { %v1108_v1 = vld [vmem:[%s1652_s0 + $0x20] sm:$0xf0]  ;;  %v824_v3 = vor.u32 %v1107_v62, %v823_v61  ;;  %v837_v8 = vld [vmem:[%s1652_s0 + $0x3c] sm:$0xf0]  ;;  %v843_v9 = vld [vmem:[%s1652_s0 + $0x30] sm:$0xf] }
  0x15   :  { %v832_v4 = vor.u32 %v1108_v1, %v831_v0  ;;  %v1112_v10 = vld [vmem:[%s1652_s0 + $0x40] sm:$0xf0]  ;;  %v1113_v13 = vld [vmem:[%s1652_s0 + $0x48] sm:$0xf0]  ;;  %v1115_v17 = vld [vmem:[%s1652_s0 + $0x5c] sm:$0xf] }
  0x16   :  { %1190 = vmatpush.bf16.msra.mxu1 %v1141_v5  ;;  %1191 = vmatpush.bf16.msra.mxu2 %v1141_v5  ;;  %v891_v36 = vld [vmem:[%s1652_s0 + $0x88] sm:$0xf]  ;;  %v1123_v37 = vld [vmem:[%s1652_s0 + $0x98] sm:$0xf0]  ;;  %v917_v56 = vld [vmem:[%s1652_s0 + $0xdc] sm:$0xf0] }
  0x17   :  { %1192 = vmatpush.bf16.msra.mxu3 %v1141_v5  ;;  %551 = vmatpush.bf16.msra.mxu0 %v1141_v5  ;;  %v1110_v5 = vld [vmem:[%s1652_s0 + $0x34] sm:$0xf]  ;;  %v892_v40 = vor.u32 %v1123_v37, %v891_v36  ;;  %v923_v57 = vld [vmem:[%s1652_s0 + $0xd0] sm:$0xf]  ;;  %v931_v60 = vld [vmem:[%s1652_s0 + $0xd8] sm:$0xf] }
  0x18   :  { %v1133_v61 = vld [vmem:[%s1652_s0 + $0xe8] sm:$0xf0]  ;;  %v1135_v1 = vld [vmem:[%s1652_s0 + $0xfc] sm:$0xf] }
  0x19   :  { %v932_v0 = vor.u32 %v1133_v61, %v931_v60 }
  0x1a   :  { %1193 = vmatpush.bf16.msra.mxu1 %v1140_v6  ;;  %1194 = vmatpush.bf16.msra.mxu2 %v1140_v6 }
  0x1b   :  { %1195 = vmatpush.bf16.msra.mxu3 %v1140_v6  ;;  %552 = vmatpush.bf16.msra.mxu0 %v1140_v6  ;;  %v845_v6 = vld [vmem:[%s1652_s0 + $0x44] sm:$0xf0] }
  0x1c   :  { %v848_v11 = vor.u32 %v1110_v5, %v845_v6  ;;  %v943_v5 = vld [vmem:[%s1652_s0 + $0xf8] sm:$0xf]  ;;  %v1137_v6 = vld [vmem:[%s1652_s0 + $0x108] sm:$0xf0] }
  0x1e   :  { %1196 = vmatpush.bf16.msra.mxu1 %v1139_v7  ;;  %1197 = vmatpush.bf16.msra.mxu2 %v1139_v7 }
  0x1f   :  { %1198 = vmatpush.bf16.msra.mxu3 %v1139_v7  ;;  %553 = vmatpush.bf16.msra.mxu0 %v1139_v7  ;;  %v1109_v7 = vld [vmem:[%s1652_s0 + $0x2c] sm:$0xf] }
  0x20   :  { %v840_v14 = vor.u32 %v1109_v7, %v837_v8  ;;  %v951_v8 = vld [vmem:[%s1652_s0 + $0x100] sm:$0xf] }
  0x21   :  { %564 = vmatmul.bf16.vlgmr.msra.gmra.mxu1 %v856_v18  ;;  %574 = vmatmul.bf16.vlgmr.msra.gmra.mxu2 %v896_v19  ;;  %v865_v18 = vld [vmem:[%s1652_s0 + $0x6c] sm:$0xf0]  ;;  %v1114_v19 = vld [vmem:[%s1652_s0 + $0x54] sm:$0xf] }
  0x22   :  { %634 = vmatpush.bf16.msrb.mxu2 %v1162_v15  ;;  %590 = vmatpush.bf16.msrb.mxu1 %v1154_v20  ;;  %v844_v15 = vor.u32 %v1112_v10, %v843_v9  ;;  %v857_v20 = vld [vmem:[%s1652_s0 + $0x64] sm:$0xf0]  ;;  %v1138_v9 = vld [vmem:[%s1652_s0 + $0x110] sm:$0xf0] }
  0x23   :  { %678 = vmatpush.bf16.msrb.mxu3 %v1170_v12  ;;  %554 = vmatmul.bf16.vlgmr.msra.gmra.mxu0 %v816_v21  ;;  %v851_v12 = vld [vmem:[%s1652_s0 + $0x38] sm:$0xf] }
  0x24   :  { %584 = vmatmul.bf16.vlgmr.msra.gmra.mxu3 %v936_v22  ;;  %726 = vmatpush.bf16.msrb.mxu0 %v1174_v23  ;;  %v852_v16 = vor.u32 %v1113_v13, %v851_v12  ;;  %v863_v21 = vld [vmem:[%s1652_s0 + $0x58] sm:$0xf]  ;;  %v1117_v22 = vld [vmem:[%s1652_s0 + $0x68] sm:$0xf0]  ;;  %v868_v23 = vor.u32 %v1115_v17, %v865_v18  ;;  %v952_v13 = vor.u32 %v1138_v9, %v951_v8 }
  0x26   :  { %635 = vmatpush.bf16.msrb.mxu2 %v1161_v25  ;;  %591 = vmatpush.bf16.msrb.mxu1 %v1153_v26  ;;  %v1118_v25 = vld [vmem:[%s1652_s0 + $0x70] sm:$0xf0]  ;;  %v860_v26 = vor.u32 %v1114_v19, %v857_v20 }
  0x27   :  { %679 = vmatpush.bf16.msrb.mxu3 %v1169_v24  ;;  %v871_v24 = vld [vmem:[%s1652_s0 + $0x60] sm:$0xf] }
  0x28   :  { %727 = vmatpush.bf16.msrb.mxu0 %v1173_v27  ;;  %v864_v27 = vor.u32 %v1117_v22, %v863_v21 }
  0x2a   :  { %636 = vmatpush.bf16.msrb.mxu2 %v1160_v29  ;;  %592 = vmatpush.bf16.msrb.mxu1 %v1152_v30  ;;  %v1120_v29 = vld [vmem:[%s1652_s0 + $0x84] sm:$0xf]  ;;  %v885_v30 = vld [vmem:[%s1652_s0 + $0x94] sm:$0xf0] }
  0x2b   :  { %680 = vmatpush.bf16.msrb.mxu3 %v1168_v28  ;;  %v872_v28 = vor.u32 %v1118_v25, %v871_v24  ;;  %v888_v35 = vor.u32 %v1120_v29, %v885_v30 }
  0x2c   :  { %728 = vmatpush.bf16.msrb.mxu0 %v1172_v31  ;;  %v1119_v31 = vld [vmem:[%s1652_s0 + $0x7c] sm:$0xf] }
  0x2e   :  { %637 = vmatpush.bf16.msrb.mxu2 %v1159_v33  ;;  %593 = vmatpush.bf16.msrb.mxu1 %v1151_v34  ;;  %v883_v33 = vld [vmem:[%s1652_s0 + $0x80] sm:$0xf]  ;;  %v1122_v34 = vld [vmem:[%s1652_s0 + $0x90] sm:$0xf0] }
  0x2f   :  { %681 = vmatpush.bf16.msrb.mxu3 %v1167_v32  ;;  %v877_v32 = vld [vmem:[%s1652_s0 + $0x8c] sm:$0xf0]  ;;  %v884_v39 = vor.u32 %v1122_v34, %v883_v33 }
  0x30   :  { %729 = vmatpush.bf16.msrb.mxu0 %v1171_v41  ;;  %v880_v38 = vor.u32 %v1119_v31, %v877_v32  ;;  %v1125_v41 = vld [vmem:[%s1652_s0 + $0xac] sm:$0xf] }
  0x31   :  { %569 = vmatmul.bf16.gmra.mxu1 %v876_v44  ;;  %579 = vmatmul.bf16.gmra.mxu2 %v916_v45  ;;  %v897_v44 = vld [vmem:[%s1652_s0 + $0xb4] sm:$0xf0]  ;;  %v903_v45 = vld [vmem:[%s1652_s0 + $0xa8] sm:$0xf] }
  0x32   :  { %638 = vmatpush.bf16.msrb.mxu2 %v1158_v43  ;;  %594 = vmatpush.bf16.msrb.mxu1 %v1150_v46  ;;  %v1124_v43 = vld [vmem:[%s1652_s0 + $0xa4] sm:$0xf]  ;;  %v1127_v46 = vld [vmem:[%s1652_s0 + $0xb8] sm:$0xf0] }
  0x33   :  { %682 = vmatpush.bf16.msrb.mxu3 %v1166_v42  ;;  %559 = vmatmul.bf16.gmra.mxu0 %v836_v47  ;;  %v905_v42 = vld [vmem:[%s1652_s0 + $0xbc] sm:$0xf0] }
  0x34   :  { %v908_v47 = vor.u32 %v1125_v41, %v905_v42 }
  0x36   :  { %639 = vmatpush.bf16.msrb.mxu2 %v1157_v49  ;;  %595 = vmatpush.bf16.msrb.mxu1 %v1149_v50  ;;  %v1128_v49 = vld [vmem:[%s1652_s0 + $0xc0] sm:$0xf0]  ;;  %v900_v50 = vor.u32 %v1124_v43, %v897_v44 }
  0x37   :  { %683 = vmatpush.bf16.msrb.mxu3 %v1165_v48  ;;  %v911_v48 = vld [vmem:[%s1652_s0 + $0xb0] sm:$0xf] }
  0x3a   :  { %640 = vmatpush.bf16.msrb.mxu2 %v1156_v52  ;;  %596 = vmatpush.bf16.msrb.mxu1 %v1148_v53  ;;  %v912_v52 = vor.u32 %v1128_v49, %v911_v48  ;;  %v1130_v53 = vld [vmem:[%s1652_s0 + $0xd4] sm:$0xf] }
  0x3b   :  { %684 = vmatpush.bf16.msrb.mxu3 %v1164_v51  ;;  %v904_v51 = vor.u32 %v1127_v46, %v903_v45 }
  0x3e   :  { %641 = vmatpush.bf16.msrb.mxu2 %v1155_v55  ;;  %597 = vmatpush.bf16.msrb.mxu1 %v1147_v58  ;;  %v1129_v55 = vld [vmem:[%s1652_s0 + $0xcc] sm:$0xf]  ;;  %v1132_v58 = vld [vmem:[%s1652_s0 + $0xe0] sm:$0xf0] }
  0x3f   :  { %685 = vmatpush.bf16.msrb.mxu3 %v1163_v54  ;;  %v925_v54 = vld [vmem:[%s1652_s0 + $0xe4] sm:$0xf0]  ;;  %v920_v62 = vor.u32 %v1129_v55, %v917_v56 }
  0x40   :  { %v928_v59 = vor.u32 %v1130_v53, %v925_v54 }
  0x41   :  { %598 = vmatmul.bf16.vlgmr.msrb.gmra.mxu1 %v820_v2  ;;  %642 = vmatmul.bf16.vlgmr.msrb.gmra.mxu2 %v824_v3  ;;  %v945_v2 = vld [vmem:[%s1652_s0 + $0x10c] sm:$0xf0]  ;;  %v1134_v3 = vld [vmem:[%s1652_s0 + $0xf4] sm:$0xf] }
  0x42   :  { %686 = vmatmul.bf16.vlgmr.msrb.gmra.mxu3 %v828_v63  ;;  %v924_v63 = vor.u32 %v1132_v58, %v923_v57  ;;  %v948_v7 = vor.u32 %v1135_v1, %v945_v2 }
  0x43   :  { %1097 = vmatmul.msk.bf16.vlgmr.msrb.gmra.mxu0 %vm524_vm0, %v832_v4  ;;  %v937_v4 = vld [vmem:[%s1652_s0 + $0x104] sm:$0xf0] }
  0x44   :  { %v940_v10 = vor.u32 %v1134_v3, %v937_v4 }
  0x51   :  { %603 = vmatmul.bf16.gmra.mxu1 %v840_v14  ;;  %647 = vmatmul.bf16.gmra.mxu2 %v844_v15  ;;  %v1550_v15 = vld [vmem:[%s1651_s2] ss:$0 sm:$0xff] }
  0x52   :  { %691 = vmatmul.bf16.gmra.mxu3 %v848_v11  ;;  %v944_v11 = vor.u32 %v1137_v6, %v943_v5 }
  0x53   :  { %1098 = vmatmul.msk.bf16.gmra.mxu0 %vm524_vm0, %v852_v16 }
  0x61   :  { %608 = vmatmul.bf16.gmra.mxu1 %v860_v26  ;;  %652 = vmatmul.bf16.gmra.mxu2 %v864_v27 }
  0x62   :  { %696 = vmatmul.bf16.gmra.mxu3 %v868_v23 }
  0x63   :  { %1099 = vmatmul.msk.bf16.gmra.mxu0 %vm524_vm0, %v872_v28 }
  0x71   :  { %613 = vmatmul.bf16.gmra.mxu1 %v880_v38  ;;  %657 = vmatmul.bf16.gmra.mxu2 %v884_v39 }
  0x72   :  { %701 = vmatmul.bf16.gmra.mxu3 %v888_v35 }
  0x73   :  { %1100 = vmatmul.msk.bf16.gmra.mxu0 %vm524_vm0, %v892_v40 }
  0x81   :  { %618 = vmatmul.bf16.gmra.mxu1 %v900_v50  ;;  %662 = vmatmul.bf16.gmra.mxu2 %v904_v51 }
  0x82   :  { %706 = vmatmul.bf16.gmra.mxu3 %v908_v47 }
  0x83   :  { %1101 = vmatmul.msk.bf16.gmra.mxu0 %vm524_vm0, %v912_v52 }
  0x91   :  { %623 = vmatmul.bf16.gmra.mxu1 %v920_v62  ;;  %667 = vmatmul.bf16.gmra.mxu2 %v924_v63 }
  0x92   :  { %711 = vmatmul.bf16.gmra.mxu3 %v928_v59 }
  0x93   :  { %1102 = vmatmul.msk.bf16.gmra.mxu0 %vm524_vm0, %v932_v0 }
  0x9e   :  { %v1544_v12 = vpop.f32.mrf.mxu1 }
  0xa0   :  { %v555_v14 = vpop.f32.mrf.mxu0 }
  0xa1   :  { %628 = vmatmul.bf16.gmra.mxu1 %v940_v10  ;;  %672 = vmatmul.bf16.gmra.mxu2 %v944_v11  ;;  %v556_v36 = vadd.f32 %v1550_v15, %v555_v14  ;;  %v566_v14 = vadd.f32 %v1550_v15, %v1544_v12 }
  0xa2   :  { %716 = vmatmul.bf16.gmra.mxu3 %v948_v7 }
  0xa3   :  { %1103 = vmatmul.msk.bf16.gmra.mxu0 %vm524_vm0, %v952_v13 }
  0xa4   :  { %v575_v16 = vpop.f32.mrf.mxu2 }
  0xa5   :  { %v1553_v17 = vadd.f32 %v1550_v15, %v575_v16 }
  0xa6   :  { %v1555_v18 = vpop.f32.mrf.mxu1 }
  0xa7   :  { %v585_v19 = vpop.f32.mrf.mxu3 }
  0xa8   :  { %v557_v20 = vpop.f32.mrf.mxu0  ;;  %v1558_v21 = vadd.f32 %v1550_v15, %v585_v19 }
  0xa9   :  { %v558_v44 = vadd.f32 %v1550_v15, %v557_v20 }
  0xac   :  { %v577_v22 = vpop.f32.mrf.mxu2 }
  0xad   :  { %v1561_v23 = vadd.f32 %v1550_v15, %v577_v22 }
  0xae   :  { %v1563_v24 = vpop.f32.mrf.mxu1 }
  0xaf   :  { %v587_v25 = vpop.f32.mrf.mxu3 }
  0xb0   :  { %v560_v26 = vpop.f32.mrf.mxu0  ;;  %v1566_v27 = vadd.f32 %v1550_v15, %v587_v25 }
  0xb1   :  { %v561_v55 = vadd.f32 %v1550_v15, %v560_v26 }
  0xb4   :  { %v580_v28 = vpop.f32.mrf.mxu2 }
  0xb5   :  { %v1569_v29 = vadd.f32 %v1550_v15, %v580_v28 }
  0xb6   :  { %v1571_v30 = vpop.f32.mrf.mxu1 }
  0xb8   :  { %v562_v31 = vpop.f32.mrf.mxu0 }
  0xb9   :  { %v563_v2 = vadd.f32 %v1550_v15, %v562_v31 }
  0xbc   :  { %v582_v32 = vpop.f32.mrf.mxu2 }
  0xbd   :  { %v1574_v33 = vadd.f32 %v1550_v15, %v582_v32 }
  0xbe   :  { %v599_v34 = vpop.f32.mrf.mxu1 }
  0xbf   :  { %v600_v38 = vadd.f32 %v599_v34, %v556_v36 }
  0xc0   :  { %v731_v35 = vpop.f32.mrf.mxu0 }
  0xc4   :  { %v643_v39 = vpop.f32.mrf.mxu2 }
  0xc5   :  { %v687_v37 = vpop.f32.mrf.mxu3  ;;  %v644_v40 = vadd.f32 %v643_v39, %v600_v38 }
  0xc6   :  { %v601_v41 = vpop.f32.mrf.mxu1 }
  0xc7   :  { %v688_v42 = vadd.f32 %v687_v37, %v644_v40  ;;  %v602_v48 = vadd.f32 %v601_v41, %v558_v44 }
  0xc8   :  { %v733_v43 = vpop.f32.mrf.mxu0 }
  0xc9   :  { %v732_v45 = vadd.f32 %v731_v35, %v688_v42  ;;  %v568_v35 = vadd.f32 %v1550_v15, %v1555_v18 }
  0xcb   :  { %v766_v47 = vmax.f32 %v732_v45, 0.0  ;;  %v571_v45 = vadd.f32 %v1550_v15, %v1563_v24 }
  0xcc   :  { %v645_v49 = vpop.f32.mrf.mxu2 }
  0xcd   :  { %v689_v46 = vpop.f32.mrf.mxu3  ;;  %v780_v50 = vpack.c.bf16 %v766_v47, %v766_v47  ;;  %v646_v51 = vadd.f32 %v645_v49, %v602_v48 }
  0xce   :  { %v604_v52 = vpop.f32.mrf.mxu1 }
  0xcf   :  { %795 = vst.msk [vmem:[%s1653_s3] sm:$0xf] %vm794_vm1, %v780_v50  ;;  %v690_v53 = vadd.f32 %v689_v46, %v646_v51  ;;  %v605_v59 = vadd.f32 %v604_v52, %v561_v55  ;;  %v573_v55 = vadd.f32 %v1550_v15, %v1571_v30 }
  0xd0   :  { %v736_v54 = vpop.f32.mrf.mxu0 }
  0xd1   :  { %v734_v56 = vadd.f32 %v733_v43, %v690_v53 }
  0xd3   :  { %v767_v58 = vmax.f32 %v734_v56, 0.0 }
  0xd4   :  { %v648_v60 = vpop.f32.mrf.mxu2 }
  0xd5   :  { %v692_v57 = vpop.f32.mrf.mxu3  ;;  %v781_v61 = vpack.c.bf16 %v767_v58, %v767_v58  ;;  %v649_v62 = vadd.f32 %v648_v60, %v605_v59 }
  0xd6   :  { %v606_v63 = vpop.f32.mrf.mxu1 }
  0xd7   :  { %796 = vst.msk [vmem:[%s1653_s3 + $0x4] sm:$0xf] %vm794_vm1, %v781_v61  ;;  %v693_v0 = vadd.f32 %v692_v57, %v649_v62  ;;  %v607_v6 = vadd.f32 %v606_v63, %v563_v2 }
  0xd8   :  { %v738_v1 = vpop.f32.mrf.mxu0 }
  0xd9   :  { %v737_v3 = vadd.f32 %v736_v54, %v693_v0 }
  0xdb   :  { %v768_v5 = vmax.f32 %v737_v3, 0.0 }
  0xdc   :  { %v650_v7 = vpop.f32.mrf.mxu2 }
  0xdd   :  { %v694_v4 = vpop.f32.mrf.mxu3  ;;  %v782_v8 = vpack.c.bf16 %v768_v5, %v768_v5  ;;  %v651_v9 = vadd.f32 %v650_v7, %v607_v6 }
  0xde   :  { %v609_v10 = vpop.f32.mrf.mxu1 }
  0xdf   :  { %797 = vst.msk [vmem:[%s1653_s3 + $0x8] sm:$0xf] %vm794_vm1, %v782_v8  ;;  %v695_v11 = vadd.f32 %v694_v4, %v651_v9  ;;  %v610_v22 = vadd.f32 %v609_v10, %v566_v14 }
  0xe0   :  { %v741_v13 = vpop.f32.mrf.mxu0 }
  0xe1   :  { %v739_v16 = vadd.f32 %v738_v1, %v695_v11 }
  0xe3   :  { %v769_v20 = vmax.f32 %v739_v16, 0.0 }
  0xe4   :  { %v653_v25 = vpop.f32.mrf.mxu2 }
  0xe5   :  { %v697_v19 = vpop.f32.mrf.mxu3  ;;  %v783_v26 = vpack.c.bf16 %v769_v20, %v769_v20  ;;  %v654_v28 = vadd.f32 %v653_v25, %v610_v22 }
  0xe6   :  { %v611_v31 = vpop.f32.mrf.mxu1 }
  0xe7   :  { %798 = vst.msk [vmem:[%s1653_s3 + $0xc] sm:$0xf] %vm794_vm1, %v783_v26  ;;  %v698_v32 = vadd.f32 %v697_v19, %v654_v28  ;;  %v612_v38 = vadd.f32 %v611_v31, %v568_v35 }
  0xe8   :  { %v743_v34 = vpop.f32.mrf.mxu0 }
  0xe9   :  { %v742_v36 = vadd.f32 %v741_v13, %v698_v32 }
  0xeb   :  { %v770_v37 = vmax.f32 %v742_v36, 0.0 }
  0xec   :  { %v655_v39 = vpop.f32.mrf.mxu2 }
  0xed   :  { %v699_v12 = vpop.f32.mrf.mxu3  ;;  %v784_v40 = vpack.c.bf16 %v770_v37, %v770_v37  ;;  %v656_v41 = vadd.f32 %v655_v39, %v612_v38 }
  0xee   :  { %v614_v42 = vpop.f32.mrf.mxu1 }
  0xef   :  { %799 = vst.msk [vmem:[%s1653_s3 + $0x10] sm:$0xf] %vm794_vm1, %v784_v40  ;;  %v700_v43 = vadd.f32 %v699_v12, %v656_v41  ;;  %v615_v48 = vadd.f32 %v614_v42, %v571_v45 }
  0xf0   :  { %v746_v44 = vpop.f32.mrf.mxu0 }
  0xf1   :  { %v744_v46 = vadd.f32 %v743_v34, %v700_v43 }
  0xf3   :  { %v771_v47 = vmax.f32 %v744_v46, 0.0 }
  0xf4   :  { %v658_v49 = vpop.f32.mrf.mxu2 }
  0xf5   :  { %v702_v18 = vpop.f32.mrf.mxu3  ;;  %v785_v50 = vpack.c.bf16 %v771_v47, %v771_v47  ;;  %v659_v51 = vadd.f32 %v658_v49, %v615_v48 }
  0xf6   :  { %v616_v52 = vpop.f32.mrf.mxu1 }
  0xf7   :  { %800 = vst.msk [vmem:[%s1653_s3 + $0x14] sm:$0xf] %vm794_vm1, %v785_v50  ;;  %v703_v53 = vadd.f32 %v702_v18, %v659_v51  ;;  %v617_v58 = vadd.f32 %v616_v52, %v573_v55 }
  0xf8   :  { %v748_v54 = vpop.f32.mrf.mxu0 }
  0xf9   :  { %v747_v56 = vadd.f32 %v746_v44, %v703_v53 }
  0xfb   :  { %v772_v57 = vmax.f32 %v747_v56, 0.0 }
  0xfc   :  { %v660_v59 = vpop.f32.mrf.mxu2 }
  0xfd   :  { %v704_v24 = vpop.f32.mrf.mxu3  ;;  %v786_v60 = vpack.c.bf16 %v772_v57, %v772_v57  ;;  %v661_v61 = vadd.f32 %v660_v59, %v617_v58 }
  0xfe   :  { %v619_v62 = vpop.f32.mrf.mxu1 }
  0xff   :  { %801 = vst.msk [vmem:[%s1653_s3 + $0x18] sm:$0xf] %vm794_vm1, %v786_v60  ;;  %v705_v63 = vadd.f32 %v704_v24, %v661_v61  ;;  %v620_v15 = vadd.f32 %v619_v62, %v1553_v17 }
 0x100   :  { %v751_v0 = vpop.f32.mrf.mxu0 }
 0x101   :  { %v749_v1 = vadd.f32 %v748_v54, %v705_v63 }
 0x103   :  { %v773_v3 = vmax.f32 %v749_v1, 0.0 }
 0x104   :  { %v663_v30 = vpop.f32.mrf.mxu2 }
 0x105   :  { %v707_v2 = vpop.f32.mrf.mxu3  ;;  %v787_v4 = vpack.c.bf16 %v773_v3, %v773_v3  ;;  %v664_v5 = vadd.f32 %v663_v30, %v620_v15 }
 0x106   :  { %v621_v6 = vpop.f32.mrf.mxu1 }
 0x107   :  { %802 = vst.msk [vmem:[%s1653_s3 + $0x1c] sm:$0xf] %vm794_vm1, %v787_v4  ;;  %v708_v7 = vadd.f32 %v707_v2, %v664_v5  ;;  %v622_v13 = vadd.f32 %v621_v6, %v1561_v23 }
 0x108   :  { %v753_v8 = vpop.f32.mrf.mxu0 }
 0x109   :  { %v752_v9 = vadd.f32 %v751_v0, %v708_v7 }
 0x10b   :  { %v774_v11 = vmax.f32 %v752_v9, 0.0 }
 0x10c   :  { %v665_v14 = vpop.f32.mrf.mxu2 }
 0x10d   :  { %v709_v10 = vpop.f32.mrf.mxu3  ;;  %v788_v16 = vpack.c.bf16 %v774_v11, %v774_v11  ;;  %v666_v19 = vadd.f32 %v665_v14, %v622_v13 }
 0x10e   :  { %v624_v17 = vpop.f32.mrf.mxu1 }
 0x10f   :  { %803 = vst.msk [vmem:[%s1653_s3 + $0x20] sm:$0xf] %vm794_vm1, %v788_v16  ;;  %v710_v20 = vadd.f32 %v709_v10, %v666_v19  ;;  %v625_v31 = vadd.f32 %v624_v17, %v1569_v29 }
 0x110   :  { %v756_v25 = vpop.f32.mrf.mxu0 }
 0x111   :  { %v754_v22 = vadd.f32 %v753_v8, %v710_v20 }
 0x113   :  { %v775_v28 = vmax.f32 %v754_v22, 0.0 }
 0x114   :  { %v668_v32 = vpop.f32.mrf.mxu2 }
 0x115   :  { %v712_v26 = vpop.f32.mrf.mxu3  ;;  %v789_v34 = vpack.c.bf16 %v775_v28, %v775_v28  ;;  %v669_v35 = vadd.f32 %v668_v32, %v625_v31 }
 0x116   :  { %v626_v23 = vpop.f32.mrf.mxu1 }
 0x117   :  { %804 = vst.msk [vmem:[%s1653_s3 + $0x24] sm:$0xf] %vm794_vm1, %v789_v34  ;;  %v713_v36 = vadd.f32 %v712_v26, %v669_v35  ;;  %v627_v39 = vadd.f32 %v626_v23, %v1574_v33 }
 0x118   :  { %v758_v40 = vpop.f32.mrf.mxu0 }
 0x119   :  { %v757_v12 = vadd.f32 %v756_v25, %v713_v36 }
 0x11b   :  { %v776_v38 = vmax.f32 %v757_v12, 0.0 }
 0x11c   :  { %v670_v41 = vpop.f32.mrf.mxu2 }
 0x11d   :  { %v714_v37 = vpop.f32.mrf.mxu3  ;;  %v790_v42 = vpack.c.bf16 %v776_v38, %v776_v38  ;;  %v671_v43 = vadd.f32 %v670_v41, %v627_v39 }
 0x11e   :  { %v629_v29 = vpop.f32.mrf.mxu1 }
 0x11f   :  { %805 = vst.msk [vmem:[%s1653_s3 + $0x28] sm:$0xf] %vm794_vm1, %v790_v42  ;;  %v715_v44 = vadd.f32 %v714_v37, %v671_v43  ;;  %v630_v18 = vadd.f32 %v629_v29, %v1558_v21 }
 0x120   :  { %v761_v33 = vpop.f32.mrf.mxu0 }
 0x121   :  { %v759_v45 = vadd.f32 %v758_v40, %v715_v44 }
 0x123   :  { %v777_v46 = vmax.f32 %v759_v45, 0.0 }
 0x124   :  { %v673_v48 = vpop.f32.mrf.mxu2 }
 0x125   :  { %v717_v47 = vpop.f32.mrf.mxu3  ;;  %v791_v49 = vpack.c.bf16 %v777_v46, %v777_v46  ;;  %v674_v50 = vadd.f32 %v673_v48, %v630_v18 }
 0x126   :  { %v631_v52 = vpop.f32.mrf.mxu1 }
 0x127   :  { %806 = vst.msk [vmem:[%s1653_s3 + $0x2c] sm:$0xf] %vm794_vm1, %v791_v49  ;;  %v718_v51 = vadd.f32 %v717_v47, %v674_v50  ;;  %v632_v55 = vadd.f32 %v631_v52, %v1566_v27 }
 0x128   :  { %v763_v59 = vpop.f32.mrf.mxu0 }
 0x129   :  { %v762_v53 = vadd.f32 %v761_v33, %v718_v51 }
 0x12b   :  { %v778_v54 = vmax.f32 %v762_v53, 0.0 }
 0x12c   :  { %v675_v56 = vpop.f32.mrf.mxu2 }
 0x12d   :  { %v792_v24 = vpack.c.bf16 %v778_v54, %v778_v54  ;;  %v676_v57 = vadd.f32 %v675_v56, %v632_v55  ;;  %v719_v21 = vpop.f32.mrf.mxu3 }
 0x12f   :  { %807 = vst.msk [vmem:[%s1653_s3 + $0x30] sm:$0xf] %vm794_vm1, %v792_v24  ;;  %v720_v58 = vadd.f32 %v719_v21, %v676_v57 }
 0x131   :  { %v764_v60 = vadd.f32 %v763_v59, %v720_v58 }
 0x133   :  { %v779_v61 = vmax.f32 %v764_v60, 0.0 }
 0x135   :  { %v793_v62 = vpack.c.bf16 %v779_v61, %v779_v61 }
 0x137   :  { %808 = vst.msk [vmem:[%s1653_s3 + $0x34] sm:$0xf] %vm794_vm1, %v793_v62 }

// kernel: dqn_forward.7
= control target key start
LH: loop header
LB: loop body
LE: loop exit
PB: predicated region body
PF: predicated region fallthrough
CT: control target
= control target key end

     0   :  { %vm4886_vm0 = vcmask 523264   ;;  %vm6618_vm1 = vcmask 31744   ;;  %s16307_s1 = inlined_call_operand.vmem [shape: bf16[3136,512], index: 1, kind: input, shape index: {}]   ;;  %s16308_s0 = inlined_call_operand.vmem [shape: bf16[16,3136], index: 0, kind: input, shape index: {}]   ;;  %s16309_s2 = inlined_call_operand.vmem [shape: f32[1,512], index: 2, kind: input, shape index: {}]   ;;  %s16310_s3 = inlined_call_operand.vmem [shape: bf16[512,4], index: 3, kind: input, shape index: {}]   ;;  %s16311_s4 = inlined_call_operand.vmem [shape: f32[1,4], index: 4, kind: input, shape index: {}]   ;;  %s16312_s5 = inlined_call_operand.vmem [shape: f32[16,4], index: 5, kind: output, shape index: {}]  }
   0x1   :  { %v6839_v0 = vld [vmem:[%s16307_s1 + $0xe0] sm:$0xf]  ;;  %v10048_v1 = vld [vmem:[%s16307_s1 + $0xec] sm:$0xf0] }
   0x2   :  { %v6967_v2 = vld [vmem:[%s16307_s1 + $0x1e0] sm:$0xf]  ;;  %v6840_v3 = vor.u32 %v10048_v1, %v6839_v0  ;;  %v10080_v4 = vld [vmem:[%s16307_s1 + $0x1ec] sm:$0xf0] }
   0x3   :  { %v7095_v5 = vld [vmem:[%s16307_s1 + $0x2e0] sm:$0xf]  ;;  %v10112_v6 = vld [vmem:[%s16307_s1 + $0x2ec] sm:$0xf0]  ;;  %v6968_v7 = vor.u32 %v10080_v4, %v6967_v2 }
   0x4   :  { %v7096_v8 = vor.u32 %v10112_v6, %v7095_v5  ;;  %v7223_v9 = vld [vmem:[%s16307_s1 + $0x3e0] sm:$0xf]  ;;  %v10144_v10 = vld [vmem:[%s16307_s1 + $0x3ec] sm:$0xf0]  ;;  %4890 = vmatpush.bf16.msra.mxu0 %v6840_v3 }
   0x5   :  { %v6823_v11 = vld [vmem:[%s16307_s1 + $0xc0] sm:$0xf]  ;;  %v7224_v12 = vor.u32 %v10144_v10, %v7223_v9  ;;  %v10044_v13 = vld [vmem:[%s16307_s1 + $0xcc] sm:$0xf0]  ;;  %4904 = vmatpush.bf16.msra.mxu1 %v6968_v7 }
   0x6   :  { %v6951_v14 = vld [vmem:[%s16307_s1 + $0x1c0] sm:$0xf]  ;;  %v10076_v15 = vld [vmem:[%s16307_s1 + $0x1cc] sm:$0xf0]  ;;  %4918 = vmatpush.bf16.msra.mxu2 %v7096_v8  ;;  %v6824_v16 = vor.u32 %v10044_v13, %v6823_v11 }
   0x7   :  { %v6952_v17 = vor.u32 %v10076_v15, %v6951_v14  ;;  %v7079_v18 = vld [vmem:[%s16307_s1 + $0x2c0] sm:$0xf]  ;;  %v10108_v19 = vld [vmem:[%s16307_s1 + $0x2cc] sm:$0xf0]  ;;  %4932 = vmatpush.bf16.msra.mxu3 %v7224_v12 }
   0x8   :  { %v7207_v20 = vld [vmem:[%s16307_s1 + $0x3c0] sm:$0xf]  ;;  %v7080_v21 = vor.u32 %v10108_v19, %v7079_v18  ;;  %v10140_v22 = vld [vmem:[%s16307_s1 + $0x3cc] sm:$0xf0]  ;;  %4891 = vmatpush.bf16.msra.mxu0 %v6824_v16 }
   0x9   :  { %v6807_v23 = vld [vmem:[%s16307_s1 + $0xa0] sm:$0xf]  ;;  %v10040_v24 = vld [vmem:[%s16307_s1 + $0xac] sm:$0xf0]  ;;  %v7208_v25 = vor.u32 %v10140_v22, %v7207_v20  ;;  %4905 = vmatpush.bf16.msra.mxu1 %v6952_v17 }
   0xa   :  { %v6935_v26 = vld [vmem:[%s16307_s1 + $0x1a0] sm:$0xf]  ;;  %v10072_v27 = vld [vmem:[%s16307_s1 + $0x1ac] sm:$0xf0]  ;;  %v6808_v29 = vor.u32 %v10040_v24, %v6807_v23  ;;  %4919 = vmatpush.bf16.msra.mxu2 %v7080_v21 }
   0xb   :  { %v7063_v28 = vld [vmem:[%s16307_s1 + $0x2a0] sm:$0xf]  ;;  %v10104_v30 = vld [vmem:[%s16307_s1 + $0x2ac] sm:$0xf0]  ;;  %v6936_v33 = vor.u32 %v10072_v27, %v6935_v26  ;;  %4933 = vmatpush.bf16.msra.mxu3 %v7208_v25 }
   0xc   :  { %v7191_v31 = vld [vmem:[%s16307_s1 + $0x3a0] sm:$0xf]  ;;  %v10136_v32 = vld [vmem:[%s16307_s1 + $0x3ac] sm:$0xf0]  ;;  %v7064_v34 = vor.u32 %v10104_v30, %v7063_v28  ;;  %4892 = vmatpush.bf16.msra.mxu0 %v6808_v29 }
   0xd   :  { %v6791_v35 = vld [vmem:[%s16307_s1 + $0x80] sm:$0xf]  ;;  %v10036_v36 = vld [vmem:[%s16307_s1 + $0x8c] sm:$0xf0]  ;;  %v7192_v38 = vor.u32 %v10136_v32, %v7191_v31  ;;  %4906 = vmatpush.bf16.msra.mxu1 %v6936_v33 }
   0xe   :  { %v6919_v37 = vld [vmem:[%s16307_s1 + $0x180] sm:$0xf]  ;;  %v10068_v39 = vld [vmem:[%s16307_s1 + $0x18c] sm:$0xf0]  ;;  %v6792_v44 = vor.u32 %v10036_v36, %v6791_v35  ;;  %4920 = vmatpush.bf16.msra.mxu2 %v7064_v34 }
   0xf   :  { %v7047_v40 = vld [vmem:[%s16307_s1 + $0x280] sm:$0xf]  ;;  %v10100_v41 = vld [vmem:[%s16307_s1 + $0x28c] sm:$0xf0]  ;;  %v6920_v45 = vor.u32 %v10068_v39, %v6919_v37  ;;  %4934 = vmatpush.bf16.msra.mxu3 %v7192_v38 }
  0x10   :  { %v7175_v42 = vld [vmem:[%s16307_s1 + $0x380] sm:$0xf]  ;;  %v10132_v43 = vld [vmem:[%s16307_s1 + $0x38c] sm:$0xf0]  ;;  %v7048_v46 = vor.u32 %v10100_v41, %v7047_v40  ;;  %4893 = vmatpush.bf16.msra.mxu0 %v6792_v44 }
  0x11   :  { %v6775_v47 = vld [vmem:[%s16307_s1 + $0x60] sm:$0xf]  ;;  %v10032_v48 = vld [vmem:[%s16307_s1 + $0x6c] sm:$0xf0]  ;;  %v7176_v50 = vor.u32 %v10132_v43, %v7175_v42  ;;  %4907 = vmatpush.bf16.msra.mxu1 %v6920_v45 }
  0x12   :  { %v6903_v49 = vld [vmem:[%s16307_s1 + $0x160] sm:$0xf]  ;;  %v10064_v51 = vld [vmem:[%s16307_s1 + $0x16c] sm:$0xf0]  ;;  %v6776_v56 = vor.u32 %v10032_v48, %v6775_v47  ;;  %4921 = vmatpush.bf16.msra.mxu2 %v7048_v46 }
  0x13   :  { %v7031_v52 = vld [vmem:[%s16307_s1 + $0x260] sm:$0xf]  ;;  %v10096_v53 = vld [vmem:[%s16307_s1 + $0x26c] sm:$0xf0]  ;;  %v6904_v57 = vor.u32 %v10064_v51, %v6903_v49  ;;  %4935 = vmatpush.bf16.msra.mxu3 %v7176_v50 }
  0x14   :  { %v7159_v54 = vld [vmem:[%s16307_s1 + $0x360] sm:$0xf]  ;;  %v10128_v55 = vld [vmem:[%s16307_s1 + $0x36c] sm:$0xf0]  ;;  %v7032_v58 = vor.u32 %v10096_v53, %v7031_v52  ;;  %4894 = vmatpush.bf16.msra.mxu0 %v6776_v56  ;;  %v10005_v53 = vld [vmem:[%s16308_s0 + $0x60] sm:$0xf0] }
  0x15   :  { %v6759_v59 = vld [vmem:[%s16307_s1 + $0x40] sm:$0xf]  ;;  %v10028_v60 = vld [vmem:[%s16307_s1 + $0x4c] sm:$0xf0]  ;;  %v7160_v62 = vor.u32 %v10128_v55, %v7159_v54  ;;  %4908 = vmatpush.bf16.msra.mxu1 %v6904_v57  ;;  %v6635_v54 = vld [vmem:[%s16308_s0 + $0x8] sm:$0xf] }
  0x16   :  { %v6887_v61 = vld [vmem:[%s16307_s1 + $0x140] sm:$0xf]  ;;  %v10060_v63 = vld [vmem:[%s16307_s1 + $0x14c] sm:$0xf0]  ;;  %v6760_v4 = vor.u32 %v10028_v60, %v6759_v59  ;;  %4922 = vmatpush.bf16.msra.mxu2 %v7032_v58  ;;  %v10006_v59 = vld [vmem:[%s16308_s0 + $0x68] sm:$0xf0] }
  0x17   :  { %v7015_v0 = vld [vmem:[%s16307_s1 + $0x240] sm:$0xf]  ;;  %v10092_v1 = vld [vmem:[%s16307_s1 + $0x24c] sm:$0xf0]  ;;  %v6888_v5 = vor.u32 %v10060_v63, %v6887_v61  ;;  %4936 = vmatpush.bf16.msra.mxu3 %v7160_v62 }
  0x18   :  { %v7143_v2 = vld [vmem:[%s16307_s1 + $0x340] sm:$0xf]  ;;  %v10124_v3 = vld [vmem:[%s16307_s1 + $0x34c] sm:$0xf0]  ;;  %v7016_v6 = vor.u32 %v10092_v1, %v7015_v0  ;;  %4895 = vmatpush.bf16.msra.mxu0 %v6760_v4  ;;  %v11136_v1 = vor.u32 %v10006_v59, %v6635_v54 }
  0x19   :  { %v6743_v7 = vld [vmem:[%s16307_s1 + $0x20] sm:$0xf]  ;;  %v10024_v8 = vld [vmem:[%s16307_s1 + $0x2c] sm:$0xf0]  ;;  %v7144_v10 = vor.u32 %v10124_v3, %v7143_v2  ;;  %4909 = vmatpush.bf16.msra.mxu1 %v6888_v5 }
  0x1a   :  { %v6871_v9 = vld [vmem:[%s16307_s1 + $0x120] sm:$0xf]  ;;  %v10056_v11 = vld [vmem:[%s16307_s1 + $0x12c] sm:$0xf0]  ;;  %v6744_v16 = vor.u32 %v10024_v8, %v6743_v7  ;;  %4923 = vmatpush.bf16.msra.mxu2 %v7016_v6  ;;  %v9993_v6 = vld [vmem:[%s16308_s0 + $0x4] sm:$0xf] }
  0x1b   :  { %v6999_v12 = vld [vmem:[%s16307_s1 + $0x220] sm:$0xf]  ;;  %v10088_v13 = vld [vmem:[%s16307_s1 + $0x22c] sm:$0xf0]  ;;  %v6872_v19 = vor.u32 %v10056_v11, %v6871_v9  ;;  %4937 = vmatpush.bf16.msra.mxu3 %v7144_v10  ;;  %v6629_v7 = vld [vmem:[%s16308_s0 + $0x64] sm:$0xf0] }
  0x1c   :  { %v7127_v14 = vld [vmem:[%s16307_s1 + $0x320] sm:$0xf]  ;;  %v10120_v15 = vld [vmem:[%s16307_s1 + $0x32c] sm:$0xf0]  ;;  %v7000_v20 = vor.u32 %v10088_v13, %v6999_v12  ;;  %4896 = vmatpush.bf16.msra.mxu0 %v6744_v16  ;;  %v9994_v8 = vld [vmem:[%s16308_s0 + $0xc] sm:$0xf]  ;;  %v11158_v10 = vor.u32 %v9993_v6, %v6629_v7 }
  0x1d   :  { %v6727_v17 = vld [vmem:[%s16307_s1] sm:$0xf]  ;;  %v10020_v18 = vld [vmem:[%s16307_s1 + $0xc] sm:$0xf0]  ;;  %v7128_v24 = vor.u32 %v10120_v15, %v7127_v14  ;;  %4910 = vmatpush.bf16.msra.mxu1 %v6872_v19 }
  0x1e   :  { %v6855_v21 = vld [vmem:[%s16307_s1 + $0x100] sm:$0xf]  ;;  %v10052_v22 = vld [vmem:[%s16307_s1 + $0x10c] sm:$0xf0]  ;;  %v6728_v31 = vor.u32 %v10020_v18, %v6727_v17  ;;  %4924 = vmatpush.bf16.msra.mxu2 %v7000_v20 }
  0x1f   :  { %v6983_v23 = vld [vmem:[%s16307_s1 + $0x200] sm:$0xf]  ;;  %v10084_v25 = vld [vmem:[%s16307_s1 + $0x20c] sm:$0xf0]  ;;  %v6856_v35 = vor.u32 %v10052_v22, %v6855_v21  ;;  %4938 = vmatpush.bf16.msra.mxu3 %v7128_v24 }
  0x20   :  { %v7111_v26 = vld [vmem:[%s16307_s1 + $0x300] sm:$0xf]  ;;  %v10116_v27 = vld [vmem:[%s16307_s1 + $0x30c] sm:$0xf0]  ;;  %v6984_v36 = vor.u32 %v10084_v25, %v6983_v23  ;;  %4897 = vmatpush.bf16.msra.mxu0 %v6728_v31 }
  0x21   :  { %v7351_v28 = vld [vmem:[%s16307_s1 + $0x4e0] sm:$0xf]  ;;  %v10176_v29 = vld [vmem:[%s16307_s1 + $0x4ec] sm:$0xf0]  ;;  %v7112_v39 = vor.u32 %v10116_v27, %v7111_v26  ;;  %4911 = vmatpush.bf16.msra.mxu1 %v6856_v35 }
  0x22   :  { %v7479_v30 = vld [vmem:[%s16307_s1 + $0x5e0] sm:$0xf]  ;;  %v10208_v32 = vld [vmem:[%s16307_s1 + $0x5ec] sm:$0xf0]  ;;  %v7352_v40 = vor.u32 %v10176_v29, %v7351_v28  ;;  %4925 = vmatpush.bf16.msra.mxu2 %v6984_v36 }
  0x23   :  { %v7607_v33 = vld [vmem:[%s16307_s1 + $0x6e0] sm:$0xf]  ;;  %v10240_v34 = vld [vmem:[%s16307_s1 + $0x6ec] sm:$0xf0]  ;;  %v7480_v43 = vor.u32 %v10208_v32, %v7479_v30  ;;  %4939 = vmatpush.bf16.msra.mxu3 %v7112_v39 }
  0x24   :  { %v7735_v37 = vld [vmem:[%s16307_s1 + $0x7e0] sm:$0xf]  ;;  %v10272_v38 = vld [vmem:[%s16307_s1 + $0x7ec] sm:$0xf0]  ;;  %v7608_v44 = vor.u32 %v10240_v34, %v7607_v33  ;;  %4946 = vmatpush.bf16.msrb.mxu0 %v7352_v40  ;;  %4912 = vmatmul.bf16.vlgmr.msra.gmra.mxu1 %v11158_v10 }
  0x25   :  { %v7335_v41 = vld [vmem:[%s16307_s1 + $0x4c0] sm:$0xf]  ;;  %v10172_v42 = vld [vmem:[%s16307_s1 + $0x4cc] sm:$0xf0]  ;;  %v7736_v48 = vor.u32 %v10272_v38, %v7735_v37  ;;  %4960 = vmatpush.bf16.msrb.mxu1 %v7480_v43  ;;  %4926 = vmatmul.bf16.vlgmr.msra.gmra.mxu2 %v11136_v1 }
  0x26   :  { %v7463_v45 = vld [vmem:[%s16307_s1 + $0x5c0] sm:$0xf]  ;;  %v10204_v46 = vld [vmem:[%s16307_s1 + $0x5cc] sm:$0xf0]  ;;  %v7336_v55 = vor.u32 %v10172_v42, %v7335_v41  ;;  %4974 = vmatpush.bf16.msrb.mxu2 %v7608_v44 }
  0x27   :  { %v7591_v47 = vld [vmem:[%s16307_s1 + $0x6c0] sm:$0xf]  ;;  %v10236_v49 = vld [vmem:[%s16307_s1 + $0x6cc] sm:$0xf0]  ;;  %v7464_v60 = vor.u32 %v10204_v46, %v7463_v45  ;;  %4988 = vmatpush.bf16.msrb.mxu3 %v7736_v48 }
  0x28   :  { %v7719_v50 = vld [vmem:[%s16307_s1 + $0x7c0] sm:$0xf]  ;;  %v10268_v51 = vld [vmem:[%s16307_s1 + $0x7cc] sm:$0xf0]  ;;  %v7592_v61 = vor.u32 %v10236_v49, %v7591_v47  ;;  %4947 = vmatpush.bf16.msrb.mxu0 %v7336_v55 }
  0x29   :  { %v6627_v52 = vld [vmem:[%s16308_s0] sm:$0xf]  ;;  %v10168_v57 = vld [vmem:[%s16307_s1 + $0x4ac] sm:$0xf0]  ;;  %v7720_v2 = vor.u32 %v10268_v51, %v7719_v50  ;;  %4961 = vmatpush.bf16.msrb.mxu1 %v7464_v60 }
  0x2a   :  { %v7319_v56 = vld [vmem:[%s16307_s1 + $0x4a0] sm:$0xf]  ;;  %v11122_v58 = vor.u32 %v10005_v53, %v6627_v52  ;;  %v10200_v63 = vld [vmem:[%s16307_s1 + $0x5ac] sm:$0xf0]  ;;  %4975 = vmatpush.bf16.msrb.mxu2 %v7592_v61 }
  0x2b   :  { %v7447_v62 = vld [vmem:[%s16307_s1 + $0x5a0] sm:$0xf]  ;;  %v10232_v3 = vld [vmem:[%s16307_s1 + $0x6ac] sm:$0xf0]  ;;  %v7320_v9 = vor.u32 %v10168_v57, %v7319_v56  ;;  %4989 = vmatpush.bf16.msrb.mxu3 %v7720_v2 }
  0x2c   :  { %v7575_v0 = vld [vmem:[%s16307_s1 + $0x6a0] sm:$0xf]  ;;  %v10264_v5 = vld [vmem:[%s16307_s1 + $0x7ac] sm:$0xf0]  ;;  %4898 = vmatmul.bf16.vlgmr.msra.gmra.mxu0 %v11122_v58  ;;  %v7448_v12 = vor.u32 %v10200_v63, %v7447_v62 }
  0x2d   :  { %v7703_v4 = vld [vmem:[%s16307_s1 + $0x7a0] sm:$0xf]  ;;  %v6637_v11 = vld [vmem:[%s16308_s0 + $0x6c] sm:$0xf0]  ;;  %v7576_v13 = vor.u32 %v10232_v3, %v7575_v0  ;;  %4948 = vmatpush.bf16.msrb.mxu0 %v7320_v9 }
  0x2e   :  { %v7303_v14 = vld [vmem:[%s16307_s1 + $0x480] sm:$0xf]  ;;  %v10164_v15 = vld [vmem:[%s16307_s1 + $0x48c] sm:$0xf0]  ;;  %v11172_v17 = vor.u32 %v9994_v8, %v6637_v11  ;;  %v7704_v18 = vor.u32 %v10264_v5, %v7703_v4  ;;  %4962 = vmatpush.bf16.msrb.mxu1 %v7448_v12 }
  0x2f   :  { %v7431_v16 = vld [vmem:[%s16307_s1 + $0x580] sm:$0xf]  ;;  %v10196_v19 = vld [vmem:[%s16307_s1 + $0x58c] sm:$0xf0]  ;;  %v7304_v24 = vor.u32 %v10164_v15, %v7303_v14  ;;  %4976 = vmatpush.bf16.msrb.mxu2 %v7576_v13 }
  0x30   :  { %v7559_v20 = vld [vmem:[%s16307_s1 + $0x680] sm:$0xf]  ;;  %v10228_v21 = vld [vmem:[%s16307_s1 + $0x68c] sm:$0xf0]  ;;  %4940 = vmatmul.bf16.vlgmr.msra.gmra.mxu3 %v11172_v17  ;;  %v7432_v25 = vor.u32 %v10196_v19, %v7431_v16 }
  0x31   :  { %v7687_v22 = vld [vmem:[%s16307_s1 + $0x780] sm:$0xf]  ;;  %v10260_v23 = vld [vmem:[%s16307_s1 + $0x78c] sm:$0xf0]  ;;  %v7560_v26 = vor.u32 %v10228_v21, %v7559_v20  ;;  %4990 = vmatpush.bf16.msrb.mxu3 %v7704_v18  ;;  %4949 = vmatpush.bf16.msrb.mxu0 %v7304_v24 }
  0x32   :  { %v7287_v27 = vld [vmem:[%s16307_s1 + $0x460] sm:$0xf]  ;;  %v10160_v28 = vld [vmem:[%s16307_s1 + $0x46c] sm:$0xf0]  ;;  %v7688_v30 = vor.u32 %v10260_v23, %v7687_v22  ;;  %4963 = vmatpush.bf16.msrb.mxu1 %v7432_v25  ;;  %v10007_v22 = vld [vmem:[%s16308_s0 + $0x70] sm:$0xf0] }
  0x33   :  { %v7415_v29 = vld [vmem:[%s16307_s1 + $0x560] sm:$0xf]  ;;  %v10192_v31 = vld [vmem:[%s16307_s1 + $0x56c] sm:$0xf0]  ;;  %v7288_v36 = vor.u32 %v10160_v28, %v7287_v27  ;;  %4977 = vmatpush.bf16.msrb.mxu2 %v7560_v26  ;;  %v6651_v25 = vld [vmem:[%s16308_s0 + $0x18] sm:$0xf] }
  0x34   :  { %v7543_v32 = vld [vmem:[%s16307_s1 + $0x660] sm:$0xf]  ;;  %v10224_v33 = vld [vmem:[%s16307_s1 + $0x66c] sm:$0xf0]  ;;  %v7416_v37 = vor.u32 %v10192_v31, %v7415_v29  ;;  %v10008_v26 = vld [vmem:[%s16308_s0 + $0x78] sm:$0xf0] }
  0x35   :  { %v7671_v34 = vld [vmem:[%s16307_s1 + $0x760] sm:$0xf]  ;;  %v10256_v35 = vld [vmem:[%s16307_s1 + $0x76c] sm:$0xf0]  ;;  %v7544_v38 = vor.u32 %v10224_v33, %v7543_v32  ;;  %4991 = vmatpush.bf16.msrb.mxu3 %v7688_v30  ;;  %4950 = vmatpush.bf16.msrb.mxu0 %v7288_v36  ;;  %v9995_v27 = vld [vmem:[%s16308_s0 + $0x14] sm:$0xf] }
  0x36   :  { %v7271_v39 = vld [vmem:[%s16307_s1 + $0x440] sm:$0xf]  ;;  %v10156_v40 = vld [vmem:[%s16307_s1 + $0x44c] sm:$0xf0]  ;;  %v7672_v42 = vor.u32 %v10256_v35, %v7671_v34  ;;  %4964 = vmatpush.bf16.msrb.mxu1 %v7416_v37  ;;  %v6645_v30 = vld [vmem:[%s16308_s0 + $0x74] sm:$0xf0] }
  0x37   :  { %v7399_v41 = vld [vmem:[%s16307_s1 + $0x540] sm:$0xf]  ;;  %v10188_v43 = vld [vmem:[%s16307_s1 + $0x54c] sm:$0xf0]  ;;  %v7272_v48 = vor.u32 %v10156_v40, %v7271_v39  ;;  %4978 = vmatpush.bf16.msrb.mxu2 %v7544_v38  ;;  %v9996_v31 = vld [vmem:[%s16308_s0 + $0x1c] sm:$0xf] }
  0x38   :  { %v7527_v44 = vld [vmem:[%s16307_s1 + $0x640] sm:$0xf]  ;;  %v10220_v45 = vld [vmem:[%s16307_s1 + $0x64c] sm:$0xf0]  ;;  %v7400_v50 = vor.u32 %v10188_v43, %v7399_v41  ;;  %v11355_v43 = vor.u32 %v10008_v26, %v6651_v25 }
  0x39   :  { %v7655_v46 = vld [vmem:[%s16307_s1 + $0x740] sm:$0xf]  ;;  %v10252_v47 = vld [vmem:[%s16307_s1 + $0x74c] sm:$0xf0]  ;;  %v7528_v51 = vor.u32 %v10220_v45, %v7527_v44  ;;  %4992 = vmatpush.bf16.msrb.mxu3 %v7672_v42  ;;  %4951 = vmatpush.bf16.msrb.mxu0 %v7272_v48  ;;  %v11357_v44 = vor.u32 %v9995_v27, %v6645_v30 }
  0x3a   :  { %v7255_v49 = vld [vmem:[%s16307_s1 + $0x420] sm:$0xf]  ;;  %v10152_v52 = vld [vmem:[%s16307_s1 + $0x42c] sm:$0xf0]  ;;  %v7656_v55 = vor.u32 %v10252_v47, %v7655_v46  ;;  %4965 = vmatpush.bf16.msrb.mxu1 %v7400_v50 }
  0x3b   :  { %v7383_v53 = vld [vmem:[%s16307_s1 + $0x520] sm:$0xf]  ;;  %v10184_v54 = vld [vmem:[%s16307_s1 + $0x52c] sm:$0xf0]  ;;  %v7256_v63 = vor.u32 %v10152_v52, %v7255_v49  ;;  %4979 = vmatpush.bf16.msrb.mxu2 %v7528_v51 }
  0x3c   :  { %v7511_v56 = vld [vmem:[%s16307_s1 + $0x620] sm:$0xf]  ;;  %v10216_v57 = vld [vmem:[%s16307_s1 + $0x62c] sm:$0xf0]  ;;  %v7384_v5 = vor.u32 %v10184_v54, %v7383_v53 }
  0x3d   :  { %v7639_v59 = vld [vmem:[%s16307_s1 + $0x720] sm:$0xf]  ;;  %v10248_v60 = vld [vmem:[%s16307_s1 + $0x72c] sm:$0xf0]  ;;  %v7512_v6 = vor.u32 %v10216_v57, %v7511_v56  ;;  %4993 = vmatpush.bf16.msrb.mxu3 %v7656_v55  ;;  %4952 = vmatpush.bf16.msrb.mxu0 %v7256_v63 }
  0x3e   :  { %v7239_v61 = vld [vmem:[%s16307_s1 + $0x400] sm:$0xf]  ;;  %v10148_v62 = vld [vmem:[%s16307_s1 + $0x40c] sm:$0xf0]  ;;  %v7640_v11 = vor.u32 %v10248_v60, %v7639_v59  ;;  %4966 = vmatpush.bf16.msrb.mxu1 %v7384_v5 }
  0x3f   :  { %v7367_v0 = vld [vmem:[%s16307_s1 + $0x500] sm:$0xf]  ;;  %v10180_v2 = vld [vmem:[%s16307_s1 + $0x50c] sm:$0xf0]  ;;  %v7240_v19 = vor.u32 %v10148_v62, %v7239_v61  ;;  %4980 = vmatpush.bf16.msrb.mxu2 %v7512_v6 }
  0x40   :  { %v7495_v3 = vld [vmem:[%s16307_s1 + $0x600] sm:$0xf]  ;;  %v10212_v4 = vld [vmem:[%s16307_s1 + $0x60c] sm:$0xf0]  ;;  %v7368_v23 = vor.u32 %v10180_v2, %v7367_v0 }
  0x41   :  { %v7623_v7 = vld [vmem:[%s16307_s1 + $0x700] sm:$0xf]  ;;  %v10244_v8 = vld [vmem:[%s16307_s1 + $0x70c] sm:$0xf0]  ;;  %v7496_v24 = vor.u32 %v10212_v4, %v7495_v3  ;;  %4994 = vmatpush.bf16.msrb.mxu3 %v7640_v11  ;;  %4953 = vmatpush.bf16.msrb.mxu0 %v7240_v19 }
  0x42   :  { %v7863_v9 = vld [vmem:[%s16307_s1 + $0x8e0] sm:$0xf]  ;;  %v10304_v12 = vld [vmem:[%s16307_s1 + $0x8ec] sm:$0xf0]  ;;  %v7624_v28 = vor.u32 %v10244_v8, %v7623_v7  ;;  %4967 = vmatpush.bf16.msrb.mxu1 %v7368_v23 }
  0x43   :  { %v7991_v13 = vld [vmem:[%s16307_s1 + $0x9e0] sm:$0xf]  ;;  %v10336_v14 = vld [vmem:[%s16307_s1 + $0x9ec] sm:$0xf0]  ;;  %v7864_v29 = vor.u32 %v10304_v12, %v7863_v9  ;;  %4981 = vmatpush.bf16.msrb.mxu2 %v7496_v24 }
  0x44   :  { %v8119_v15 = vld [vmem:[%s16307_s1 + $0xae0] sm:$0xf]  ;;  %v10368_v16 = vld [vmem:[%s16307_s1 + $0xaec] sm:$0xf0]  ;;  %v7992_v33 = vor.u32 %v10336_v14, %v7991_v13 }
  0x45   :  { %v8247_v18 = vld [vmem:[%s16307_s1 + $0xbe0] sm:$0xf]  ;;  %v10400_v20 = vld [vmem:[%s16307_s1 + $0xbec] sm:$0xf0]  ;;  %v8120_v34 = vor.u32 %v10368_v16, %v8119_v15  ;;  %4995 = vmatpush.bf16.msrb.mxu3 %v7624_v28  ;;  %5002 = vmatpush.bf16.msra.mxu0 %v7864_v29 }
  0x46   :  { %v6643_v21 = vld [vmem:[%s16308_s0 + $0x10] sm:$0xf]  ;;  %v6653_v32 = vld [vmem:[%s16308_s0 + $0x7c] sm:$0xf0]  ;;  %v8248_v38 = vor.u32 %v10400_v20, %v8247_v18  ;;  %5016 = vmatpush.bf16.msra.mxu1 %v7992_v33  ;;  %4982 = vmatmul.bf16.vlgmr.msrb.gmra.mxu2 %v11355_v43 }
  0x47   :  { %v7847_v35 = vld [vmem:[%s16307_s1 + $0x8c0] sm:$0xf]  ;;  %v10300_v36 = vld [vmem:[%s16307_s1 + $0x8cc] sm:$0xf0]  ;;  %v11344_v39 = vor.u32 %v10007_v22, %v6643_v21  ;;  %v11365_v47 = vor.u32 %v9996_v31, %v6653_v32  ;;  %5030 = vmatpush.bf16.msra.mxu2 %v8120_v34  ;;  %4968 = vmatmul.bf16.vlgmr.msrb.gmra.mxu1 %v11357_v44 }
  0x48   :  { %v7975_v37 = vld [vmem:[%s16307_s1 + $0x9c0] sm:$0xf]  ;;  %v10332_v40 = vld [vmem:[%s16307_s1 + $0x9cc] sm:$0xf0]  ;;  %v7848_v48 = vor.u32 %v10300_v36, %v7847_v35 }
  0x49   :  { %v8103_v41 = vld [vmem:[%s16307_s1 + $0xac0] sm:$0xf]  ;;  %v10364_v42 = vld [vmem:[%s16307_s1 + $0xacc] sm:$0xf0]  ;;  %v7976_v49 = vor.u32 %v10332_v40, %v7975_v37  ;;  %5044 = vmatpush.bf16.msra.mxu3 %v8248_v38  ;;  %4954 = vmatmul.bf16.vlgmr.msrb.gmra.mxu0 %v11344_v39 }
  0x4a   :  { %v8231_v45 = vld [vmem:[%s16307_s1 + $0xbc0] sm:$0xf]  ;;  %v10396_v46 = vld [vmem:[%s16307_s1 + $0xbcc] sm:$0xf0]  ;;  %v8104_v50 = vor.u32 %v10364_v42, %v8103_v41  ;;  %4996 = vmatmul.bf16.vlgmr.msrb.gmra.mxu3 %v11365_v47  ;;  %5003 = vmatpush.bf16.msra.mxu0 %v7848_v48 }
  0x4b   :  { %v7831_v51 = vld [vmem:[%s16307_s1 + $0x8a0] sm:$0xf]  ;;  %v10296_v52 = vld [vmem:[%s16307_s1 + $0x8ac] sm:$0xf0]  ;;  %v8232_v54 = vor.u32 %v10396_v46, %v8231_v45  ;;  %5017 = vmatpush.bf16.msra.mxu1 %v7976_v49 }
  0x4c   :  { %v7959_v53 = vld [vmem:[%s16307_s1 + $0x9a0] sm:$0xf]  ;;  %v10328_v55 = vld [vmem:[%s16307_s1 + $0x9ac] sm:$0xf0]  ;;  %v7832_v61 = vor.u32 %v10296_v52, %v7831_v51  ;;  %5031 = vmatpush.bf16.msra.mxu2 %v8104_v50 }
  0x4d   :  { %v8087_v56 = vld [vmem:[%s16307_s1 + $0xaa0] sm:$0xf]  ;;  %v10360_v57 = vld [vmem:[%s16307_s1 + $0xaac] sm:$0xf0]  ;;  %v7960_v62 = vor.u32 %v10328_v55, %v7959_v53  ;;  %5045 = vmatpush.bf16.msra.mxu3 %v8232_v54 }
  0x4e   :  { %v8215_v59 = vld [vmem:[%s16307_s1 + $0xba0] sm:$0xf]  ;;  %v10392_v60 = vld [vmem:[%s16307_s1 + $0xbac] sm:$0xf0]  ;;  %v8088_v63 = vor.u32 %v10360_v57, %v8087_v56  ;;  %5004 = vmatpush.bf16.msra.mxu0 %v7832_v61 }
  0x4f   :  { %v7815_v0 = vld [vmem:[%s16307_s1 + $0x880] sm:$0xf]  ;;  %v10292_v2 = vld [vmem:[%s16307_s1 + $0x88c] sm:$0xf0]  ;;  %v8216_v4 = vor.u32 %v10392_v60, %v8215_v59  ;;  %5018 = vmatpush.bf16.msra.mxu1 %v7960_v62 }
  0x50   :  { %v7943_v3 = vld [vmem:[%s16307_s1 + $0x980] sm:$0xf]  ;;  %v10324_v5 = vld [vmem:[%s16307_s1 + $0x98c] sm:$0xf0]  ;;  %v7816_v11 = vor.u32 %v10292_v2, %v7815_v0  ;;  %5032 = vmatpush.bf16.msra.mxu2 %v8088_v63 }
  0x51   :  { %v8071_v6 = vld [vmem:[%s16307_s1 + $0xa80] sm:$0xf]  ;;  %v10356_v7 = vld [vmem:[%s16307_s1 + $0xa8c] sm:$0xf0]  ;;  %v7944_v12 = vor.u32 %v10324_v5, %v7943_v3  ;;  %5046 = vmatpush.bf16.msra.mxu3 %v8216_v4 }
  0x52   :  { %v8199_v8 = vld [vmem:[%s16307_s1 + $0xb80] sm:$0xf]  ;;  %v10388_v9 = vld [vmem:[%s16307_s1 + $0xb8c] sm:$0xf0]  ;;  %v8072_v13 = vor.u32 %v10356_v7, %v8071_v6  ;;  %5005 = vmatpush.bf16.msra.mxu0 %v7816_v11 }
  0x53   :  { %v7799_v14 = vld [vmem:[%s16307_s1 + $0x860] sm:$0xf]  ;;  %v10288_v15 = vld [vmem:[%s16307_s1 + $0x86c] sm:$0xf0]  ;;  %v8200_v18 = vor.u32 %v10388_v9, %v8199_v8  ;;  %5019 = vmatpush.bf16.msra.mxu1 %v7944_v12 }
  0x54   :  { %v7927_v16 = vld [vmem:[%s16307_s1 + $0x960] sm:$0xf]  ;;  %v10320_v19 = vld [vmem:[%s16307_s1 + $0x96c] sm:$0xf0]  ;;  %v7800_v24 = vor.u32 %v10288_v15, %v7799_v14  ;;  %5033 = vmatpush.bf16.msra.mxu2 %v8072_v13  ;;  %v10009_v13 = vld [vmem:[%s16308_s0 + $0x80] sm:$0xf0] }
  0x55   :  { %v8055_v20 = vld [vmem:[%s16307_s1 + $0xa60] sm:$0xf]  ;;  %v10352_v21 = vld [vmem:[%s16307_s1 + $0xa6c] sm:$0xf0]  ;;  %v7928_v25 = vor.u32 %v10320_v19, %v7927_v16  ;;  %5047 = vmatpush.bf16.msra.mxu3 %v8200_v18  ;;  %v6667_v16 = vld [vmem:[%s16308_s0 + $0x28] sm:$0xf] }
  0x56   :  { %v8183_v22 = vld [vmem:[%s16307_s1 + $0xb60] sm:$0xf]  ;;  %v10384_v23 = vld [vmem:[%s16307_s1 + $0xb6c] sm:$0xf0]  ;;  %v8056_v26 = vor.u32 %v10352_v21, %v8055_v20  ;;  %5006 = vmatpush.bf16.msra.mxu0 %v7800_v24  ;;  %v10010_v18 = vld [vmem:[%s16308_s0 + $0x88] sm:$0xf0] }
  0x57   :  { %v7783_v27 = vld [vmem:[%s16307_s1 + $0x840] sm:$0xf]  ;;  %v10284_v28 = vld [vmem:[%s16307_s1 + $0x84c] sm:$0xf0]  ;;  %v8184_v30 = vor.u32 %v10384_v23, %v8183_v22  ;;  %5020 = vmatpush.bf16.msra.mxu1 %v7928_v25  ;;  %v9997_v19 = vld [vmem:[%s16308_s0 + $0x24] sm:$0xf] }
  0x58   :  { %v7911_v29 = vld [vmem:[%s16307_s1 + $0x940] sm:$0xf]  ;;  %v10316_v31 = vld [vmem:[%s16307_s1 + $0x94c] sm:$0xf0]  ;;  %v7784_v36 = vor.u32 %v10284_v28, %v7783_v27  ;;  %5034 = vmatpush.bf16.msra.mxu2 %v8056_v26  ;;  %v6661_v22 = vld [vmem:[%s16308_s0 + $0x84] sm:$0xf0] }
  0x59   :  { %v8039_v32 = vld [vmem:[%s16307_s1 + $0xa40] sm:$0xf]  ;;  %v10348_v33 = vld [vmem:[%s16307_s1 + $0xa4c] sm:$0xf0]  ;;  %v7912_v38 = vor.u32 %v10316_v31, %v7911_v29  ;;  %5048 = vmatpush.bf16.msra.mxu3 %v8184_v30  ;;  %v9998_v23 = vld [vmem:[%s16308_s0 + $0x2c] sm:$0xf] }
  0x5a   :  { %v8167_v34 = vld [vmem:[%s16307_s1 + $0xb40] sm:$0xf]  ;;  %v10380_v35 = vld [vmem:[%s16307_s1 + $0xb4c] sm:$0xf0]  ;;  %v8040_v40 = vor.u32 %v10348_v33, %v8039_v32  ;;  %5007 = vmatpush.bf16.msra.mxu0 %v7784_v36  ;;  %v11585_v36 = vor.u32 %v9997_v19, %v6661_v22 }
  0x5b   :  { %v7767_v37 = vld [vmem:[%s16307_s1 + $0x820] sm:$0xf]  ;;  %v10280_v41 = vld [vmem:[%s16307_s1 + $0x82c] sm:$0xf0]  ;;  %v8168_v46 = vor.u32 %v10380_v35, %v8167_v34  ;;  %5021 = vmatpush.bf16.msra.mxu1 %v7912_v38  ;;  %v11583_v35 = vor.u32 %v10010_v18, %v6667_v16 }
  0x5c   :  { %v7895_v42 = vld [vmem:[%s16307_s1 + $0x920] sm:$0xf]  ;;  %v10312_v45 = vld [vmem:[%s16307_s1 + $0x92c] sm:$0xf0]  ;;  %v7768_v54 = vor.u32 %v10280_v41, %v7767_v37  ;;  %5035 = vmatpush.bf16.msra.mxu2 %v8040_v40 }
  0x5d   :  { %v8023_v48 = vld [vmem:[%s16307_s1 + $0xa20] sm:$0xf]  ;;  %v10344_v49 = vld [vmem:[%s16307_s1 + $0xa2c] sm:$0xf0]  ;;  %v7896_v60 = vor.u32 %v10312_v45, %v7895_v42  ;;  %5049 = vmatpush.bf16.msra.mxu3 %v8168_v46 }
  0x5e   :  { %v8151_v50 = vld [vmem:[%s16307_s1 + $0xb20] sm:$0xf]  ;;  %v10376_v51 = vld [vmem:[%s16307_s1 + $0xb2c] sm:$0xf0]  ;;  %v8024_v61 = vor.u32 %v10344_v49, %v8023_v48  ;;  %5008 = vmatpush.bf16.msra.mxu0 %v7768_v54 }
  0x5f   :  { %v7751_v52 = vld [vmem:[%s16307_s1 + $0x800] sm:$0xf]  ;;  %v10276_v53 = vld [vmem:[%s16307_s1 + $0x80c] sm:$0xf0]  ;;  %v8152_v2 = vor.u32 %v10376_v51, %v8151_v50  ;;  %5022 = vmatpush.bf16.msra.mxu1 %v7896_v60 }
  0x60   :  { %v7879_v55 = vld [vmem:[%s16307_s1 + $0x900] sm:$0xf]  ;;  %v10308_v56 = vld [vmem:[%s16307_s1 + $0x90c] sm:$0xf0]  ;;  %v7752_v9 = vor.u32 %v10276_v53, %v7751_v52  ;;  %5036 = vmatpush.bf16.msra.mxu2 %v8024_v61 }
  0x61   :  { %v8007_v57 = vld [vmem:[%s16307_s1 + $0xa00] sm:$0xf]  ;;  %v10340_v59 = vld [vmem:[%s16307_s1 + $0xa0c] sm:$0xf0]  ;;  %v7880_v14 = vor.u32 %v10308_v56, %v7879_v55  ;;  %5050 = vmatpush.bf16.msra.mxu3 %v8152_v2 }
  0x62   :  { %v8135_v62 = vld [vmem:[%s16307_s1 + $0xb00] sm:$0xf]  ;;  %v10372_v63 = vld [vmem:[%s16307_s1 + $0xb0c] sm:$0xf0]  ;;  %v8008_v15 = vor.u32 %v10340_v59, %v8007_v57  ;;  %5009 = vmatpush.bf16.msra.mxu0 %v7752_v9 }
  0x63   :  { %v8375_v0 = vld [vmem:[%s16307_s1 + $0xce0] sm:$0xf]  ;;  %v10432_v3 = vld [vmem:[%s16307_s1 + $0xcec] sm:$0xf0]  ;;  %v8136_v20 = vor.u32 %v10372_v63, %v8135_v62  ;;  %5023 = vmatpush.bf16.msra.mxu1 %v7880_v14 }
  0x64   :  { %v8503_v4 = vld [vmem:[%s16307_s1 + $0xde0] sm:$0xf]  ;;  %v10464_v5 = vld [vmem:[%s16307_s1 + $0xdec] sm:$0xf0]  ;;  %v8376_v21 = vor.u32 %v10432_v3, %v8375_v0  ;;  %5037 = vmatpush.bf16.msra.mxu2 %v8008_v15 }
  0x65   :  { %v8631_v6 = vld [vmem:[%s16307_s1 + $0xee0] sm:$0xf]  ;;  %v10496_v7 = vld [vmem:[%s16307_s1 + $0xeec] sm:$0xf0]  ;;  %v8504_v25 = vor.u32 %v10464_v5, %v8503_v4  ;;  %5051 = vmatpush.bf16.msra.mxu3 %v8136_v20 }
  0x66   :  { %v8759_v8 = vld [vmem:[%s16307_s1 + $0xfe0] sm:$0xf]  ;;  %v10528_v11 = vld [vmem:[%s16307_s1 + $0xfec] sm:$0xf0]  ;;  %v8632_v26 = vor.u32 %v10496_v7, %v8631_v6  ;;  %5058 = vmatpush.bf16.msrb.mxu0 %v8376_v21  ;;  %5024 = vmatmul.bf16.vlgmr.msra.gmra.mxu1 %v11585_v36 }
  0x67   :  { %v6659_v12 = vld [vmem:[%s16308_s0 + $0x20] sm:$0xf]  ;;  %v6669_v24 = vld [vmem:[%s16308_s0 + $0x8c] sm:$0xf0]  ;;  %v8760_v30 = vor.u32 %v10528_v11, %v8759_v8  ;;  %5072 = vmatpush.bf16.msrb.mxu1 %v8504_v25  ;;  %5038 = vmatmul.bf16.vlgmr.msra.gmra.mxu2 %v11583_v35 }
  0x68   :  { %v8359_v27 = vld [vmem:[%s16307_s1 + $0xcc0] sm:$0xf]  ;;  %v10428_v28 = vld [vmem:[%s16307_s1 + $0xccc] sm:$0xf0]  ;;  %v11572_v31 = vor.u32 %v10009_v13, %v6659_v12  ;;  %v11593_v40 = vor.u32 %v9998_v23, %v6669_v24  ;;  %5086 = vmatpush.bf16.msrb.mxu2 %v8632_v26 }
  0x69   :  { %v8487_v29 = vld [vmem:[%s16307_s1 + $0xdc0] sm:$0xf]  ;;  %v10460_v32 = vld [vmem:[%s16307_s1 + $0xdcc] sm:$0xf0]  ;;  %v8360_v41 = vor.u32 %v10428_v28, %v8359_v27  ;;  %5100 = vmatpush.bf16.msrb.mxu3 %v8760_v30 }
  0x6a   :  { %v8615_v33 = vld [vmem:[%s16307_s1 + $0xec0] sm:$0xf]  ;;  %v10492_v34 = vld [vmem:[%s16307_s1 + $0xecc] sm:$0xf0]  ;;  %v8488_v42 = vor.u32 %v10460_v32, %v8487_v29  ;;  %5010 = vmatmul.bf16.vlgmr.msra.gmra.mxu0 %v11572_v31  ;;  %5052 = vmatmul.bf16.vlgmr.msra.gmra.mxu3 %v11593_v40 }
  0x6b   :  { %v8743_v37 = vld [vmem:[%s16307_s1 + $0xfc0] sm:$0xf]  ;;  %v10524_v38 = vld [vmem:[%s16307_s1 + $0xfcc] sm:$0xf0]  ;;  %v8616_v45 = vor.u32 %v10492_v34, %v8615_v33  ;;  %5059 = vmatpush.bf16.msrb.mxu0 %v8360_v41 }
  0x6c   :  { %v8343_v46 = vld [vmem:[%s16307_s1 + $0xca0] sm:$0xf]  ;;  %v10424_v48 = vld [vmem:[%s16307_s1 + $0xcac] sm:$0xf0]  ;;  %v8744_v50 = vor.u32 %v10524_v38, %v8743_v37  ;;  %5073 = vmatpush.bf16.msrb.mxu1 %v8488_v42 }
  0x6d   :  { %v8471_v49 = vld [vmem:[%s16307_s1 + $0xda0] sm:$0xf]  ;;  %v10456_v51 = vld [vmem:[%s16307_s1 + $0xdac] sm:$0xf0]  ;;  %v8344_v56 = vor.u32 %v10424_v48, %v8343_v46  ;;  %5087 = vmatpush.bf16.msrb.mxu2 %v8616_v45 }
  0x6e   :  { %v8599_v52 = vld [vmem:[%s16307_s1 + $0xea0] sm:$0xf]  ;;  %v10488_v53 = vld [vmem:[%s16307_s1 + $0xeac] sm:$0xf0]  ;;  %v8472_v57 = vor.u32 %v10456_v51, %v8471_v49  ;;  %5101 = vmatpush.bf16.msrb.mxu3 %v8744_v50 }
  0x6f   :  { %v8727_v54 = vld [vmem:[%s16307_s1 + $0xfa0] sm:$0xf]  ;;  %v10520_v55 = vld [vmem:[%s16307_s1 + $0xfac] sm:$0xf0]  ;;  %v8600_v59 = vor.u32 %v10488_v53, %v8599_v52  ;;  %5060 = vmatpush.bf16.msrb.mxu0 %v8344_v56 }
  0x70   :  { %v8327_v60 = vld [vmem:[%s16307_s1 + $0xc80] sm:$0xf]  ;;  %v10420_v61 = vld [vmem:[%s16307_s1 + $0xc8c] sm:$0xf0]  ;;  %v8728_v63 = vor.u32 %v10520_v55, %v8727_v54  ;;  %5074 = vmatpush.bf16.msrb.mxu1 %v8472_v57 }
  0x71   :  { %v8455_v62 = vld [vmem:[%s16307_s1 + $0xd80] sm:$0xf]  ;;  %v10452_v0 = vld [vmem:[%s16307_s1 + $0xd8c] sm:$0xf0]  ;;  %v8328_v6 = vor.u32 %v10420_v61, %v8327_v60  ;;  %5088 = vmatpush.bf16.msrb.mxu2 %v8600_v59 }
  0x72   :  { %v8583_v2 = vld [vmem:[%s16307_s1 + $0xe80] sm:$0xf]  ;;  %v10484_v3 = vld [vmem:[%s16307_s1 + $0xe8c] sm:$0xf0]  ;;  %v8456_v7 = vor.u32 %v10452_v0, %v8455_v62  ;;  %5102 = vmatpush.bf16.msrb.mxu3 %v8728_v63 }
  0x73   :  { %v8711_v4 = vld [vmem:[%s16307_s1 + $0xf80] sm:$0xf]  ;;  %v10516_v5 = vld [vmem:[%s16307_s1 + $0xf8c] sm:$0xf0]  ;;  %v8584_v8 = vor.u32 %v10484_v3, %v8583_v2  ;;  %5061 = vmatpush.bf16.msrb.mxu0 %v8328_v6 }
  0x74   :  { %v8311_v9 = vld [vmem:[%s16307_s1 + $0xc60] sm:$0xf]  ;;  %v10416_v11 = vld [vmem:[%s16307_s1 + $0xc6c] sm:$0xf0]  ;;  %v8712_v13 = vor.u32 %v10516_v5, %v8711_v4  ;;  %5075 = vmatpush.bf16.msrb.mxu1 %v8456_v7 }
  0x75   :  { %v8439_v12 = vld [vmem:[%s16307_s1 + $0xd60] sm:$0xf]  ;;  %v10448_v14 = vld [vmem:[%s16307_s1 + $0xd6c] sm:$0xf0]  ;;  %v8312_v20 = vor.u32 %v10416_v11, %v8311_v9  ;;  %5089 = vmatpush.bf16.msrb.mxu2 %v8584_v8 }
  0x76   :  { %v8567_v15 = vld [vmem:[%s16307_s1 + $0xe60] sm:$0xf]  ;;  %v10480_v16 = vld [vmem:[%s16307_s1 + $0xe6c] sm:$0xf0]  ;;  %v8440_v21 = vor.u32 %v10448_v14, %v8439_v12  ;;  %5103 = vmatpush.bf16.msrb.mxu3 %v8712_v13  ;;  %v10011_v13 = vld [vmem:[%s16308_s0 + $0x90] sm:$0xf0] }
  0x77   :  { %v8695_v18 = vld [vmem:[%s16307_s1 + $0xf60] sm:$0xf]  ;;  %v10512_v19 = vld [vmem:[%s16307_s1 + $0xf6c] sm:$0xf0]  ;;  %v8568_v22 = vor.u32 %v10480_v16, %v8567_v15  ;;  %5062 = vmatpush.bf16.msrb.mxu0 %v8312_v20  ;;  %v6683_v16 = vld [vmem:[%s16308_s0 + $0x38] sm:$0xf] }
  0x78   :  { %v8295_v23 = vld [vmem:[%s16307_s1 + $0xc40] sm:$0xf]  ;;  %v10412_v24 = vld [vmem:[%s16307_s1 + $0xc4c] sm:$0xf0]  ;;  %v8696_v26 = vor.u32 %v10512_v19, %v8695_v18  ;;  %5076 = vmatpush.bf16.msrb.mxu1 %v8440_v21  ;;  %v10012_v18 = vld [vmem:[%s16308_s0 + $0x98] sm:$0xf0] }
  0x79   :  { %v8423_v25 = vld [vmem:[%s16307_s1 + $0xd40] sm:$0xf]  ;;  %v10444_v27 = vld [vmem:[%s16307_s1 + $0xd4c] sm:$0xf0]  ;;  %v8296_v33 = vor.u32 %v10412_v24, %v8295_v23  ;;  %5090 = vmatpush.bf16.msrb.mxu2 %v8568_v22  ;;  %v9999_v19 = vld [vmem:[%s16308_s0 + $0x34] sm:$0xf] }
  0x7a   :  { %v8551_v28 = vld [vmem:[%s16307_s1 + $0xe40] sm:$0xf]  ;;  %v10476_v29 = vld [vmem:[%s16307_s1 + $0xe4c] sm:$0xf0]  ;;  %v8424_v37 = vor.u32 %v10444_v27, %v8423_v25  ;;  %5104 = vmatpush.bf16.msrb.mxu3 %v8696_v26  ;;  %v6677_v22 = vld [vmem:[%s16308_s0 + $0x94] sm:$0xf0] }
  0x7b   :  { %v8679_v30 = vld [vmem:[%s16307_s1 + $0xf40] sm:$0xf]  ;;  %v10508_v32 = vld [vmem:[%s16307_s1 + $0xf4c] sm:$0xf0]  ;;  %v8552_v38 = vor.u32 %v10476_v29, %v8551_v28  ;;  %5063 = vmatpush.bf16.msrb.mxu0 %v8296_v33  ;;  %v10000_v23 = vld [vmem:[%s16308_s0 + $0x3c] sm:$0xf] }
  0x7c   :  { %v8279_v34 = vld [vmem:[%s16307_s1 + $0xc20] sm:$0xf]  ;;  %v10408_v41 = vld [vmem:[%s16307_s1 + $0xc2c] sm:$0xf0]  ;;  %v8680_v46 = vor.u32 %v10508_v32, %v8679_v30  ;;  %5077 = vmatpush.bf16.msrb.mxu1 %v8424_v37 }
  0x7d   :  { %v8407_v42 = vld [vmem:[%s16307_s1 + $0xd20] sm:$0xf]  ;;  %v10440_v45 = vld [vmem:[%s16307_s1 + $0xd2c] sm:$0xf0]  ;;  %v8280_v54 = vor.u32 %v10408_v41, %v8279_v34  ;;  %5091 = vmatpush.bf16.msrb.mxu2 %v8552_v38  ;;  %v11811_v38 = vor.u32 %v10012_v18, %v6683_v16  ;;  %v11813_v41 = vor.u32 %v9999_v19, %v6677_v22 }
  0x7e   :  { %v8535_v48 = vld [vmem:[%s16307_s1 + $0xe20] sm:$0xf]  ;;  %v10472_v49 = vld [vmem:[%s16307_s1 + $0xe2c] sm:$0xf0]  ;;  %v8408_v60 = vor.u32 %v10440_v45, %v8407_v42  ;;  %5105 = vmatpush.bf16.msrb.mxu3 %v8680_v46 }
  0x7f   :  { %v8663_v50 = vld [vmem:[%s16307_s1 + $0xf20] sm:$0xf]  ;;  %v10504_v51 = vld [vmem:[%s16307_s1 + $0xf2c] sm:$0xf0]  ;;  %v8536_v61 = vor.u32 %v10472_v49, %v8535_v48  ;;  %5064 = vmatpush.bf16.msrb.mxu0 %v8280_v54 }
  0x80   :  { %v8263_v52 = vld [vmem:[%s16307_s1 + $0xc00] sm:$0xf]  ;;  %v10404_v53 = vld [vmem:[%s16307_s1 + $0xc0c] sm:$0xf0]  ;;  %v8664_v2 = vor.u32 %v10504_v51, %v8663_v50  ;;  %5078 = vmatpush.bf16.msrb.mxu1 %v8408_v60 }
  0x81   :  { %v8391_v55 = vld [vmem:[%s16307_s1 + $0xd00] sm:$0xf]  ;;  %v10436_v56 = vld [vmem:[%s16307_s1 + $0xd0c] sm:$0xf0]  ;;  %v8264_v9 = vor.u32 %v10404_v53, %v8263_v52  ;;  %5092 = vmatpush.bf16.msrb.mxu2 %v8536_v61 }
  0x82   :  { %v8519_v57 = vld [vmem:[%s16307_s1 + $0xe00] sm:$0xf]  ;;  %v10468_v59 = vld [vmem:[%s16307_s1 + $0xe0c] sm:$0xf0]  ;;  %v8392_v14 = vor.u32 %v10436_v56, %v8391_v55  ;;  %5106 = vmatpush.bf16.msrb.mxu3 %v8664_v2 }
  0x83   :  { %v8647_v62 = vld [vmem:[%s16307_s1 + $0xf00] sm:$0xf]  ;;  %v10500_v63 = vld [vmem:[%s16307_s1 + $0xf0c] sm:$0xf0]  ;;  %v8520_v15 = vor.u32 %v10468_v59, %v8519_v57  ;;  %5065 = vmatpush.bf16.msrb.mxu0 %v8264_v9 }
  0x84   :  { %v8887_v0 = vld [vmem:[%s16307_s1 + $0x10e0] sm:$0xf]  ;;  %v10560_v3 = vld [vmem:[%s16307_s1 + $0x10ec] sm:$0xf0]  ;;  %v8648_v20 = vor.u32 %v10500_v63, %v8647_v62  ;;  %5079 = vmatpush.bf16.msrb.mxu1 %v8392_v14 }
  0x85   :  { %v9015_v4 = vld [vmem:[%s16307_s1 + $0x11e0] sm:$0xf]  ;;  %v10592_v5 = vld [vmem:[%s16307_s1 + $0x11ec] sm:$0xf0]  ;;  %v8888_v21 = vor.u32 %v10560_v3, %v8887_v0  ;;  %5093 = vmatpush.bf16.msrb.mxu2 %v8520_v15 }
  0x86   :  { %v9143_v6 = vld [vmem:[%s16307_s1 + $0x12e0] sm:$0xf]  ;;  %v10624_v7 = vld [vmem:[%s16307_s1 + $0x12ec] sm:$0xf0]  ;;  %v9016_v25 = vor.u32 %v10592_v5, %v9015_v4  ;;  %5107 = vmatpush.bf16.msrb.mxu3 %v8648_v20 }
  0x87   :  { %v9271_v8 = vld [vmem:[%s16307_s1 + $0x13e0] sm:$0xf]  ;;  %v10656_v11 = vld [vmem:[%s16307_s1 + $0x13ec] sm:$0xf0]  ;;  %v9144_v26 = vor.u32 %v10624_v7, %v9143_v6  ;;  %5114 = vmatpush.bf16.msra.mxu0 %v8888_v21  ;;  %5080 = vmatmul.bf16.vlgmr.msrb.gmra.mxu1 %v11813_v41 }
  0x88   :  { %v6675_v12 = vld [vmem:[%s16308_s0 + $0x30] sm:$0xf]  ;;  %v6685_v24 = vld [vmem:[%s16308_s0 + $0x9c] sm:$0xf0]  ;;  %v9272_v30 = vor.u32 %v10656_v11, %v9271_v8  ;;  %5128 = vmatpush.bf16.msra.mxu1 %v9016_v25  ;;  %5094 = vmatmul.bf16.vlgmr.msrb.gmra.mxu2 %v11811_v38 }
  0x89   :  { %v8871_v27 = vld [vmem:[%s16307_s1 + $0x10c0] sm:$0xf]  ;;  %v10556_v28 = vld [vmem:[%s16307_s1 + $0x10cc] sm:$0xf0]  ;;  %v11800_v32 = vor.u32 %v10011_v13, %v6675_v12  ;;  %v11821_v46 = vor.u32 %v10000_v23, %v6685_v24  ;;  %5142 = vmatpush.bf16.msra.mxu2 %v9144_v26 }
  0x8a   :  { %v8999_v29 = vld [vmem:[%s16307_s1 + $0x11c0] sm:$0xf]  ;;  %v10588_v33 = vld [vmem:[%s16307_s1 + $0x11cc] sm:$0xf0]  ;;  %v8872_v48 = vor.u32 %v10556_v28, %v8871_v27  ;;  %5156 = vmatpush.bf16.msra.mxu3 %v9272_v30 }
  0x8b   :  { %v9127_v34 = vld [vmem:[%s16307_s1 + $0x12c0] sm:$0xf]  ;;  %v10620_v37 = vld [vmem:[%s16307_s1 + $0x12cc] sm:$0xf0]  ;;  %v9000_v49 = vor.u32 %v10588_v33, %v8999_v29  ;;  %5066 = vmatmul.bf16.vlgmr.msrb.gmra.mxu0 %v11800_v32  ;;  %5108 = vmatmul.bf16.vlgmr.msrb.gmra.mxu3 %v11821_v46 }
  0x8c   :  { %v9255_v42 = vld [vmem:[%s16307_s1 + $0x13c0] sm:$0xf]  ;;  %v10652_v45 = vld [vmem:[%s16307_s1 + $0x13cc] sm:$0xf0]  ;;  %v9128_v50 = vor.u32 %v10620_v37, %v9127_v34  ;;  %5115 = vmatpush.bf16.msra.mxu0 %v8872_v48 }
  0x8d   :  { %v8855_v51 = vld [vmem:[%s16307_s1 + $0x10a0] sm:$0xf]  ;;  %v10552_v52 = vld [vmem:[%s16307_s1 + $0x10ac] sm:$0xf0]  ;;  %v9256_v54 = vor.u32 %v10652_v45, %v9255_v42  ;;  %5129 = vmatpush.bf16.msra.mxu1 %v9000_v49 }
  0x8e   :  { %v8983_v53 = vld [vmem:[%s16307_s1 + $0x11a0] sm:$0xf]  ;;  %v10584_v55 = vld [vmem:[%s16307_s1 + $0x11ac] sm:$0xf0]  ;;  %v8856_v61 = vor.u32 %v10552_v52, %v8855_v51  ;;  %5143 = vmatpush.bf16.msra.mxu2 %v9128_v50 }
  0x8f   :  { %v9111_v56 = vld [vmem:[%s16307_s1 + $0x12a0] sm:$0xf]  ;;  %v10616_v57 = vld [vmem:[%s16307_s1 + $0x12ac] sm:$0xf0]  ;;  %v8984_v62 = vor.u32 %v10584_v55, %v8983_v53  ;;  %5157 = vmatpush.bf16.msra.mxu3 %v9256_v54 }
  0x90   :  { %v9239_v59 = vld [vmem:[%s16307_s1 + $0x13a0] sm:$0xf]  ;;  %v10648_v60 = vld [vmem:[%s16307_s1 + $0x13ac] sm:$0xf0]  ;;  %v9112_v63 = vor.u32 %v10616_v57, %v9111_v56  ;;  %5116 = vmatpush.bf16.msra.mxu0 %v8856_v61 }
  0x91   :  { %v8839_v0 = vld [vmem:[%s16307_s1 + $0x1080] sm:$0xf]  ;;  %v10548_v2 = vld [vmem:[%s16307_s1 + $0x108c] sm:$0xf0]  ;;  %v9240_v4 = vor.u32 %v10648_v60, %v9239_v59  ;;  %5130 = vmatpush.bf16.msra.mxu1 %v8984_v62 }
  0x92   :  { %v8967_v3 = vld [vmem:[%s16307_s1 + $0x1180] sm:$0xf]  ;;  %v10580_v5 = vld [vmem:[%s16307_s1 + $0x118c] sm:$0xf0]  ;;  %v8840_v11 = vor.u32 %v10548_v2, %v8839_v0  ;;  %5144 = vmatpush.bf16.msra.mxu2 %v9112_v63 }
  0x93   :  { %v9095_v6 = vld [vmem:[%s16307_s1 + $0x1280] sm:$0xf]  ;;  %v10612_v7 = vld [vmem:[%s16307_s1 + $0x128c] sm:$0xf0]  ;;  %v8968_v12 = vor.u32 %v10580_v5, %v8967_v3  ;;  %5158 = vmatpush.bf16.msra.mxu3 %v9240_v4 }
  0x94   :  { %v9223_v8 = vld [vmem:[%s16307_s1 + $0x1380] sm:$0xf]  ;;  %v10644_v9 = vld [vmem:[%s16307_s1 + $0x138c] sm:$0xf0]  ;;  %v9096_v13 = vor.u32 %v10612_v7, %v9095_v6  ;;  %5117 = vmatpush.bf16.msra.mxu0 %v8840_v11 }
  0x95   :  { %v8823_v14 = vld [vmem:[%s16307_s1 + $0x1060] sm:$0xf]  ;;  %v10544_v15 = vld [vmem:[%s16307_s1 + $0x106c] sm:$0xf0]  ;;  %v9224_v18 = vor.u32 %v10644_v9, %v9223_v8  ;;  %5131 = vmatpush.bf16.msra.mxu1 %v8968_v12 }
  0x96   :  { %v8951_v16 = vld [vmem:[%s16307_s1 + $0x1160] sm:$0xf]  ;;  %v10576_v19 = vld [vmem:[%s16307_s1 + $0x116c] sm:$0xf0]  ;;  %v8824_v24 = vor.u32 %v10544_v15, %v8823_v14  ;;  %5145 = vmatpush.bf16.msra.mxu2 %v9096_v13 }
  0x97   :  { %v9079_v20 = vld [vmem:[%s16307_s1 + $0x1260] sm:$0xf]  ;;  %v10608_v21 = vld [vmem:[%s16307_s1 + $0x126c] sm:$0xf0]  ;;  %v8952_v25 = vor.u32 %v10576_v19, %v8951_v16  ;;  %5159 = vmatpush.bf16.msra.mxu3 %v9224_v18 }
  0x98   :  { %v9207_v22 = vld [vmem:[%s16307_s1 + $0x1360] sm:$0xf]  ;;  %v10640_v23 = vld [vmem:[%s16307_s1 + $0x136c] sm:$0xf0]  ;;  %v9080_v26 = vor.u32 %v10608_v21, %v9079_v20  ;;  %5118 = vmatpush.bf16.msra.mxu0 %v8824_v24 }
  0x99   :  { %v8807_v27 = vld [vmem:[%s16307_s1 + $0x1040] sm:$0xf]  ;;  %v10540_v28 = vld [vmem:[%s16307_s1 + $0x104c] sm:$0xf0]  ;;  %v9208_v30 = vor.u32 %v10640_v23, %v9207_v22  ;;  %5132 = vmatpush.bf16.msra.mxu1 %v8952_v25  ;;  %v10013_v22 = vld [vmem:[%s16308_s0 + $0xa0] sm:$0xf0] }
  0x9a   :  { %v8935_v29 = vld [vmem:[%s16307_s1 + $0x1140] sm:$0xf]  ;;  %v10572_v33 = vld [vmem:[%s16307_s1 + $0x114c] sm:$0xf0]  ;;  %v8808_v48 = vor.u32 %v10540_v28, %v8807_v27  ;;  %5146 = vmatpush.bf16.msra.mxu2 %v9080_v26  ;;  %v6699_v25 = vld [vmem:[%s16308_s0 + $0x48] sm:$0xf] }
  0x9b   :  { %v9063_v34 = vld [vmem:[%s16307_s1 + $0x1240] sm:$0xf]  ;;  %v10604_v37 = vld [vmem:[%s16307_s1 + $0x124c] sm:$0xf0]  ;;  %v8936_v50 = vor.u32 %v10572_v33, %v8935_v29  ;;  %5160 = vmatpush.bf16.msra.mxu3 %v9208_v30  ;;  %v10014_v26 = vld [vmem:[%s16308_s0 + $0xa8] sm:$0xf0] }
  0x9c   :  { %v9191_v42 = vld [vmem:[%s16307_s1 + $0x1340] sm:$0xf]  ;;  %v10636_v45 = vld [vmem:[%s16307_s1 + $0x134c] sm:$0xf0]  ;;  %v9064_v51 = vor.u32 %v10604_v37, %v9063_v34  ;;  %5119 = vmatpush.bf16.msra.mxu0 %v8808_v48  ;;  %v10001_v27 = vld [vmem:[%s16308_s0 + $0x44] sm:$0xf] }
  0x9d   :  { %v8791_v49 = vld [vmem:[%s16307_s1 + $0x1020] sm:$0xf]  ;;  %v10536_v52 = vld [vmem:[%s16307_s1 + $0x102c] sm:$0xf0]  ;;  %v9192_v55 = vor.u32 %v10636_v45, %v9191_v42  ;;  %5133 = vmatpush.bf16.msra.mxu1 %v8936_v50  ;;  %v6693_v30 = vld [vmem:[%s16308_s0 + $0xa4] sm:$0xf0] }
  0x9e   :  { %v8919_v53 = vld [vmem:[%s16307_s1 + $0x1120] sm:$0xf]  ;;  %v10568_v54 = vld [vmem:[%s16307_s1 + $0x112c] sm:$0xf0]  ;;  %v8792_v63 = vor.u32 %v10536_v52, %v8791_v49  ;;  %5147 = vmatpush.bf16.msra.mxu2 %v9064_v51  ;;  %v10002_v33 = vld [vmem:[%s16308_s0 + $0x4c] sm:$0xf] }
  0x9f   :  { %v9047_v56 = vld [vmem:[%s16307_s1 + $0x1220] sm:$0xf]  ;;  %v10600_v57 = vld [vmem:[%s16307_s1 + $0x122c] sm:$0xf0]  ;;  %v8920_v5 = vor.u32 %v10568_v54, %v8919_v53  ;;  %5161 = vmatpush.bf16.msra.mxu3 %v9192_v55  ;;  %v12039_v55 = vor.u32 %v10014_v26, %v6699_v25 }
  0xa0   :  { %v9175_v59 = vld [vmem:[%s16307_s1 + $0x1320] sm:$0xf]  ;;  %v10632_v60 = vld [vmem:[%s16307_s1 + $0x132c] sm:$0xf0]  ;;  %v9048_v6 = vor.u32 %v10600_v57, %v9047_v56  ;;  %5120 = vmatpush.bf16.msra.mxu0 %v8792_v63  ;;  %v12041_v56 = vor.u32 %v10001_v27, %v6693_v30 }
  0xa1   :  { %v8775_v61 = vld [vmem:[%s16307_s1 + $0x1000] sm:$0xf]  ;;  %v10532_v62 = vld [vmem:[%s16307_s1 + $0x100c] sm:$0xf0]  ;;  %v9176_v11 = vor.u32 %v10632_v60, %v9175_v59  ;;  %5134 = vmatpush.bf16.msra.mxu1 %v8920_v5 }
  0xa2   :  { %v8903_v0 = vld [vmem:[%s16307_s1 + $0x1100] sm:$0xf]  ;;  %v10564_v2 = vld [vmem:[%s16307_s1 + $0x110c] sm:$0xf0]  ;;  %v8776_v19 = vor.u32 %v10532_v62, %v8775_v61  ;;  %5148 = vmatpush.bf16.msra.mxu2 %v9048_v6 }
  0xa3   :  { %v9031_v3 = vld [vmem:[%s16307_s1 + $0x1200] sm:$0xf]  ;;  %v10596_v4 = vld [vmem:[%s16307_s1 + $0x120c] sm:$0xf0]  ;;  %v8904_v23 = vor.u32 %v10564_v2, %v8903_v0  ;;  %5162 = vmatpush.bf16.msra.mxu3 %v9176_v11 }
  0xa4   :  { %v9159_v7 = vld [vmem:[%s16307_s1 + $0x1300] sm:$0xf]  ;;  %v10628_v8 = vld [vmem:[%s16307_s1 + $0x130c] sm:$0xf0]  ;;  %v9032_v24 = vor.u32 %v10596_v4, %v9031_v3  ;;  %5121 = vmatpush.bf16.msra.mxu0 %v8776_v19 }
  0xa5   :  { %v9399_v9 = vld [vmem:[%s16307_s1 + $0x14e0] sm:$0xf]  ;;  %v10688_v12 = vld [vmem:[%s16307_s1 + $0x14ec] sm:$0xf0]  ;;  %v9160_v28 = vor.u32 %v10628_v8, %v9159_v7  ;;  %5135 = vmatpush.bf16.msra.mxu1 %v8904_v23 }
  0xa6   :  { %v9527_v13 = vld [vmem:[%s16307_s1 + $0x15e0] sm:$0xf]  ;;  %v10720_v14 = vld [vmem:[%s16307_s1 + $0x15ec] sm:$0xf0]  ;;  %v9400_v29 = vor.u32 %v10688_v12, %v9399_v9  ;;  %5149 = vmatpush.bf16.msra.mxu2 %v9032_v24 }
  0xa7   :  { %v9655_v15 = vld [vmem:[%s16307_s1 + $0x16e0] sm:$0xf]  ;;  %v10752_v16 = vld [vmem:[%s16307_s1 + $0x16ec] sm:$0xf0]  ;;  %v9528_v37 = vor.u32 %v10720_v14, %v9527_v13  ;;  %5163 = vmatpush.bf16.msra.mxu3 %v9160_v28 }
  0xa8   :  { %v9783_v18 = vld [vmem:[%s16307_s1 + $0x17e0] sm:$0xf]  ;;  %v10784_v20 = vld [vmem:[%s16307_s1 + $0x17ec] sm:$0xf0]  ;;  %v9656_v42 = vor.u32 %v10752_v16, %v9655_v15  ;;  %5170 = vmatpush.bf16.msrb.mxu0 %v9400_v29  ;;  %5136 = vmatmul.bf16.vlgmr.msra.gmra.mxu1 %v12041_v56 }
  0xa9   :  { %v6691_v21 = vld [vmem:[%s16308_s0 + $0x40] sm:$0xf]  ;;  %v6701_v34 = vld [vmem:[%s16308_s0 + $0xac] sm:$0xf0]  ;;  %v9784_v50 = vor.u32 %v10784_v20, %v9783_v18  ;;  %5184 = vmatpush.bf16.msrb.mxu1 %v9528_v37  ;;  %5150 = vmatmul.bf16.vlgmr.msra.gmra.mxu2 %v12039_v55  ;;  %v4899_v26 = vpop.f32.mrf.mxu0 }
  0xaa   :  { %v9383_v45 = vld [vmem:[%s16307_s1 + $0x14c0] sm:$0xf]  ;;  %v10684_v48 = vld [vmem:[%s16307_s1 + $0x14cc] sm:$0xf0]  ;;  %v12028_v51 = vor.u32 %v10013_v22, %v6691_v21  ;;  %v12049_v60 = vor.u32 %v10002_v33, %v6701_v34  ;;  %5198 = vmatpush.bf16.msrb.mxu2 %v9656_v42 }
  0xab   :  { %v9511_v49 = vld [vmem:[%s16307_s1 + $0x15c0] sm:$0xf]  ;;  %v10716_v52 = vld [vmem:[%s16307_s1 + $0x15cc] sm:$0xf0]  ;;  %v9384_v61 = vor.u32 %v10684_v48, %v9383_v45  ;;  %5212 = vmatpush.bf16.msrb.mxu3 %v9784_v50 }
  0xac   :  { %v9639_v53 = vld [vmem:[%s16307_s1 + $0x16c0] sm:$0xf]  ;;  %v10748_v54 = vld [vmem:[%s16307_s1 + $0x16cc] sm:$0xf0]  ;;  %v9512_v63 = vor.u32 %v10716_v52, %v9511_v49  ;;  %5122 = vmatmul.bf16.vlgmr.msra.gmra.mxu0 %v12028_v51  ;;  %5164 = vmatmul.bf16.vlgmr.msra.gmra.mxu3 %v12049_v60 }
  0xad   :  { %v9767_v57 = vld [vmem:[%s16307_s1 + $0x17c0] sm:$0xf]  ;;  %v10780_v59 = vld [vmem:[%s16307_s1 + $0x17cc] sm:$0xf0]  ;;  %v9640_v0 = vor.u32 %v10748_v54, %v9639_v53  ;;  %5171 = vmatpush.bf16.msrb.mxu0 %v9384_v61  ;;  %v4913_v53 = vpop.f32.mrf.mxu1 }
  0xae   :  { %v9367_v62 = vld [vmem:[%s16307_s1 + $0x14a0] sm:$0xf]  ;;  %v10680_v2 = vld [vmem:[%s16307_s1 + $0x14ac] sm:$0xf0]  ;;  %v9768_v5 = vor.u32 %v10780_v59, %v9767_v57  ;;  %5185 = vmatpush.bf16.msrb.mxu1 %v9512_v63 }
  0xaf   :  { %v9495_v3 = vld [vmem:[%s16307_s1 + $0x15a0] sm:$0xf]  ;;  %v10712_v6 = vld [vmem:[%s16307_s1 + $0x15ac] sm:$0xf0]  ;;  %v9368_v12 = vor.u32 %v10680_v2, %v9367_v62  ;;  %5199 = vmatpush.bf16.msrb.mxu2 %v9640_v0 }
  0xb0   :  { %v12063_v4 = vld [vmem:[%s16309_s2] sm:$0xf]  ;;  %v10744_v8 = vld [vmem:[%s16307_s1 + $0x16ac] sm:$0xf0]  ;;  %v9496_v14 = vor.u32 %v10712_v6, %v9495_v3  ;;  %5213 = vmatpush.bf16.msrb.mxu3 %v9768_v5 }
  0xb1   :  { %v9623_v7 = vld [vmem:[%s16307_s1 + $0x16a0] sm:$0xf]  ;;  %v10776_v11 = vld [vmem:[%s16307_s1 + $0x17ac] sm:$0xf0]  ;;  %v16313_v13 = vperm.slane %v12063_v4, 0  ;;  %5172 = vmatpush.bf16.msrb.mxu0 %v9368_v12 }
  0xb2   :  { %v9751_v9 = vld [vmem:[%s16307_s1 + $0x17a0] sm:$0xf]  ;;  %v9624_v15 = vor.u32 %v10744_v8, %v9623_v7  ;;  %v10676_v18 = vld [vmem:[%s16307_s1 + $0x148c] sm:$0xf0]  ;;  %5186 = vmatpush.bf16.msrb.mxu1 %v9496_v14  ;;  %v4927_v7 = vpop.f32.mrf.mxu2 }
  0xb3   :  { %v9351_v16 = vld [vmem:[%s16307_s1 + $0x1480] sm:$0xf]  ;;  %v9752_v20 = vor.u32 %v10776_v11, %v9751_v9  ;;  %v10708_v21 = vld [vmem:[%s16307_s1 + $0x158c] sm:$0xf0]  ;;  %v4900_v28 = vadd.f32 %v4899_v26, %v16313_v13  ;;  %v10414_v13 = vld [vmem:[%s16307_s1 + $0xc64] sm:$0xf] }
  0xb4   :  { %v9479_v19 = vld [vmem:[%s16307_s1 + $0x1580] sm:$0xf]  ;;  %v10740_v23 = vld [vmem:[%s16307_s1 + $0x168c] sm:$0xf0]  ;;  %v9352_v27 = vor.u32 %v10676_v18, %v9351_v16  ;;  %5200 = vmatpush.bf16.msrb.mxu2 %v9624_v15 }
  0xb5   :  { %v9607_v22 = vld [vmem:[%s16307_s1 + $0x1680] sm:$0xf]  ;;  %v10772_v25 = vld [vmem:[%s16307_s1 + $0x178c] sm:$0xf0]  ;;  %v9480_v29 = vor.u32 %v10708_v21, %v9479_v19  ;;  %5214 = vmatpush.bf16.msrb.mxu3 %v9752_v20  ;;  %v4914_v57 = vadd.f32 %v4913_v53, %v4900_v28 }
  0xb6   :  { %v9735_v24 = vld [vmem:[%s16307_s1 + $0x1780] sm:$0xf]  ;;  %v9608_v30 = vor.u32 %v10740_v23, %v9607_v22  ;;  %v10672_v34 = vld [vmem:[%s16307_s1 + $0x146c] sm:$0xf0]  ;;  %5173 = vmatpush.bf16.msrb.mxu0 %v9352_v27 }
  0xb7   :  { %v9335_v33 = vld [vmem:[%s16307_s1 + $0x1460] sm:$0xf]  ;;  %v9736_v42 = vor.u32 %v10772_v25, %v9735_v24  ;;  %v10704_v45 = vld [vmem:[%s16307_s1 + $0x156c] sm:$0xf0]  ;;  %5187 = vmatpush.bf16.msrb.mxu1 %v9480_v29  ;;  %v4928_v11 = vadd.f32 %v4927_v7, %v4914_v57  ;;  %v4941_v25 = vpop.f32.mrf.mxu3  ;;  %v10046_v57 = vld [vmem:[%s16307_s1 + $0xe4] sm:$0xf] }
  0xb8   :  { %v9463_v37 = vld [vmem:[%s16307_s1 + $0x1560] sm:$0xf]  ;;  %v10736_v49 = vld [vmem:[%s16307_s1 + $0x166c] sm:$0xf0]  ;;  %v9336_v54 = vor.u32 %v10672_v34, %v9335_v33  ;;  %5201 = vmatpush.bf16.msrb.mxu2 %v9608_v30 }
  0xb9   :  { %v9591_v48 = vld [vmem:[%s16307_s1 + $0x1660] sm:$0xf]  ;;  %v10768_v52 = vld [vmem:[%s16307_s1 + $0x176c] sm:$0xf0]  ;;  %v9464_v59 = vor.u32 %v10704_v45, %v9463_v37  ;;  %5215 = vmatpush.bf16.msrb.mxu3 %v9736_v42  ;;  %v12189_v29 = vadd.f32 %v4941_v25, %v4928_v11  ;;  %v10003_v11 = vld [vmem:[%s16308_s0 + $0x54] sm:$0xf] }
  0xba   :  { %v9719_v50 = vld [vmem:[%s16307_s1 + $0x1760] sm:$0xf]  ;;  %v9592_v61 = vor.u32 %v10736_v49, %v9591_v48  ;;  %v10668_v63 = vld [vmem:[%s16307_s1 + $0x144c] sm:$0xf0]  ;;  %5174 = vmatpush.bf16.msrb.mxu0 %v9336_v54 }
  0xbb   :  { %v9319_v62 = vld [vmem:[%s16307_s1 + $0x1440] sm:$0xf]  ;;  %v9720_v2 = vor.u32 %v10768_v52, %v9719_v50  ;;  %v10700_v3 = vld [vmem:[%s16307_s1 + $0x154c] sm:$0xf0]  ;;  %5188 = vmatpush.bf16.msrb.mxu1 %v9464_v59  ;;  %v6841_v59 = vld [vmem:[%s16307_s1 + $0xf0] sm:$0xf0] }
  0xbc   :  { %v9447_v0 = vld [vmem:[%s16307_s1 + $0x1540] sm:$0xf]  ;;  %v10732_v6 = vld [vmem:[%s16307_s1 + $0x164c] sm:$0xf0]  ;;  %v9320_v12 = vor.u32 %v10668_v63, %v9319_v62  ;;  %5202 = vmatpush.bf16.msrb.mxu2 %v9592_v61  ;;  %v10078_v61 = vld [vmem:[%s16307_s1 + $0x1e4] sm:$0xf] }
  0xbd   :  { %v9575_v5 = vld [vmem:[%s16307_s1 + $0x1640] sm:$0xf]  ;;  %v10764_v9 = vld [vmem:[%s16307_s1 + $0x174c] sm:$0xf0]  ;;  %v9448_v15 = vor.u32 %v10700_v3, %v9447_v0  ;;  %5216 = vmatpush.bf16.msrb.mxu3 %v9720_v2  ;;  %v6969_v62 = vld [vmem:[%s16307_s1 + $0x1f0] sm:$0xf0] }
  0xbe   :  { %v9703_v8 = vld [vmem:[%s16307_s1 + $0x1740] sm:$0xf]  ;;  %v9576_v16 = vor.u32 %v10732_v6, %v9575_v5  ;;  %v10664_v18 = vld [vmem:[%s16307_s1 + $0x142c] sm:$0xf0]  ;;  %5175 = vmatpush.bf16.msrb.mxu0 %v9320_v12  ;;  %v10110_v63 = vld [vmem:[%s16307_s1 + $0x2e4] sm:$0xf] }
  0xbf   :  { %v9303_v14 = vld [vmem:[%s16307_s1 + $0x1420] sm:$0xf]  ;;  %v10696_v20 = vld [vmem:[%s16307_s1 + $0x152c] sm:$0xf0]  ;;  %v9704_v21 = vor.u32 %v10764_v9, %v9703_v8  ;;  %5189 = vmatpush.bf16.msrb.mxu1 %v9448_v15  ;;  %v7097_v2 = vld [vmem:[%s16307_s1 + $0x2f0] sm:$0xf0] }
  0xc0   :  { %v9431_v19 = vld [vmem:[%s16307_s1 + $0x1520] sm:$0xf]  ;;  %v10728_v23 = vld [vmem:[%s16307_s1 + $0x162c] sm:$0xf0]  ;;  %v9304_v30 = vor.u32 %v10664_v18, %v9303_v14  ;;  %5203 = vmatpush.bf16.msrb.mxu2 %v9576_v16  ;;  %v10015_v5 = vld [vmem:[%s16308_s0 + $0xb0] sm:$0xf0]  ;;  %v7100_v25 = vor.u32 %v10110_v63, %v7097_v2 }
  0xc1   :  { %v9559_v22 = vld [vmem:[%s16307_s1 + $0x1620] sm:$0xf]  ;;  %v10760_v26 = vld [vmem:[%s16307_s1 + $0x172c] sm:$0xf0]  ;;  %v9432_v45 = vor.u32 %v10696_v20, %v9431_v19  ;;  %5217 = vmatpush.bf16.msrb.mxu3 %v9704_v21  ;;  %v6715_v8 = vld [vmem:[%s16308_s0 + $0x58] sm:$0xf]  ;;  %v6844_v19 = vor.u32 %v10046_v57, %v6841_v59  ;;  %v6972_v20 = vor.u32 %v10078_v61, %v6969_v62  ;;  %v12257_v21 = vpop.f32.mrf.mxu0 }
  0xc2   :  { %v9687_v24 = vld [vmem:[%s16307_s1 + $0x1720] sm:$0xf]  ;;  %v10660_v28 = vld [vmem:[%s16307_s1 + $0x140c] sm:$0xf0]  ;;  %v9560_v48 = vor.u32 %v10728_v23, %v9559_v22  ;;  %5176 = vmatpush.bf16.msrb.mxu0 %v9304_v30  ;;  %v10016_v9 = vld [vmem:[%s16308_s0 + $0xb8] sm:$0xf0] }
  0xc3   :  { %v9287_v27 = vld [vmem:[%s16307_s1 + $0x1400] sm:$0xf]  ;;  %v10692_v34 = vld [vmem:[%s16307_s1 + $0x150c] sm:$0xf0]  ;;  %v9688_v53 = vor.u32 %v10760_v26, %v9687_v24  ;;  %5190 = vmatpush.bf16.msrb.mxu1 %v9432_v45  ;;  %v6709_v15 = vld [vmem:[%s16308_s0 + $0xb4] sm:$0xf0]  ;;  %v12289_v45 = vpop.f32.mrf.mxu1 }
  0xc4   :  { %v9415_v33 = vld [vmem:[%s16307_s1 + $0x1500] sm:$0xf]  ;;  %v10724_v42 = vld [vmem:[%s16307_s1 + $0x160c] sm:$0xf0]  ;;  %v9288_v0 = vor.u32 %v10660_v28, %v9287_v27  ;;  %5204 = vmatpush.bf16.msrb.mxu2 %v9560_v48  ;;  %v10004_v16 = vld [vmem:[%s16308_s0 + $0x5c] sm:$0xf] }
  0xc5   :  { %v9543_v37 = vld [vmem:[%s16307_s1 + $0x1600] sm:$0xf]  ;;  %v10756_v50 = vld [vmem:[%s16307_s1 + $0x170c] sm:$0xf0]  ;;  %v9416_v6 = vor.u32 %v10692_v34, %v9415_v33  ;;  %5218 = vmatpush.bf16.msrb.mxu3 %v9688_v53  ;;  %v10042_v24 = vld [vmem:[%s16307_s1 + $0xc4] sm:$0xf]  ;;  %v12279_v33 = vor.u32 %v10016_v9, %v6715_v8  ;;  %v12281_v34 = vor.u32 %v10003_v11, %v6709_v15  ;;  %v12335_v15 = vpop.f32.mrf.mxu3 }
  0xc6   :  { %v9671_v49 = vld [vmem:[%s16307_s1 + $0x1700] sm:$0xf]  ;;  %v10800_v54 = vld [vmem:[%s16307_s1 + $0x186c] sm:$0xf0]  ;;  %v9544_v7 = vor.u32 %v10724_v42, %v9543_v37  ;;  %5177 = vmatpush.bf16.msrb.mxu0 %v9288_v0  ;;  %v6825_v27 = vld [vmem:[%s16307_s1 + $0xd0] sm:$0xf0] }
  0xc7   :  { %v9847_v52 = vld [vmem:[%s16307_s1 + $0x1860] sm:$0xf]  ;;  %v6707_v3 = vld [vmem:[%s16308_s0 + $0x50] sm:$0xf]  ;;  %v9672_v12 = vor.u32 %v10756_v50, %v9671_v49  ;;  %v10074_v28 = vld [vmem:[%s16307_s1 + $0x1c4] sm:$0xf]  ;;  %5191 = vmatpush.bf16.msrb.mxu1 %v9416_v6  ;;  %v6828_v50 = vor.u32 %v10042_v24, %v6825_v27 }
  0xc8   :  { %v9848_v14 = vor.u32 %v10800_v54, %v9847_v52  ;;  %v6717_v18 = vld [vmem:[%s16308_s0 + $0xbc] sm:$0xf0]  ;;  %v10796_v23 = vld [vmem:[%s16307_s1 + $0x184c] sm:$0xf0]  ;;  %v12268_v26 = vor.u32 %v10015_v5, %v6707_v3  ;;  %v6953_v30 = vld [vmem:[%s16307_s1 + $0x1d0] sm:$0xf0]  ;;  %5205 = vmatpush.bf16.msrb.mxu2 %v9544_v7  ;;  %v12321_v5 = vpop.f32.mrf.mxu2 }
  0xc9   :  { %v9831_v22 = vld [vmem:[%s16307_s1 + $0x1840] sm:$0xf]  ;;  %v10106_v37 = vld [vmem:[%s16307_s1 + $0x2c4] sm:$0xf]  ;;  %v7081_v42 = vld [vmem:[%s16307_s1 + $0x2d0] sm:$0xf0]  ;;  %5219 = vmatpush.bf16.msrb.mxu3 %v9672_v12  ;;  %v12291_v48 = vor.u32 %v10004_v16, %v6717_v18  ;;  %v6956_v52 = vor.u32 %v10074_v28, %v6953_v30 }
  0xca   :  { %5230 = vmatpush.bf16.msra.mxu0 %v9848_v14  ;;  %v9832_v49 = vor.u32 %v10796_v23, %v9831_v22  ;;  %v9815_v53 = vld [vmem:[%s16307_s1 + $0x1820] sm:$0xf]  ;;  %v10792_v54 = vld [vmem:[%s16307_s1 + $0x182c] sm:$0xf0]  ;;  %v10038_v57 = vld [vmem:[%s16307_s1 + $0xa4] sm:$0xf]  ;;  %v7084_v59 = vor.u32 %v10106_v37, %v7081_v42  ;;  %5192 = vmatmul.bf16.vlgmr.msrb.gmra.mxu1 %v12281_v34 }
  0xcb   :  { %5240 = vmatpush.bf16.msra.mxu1 %v6844_v19  ;;  %5178 = vmatmul.bf16.vlgmr.msrb.gmra.mxu0 %v12268_v26  ;;  %v6809_v61 = vld [vmem:[%s16307_s1 + $0xb0] sm:$0xf0]  ;;  %v10070_v62 = vld [vmem:[%s16307_s1 + $0x1a4] sm:$0xf]  ;;  %v9816_v3 = vor.u32 %v10792_v54, %v9815_v53  ;;  %v9799_v6 = vld [vmem:[%s16307_s1 + $0x1800] sm:$0xf]  ;;  %v4969_v37 = vpop.f32.mrf.mxu1 }
  0xcc   :  { %5254 = vmatpush.bf16.msra.mxu2 %v6972_v20  ;;  %v6937_v63 = vld [vmem:[%s16307_s1 + $0x1b0] sm:$0xf0]  ;;  %v10102_v0 = vld [vmem:[%s16307_s1 + $0x2a4] sm:$0xf]  ;;  %5220 = vmatmul.bf16.vlgmr.msrb.gmra.mxu3 %v12291_v48  ;;  %v6812_v7 = vor.u32 %v10038_v57, %v6809_v61  ;;  %v10788_v9 = vld [vmem:[%s16307_s1 + $0x180c] sm:$0xf0]  ;;  %v4955_v20 = vpop.f32.mrf.mxu0 }
  0xcd   :  { %5268 = vmatpush.bf16.msra.mxu3 %v7100_v25  ;;  %5206 = vmatmul.bf16.vlgmr.msrb.gmra.mxu2 %v12279_v33  ;;  %v7065_v2 = vld [vmem:[%s16307_s1 + $0x2b0] sm:$0xf0]  ;;  %v6940_v8 = vor.u32 %v10070_v62, %v6937_v63  ;;  %v10034_v11 = vld [vmem:[%s16307_s1 + $0x84] sm:$0xf]  ;;  %v4956_v25 = vadd.f32 %v4955_v20, %v12189_v29  ;;  %v9800_v27 = vor.u32 %v10788_v9, %v9799_v6  ;;  %v6723_v63 = vld [vmem:[%s16308_s0 + $0x60] sm:$0xf] }
  0xce   :  { %5231 = vmatpush.bf16.msra.mxu0 %v9832_v49  ;;  %v6793_v12 = vld [vmem:[%s16307_s1 + $0x90] sm:$0xf0]  ;;  %v7068_v14 = vor.u32 %v10102_v0, %v7065_v2  ;;  %v10066_v16 = vld [vmem:[%s16307_s1 + $0x184] sm:$0xf] }
  0xcf   :  { %5241 = vmatpush.bf16.msra.mxu1 %v6828_v50  ;;  %v6921_v18 = vld [vmem:[%s16307_s1 + $0x190] sm:$0xf0]  ;;  %v10098_v19 = vld [vmem:[%s16307_s1 + $0x284] sm:$0xf]  ;;  %v6796_v28 = vor.u32 %v10034_v11, %v6793_v12 }
  0xd0   :  { %5255 = vmatpush.bf16.msra.mxu2 %v6956_v52  ;;  %v7049_v22 = vld [vmem:[%s16307_s1 + $0x290] sm:$0xf0]  ;;  %v10142_v23 = vld [vmem:[%s16307_s1 + $0x3e4] sm:$0xf]  ;;  %v6924_v30 = vor.u32 %v10066_v16, %v6921_v18  ;;  %v4970_v52 = vadd.f32 %v4969_v37, %v4956_v25  ;;  %v4983_v9 = vpop.f32.mrf.mxu2 }
  0xd1   :  { %5269 = vmatpush.bf16.msra.mxu3 %v7084_v59  ;;  %v7225_v24 = vld [vmem:[%s16307_s1 + $0x3f0] sm:$0xf0]  ;;  %v10030_v42 = vld [vmem:[%s16307_s1 + $0x64] sm:$0xf]  ;;  %v7052_v50 = vor.u32 %v10098_v19, %v7049_v22 }
  0xd2   :  { %5232 = vmatpush.bf16.msra.mxu0 %v9816_v3  ;;  %v6777_v49 = vld [vmem:[%s16307_s1 + $0x70] sm:$0xf0]  ;;  %v7228_v53 = vor.u32 %v10142_v23, %v7225_v24  ;;  %v10062_v29 = vld [vmem:[%s16307_s1 + $0x164] sm:$0xf]  ;;  %v4984_v18 = vadd.f32 %v4983_v9, %v4970_v52  ;;  %v4997_v24 = vpop.f32.mrf.mxu3 }
  0xd3   :  { %5242 = vmatpush.bf16.msra.mxu1 %v6812_v7  ;;  %v6905_v54 = vld [vmem:[%s16307_s1 + $0x170] sm:$0xf0]  ;;  %v10094_v57 = vld [vmem:[%s16307_s1 + $0x264] sm:$0xf]  ;;  %v6780_v2 = vor.u32 %v10030_v42, %v6777_v49 }
  0xd4   :  { %5256 = vmatpush.bf16.msra.mxu2 %v6940_v8  ;;  %v7033_v59 = vld [vmem:[%s16307_s1 + $0x270] sm:$0xf0]  ;;  %v10138_v61 = vld [vmem:[%s16307_s1 + $0x3c4] sm:$0xf]  ;;  %v6908_v3 = vor.u32 %v10062_v29, %v6905_v54  ;;  %v12412_v25 = vadd.f32 %v4997_v24, %v4984_v18 }
  0xd5   :  { %5270 = vmatpush.bf16.msra.mxu3 %v7068_v14  ;;  %v7209_v62 = vld [vmem:[%s16307_s1 + $0x3d0] sm:$0xf0]  ;;  %v10017_v0 = vld [vmem:[%s16308_s0 + $0xc0] sm:$0xf0]  ;;  %v7036_v8 = vor.u32 %v10094_v57, %v7033_v59 }
  0xd6   :  { %5233 = vmatpush.bf16.msra.mxu0 %v9800_v27  ;;  %v10026_v6 = vld [vmem:[%s16307_s1 + $0x44] sm:$0xf]  ;;  %v6761_v7 = vld [vmem:[%s16307_s1 + $0x50] sm:$0xf0]  ;;  %v7212_v11 = vor.u32 %v10138_v61, %v7209_v62  ;;  %v12401_v19 = vor.u32 %v10017_v0, %v6723_v63 }
  0xd7   :  { %5243 = vmatpush.bf16.msra.mxu1 %v6796_v28  ;;  %v10058_v12 = vld [vmem:[%s16307_s1 + $0x144] sm:$0xf]  ;;  %v6889_v14 = vld [vmem:[%s16307_s1 + $0x150] sm:$0xf0]  ;;  %v6764_v27 = vor.u32 %v10026_v6, %v6761_v7 }
  0xd8   :  { %5257 = vmatpush.bf16.msra.mxu2 %v6924_v30  ;;  %v10090_v16 = vld [vmem:[%s16307_s1 + $0x244] sm:$0xf]  ;;  %16316 = vst [vmem:[#allocation2_spill] sm:$0xff] %v12401_v19  ;;  %v7017_v20 = vld [vmem:[%s16307_s1 + $0x250] sm:$0xf0]  ;;  %v6892_v28 = vor.u32 %v10058_v12, %v6889_v14 }
  0xd9   :  { %5271 = vmatpush.bf16.msra.mxu3 %v7052_v50  ;;  %v10134_v22 = vld [vmem:[%s16307_s1 + $0x3a4] sm:$0xf]  ;;  %v7193_v23 = vld [vmem:[%s16307_s1 + $0x3b0] sm:$0xf0]  ;;  %v7020_v42 = vor.u32 %v10090_v16, %v7017_v20 }
  0xda   :  { %5282 = vmatpush.bf16.msrb.mxu0 %v7228_v53  ;;  %v10022_v30 = vld [vmem:[%s16307_s1 + $0x24] sm:$0xf]  ;;  %v6745_v37 = vld [vmem:[%s16307_s1 + $0x30] sm:$0xf0]  ;;  %v7196_v49 = vor.u32 %v10134_v22, %v7193_v23 }
  0xdb   :  { %5244 = vmatpush.bf16.msra.mxu1 %v6780_v2  ;;  %v10054_v50 = vld [vmem:[%s16307_s1 + $0x124] sm:$0xf]  ;;  %v6873_v52 = vld [vmem:[%s16307_s1 + $0x130] sm:$0xf0]  ;;  %9861 = vmatmul.msk.bf16.vlgmr.msra.gmra.mxu0 %vm4886_vm0, %v12401_v19  ;;  %v6748_v59 = vor.u32 %v10022_v30, %v6745_v37 }
  0xdc   :  { %5258 = vmatpush.bf16.msra.mxu2 %v6908_v3  ;;  %v10086_v53 = vld [vmem:[%s16307_s1 + $0x224] sm:$0xf]  ;;  %v7001_v29 = vld [vmem:[%s16307_s1 + $0x230] sm:$0xf0]  ;;  %v6876_v61 = vor.u32 %v10054_v50, %v6873_v52 }
  0xdd   :  { %5272 = vmatpush.bf16.msra.mxu3 %v7036_v8  ;;  %v10130_v54 = vld [vmem:[%s16307_s1 + $0x384] sm:$0xf]  ;;  %v7177_v57 = vld [vmem:[%s16307_s1 + $0x390] sm:$0xf0]  ;;  %v7004_v2 = vor.u32 %v10086_v53, %v7001_v29 }
  0xde   :  { %5283 = vmatpush.bf16.msrb.mxu0 %v7212_v11  ;;  %v10018_v62 = vld [vmem:[%s16307_s1 + $0x4] sm:$0xf]  ;;  %v6729_v63 = vld [vmem:[%s16307_s1 + $0x10] sm:$0xf0]  ;;  %v7180_v3 = vor.u32 %v10130_v54, %v7177_v57  ;;  %v12500_v57 = vpop.f32.mrf.mxu0 }
  0xdf   :  { %5245 = vmatpush.bf16.msra.mxu1 %v6764_v27  ;;  %v10050_v0 = vld [vmem:[%s16307_s1 + $0x104] sm:$0xf]  ;;  %v6857_v6 = vld [vmem:[%s16307_s1 + $0x110] sm:$0xf0]  ;;  %v6732_v20 = vor.u32 %v10018_v62, %v6729_v63  ;;  %v12508_v62 = vpop.f32.mrf.mxu1 }
  0xe0   :  { %5259 = vmatpush.bf16.msra.mxu2 %v6892_v28  ;;  %v10082_v7 = vld [vmem:[%s16307_s1 + $0x204] sm:$0xf]  ;;  %v6985_v8 = vld [vmem:[%s16307_s1 + $0x210] sm:$0xf0]  ;;  %v6860_v22 = vor.u32 %v10050_v0, %v6857_v6 }
  0xe1   :  { %5273 = vmatpush.bf16.msra.mxu3 %v7020_v42  ;;  %v10126_v9 = vld [vmem:[%s16307_s1 + $0x364] sm:$0xf]  ;;  %v7161_v11 = vld [vmem:[%s16307_s1 + $0x370] sm:$0xf0]  ;;  %v6988_v27 = vor.u32 %v10082_v7, %v6985_v8 }
  0xe2   :  { %5284 = vmatpush.bf16.msrb.mxu0 %v7196_v49  ;;  %v10174_v12 = vld [vmem:[%s16307_s1 + $0x4e4] sm:$0xf]  ;;  %v7353_v14 = vld [vmem:[%s16307_s1 + $0x4f0] sm:$0xf0]  ;;  %v7164_v28 = vor.u32 %v10126_v9, %v7161_v11 }
  0xe3   :  { %v10206_v16 = vld [vmem:[%s16307_s1 + $0x5e4] sm:$0xf]  ;;  %v7481_v18 = vld [vmem:[%s16307_s1 + $0x5f0] sm:$0xf0]  ;;  %5246 = vmatpush.bf16.msra.mxu1 %v6748_v59  ;;  %v7356_v30 = vor.u32 %v10174_v12, %v7353_v14 }
  0xe4   :  { %5260 = vmatpush.bf16.msra.mxu2 %v6876_v61  ;;  %v10238_v23 = vld [vmem:[%s16307_s1 + $0x6e4] sm:$0xf]  ;;  %v7609_v24 = vld [vmem:[%s16307_s1 + $0x6f0] sm:$0xf0]  ;;  %v7484_v37 = vor.u32 %v10206_v16, %v7481_v18 }
  0xe5   :  { %5274 = vmatpush.bf16.msra.mxu3 %v7004_v2  ;;  %v10122_v42 = vld [vmem:[%s16307_s1 + $0x344] sm:$0xf]  ;;  %v7145_v49 = vld [vmem:[%s16307_s1 + $0x350] sm:$0xf0]  ;;  %v7612_v52 = vor.u32 %v10238_v23, %v7609_v24 }
  0xe6   :  { %5285 = vmatpush.bf16.msrb.mxu0 %v7180_v3  ;;  %v10170_v50 = vld [vmem:[%s16307_s1 + $0x4c4] sm:$0xf]  ;;  %v7337_v53 = vld [vmem:[%s16307_s1 + $0x4d0] sm:$0xf0]  ;;  %v7148_v63 = vor.u32 %v10122_v42, %v7145_v49 }
  0xe7   :  { %v10202_v29 = vld [vmem:[%s16307_s1 + $0x5c4] sm:$0xf]  ;;  %v7465_v54 = vld [vmem:[%s16307_s1 + $0x5d0] sm:$0xf0]  ;;  %5247 = vmatpush.bf16.msra.mxu1 %v6732_v20  ;;  %v7340_v0 = vor.u32 %v10170_v50, %v7337_v53  ;;  %v5011_v53 = vpop.f32.mrf.mxu0 }
  0xe8   :  { %5261 = vmatpush.bf16.msra.mxu2 %v6860_v22  ;;  %v10234_v59 = vld [vmem:[%s16307_s1 + $0x6c4] sm:$0xf]  ;;  %v7593_v61 = vld [vmem:[%s16307_s1 + $0x6d0] sm:$0xf0]  ;;  %v7468_v2 = vor.u32 %v10202_v29, %v7465_v54 }
  0xe9   :  { %5275 = vmatpush.bf16.msra.mxu3 %v6988_v27  ;;  %v10118_v3 = vld [vmem:[%s16307_s1 + $0x324] sm:$0xf]  ;;  %v7129_v6 = vld [vmem:[%s16307_s1 + $0x330] sm:$0xf0]  ;;  %v7596_v8 = vor.u32 %v10234_v59, %v7593_v61  ;;  %v5012_v61 = vadd.f32 %v5011_v53, %v12412_v25 }
  0xea   :  { %5286 = vmatpush.bf16.msrb.mxu0 %v7164_v28  ;;  %v10166_v7 = vld [vmem:[%s16307_s1 + $0x4a4] sm:$0xf]  ;;  %v7321_v9 = vld [vmem:[%s16307_s1 + $0x4b0] sm:$0xf0]  ;;  %5248 = vmatmul.bf16.vlgmr.msra.gmra.mxu1 %v11122_v58  ;;  %v7132_v18 = vor.u32 %v10118_v3, %v7129_v6 }
  0xeb   :  { %5296 = vmatpush.bf16.msrb.mxu1 %v7356_v30  ;;  %v10198_v11 = vld [vmem:[%s16307_s1 + $0x5a4] sm:$0xf]  ;;  %v7449_v12 = vld [vmem:[%s16307_s1 + $0x5b0] sm:$0xf0]  ;;  %5262 = vmatmul.bf16.vlgmr.msra.gmra.mxu2 %v11158_v10  ;;  %v7324_v22 = vor.u32 %v10166_v7, %v7321_v9  ;;  %v12549_v30 = vpop.f32.mrf.mxu2 }
  0xec   :  { %5310 = vmatpush.bf16.msrb.mxu2 %v7484_v37  ;;  %v10230_v14 = vld [vmem:[%s16307_s1 + $0x6a4] sm:$0xf]  ;;  %v7577_v16 = vld [vmem:[%s16307_s1 + $0x6b0] sm:$0xf0]  ;;  %5276 = vmatmul.bf16.vlgmr.msra.gmra.mxu3 %v11136_v1  ;;  %v7452_v23 = vor.u32 %v10198_v11, %v7449_v12 }
  0xed   :  { %5324 = vmatpush.bf16.msrb.mxu3 %v7612_v52  ;;  %v10114_v20 = vld [vmem:[%s16307_s1 + $0x304] sm:$0xf]  ;;  %v7113_v24 = vld [vmem:[%s16307_s1 + $0x310] sm:$0xf0]  ;;  %v7580_v37 = vor.u32 %v10230_v14, %v7577_v16  ;;  %v12560_v52 = vpop.f32.mrf.mxu3 }
  0xee   :  { %5287 = vmatpush.bf16.msrb.mxu0 %v7148_v63  ;;  %v10162_v27 = vld [vmem:[%s16307_s1 + $0x484] sm:$0xf]  ;;  %v7305_v28 = vld [vmem:[%s16307_s1 + $0x490] sm:$0xf0]  ;;  %v7116_v63 = vor.u32 %v10114_v20, %v7113_v24 }
  0xef   :  { %5297 = vmatpush.bf16.msrb.mxu1 %v7340_v0  ;;  %v10194_v42 = vld [vmem:[%s16307_s1 + $0x584] sm:$0xf]  ;;  %v7433_v49 = vld [vmem:[%s16307_s1 + $0x590] sm:$0xf0]  ;;  %v5025_v0 = vpop.f32.mrf.mxu1 }
  0xf0   :  { %5311 = vmatpush.bf16.msrb.mxu2 %v7468_v2  ;;  %v10226_v50 = vld [vmem:[%s16307_s1 + $0x684] sm:$0xf]  ;;  %v7561_v29 = vld [vmem:[%s16307_s1 + $0x690] sm:$0xf0]  ;;  %v7308_v2 = vor.u32 %v10162_v27, %v7305_v28  ;;  %v7436_v3 = vor.u32 %v10194_v42, %v7433_v49  ;;  %v5026_v9 = vadd.f32 %v5025_v0, %v5012_v61 }
  0xf1   :  { %5325 = vmatpush.bf16.msrb.mxu3 %v7596_v8  ;;  %v10270_v54 = vld [vmem:[%s16307_s1 + $0x7e4] sm:$0xf]  ;;  %v7737_v59 = vld [vmem:[%s16307_s1 + $0x7f0] sm:$0xf0]  ;;  %v7564_v8 = vor.u32 %v10226_v50, %v7561_v29 }
  0xf2   :  { %5288 = vmatpush.bf16.msrb.mxu0 %v7132_v18  ;;  %v10158_v6 = vld [vmem:[%s16307_s1 + $0x464] sm:$0xf]  ;;  %v7289_v7 = vld [vmem:[%s16307_s1 + $0x470] sm:$0xf0]  ;;  %v7740_v11 = vor.u32 %v10270_v54, %v7737_v59 }
  0xf3   :  { %5298 = vmatpush.bf16.msrb.mxu1 %v7324_v22  ;;  %v10190_v25 = vld [vmem:[%s16307_s1 + $0x564] sm:$0xf]  ;;  %v7417_v12 = vld [vmem:[%s16307_s1 + $0x570] sm:$0xf0]  ;;  %v7292_v22 = vor.u32 %v10158_v6, %v7289_v7 }
  0xf4   :  { %5312 = vmatpush.bf16.msrb.mxu2 %v7452_v23  ;;  %v10222_v14 = vld [vmem:[%s16307_s1 + $0x664] sm:$0xf]  ;;  %v7545_v16 = vld [vmem:[%s16307_s1 + $0x670] sm:$0xf0]  ;;  %v7420_v23 = vor.u32 %v10190_v25, %v7417_v12 }
  0xf5   :  { %5326 = vmatpush.bf16.msrb.mxu3 %v7580_v37  ;;  %v10266_v18 = vld [vmem:[%s16307_s1 + $0x7c4] sm:$0xf]  ;;  %v7721_v20 = vld [vmem:[%s16307_s1 + $0x7d0] sm:$0xf0]  ;;  %v7548_v28 = vor.u32 %v10222_v14, %v7545_v16  ;;  %v5039_v37 = vpop.f32.mrf.mxu2  ;;  %v5053_v54 = vpop.f32.mrf.mxu3 }
  0xf6   :  { %5289 = vmatpush.bf16.msrb.mxu0 %v7116_v63  ;;  %v10154_v24 = vld [vmem:[%s16307_s1 + $0x444] sm:$0xf]  ;;  %v7273_v27 = vld [vmem:[%s16307_s1 + $0x450] sm:$0xf0]  ;;  %v7724_v42 = vor.u32 %v10266_v18, %v7721_v20  ;;  %v5040_v29 = vadd.f32 %v5039_v37, %v5026_v9 }
  0xf7   :  { %5299 = vmatpush.bf16.msrb.mxu1 %v7308_v2  ;;  %v10186_v49 = vld [vmem:[%s16307_s1 + $0x544] sm:$0xf]  ;;  %v7401_v50 = vld [vmem:[%s16307_s1 + $0x550] sm:$0xf0]  ;;  %v7276_v2 = vor.u32 %v10154_v24, %v7273_v27 }
  0xf8   :  { %5313 = vmatpush.bf16.msrb.mxu2 %v7436_v3  ;;  %v10218_v53 = vld [vmem:[%s16307_s1 + $0x644] sm:$0xf]  ;;  %v7529_v59 = vld [vmem:[%s16307_s1 + $0x650] sm:$0xf0]  ;;  %v12621_v0 = vadd.f32 %v5053_v54, %v5040_v29  ;;  %v7404_v3 = vor.u32 %v10186_v49, %v7401_v50 }
  0xf9   :  { %5327 = vmatpush.bf16.msrb.mxu3 %v7564_v8  ;;  %v10262_v61 = vld [vmem:[%s16307_s1 + $0x7a4] sm:$0xf]  ;;  %v7705_v63 = vld [vmem:[%s16307_s1 + $0x7b0] sm:$0xf0]  ;;  %5290 = vmatmul.bf16.vlgmr.msrb.gmra.mxu0 %v11172_v17  ;;  %v7532_v8 = vor.u32 %v10218_v53, %v7529_v59 }
  0xfa   :  { %5338 = vmatpush.bf16.msra.mxu0 %v7740_v11  ;;  %v10150_v6 = vld [vmem:[%s16307_s1 + $0x424] sm:$0xf]  ;;  %v7257_v7 = vld [vmem:[%s16307_s1 + $0x430] sm:$0xf0]  ;;  %v7708_v9 = vor.u32 %v10262_v61, %v7705_v63 }
  0xfb   :  { %5300 = vmatpush.bf16.msrb.mxu1 %v7292_v22  ;;  %v10182_v11 = vld [vmem:[%s16307_s1 + $0x524] sm:$0xf]  ;;  %v7385_v25 = vld [vmem:[%s16307_s1 + $0x530] sm:$0xf0]  ;;  %v7260_v20 = vor.u32 %v10150_v6, %v7257_v7 }
  0xfc   :  { %5314 = vmatpush.bf16.msrb.mxu2 %v7420_v23  ;;  %v10214_v12 = vld [vmem:[%s16307_s1 + $0x624] sm:$0xf]  ;;  %v7513_v14 = vld [vmem:[%s16307_s1 + $0x630] sm:$0xf0]  ;;  %v7388_v22 = vor.u32 %v10182_v11, %v7385_v25 }
  0xfd   :  { %5328 = vmatpush.bf16.msrb.mxu3 %v7548_v28  ;;  %v10258_v16 = vld [vmem:[%s16307_s1 + $0x784] sm:$0xf]  ;;  %v7689_v18 = vld [vmem:[%s16307_s1 + $0x790] sm:$0xf0]  ;;  %v7516_v28 = vor.u32 %v10214_v12, %v7513_v14 }
  0xfe   :  { %5339 = vmatpush.bf16.msra.mxu0 %v7724_v42  ;;  %v10146_v23 = vld [vmem:[%s16307_s1 + $0x404] sm:$0xf]  ;;  %v7241_v24 = vld [vmem:[%s16307_s1 + $0x410] sm:$0xf0]  ;;  %v7692_v37 = vor.u32 %v10258_v16, %v7689_v18 }
  0xff   :  { %5301 = vmatpush.bf16.msrb.mxu1 %v7276_v2  ;;  %v10178_v27 = vld [vmem:[%s16307_s1 + $0x504] sm:$0xf]  ;;  %v7369_v42 = vld [vmem:[%s16307_s1 + $0x510] sm:$0xf0]  ;;  %v7244_v2 = vor.u32 %v10146_v23, %v7241_v24  ;;  %v12707_v24 = vpop.f32.mrf.mxu0 }
 0x100   :  { %5315 = vmatpush.bf16.msrb.mxu2 %v7404_v3  ;;  %v10210_v49 = vld [vmem:[%s16307_s1 + $0x604] sm:$0xf]  ;;  %v7497_v50 = vld [vmem:[%s16307_s1 + $0x610] sm:$0xf0]  ;;  %v7372_v3 = vor.u32 %v10178_v27, %v7369_v42 }
 0x101   :  { %5329 = vmatpush.bf16.msrb.mxu3 %v7532_v8  ;;  %v10254_v53 = vld [vmem:[%s16307_s1 + $0x764] sm:$0xf]  ;;  %v7673_v29 = vld [vmem:[%s16307_s1 + $0x770] sm:$0xf0]  ;;  %v7500_v8 = vor.u32 %v10210_v49, %v7497_v50 }
 0x102   :  { %5340 = vmatpush.bf16.msra.mxu0 %v7708_v9  ;;  %v10302_v54 = vld [vmem:[%s16307_s1 + $0x8e4] sm:$0xf]  ;;  %v7865_v59 = vld [vmem:[%s16307_s1 + $0x8f0] sm:$0xf0]  ;;  %v7676_v9 = vor.u32 %v10254_v53, %v7673_v29 }
 0x103   :  { %v10334_v61 = vld [vmem:[%s16307_s1 + $0x9e4] sm:$0xf]  ;;  %v7993_v63 = vld [vmem:[%s16307_s1 + $0x9f0] sm:$0xf0]  ;;  %5302 = vmatpush.bf16.msrb.mxu1 %v7260_v20  ;;  %v7868_v11 = vor.u32 %v10302_v54, %v7865_v59 }
 0x104   :  { %5316 = vmatpush.bf16.msrb.mxu2 %v7388_v22  ;;  %v10366_v6 = vld [vmem:[%s16307_s1 + $0xae4] sm:$0xf]  ;;  %v8121_v7 = vld [vmem:[%s16307_s1 + $0xaf0] sm:$0xf0]  ;;  %v7996_v25 = vor.u32 %v10334_v61, %v7993_v63 }
 0x105   :  { %5330 = vmatpush.bf16.msrb.mxu3 %v7516_v28  ;;  %v10250_v12 = vld [vmem:[%s16307_s1 + $0x744] sm:$0xf]  ;;  %v7657_v14 = vld [vmem:[%s16307_s1 + $0x750] sm:$0xf0]  ;;  %v8124_v18 = vor.u32 %v10366_v6, %v8121_v7 }
 0x106   :  { %5341 = vmatpush.bf16.msra.mxu0 %v7692_v37  ;;  %v10298_v16 = vld [vmem:[%s16307_s1 + $0x8c4] sm:$0xf]  ;;  %v7849_v20 = vld [vmem:[%s16307_s1 + $0x8d0] sm:$0xf0]  ;;  %v12715_v37 = vpop.f32.mrf.mxu1  ;;  %v7660_v42 = vor.u32 %v10250_v12, %v7657_v14 }
 0x107   :  { %v10330_v22 = vld [vmem:[%s16307_s1 + $0x9c4] sm:$0xf]  ;;  %v7977_v23 = vld [vmem:[%s16307_s1 + $0x9d0] sm:$0xf0]  ;;  %5303 = vmatpush.bf16.msrb.mxu1 %v7244_v2  ;;  %16317 = vst [vmem:[#allocation3_spill] sm:$0xff] %v12715_v37  ;;  %v7852_v49 = vor.u32 %v10298_v16, %v7849_v20  ;;  %v12756_v16 = vpop.f32.mrf.mxu2 }
 0x108   :  { %5317 = vmatpush.bf16.msrb.mxu2 %v7372_v3  ;;  %v10362_v27 = vld [vmem:[%s16307_s1 + $0xac4] sm:$0xf]  ;;  %v8105_v28 = vld [vmem:[%s16307_s1 + $0xad0] sm:$0xf0]  ;;  %v7980_v50 = vor.u32 %v10330_v22, %v7977_v23  ;;  %16318 = vst [vmem:[#allocation4_spill] sm:$0xff] %v12756_v16 }
 0x109   :  { %5331 = vmatpush.bf16.msrb.mxu3 %v7500_v8  ;;  %v10246_v53 = vld [vmem:[%s16307_s1 + $0x724] sm:$0xf]  ;;  %v7641_v29 = vld [vmem:[%s16307_s1 + $0x730] sm:$0xf0]  ;;  %v8108_v59 = vor.u32 %v10362_v27, %v8105_v28  ;;  %v12767_v27 = vpop.f32.mrf.mxu3  ;;  %v5067_v28 = vpop.f32.mrf.mxu0 }
 0x10a   :  { %5342 = vmatpush.bf16.msra.mxu0 %v7676_v9  ;;  %v10294_v54 = vld [vmem:[%s16307_s1 + $0x8a4] sm:$0xf]  ;;  %5304 = vmatmul.bf16.vlgmr.msrb.gmra.mxu1 %v11344_v39  ;;  %v7833_v61 = vld [vmem:[%s16307_s1 + $0x8b0] sm:$0xf0]  ;;  %v7644_v7 = vor.u32 %v10246_v53, %v7641_v29  ;;  %16319 = vst [vmem:[#allocation5_spill] sm:$0xff] %v12767_v27  ;;  %v5068_v53 = vadd.f32 %v5067_v28, %v12621_v0 }
 0x10b   :  { %5352 = vmatpush.bf16.msra.mxu1 %v7868_v11  ;;  %v10326_v63 = vld [vmem:[%s16307_s1 + $0x9a4] sm:$0xf]  ;;  %v7961_v2 = vld [vmem:[%s16307_s1 + $0x9b0] sm:$0xf0]  ;;  %5318 = vmatmul.bf16.vlgmr.msrb.gmra.mxu2 %v11357_v44  ;;  %v7836_v9 = vor.u32 %v10294_v54, %v7833_v61 }
 0x10c   :  { %5366 = vmatpush.bf16.msra.mxu2 %v7996_v25  ;;  %5332 = vmatmul.bf16.vlgmr.msrb.gmra.mxu3 %v11355_v43  ;;  %v10358_v3 = vld [vmem:[%s16307_s1 + $0xaa4] sm:$0xf]  ;;  %v8089_v6 = vld [vmem:[%s16307_s1 + $0xab0] sm:$0xf0]  ;;  %v7964_v11 = vor.u32 %v10326_v63, %v7961_v2 }
 0x10d   :  { %5380 = vmatpush.bf16.msra.mxu3 %v8124_v18  ;;  %v10242_v8 = vld [vmem:[%s16307_s1 + $0x704] sm:$0xf]  ;;  %v7625_v25 = vld [vmem:[%s16307_s1 + $0x710] sm:$0xf0]  ;;  %v8092_v18 = vor.u32 %v10358_v3, %v8089_v6 }
 0x10e   :  { %5343 = vmatpush.bf16.msra.mxu0 %v7660_v42  ;;  %v10290_v12 = vld [vmem:[%s16307_s1 + $0x884] sm:$0xf]  ;;  %v7817_v14 = vld [vmem:[%s16307_s1 + $0x890] sm:$0xf0]  ;;  %v7628_v29 = vor.u32 %v10242_v8, %v7625_v25  ;;  %v5081_v54 = vpop.f32.mrf.mxu1 }
 0x10f   :  { %5353 = vmatpush.bf16.msra.mxu1 %v7852_v49  ;;  %v10322_v20 = vld [vmem:[%s16307_s1 + $0x984] sm:$0xf]  ;;  %v7945_v22 = vld [vmem:[%s16307_s1 + $0x990] sm:$0xf0]  ;;  %v5082_v6 = vadd.f32 %v5081_v54, %v5068_v53  ;;  %v5095_v28 = vpop.f32.mrf.mxu2 }
 0x110   :  { %5367 = vmatpush.bf16.msra.mxu2 %v7980_v50  ;;  %v10354_v23 = vld [vmem:[%s16307_s1 + $0xa84] sm:$0xf]  ;;  %v8073_v42 = vld [vmem:[%s16307_s1 + $0xa90] sm:$0xf0]  ;;  %v7948_v61 = vor.u32 %v10322_v20, %v7945_v22 }
 0x111   :  { %5381 = vmatpush.bf16.msra.mxu3 %v8108_v59  ;;  %v10398_v49 = vld [vmem:[%s16307_s1 + $0xbe4] sm:$0xf]  ;;  %v8249_v50 = vld [vmem:[%s16307_s1 + $0xbf0] sm:$0xf0]  ;;  %v7820_v59 = vor.u32 %v10290_v12, %v7817_v14  ;;  %v8076_v3 = vor.u32 %v10354_v23, %v8073_v42  ;;  %v5109_v54 = vpop.f32.mrf.mxu3 }
 0x112   :  { %5344 = vmatpush.bf16.msra.mxu0 %v7644_v7  ;;  %v10286_v63 = vld [vmem:[%s16307_s1 + $0x864] sm:$0xf]  ;;  %v7801_v2 = vld [vmem:[%s16307_s1 + $0x870] sm:$0xf0]  ;;  %v8252_v7 = vor.u32 %v10398_v49, %v8249_v50 }
 0x113   :  { %5354 = vmatpush.bf16.msra.mxu1 %v7836_v9  ;;  %v10318_v0 = vld [vmem:[%s16307_s1 + $0x964] sm:$0xf]  ;;  %v7929_v8 = vld [vmem:[%s16307_s1 + $0x970] sm:$0xf0]  ;;  %v7804_v14 = vor.u32 %v10286_v63, %v7801_v2 }
 0x114   :  { %5368 = vmatpush.bf16.msra.mxu2 %v7964_v11  ;;  %v10350_v9 = vld [vmem:[%s16307_s1 + $0xa64] sm:$0xf]  ;;  %v8057_v11 = vld [vmem:[%s16307_s1 + $0xa70] sm:$0xf0] }
 0x115   :  { %5382 = vmatpush.bf16.msra.mxu3 %v8092_v18  ;;  %v10394_v25 = vld [vmem:[%s16307_s1 + $0xbc4] sm:$0xf]  ;;  %v8233_v12 = vld [vmem:[%s16307_s1 + $0xbd0] sm:$0xf0]  ;;  %v7932_v18 = vor.u32 %v10318_v0, %v7929_v8  ;;  %v8060_v23 = vor.u32 %v10350_v9, %v8057_v11 }
 0x116   :  { %5345 = vmatpush.bf16.msra.mxu0 %v7628_v29  ;;  %v10282_v20 = vld [vmem:[%s16307_s1 + $0x844] sm:$0xf]  ;;  %v7785_v22 = vld [vmem:[%s16307_s1 + $0x850] sm:$0xf0]  ;;  %v8236_v42 = vor.u32 %v10394_v25, %v8233_v12  ;;  %v5096_v29 = vadd.f32 %v5095_v28, %v5082_v6 }
 0x117   :  { %5355 = vmatpush.bf16.msra.mxu1 %v7820_v59  ;;  %v10314_v49 = vld [vmem:[%s16307_s1 + $0x944] sm:$0xf]  ;;  %v7913_v50 = vld [vmem:[%s16307_s1 + $0x950] sm:$0xf0] }
 0x118   :  { %5369 = vmatpush.bf16.msra.mxu2 %v7948_v61  ;;  %v10346_v53 = vld [vmem:[%s16307_s1 + $0xa44] sm:$0xf]  ;;  %v8041_v59 = vld [vmem:[%s16307_s1 + $0xa50] sm:$0xf0]  ;;  %v12828_v2 = vadd.f32 %v5109_v54, %v5096_v29 }
 0x119   :  { %5383 = vmatpush.bf16.msra.mxu3 %v8076_v3  ;;  %5346 = vmatmul.bf16.vlgmr.msra.gmra.mxu0 %v11365_v47  ;;  %v10390_v61 = vld [vmem:[%s16307_s1 + $0xba4] sm:$0xf]  ;;  %v8217_v63 = vld [vmem:[%s16307_s1 + $0xbb0] sm:$0xf0]  ;;  %v7788_v3 = vor.u32 %v10282_v20, %v7785_v22  ;;  %v8044_v8 = vor.u32 %v10346_v53, %v8041_v59 }
 0x11a   :  { %5394 = vmatpush.bf16.msrb.mxu0 %v8252_v7  ;;  %v7916_v7 = vor.u32 %v10314_v49, %v7913_v50  ;;  %v10278_v6 = vld [vmem:[%s16307_s1 + $0x824] sm:$0xf]  ;;  %v7769_v0 = vld [vmem:[%s16307_s1 + $0x830] sm:$0xf0]  ;;  %v8220_v9 = vor.u32 %v10390_v61, %v8217_v63 }
 0x11b   :  { %5356 = vmatpush.bf16.msra.mxu1 %v7804_v14  ;;  %v10310_v11 = vld [vmem:[%s16307_s1 + $0x924] sm:$0xf]  ;;  %v7897_v25 = vld [vmem:[%s16307_s1 + $0x930] sm:$0xf0]  ;;  %v7772_v22 = vor.u32 %v10278_v6, %v7769_v0 }
 0x11c   :  { %5370 = vmatpush.bf16.msra.mxu2 %v7932_v18  ;;  %v10342_v12 = vld [vmem:[%s16307_s1 + $0xa24] sm:$0xf]  ;;  %v8025_v14 = vld [vmem:[%s16307_s1 + $0xa30] sm:$0xf0] }
 0x11d   :  { %5384 = vmatpush.bf16.msra.mxu3 %v8060_v23  ;;  %v10386_v18 = vld [vmem:[%s16307_s1 + $0xb84] sm:$0xf]  ;;  %v8201_v20 = vld [vmem:[%s16307_s1 + $0xb90] sm:$0xf0]  ;;  %v7900_v23 = vor.u32 %v10310_v11, %v7897_v25  ;;  %v8028_v50 = vor.u32 %v10342_v12, %v8025_v14 }
 0x11e   :  { %5395 = vmatpush.bf16.msrb.mxu0 %v8236_v42  ;;  %v10274_v28 = vld [vmem:[%s16307_s1 + $0x804] sm:$0xf]  ;;  %v7753_v42 = vld [vmem:[%s16307_s1 + $0x810] sm:$0xf0]  ;;  %v8204_v53 = vor.u32 %v10386_v18, %v8201_v20 }
 0x11f   :  { %5357 = vmatpush.bf16.msra.mxu1 %v7788_v3  ;;  %v10306_v49 = vld [vmem:[%s16307_s1 + $0x904] sm:$0xf]  ;;  %v7881_v29 = vld [vmem:[%s16307_s1 + $0x910] sm:$0xf0] }
 0x120   :  { %5371 = vmatpush.bf16.msra.mxu2 %v7916_v7  ;;  %v10338_v54 = vld [vmem:[%s16307_s1 + $0xa04] sm:$0xf]  ;;  %v8009_v59 = vld [vmem:[%s16307_s1 + $0xa10] sm:$0xf0] }
 0x121   :  { %5385 = vmatpush.bf16.msra.mxu3 %v8044_v8  ;;  %v10382_v61 = vld [vmem:[%s16307_s1 + $0xb64] sm:$0xf]  ;;  %v8185_v63 = vld [vmem:[%s16307_s1 + $0xb70] sm:$0xf0]  ;;  %v7756_v8 = vor.u32 %v10274_v28, %v7753_v42  ;;  %v8012_v12 = vor.u32 %v10338_v54, %v8009_v59 }
 0x122   :  { %5396 = vmatpush.bf16.msrb.mxu0 %v8220_v9  ;;  %v10430_v3 = vld [vmem:[%s16307_s1 + $0xce4] sm:$0xf]  ;;  %v8377_v7 = vld [vmem:[%s16307_s1 + $0xcf0] sm:$0xf0]  ;;  %v7884_v9 = vor.u32 %v10306_v49, %v7881_v29  ;;  %v8188_v14 = vor.u32 %v10382_v61, %v8185_v63  ;;  %v12914_v29 = vpop.f32.mrf.mxu0  ;;  %v12922_v61 = vpop.f32.mrf.mxu1 }
 0x123   :  { %v10462_v6 = vld [vmem:[%s16307_s1 + $0xde4] sm:$0xf]  ;;  %v8505_v0 = vld [vmem:[%s16307_s1 + $0xdf0] sm:$0xf0]  ;;  %5358 = vmatpush.bf16.msra.mxu1 %v7772_v22  ;;  %v8380_v18 = vor.u32 %v10430_v3, %v8377_v7  ;;  %16320 = vst [vmem:[#allocation6_spill] sm:$0xff] %v12914_v29 }
 0x124   :  { %5372 = vmatpush.bf16.msra.mxu2 %v7900_v23  ;;  %v10494_v11 = vld [vmem:[%s16307_s1 + $0xee4] sm:$0xf]  ;;  %v8633_v25 = vld [vmem:[%s16307_s1 + $0xef0] sm:$0xf0]  ;;  %v8508_v20 = vor.u32 %v10462_v6, %v8505_v0  ;;  %16321 = vst [vmem:[#allocation7_spill] sm:$0xff] %v12922_v61 }
 0x125   :  { %5386 = vmatpush.bf16.msra.mxu3 %v8028_v50  ;;  %v10378_v22 = vld [vmem:[%s16307_s1 + $0xb44] sm:$0xf]  ;;  %v8169_v23 = vld [vmem:[%s16307_s1 + $0xb50] sm:$0xf0]  ;;  %v8636_v42 = vor.u32 %v10494_v11, %v8633_v25 }
 0x126   :  { %5397 = vmatpush.bf16.msrb.mxu0 %v8204_v53  ;;  %v10426_v28 = vld [vmem:[%s16307_s1 + $0xcc4] sm:$0xf]  ;;  %v8361_v49 = vld [vmem:[%s16307_s1 + $0xcd0] sm:$0xf0]  ;;  %v8172_v63 = vor.u32 %v10378_v22, %v8169_v23 }
 0x127   :  { %v10458_v50 = vld [vmem:[%s16307_s1 + $0xdc4] sm:$0xf]  ;;  %v8489_v53 = vld [vmem:[%s16307_s1 + $0xdd0] sm:$0xf0]  ;;  %5359 = vmatpush.bf16.msra.mxu1 %v7756_v8  ;;  %v8364_v3 = vor.u32 %v10426_v28, %v8361_v49 }
 0x128   :  { %5373 = vmatpush.bf16.msra.mxu2 %v7884_v9  ;;  %v10490_v54 = vld [vmem:[%s16307_s1 + $0xec4] sm:$0xf]  ;;  %v8617_v59 = vld [vmem:[%s16307_s1 + $0xed0] sm:$0xf0]  ;;  %v8492_v7 = vor.u32 %v10458_v50, %v8489_v53  ;;  %v12963_v53 = vpop.f32.mrf.mxu2 }
 0x129   :  { %5387 = vmatpush.bf16.msra.mxu3 %v8012_v12  ;;  %v10374_v6 = vld [vmem:[%s16307_s1 + $0xb24] sm:$0xf]  ;;  %v8153_v0 = vld [vmem:[%s16307_s1 + $0xb30] sm:$0xf0]  ;;  %v8620_v9 = vor.u32 %v10490_v54, %v8617_v59  ;;  %16322 = vst [vmem:[#allocation8_spill] sm:$0xff] %v12963_v53 }
 0x12a   :  { %5398 = vmatpush.bf16.msrb.mxu0 %v8188_v14  ;;  %v10422_v8 = vld [vmem:[%s16307_s1 + $0xca4] sm:$0xf]  ;;  %5360 = vmatmul.bf16.vlgmr.msra.gmra.mxu1 %v11572_v31  ;;  %v8345_v11 = vld [vmem:[%s16307_s1 + $0xcb0] sm:$0xf0] }
 0x12b   :  { %5408 = vmatpush.bf16.msrb.mxu1 %v8380_v18  ;;  %v10454_v25 = vld [vmem:[%s16307_s1 + $0xda4] sm:$0xf]  ;;  %v8473_v12 = vld [vmem:[%s16307_s1 + $0xdb0] sm:$0xf0]  ;;  %5374 = vmatmul.bf16.vlgmr.msra.gmra.mxu2 %v11585_v36  ;;  %v8348_v23 = vor.u32 %v10422_v8, %v8345_v11 }
 0x12c   :  { %5422 = vmatpush.bf16.msrb.mxu2 %v8508_v20  ;;  %5388 = vmatmul.bf16.vlgmr.msra.gmra.mxu3 %v11583_v35  ;;  %v10486_v14 = vld [vmem:[%s16307_s1 + $0xea4] sm:$0xf]  ;;  %v8601_v18 = vld [vmem:[%s16307_s1 + $0xeb0] sm:$0xf0]  ;;  %v8156_v20 = vor.u32 %v10374_v6, %v8153_v0  ;;  %v8476_v28 = vor.u32 %v10454_v25, %v8473_v12  ;;  %v5123_v6 = vpop.f32.mrf.mxu0  ;;  %v5137_v12 = vpop.f32.mrf.mxu1 }
 0x12d   :  { %5436 = vmatpush.bf16.msrb.mxu3 %v8636_v42  ;;  %v10370_v22 = vld [vmem:[%s16307_s1 + $0xb04] sm:$0xf]  ;;  %v8137_v42 = vld [vmem:[%s16307_s1 + $0xb10] sm:$0xf0]  ;;  %v8604_v54 = vor.u32 %v10486_v14, %v8601_v18  ;;  %v5124_v11 = vadd.f32 %v5123_v6, %v12828_v2 }
 0x12e   :  { %5399 = vmatpush.bf16.msrb.mxu0 %v8172_v63  ;;  %v10418_v49 = vld [vmem:[%s16307_s1 + $0xc84] sm:$0xf]  ;;  %v8329_v50 = vld [vmem:[%s16307_s1 + $0xc90] sm:$0xf0]  ;;  %v8140_v25 = vor.u32 %v10370_v22, %v8137_v42 }
 0x12f   :  { %5409 = vmatpush.bf16.msrb.mxu1 %v8364_v3  ;;  %v10450_v59 = vld [vmem:[%s16307_s1 + $0xd84] sm:$0xf]  ;;  %v8457_v63 = vld [vmem:[%s16307_s1 + $0xd90] sm:$0xf0]  ;;  %v8332_v14 = vor.u32 %v10418_v49, %v8329_v50  ;;  %v5138_v61 = vadd.f32 %v5137_v12, %v5124_v11 }
 0x130   :  { %5423 = vmatpush.bf16.msrb.mxu2 %v8492_v7  ;;  %v10482_v3 = vld [vmem:[%s16307_s1 + $0xe84] sm:$0xf]  ;;  %v12974_v7 = vpop.f32.mrf.mxu3  ;;  %v8585_v0 = vld [vmem:[%s16307_s1 + $0xe90] sm:$0xf0]  ;;  %v8460_v18 = vor.u32 %v10450_v59, %v8457_v63  ;;  %v5151_v6 = vpop.f32.mrf.mxu2 }
 0x131   :  { %5437 = vmatpush.bf16.msrb.mxu3 %v8620_v9  ;;  %16323 = vst [vmem:[#allocation9_spill] sm:$0xff] %v12974_v7  ;;  %v10526_v8 = vld [vmem:[%s16307_s1 + $0xfe4] sm:$0xf]  ;;  %v8761_v9 = vld [vmem:[%s16307_s1 + $0xff0] sm:$0xf0]  ;;  %v8588_v53 = vor.u32 %v10482_v3, %v8585_v0 }
 0x132   :  { %5400 = vmatpush.bf16.msrb.mxu0 %v8156_v20  ;;  %v8313_v7 = vld [vmem:[%s16307_s1 + $0xc70] sm:$0xf0]  ;;  %v8764_v20 = vor.u32 %v10526_v8, %v8761_v9  ;;  %v10446_v2 = vld [vmem:[%s16307_s1 + $0xd64] sm:$0xf]  ;;  %v5152_v9 = vadd.f32 %v5151_v6, %v5138_v61 }
 0x133   :  { %5410 = vmatpush.bf16.msrb.mxu1 %v8348_v23  ;;  %v8441_v22 = vld [vmem:[%s16307_s1 + $0xd70] sm:$0xf0]  ;;  %v10478_v23 = vld [vmem:[%s16307_s1 + $0xe64] sm:$0xf]  ;;  %v8316_v50 = vor.u32 %v10414_v13, %v8313_v7 }
 0x134   :  { %5424 = vmatpush.bf16.msrb.mxu2 %v8476_v28  ;;  %v8569_v28 = vld [vmem:[%s16307_s1 + $0xe70] sm:$0xf0]  ;;  %v10522_v42 = vld [vmem:[%s16307_s1 + $0xfc4] sm:$0xf] }
 0x135   :  { %5438 = vmatpush.bf16.msrb.mxu3 %v8604_v54  ;;  %v8745_v49 = vld [vmem:[%s16307_s1 + $0xfd0] sm:$0xf0]  ;;  %v8444_v54 = vor.u32 %v10446_v2, %v8441_v22  ;;  %v10410_v59 = vld [vmem:[%s16307_s1 + $0xc44] sm:$0xf]  ;;  %v8572_v3 = vor.u32 %v10478_v23, %v8569_v28 }
 0x136   :  { %5401 = vmatpush.bf16.msrb.mxu0 %v8140_v25  ;;  %v8297_v63 = vld [vmem:[%s16307_s1 + $0xc50] sm:$0xf0]  ;;  %v8748_v0 = vor.u32 %v10522_v42, %v8745_v49  ;;  %v10442_v8 = vld [vmem:[%s16307_s1 + $0xd44] sm:$0xf] }
 0x137   :  { %5411 = vmatpush.bf16.msrb.mxu1 %v8332_v14  ;;  %v8425_v13 = vld [vmem:[%s16307_s1 + $0xd50] sm:$0xf0]  ;;  %v10474_v7 = vld [vmem:[%s16307_s1 + $0xe44] sm:$0xf] }
 0x138   :  { %5425 = vmatpush.bf16.msrb.mxu2 %v8460_v18  ;;  %v8553_v11 = vld [vmem:[%s16307_s1 + $0xe50] sm:$0xf0]  ;;  %v10518_v25 = vld [vmem:[%s16307_s1 + $0xfa4] sm:$0xf]  ;;  %v8300_v18 = vor.u32 %v10410_v59, %v8297_v63 }
 0x139   :  { %5439 = vmatpush.bf16.msrb.mxu3 %v8588_v53  ;;  %5402 = vmatmul.bf16.vlgmr.msrb.gmra.mxu0 %v11593_v40  ;;  %v5165_v53 = vpop.f32.mrf.mxu3  ;;  %v8729_v12 = vld [vmem:[%s16307_s1 + $0xfb0] sm:$0xf0]  ;;  %v10406_v61 = vld [vmem:[%s16307_s1 + $0xc24] sm:$0xf]  ;;  %v8556_v22 = vor.u32 %v10474_v7, %v8553_v11 }
 0x13a   :  { %5450 = vmatpush.bf16.msra.mxu0 %v8764_v20  ;;  %v13035_v14 = vadd.f32 %v5165_v53, %v5152_v9  ;;  %v8428_v20 = vor.u32 %v10442_v8, %v8425_v13  ;;  %v8281_v2 = vld [vmem:[%s16307_s1 + $0xc30] sm:$0xf0]  ;;  %v8732_v23 = vor.u32 %v10518_v25, %v8729_v12  ;;  %v10438_v28 = vld [vmem:[%s16307_s1 + $0xd24] sm:$0xf] }
 0x13b   :  { %5412 = vmatpush.bf16.msrb.mxu1 %v8316_v50  ;;  %v8409_v42 = vld [vmem:[%s16307_s1 + $0xd30] sm:$0xf0]  ;;  %v10470_v49 = vld [vmem:[%s16307_s1 + $0xe24] sm:$0xf]  ;;  %v8284_v63 = vor.u32 %v10406_v61, %v8281_v2 }
 0x13c   :  { %5426 = vmatpush.bf16.msrb.mxu2 %v8444_v54  ;;  %v8537_v50 = vld [vmem:[%s16307_s1 + $0xe30] sm:$0xf0]  ;;  %v10514_v54 = vld [vmem:[%s16307_s1 + $0xf84] sm:$0xf] }
 0x13d   :  { %5440 = vmatpush.bf16.msrb.mxu3 %v8572_v3  ;;  %v8713_v59 = vld [vmem:[%s16307_s1 + $0xf90] sm:$0xf0]  ;;  %v8412_v3 = vor.u32 %v10438_v28, %v8409_v42  ;;  %v10402_v6 = vld [vmem:[%s16307_s1 + $0xc04] sm:$0xf]  ;;  %v8540_v13 = vor.u32 %v10470_v49, %v8537_v50 }
 0x13e   :  { %5451 = vmatpush.bf16.msra.mxu0 %v8748_v0  ;;  %v8265_v0 = vld [vmem:[%s16307_s1 + $0xc10] sm:$0xf0]  ;;  %v10434_v8 = vld [vmem:[%s16307_s1 + $0xd04] sm:$0xf]  ;;  %v8716_v7 = vor.u32 %v10514_v54, %v8713_v59 }
 0x13f   :  { %5413 = vmatpush.bf16.msrb.mxu1 %v8300_v18  ;;  %v8393_v9 = vld [vmem:[%s16307_s1 + $0xd10] sm:$0xf0]  ;;  %v10466_v53 = vld [vmem:[%s16307_s1 + $0xe04] sm:$0xf] }
 0x140   :  { %5427 = vmatpush.bf16.msrb.mxu2 %v8428_v20  ;;  %v8521_v11 = vld [vmem:[%s16307_s1 + $0xe10] sm:$0xf0]  ;;  %v10510_v25 = vld [vmem:[%s16307_s1 + $0xf64] sm:$0xf] }
 0x141   :  { %5441 = vmatpush.bf16.msrb.mxu3 %v8556_v22  ;;  %v8697_v12 = vld [vmem:[%s16307_s1 + $0xf70] sm:$0xf0]  ;;  %v10558_v18 = vld [vmem:[%s16307_s1 + $0x10e4] sm:$0xf]  ;;  %v8268_v22 = vor.u32 %v10402_v6, %v8265_v0  ;;  %v8524_v49 = vor.u32 %v10466_v53, %v8521_v11 }
 0x142   :  { %5452 = vmatpush.bf16.msra.mxu0 %v8732_v23  ;;  %v8889_v20 = vld [vmem:[%s16307_s1 + $0x10f0] sm:$0xf0]  ;;  %v10590_v61 = vld [vmem:[%s16307_s1 + $0x11e4] sm:$0xf]  ;;  %v8396_v23 = vor.u32 %v10434_v8, %v8393_v9  ;;  %v8700_v50 = vor.u32 %v10510_v25, %v8697_v12  ;;  %v13121_v9 = vpop.f32.mrf.mxu0  ;;  %v13129_v25 = vpop.f32.mrf.mxu1 }
 0x143   :  { %v9017_v2 = vld [vmem:[%s16307_s1 + $0x11f0] sm:$0xf0]  ;;  %5414 = vmatpush.bf16.msrb.mxu1 %v8284_v63  ;;  %v10622_v28 = vld [vmem:[%s16307_s1 + $0x12e4] sm:$0xf]  ;;  %v8892_v54 = vor.u32 %v10558_v18, %v8889_v20  ;;  %16324 = vst [vmem:[#allocation10_spill] sm:$0xff] %v13121_v9 }
 0x144   :  { %5428 = vmatpush.bf16.msrb.mxu2 %v8412_v3  ;;  %v9145_v42 = vld [vmem:[%s16307_s1 + $0x12f0] sm:$0xf0]  ;;  %v9020_v59 = vor.u32 %v10590_v61, %v9017_v2  ;;  %v10506_v63 = vld [vmem:[%s16307_s1 + $0xf44] sm:$0xf]  ;;  %16325 = vst [vmem:[#allocation11_spill] sm:$0xff] %v13129_v25 }
 0x145   :  { %5442 = vmatpush.bf16.msrb.mxu3 %v8540_v13  ;;  %v8681_v3 = vld [vmem:[%s16307_s1 + $0xf50] sm:$0xf0]  ;;  %v10554_v6 = vld [vmem:[%s16307_s1 + $0x10c4] sm:$0xf]  ;;  %v9148_v0 = vor.u32 %v10622_v28, %v9145_v42 }
 0x146   :  { %5453 = vmatpush.bf16.msra.mxu0 %v8716_v7  ;;  %v8873_v8 = vld [vmem:[%s16307_s1 + $0x10d0] sm:$0xf0]  ;;  %v10586_v13 = vld [vmem:[%s16307_s1 + $0x11c4] sm:$0xf]  ;;  %v8684_v12 = vor.u32 %v10506_v63, %v8681_v3 }
 0x147   :  { %v9001_v7 = vld [vmem:[%s16307_s1 + $0x11d0] sm:$0xf0]  ;;  %5415 = vmatpush.bf16.msrb.mxu1 %v8268_v22  ;;  %v10618_v53 = vld [vmem:[%s16307_s1 + $0x12c4] sm:$0xf]  ;;  %v8876_v18 = vor.u32 %v10554_v6, %v8873_v8 }
 0x148   :  { %5429 = vmatpush.bf16.msrb.mxu2 %v8396_v23  ;;  %v9129_v11 = vld [vmem:[%s16307_s1 + $0x12d0] sm:$0xf0]  ;;  %v9004_v20 = vor.u32 %v10586_v13, %v9001_v7  ;;  %v10502_v61 = vld [vmem:[%s16307_s1 + $0xf24] sm:$0xf]  ;;  %v13170_v7 = vpop.f32.mrf.mxu2 }
 0x149   :  { %5443 = vmatpush.bf16.msrb.mxu3 %v8524_v49  ;;  %v8665_v2 = vld [vmem:[%s16307_s1 + $0xf30] sm:$0xf0]  ;;  %v10550_v22 = vld [vmem:[%s16307_s1 + $0x10a4] sm:$0xf]  ;;  %v9132_v23 = vor.u32 %v10618_v53, %v9129_v11  ;;  %16326 = vst [vmem:[#allocation12_spill] sm:$0xff] %v13170_v7 }
 0x14a   :  { %5454 = vmatpush.bf16.msra.mxu0 %v8700_v50  ;;  %5416 = vmatmul.bf16.vlgmr.msrb.gmra.mxu1 %v11800_v32  ;;  %v8857_v28 = vld [vmem:[%s16307_s1 + $0x10b0] sm:$0xf0]  ;;  %v10582_v42 = vld [vmem:[%s16307_s1 + $0x11a4] sm:$0xf] }
 0x14b   :  { %5464 = vmatpush.bf16.msra.mxu1 %v8892_v54  ;;  %v8985_v49 = vld [vmem:[%s16307_s1 + $0x11b0] sm:$0xf0]  ;;  %5430 = vmatmul.bf16.vlgmr.msrb.gmra.mxu2 %v11813_v41  ;;  %v10614_v50 = vld [vmem:[%s16307_s1 + $0x12a4] sm:$0xf]  ;;  %v8860_v3 = vor.u32 %v10550_v22, %v8857_v28 }
 0x14c   :  { %5478 = vmatpush.bf16.msra.mxu2 %v9020_v59  ;;  %5444 = vmatmul.bf16.vlgmr.msrb.gmra.mxu3 %v11811_v38  ;;  %v9113_v54 = vld [vmem:[%s16307_s1 + $0x12b0] sm:$0xf0]  ;;  %v8668_v59 = vor.u32 %v10502_v61, %v8665_v2  ;;  %v10498_v63 = vld [vmem:[%s16307_s1 + $0xf04] sm:$0xf]  ;;  %v8988_v6 = vor.u32 %v10582_v42, %v8985_v49  ;;  %v5179_v61 = vpop.f32.mrf.mxu0  ;;  %v5193_v49 = vpop.f32.mrf.mxu1 }
 0x14d   :  { %5492 = vmatpush.bf16.msra.mxu3 %v9148_v0  ;;  %v8649_v0 = vld [vmem:[%s16307_s1 + $0xf10] sm:$0xf0]  ;;  %v10546_v8 = vld [vmem:[%s16307_s1 + $0x1084] sm:$0xf]  ;;  %v9116_v53 = vor.u32 %v10614_v50, %v9113_v54  ;;  %v5180_v28 = vadd.f32 %v5179_v61, %v13035_v14 }
 0x14e   :  { %5455 = vmatpush.bf16.msra.mxu0 %v8684_v12  ;;  %v8841_v13 = vld [vmem:[%s16307_s1 + $0x1090] sm:$0xf0]  ;;  %v10578_v11 = vld [vmem:[%s16307_s1 + $0x1184] sm:$0xf]  ;;  %v8652_v42 = vor.u32 %v10498_v63, %v8649_v0 }
 0x14f   :  { %5465 = vmatpush.bf16.msra.mxu1 %v8876_v18  ;;  %v8969_v12 = vld [vmem:[%s16307_s1 + $0x1190] sm:$0xf0]  ;;  %v10610_v18 = vld [vmem:[%s16307_s1 + $0x1284] sm:$0xf]  ;;  %v8844_v50 = vor.u32 %v10546_v8, %v8841_v13  ;;  %v5194_v9 = vadd.f32 %v5193_v49, %v5180_v28 }
 0x150   :  { %5479 = vmatpush.bf16.msra.mxu2 %v9004_v20  ;;  %v13181_v20 = vpop.f32.mrf.mxu3  ;;  %v9097_v2 = vld [vmem:[%s16307_s1 + $0x1290] sm:$0xf0]  ;;  %v10654_v22 = vld [vmem:[%s16307_s1 + $0x13e4] sm:$0xf]  ;;  %v8972_v54 = vor.u32 %v10578_v11, %v8969_v12  ;;  %v5207_v61 = vpop.f32.mrf.mxu2 }
 0x151   :  { %5493 = vmatpush.bf16.msra.mxu3 %v9132_v23  ;;  %16327 = vst [vmem:[#allocation13_spill] sm:$0xff] %v13181_v20  ;;  %v9273_v23 = vld [vmem:[%s16307_s1 + $0x13f0] sm:$0xf0]  ;;  %v10542_v20 = vld [vmem:[%s16307_s1 + $0x1064] sm:$0xf]  ;;  %v9100_v25 = vor.u32 %v10610_v18, %v9097_v2 }
 0x152   :  { %5456 = vmatpush.bf16.msra.mxu0 %v8668_v59  ;;  %v8825_v7 = vld [vmem:[%s16307_s1 + $0x1070] sm:$0xf0]  ;;  %v9276_v59 = vor.u32 %v10654_v22, %v9273_v23  ;;  %v10574_v14 = vld [vmem:[%s16307_s1 + $0x1164] sm:$0xf]  ;;  %v5208_v23 = vadd.f32 %v5207_v61, %v5194_v9 }
 0x153   :  { %5466 = vmatpush.bf16.msra.mxu1 %v8860_v3  ;;  %v8953_v63 = vld [vmem:[%s16307_s1 + $0x1170] sm:$0xf0]  ;;  %v10606_v3 = vld [vmem:[%s16307_s1 + $0x1264] sm:$0xf]  ;;  %v8828_v13 = vor.u32 %v10542_v20, %v8825_v7 }
 0x154   :  { %5480 = vmatpush.bf16.msra.mxu2 %v8988_v6  ;;  %v9081_v6 = vld [vmem:[%s16307_s1 + $0x1270] sm:$0xf0]  ;;  %v10650_v0 = vld [vmem:[%s16307_s1 + $0x13c4] sm:$0xf] }
 0x155   :  { %5494 = vmatpush.bf16.msra.mxu3 %v9116_v53  ;;  %v9257_v8 = vld [vmem:[%s16307_s1 + $0x13d0] sm:$0xf0]  ;;  %v8956_v53 = vor.u32 %v10574_v14, %v8953_v63  ;;  %v10538_v11 = vld [vmem:[%s16307_s1 + $0x1044] sm:$0xf]  ;;  %v9084_v18 = vor.u32 %v10606_v3, %v9081_v6 }
 0x156   :  { %5457 = vmatpush.bf16.msra.mxu0 %v8652_v42  ;;  %v8809_v12 = vld [vmem:[%s16307_s1 + $0x1050] sm:$0xf0]  ;;  %v9260_v2 = vor.u32 %v10650_v0, %v9257_v8  ;;  %v10570_v22 = vld [vmem:[%s16307_s1 + $0x1144] sm:$0xf] }
 0x157   :  { %5467 = vmatpush.bf16.msra.mxu1 %v8844_v50  ;;  %v8937_v7 = vld [vmem:[%s16307_s1 + $0x1150] sm:$0xf0]  ;;  %v10602_v20 = vld [vmem:[%s16307_s1 + $0x1244] sm:$0xf] }
 0x158   :  { %5481 = vmatpush.bf16.msra.mxu2 %v8972_v54  ;;  %v5221_v28 = vpop.f32.mrf.mxu3  ;;  %v9065_v42 = vld [vmem:[%s16307_s1 + $0x1250] sm:$0xf0]  ;;  %v10646_v49 = vld [vmem:[%s16307_s1 + $0x13a4] sm:$0xf]  ;;  %v8940_v9 = vor.u32 %v10570_v22, %v8937_v7 }
 0x159   :  { %5495 = vmatpush.bf16.msra.mxu3 %v9100_v25  ;;  %5458 = vmatmul.bf16.vlgmr.msra.gmra.mxu0 %v11821_v46  ;;  %v13233_v25 = vpop.f32.mrf.mxu0  ;;  %v9241_v50 = vld [vmem:[%s16307_s1 + $0x13b0] sm:$0xf0]  ;;  %v5222_v54 = vadd.f32 %v5221_v28, %v5208_v23  ;;  %v10534_v14 = vld [vmem:[%s16307_s1 + $0x1024] sm:$0xf]  ;;  %v9068_v3 = vor.u32 %v10602_v20, %v9065_v42 }
 0x15a   :  { %5506 = vmatpush.bf16.msrb.mxu0 %v9276_v59  ;;  %16328 = vst [vmem:[#allocation14_spill] sm:$0xff] %v13233_v25  ;;  %v8812_v59 = vor.u32 %v10538_v11, %v8809_v12  ;;  %v8793_v63 = vld [vmem:[%s16307_s1 + $0x1030] sm:$0xf0]  ;;  %v9244_v6 = vor.u32 %v10646_v49, %v9241_v50  ;;  %v10566_v0 = vld [vmem:[%s16307_s1 + $0x1124] sm:$0xf] }
 0x15b   :  { %5468 = vmatpush.bf16.msra.mxu1 %v8828_v13  ;;  %v8921_v8 = vld [vmem:[%s16307_s1 + $0x1130] sm:$0xf0]  ;;  %v10598_v13 = vld [vmem:[%s16307_s1 + $0x1224] sm:$0xf] }
 0x15c   :  { %5482 = vmatpush.bf16.msra.mxu2 %v8956_v53  ;;  %v9049_v53 = vld [vmem:[%s16307_s1 + $0x1230] sm:$0xf0]  ;;  %v10642_v11 = vld [vmem:[%s16307_s1 + $0x1384] sm:$0xf]  ;;  %v8924_v61 = vor.u32 %v10566_v0, %v8921_v8 }
 0x15d   :  { %5496 = vmatpush.bf16.msra.mxu3 %v9084_v18  ;;  %v9225_v12 = vld [vmem:[%s16307_s1 + $0x1390] sm:$0xf0]  ;;  %v8796_v18 = vor.u32 %v10534_v14, %v8793_v63  ;;  %v10562_v7 = vld [vmem:[%s16307_s1 + $0x1104] sm:$0xf]  ;;  %v9052_v20 = vor.u32 %v10598_v13, %v9049_v53 }
 0x15e   :  { %5507 = vmatpush.bf16.msrb.mxu0 %v9260_v2  ;;  %v10530_v2 = vld [vmem:[%s16307_s1 + $0x1004] sm:$0xf]  ;;  %v8777_v22 = vld [vmem:[%s16307_s1 + $0x1010] sm:$0xf0]  ;;  %v9228_v23 = vor.u32 %v10642_v11, %v9225_v12 }
 0x15f   :  { %5469 = vmatpush.bf16.msra.mxu1 %v8812_v59  ;;  %v8905_v28 = vld [vmem:[%s16307_s1 + $0x1110] sm:$0xf0]  ;;  %v10594_v42 = vld [vmem:[%s16307_s1 + $0x1204] sm:$0xf]  ;;  %v8780_v8 = vor.u32 %v10530_v2, %v8777_v22 }
 0x160   :  { %5483 = vmatpush.bf16.msra.mxu2 %v8940_v9  ;;  %v9033_v49 = vld [vmem:[%s16307_s1 + $0x1210] sm:$0xf0]  ;;  %v10638_v50 = vld [vmem:[%s16307_s1 + $0x1364] sm:$0xf]  ;;  %v8908_v13 = vor.u32 %v10562_v7, %v8905_v28 }
 0x161   :  { %5497 = vmatpush.bf16.msra.mxu3 %v9068_v3  ;;  %v9209_v59 = vld [vmem:[%s16307_s1 + $0x1370] sm:$0xf0]  ;;  %v10686_v9 = vld [vmem:[%s16307_s1 + $0x14e4] sm:$0xf]  ;;  %v5235_v14 = vpop.f32.mrf.mxu0  ;;  %v9036_v12 = vor.u32 %v10594_v42, %v9033_v49 }
 0x162   :  { %5508 = vmatpush.bf16.msrb.mxu0 %v9244_v6  ;;  %v9401_v63 = vld [vmem:[%s16307_s1 + $0x14f0] sm:$0xf0]  ;;  %v10718_v3 = vld [vmem:[%s16307_s1 + $0x15e4] sm:$0xf]  ;;  %v13304_v0 = vadd.f32 %v5235_v14, %v5222_v54  ;;  %v9212_v25 = vor.u32 %v10638_v50, %v9209_v59 }
 0x163   :  { %v9529_v6 = vld [vmem:[%s16307_s1 + $0x15f0] sm:$0xf0]  ;;  %5470 = vmatpush.bf16.msra.mxu1 %v8796_v18  ;;  %v10750_v53 = vld [vmem:[%s16307_s1 + $0x16e4] sm:$0xf]  ;;  %v9404_v29 = vor.u32 %v10686_v9, %v9401_v63  ;;  %v13345_v63 = vpop.f32.mrf.mxu1 }
 0x164   :  { %5484 = vmatpush.bf16.msra.mxu2 %v8924_v61  ;;  %16329 = vst [vmem:[#allocation15_spill] sm:$0xff] %v13304_v0  ;;  %v9657_v11 = vld [vmem:[%s16307_s1 + $0x16f0] sm:$0xf0]  ;;  %v9532_v27 = vor.u32 %v10718_v3, %v9529_v6  ;;  %v10634_v54 = vld [vmem:[%s16307_s1 + $0x1344] sm:$0xf] }
 0x165   :  { %5498 = vmatpush.bf16.msra.mxu3 %v9052_v20  ;;  %v9193_v18 = vld [vmem:[%s16307_s1 + $0x1350] sm:$0xf0]  ;;  %v10682_v61 = vld [vmem:[%s16307_s1 + $0x14c4] sm:$0xf]  ;;  %v9660_v2 = vor.u32 %v10750_v53, %v9657_v11  ;;  %16330 = vst [vmem:[#allocation16_spill] sm:$0xff] %v13345_v63 }
 0x166   :  { %5509 = vmatpush.bf16.msrb.mxu0 %v9228_v23  ;;  %v9385_v22 = vld [vmem:[%s16307_s1 + $0x14d0] sm:$0xf0]  ;;  %v10714_v7 = vld [vmem:[%s16307_s1 + $0x15c4] sm:$0xf]  ;;  %v9196_v42 = vor.u32 %v10634_v54, %v9193_v18 }
 0x167   :  { %v9513_v20 = vld [vmem:[%s16307_s1 + $0x15d0] sm:$0xf0]  ;;  %5471 = vmatpush.bf16.msra.mxu1 %v8780_v8  ;;  %v10746_v23 = vld [vmem:[%s16307_s1 + $0x16c4] sm:$0xf]  ;;  %v9388_v49 = vor.u32 %v10682_v61, %v9385_v22  ;;  %v13380_v22 = vpop.f32.mrf.mxu2 }
 0x168   :  { %5485 = vmatpush.bf16.msra.mxu2 %v8908_v13  ;;  %v9641_v28 = vld [vmem:[%s16307_s1 + $0x16d0] sm:$0xf0]  ;;  %v9516_v50 = vor.u32 %v10714_v7, %v9513_v20  ;;  %v10630_v59 = vld [vmem:[%s16307_s1 + $0x1324] sm:$0xf]  ;;  %16331 = vst [vmem:[#allocation17_spill] sm:$0xff] %v13380_v22 }
 0x169   :  { %5499 = vmatpush.bf16.msra.mxu3 %v9036_v12  ;;  %v9177_v9 = vld [vmem:[%s16307_s1 + $0x1330] sm:$0xf0]  ;;  %v10678_v14 = vld [vmem:[%s16307_s1 + $0x14a4] sm:$0xf] }
 0x16a   :  { %5510 = vmatpush.bf16.msrb.mxu0 %v9212_v25  ;;  %5472 = vmatmul.bf16.vlgmr.msra.gmra.mxu1 %v12028_v51  ;;  %v10710_v25 = vld [vmem:[%s16307_s1 + $0x15a4] sm:$0xf]  ;;  %v9497_v3 = vld [vmem:[%s16307_s1 + $0x15b0] sm:$0xf0]  ;;  %v9180_v13 = vor.u32 %v10630_v59, %v9177_v9  ;;  %v13403_v9 = vpop.f32.mrf.mxu3 }
 0x16b   :  { %5520 = vmatpush.bf16.msrb.mxu1 %v9404_v29  ;;  %v9369_v29 = vld [vmem:[%s16307_s1 + $0x14b0] sm:$0xf0]  ;;  %5486 = vmatmul.bf16.vlgmr.msra.gmra.mxu2 %v12041_v56  ;;  %v10742_v6 = vld [vmem:[%s16307_s1 + $0x16a4] sm:$0xf]  ;;  %v9500_v54 = vor.u32 %v10710_v25, %v9497_v3  ;;  %16332 = vst [vmem:[#allocation18_spill] sm:$0xff] %v13403_v9 }
 0x16c   :  { %5534 = vmatpush.bf16.msrb.mxu2 %v9532_v27  ;;  %v9644_v27 = vor.u32 %v10746_v23, %v9641_v28  ;;  %5500 = vmatmul.bf16.vlgmr.msra.gmra.mxu3 %v12039_v55  ;;  %v9625_v8 = vld [vmem:[%s16307_s1 + $0x16b0] sm:$0xf0]  ;;  %v10626_v53 = vld [vmem:[%s16307_s1 + $0x1304] sm:$0xf]  ;;  %v9372_v12 = vor.u32 %v10678_v14, %v9369_v29 }
 0x16d   :  { %5548 = vmatpush.bf16.msrb.mxu3 %v9660_v2  ;;  %v9161_v11 = vld [vmem:[%s16307_s1 + $0x1310] sm:$0xf0]  ;;  %v10674_v18 = vld [vmem:[%s16307_s1 + $0x1484] sm:$0xf]  ;;  %v9628_v7 = vor.u32 %v10742_v6, %v9625_v8 }
 0x16e   :  { %5511 = vmatpush.bf16.msrb.mxu0 %v9196_v42  ;;  %v9353_v61 = vld [vmem:[%s16307_s1 + $0x1490] sm:$0xf0]  ;;  %v10706_v2 = vld [vmem:[%s16307_s1 + $0x1584] sm:$0xf]  ;;  %v9164_v14 = vor.u32 %v10626_v53, %v9161_v11 }
 0x16f   :  { %5521 = vmatpush.bf16.msrb.mxu1 %v9388_v49  ;;  %v9481_v20 = vld [vmem:[%s16307_s1 + $0x1590] sm:$0xf0]  ;;  %v10738_v23 = vld [vmem:[%s16307_s1 + $0x1684] sm:$0xf] }
 0x170   :  { %5535 = vmatpush.bf16.msrb.mxu2 %v9516_v50  ;;  %v9609_v28 = vld [vmem:[%s16307_s1 + $0x1690] sm:$0xf0]  ;;  %v10782_v42 = vld [vmem:[%s16307_s1 + $0x17e4] sm:$0xf]  ;;  %v13400_v50 = vld [vmem:[%s16309_s2] sm:$0xf]  ;;  %v9484_v29 = vor.u32 %v10706_v2, %v9481_v20 }
 0x171   :  { %5549 = vmatpush.bf16.msrb.mxu3 %v9644_v27  ;;  %v9785_v49 = vld [vmem:[%s16307_s1 + $0x17f0] sm:$0xf0]  ;;  %v16314_v59 = vperm.slane %v13400_v50, 1  ;;  %v9356_v27 = vor.u32 %v10674_v18, %v9353_v61  ;;  %v10670_v25 = vld [vmem:[%s16307_s1 + $0x1464] sm:$0xf]  ;;  %v9612_v6 = vor.u32 %v10738_v23, %v9609_v28 }
 0x172   :  { %5512 = vmatpush.bf16.msrb.mxu0 %v9180_v13  ;;  %v9337_v3 = vld [vmem:[%s16307_s1 + $0x1470] sm:$0xf0]  ;;  %v9788_v8 = vor.u32 %v10782_v42, %v9785_v49  ;;  %v10702_v13 = vld [vmem:[%s16307_s1 + $0x1564] sm:$0xf] }
 0x173   :  { %5522 = vmatpush.bf16.msrb.mxu1 %v9372_v12  ;;  %v9465_v53 = vld [vmem:[%s16307_s1 + $0x1570] sm:$0xf0]  ;;  %v10734_v11 = vld [vmem:[%s16307_s1 + $0x1664] sm:$0xf]  ;;  %v5249_v12 = vpop.f32.mrf.mxu1  ;;  %v9340_v20 = vor.u32 %v10670_v25, %v9337_v3  ;;  %v5263_v25 = vpop.f32.mrf.mxu2 }
 0x174   :  { %5536 = vmatpush.bf16.msrb.mxu2 %v9500_v54  ;;  %v9593_v54 = vld [vmem:[%s16307_s1 + $0x1670] sm:$0xf0]  ;;  %v10778_v18 = vld [vmem:[%s16307_s1 + $0x17c4] sm:$0xf]  ;;  %v5250_v2 = vadd.f32 %v5249_v12, %v16314_v59  ;;  %v9468_v23 = vor.u32 %v10702_v13, %v9465_v53  ;;  %v5277_v53 = vpop.f32.mrf.mxu3 }
 0x175   :  { %5550 = vmatpush.bf16.msrb.mxu3 %v9628_v7  ;;  %v9769_v61 = vld [vmem:[%s16307_s1 + $0x17d0] sm:$0xf0]  ;;  %v13431_v7 = vpop.f32.mrf.mxu0  ;;  %v10666_v28 = vld [vmem:[%s16307_s1 + $0x1444] sm:$0xf]  ;;  %v9596_v49 = vor.u32 %v10734_v11, %v9593_v54 }
 0x176   :  { %16333 = vst [vmem:[#allocation19_spill] sm:$0xff] %v13431_v7  ;;  %5513 = vmatpush.bf16.msrb.mxu0 %v9164_v14  ;;  %v9321_v42 = vld [vmem:[%s16307_s1 + $0x1450] sm:$0xf0]  ;;  %v9772_v0 = vor.u32 %v10778_v18, %v9769_v61  ;;  %v10698_v14 = vld [vmem:[%s16307_s1 + $0x1544] sm:$0xf]  ;;  %v5264_v13 = vadd.f32 %v5263_v25, %v5250_v2 }
 0x177   :  { %5523 = vmatpush.bf16.msrb.mxu1 %v9356_v27  ;;  %v9449_v27 = vld [vmem:[%s16307_s1 + $0x1550] sm:$0xf0]  ;;  %v9324_v11 = vor.u32 %v10666_v28, %v9321_v42  ;;  %v10662_v54 = vld [vmem:[%s16307_s1 + $0x1424] sm:$0xf] }
 0x178   :  { %5537 = vmatpush.bf16.msrb.mxu2 %v9484_v29  ;;  %v10730_v29 = vld [vmem:[%s16307_s1 + $0x1644] sm:$0xf]  ;;  %v9577_v3 = vld [vmem:[%s16307_s1 + $0x1650] sm:$0xf0]  ;;  %v9452_v12 = vor.u32 %v10698_v14, %v9449_v27  ;;  %v5278_v61 = vadd.f32 %v5277_v53, %v5264_v13 }
 0x179   :  { %5551 = vmatpush.bf16.msrb.mxu3 %v9612_v6  ;;  %5514 = vmatmul.bf16.vlgmr.msrb.gmra.mxu0 %v12049_v60  ;;  %v10774_v6 = vld [vmem:[%s16307_s1 + $0x17a4] sm:$0xf]  ;;  %v9305_v18 = vld [vmem:[%s16307_s1 + $0x1430] sm:$0xf0]  ;;  %v9580_v59 = vor.u32 %v10730_v29, %v9577_v3 }
 0x17a   :  { %5562 = vmatpush.bf16.msra.mxu0 %v9788_v8  ;;  %v9753_v8 = vld [vmem:[%s16307_s1 + $0x17b0] sm:$0xf0]  ;;  %v10694_v2 = vld [vmem:[%s16307_s1 + $0x1524] sm:$0xf]  ;;  %v9308_v14 = vor.u32 %v10662_v54, %v9305_v18 }
 0x17b   :  { %5524 = vmatpush.bf16.msrb.mxu1 %v9340_v20  ;;  %v9756_v7 = vor.u32 %v10774_v6, %v9753_v8  ;;  %v9433_v20 = vld [vmem:[%s16307_s1 + $0x1530] sm:$0xf0]  ;;  %v10658_v29 = vld [vmem:[%s16307_s1 + $0x1404] sm:$0xf]  ;;  %v13526_v63 = vpop.f32.mrf.mxu1 }
 0x17c   :  { %5538 = vmatpush.bf16.msrb.mxu2 %v9468_v23  ;;  %v10726_v23 = vld [vmem:[%s16307_s1 + $0x1624] sm:$0xf]  ;;  %v9561_v28 = vld [vmem:[%s16307_s1 + $0x1630] sm:$0xf0]  ;;  %v9436_v27 = vor.u32 %v10694_v2, %v9433_v20  ;;  %v10049_v2 = vld [vmem:[%s16307_s1 + $0xf4] sm:$0xf0] }
 0x17d   :  { %5552 = vmatpush.bf16.msrb.mxu3 %v9596_v49  ;;  %v9737_v42 = vld [vmem:[%s16307_s1 + $0x1790] sm:$0xf0]  ;;  %v5291_v49 = vpop.f32.mrf.mxu0  ;;  %v10690_v3 = vld [vmem:[%s16307_s1 + $0x1504] sm:$0xf]  ;;  %v9564_v8 = vor.u32 %v10726_v23, %v9561_v28  ;;  %v6975_v28 = vld [vmem:[%s16307_s1 + $0x1e8] sm:$0xf] }
 0x17e   :  { %5563 = vmatpush.bf16.msra.mxu0 %v9772_v0  ;;  %v10770_v0 = vld [vmem:[%s16307_s1 + $0x1784] sm:$0xf]  ;;  %v9289_v25 = vld [vmem:[%s16307_s1 + $0x1410] sm:$0xf0]  ;;  %v13491_v6 = vadd.f32 %v5291_v49, %v5278_v61  ;;  %v6847_v61 = vld [vmem:[%s16307_s1 + $0xe8] sm:$0xf] }
 0x17f   :  { %5525 = vmatpush.bf16.msrb.mxu1 %v9324_v11  ;;  %v9740_v13 = vor.u32 %v10770_v0, %v9737_v42  ;;  %v9417_v53 = vld [vmem:[%s16307_s1 + $0x1510] sm:$0xf0]  ;;  %v10722_v11 = vld [vmem:[%s16307_s1 + $0x1604] sm:$0xf]  ;;  %v9292_v20 = vor.u32 %v10658_v29, %v9289_v25  ;;  %v10081_v0 = vld [vmem:[%s16307_s1 + $0x1f4] sm:$0xf0]  ;;  %v6848_v22 = vor.u32 %v10049_v2, %v6847_v61 }
 0x180   :  { %5539 = vmatpush.bf16.msrb.mxu2 %v9452_v12  ;;  %v9545_v12 = vld [vmem:[%s16307_s1 + $0x1610] sm:$0xf0]  ;;  %v10766_v54 = vld [vmem:[%s16307_s1 + $0x1764] sm:$0xf]  ;;  %v9420_v23 = vor.u32 %v10690_v3, %v9417_v53  ;;  %v6976_v25 = vor.u32 %v10081_v0, %v6975_v28  ;;  %v6959_v53 = vld [vmem:[%s16307_s1 + $0x1c8] sm:$0xf] }
 0x181   :  { %5553 = vmatpush.bf16.msrb.mxu3 %v9580_v59  ;;  %v9721_v59 = vld [vmem:[%s16307_s1 + $0x1770] sm:$0xf0]  ;;  %v9548_v42 = vor.u32 %v10722_v11, %v9545_v12  ;;  %v10794_v29 = vld [vmem:[%s16307_s1 + $0x1844] sm:$0xf]  ;;  %v10077_v11 = vld [vmem:[%s16307_s1 + $0x1d4] sm:$0xf0] }
 0x182   :  { %5564 = vmatpush.bf16.msra.mxu0 %v9756_v7  ;;  %v10798_v7 = vld [vmem:[%s16307_s1 + $0x1864] sm:$0xf]  ;;  %v9849_v18 = vld [vmem:[%s16307_s1 + $0x1870] sm:$0xf0]  ;;  %v9724_v49 = vor.u32 %v10766_v54, %v9721_v59  ;;  %v6960_v2 = vor.u32 %v10077_v11, %v6959_v53  ;;  %v10073_v28 = vld [vmem:[%s16307_s1 + $0x1b4] sm:$0xf0] }
 0x183   :  { %5526 = vmatpush.bf16.msrb.mxu1 %v9308_v14  ;;  %v9852_v9 = vor.u32 %v10798_v7, %v9849_v18  ;;  %v10762_v14 = vld [vmem:[%s16307_s1 + $0x1744] sm:$0xf]  ;;  %v9833_v3 = vld [vmem:[%s16307_s1 + $0x1850] sm:$0xf0]  ;;  %v6799_v53 = vld [vmem:[%s16307_s1 + $0x88] sm:$0xf] }
 0x184   :  { %5540 = vmatpush.bf16.msrb.mxu2 %v9436_v27  ;;  %v9705_v27 = vld [vmem:[%s16307_s1 + $0x1750] sm:$0xf0]  ;;  %v9836_v54 = vor.u32 %v10794_v29, %v9833_v3  ;;  %v10758_v7 = vld [vmem:[%s16307_s1 + $0x1724] sm:$0xf]  ;;  %v10037_v11 = vld [vmem:[%s16307_s1 + $0x94] sm:$0xf0] }
 0x185   :  { %5554 = vmatpush.bf16.msrb.mxu3 %v9564_v8  ;;  %v6831_v8 = vld [vmem:[%s16307_s1 + $0xc8] sm:$0xf]  ;;  %v9708_v12 = vor.u32 %v10762_v14, %v9705_v27  ;;  %v9689_v18 = vld [vmem:[%s16307_s1 + $0x1730] sm:$0xf0]  ;;  %v10790_v61 = vld [vmem:[%s16307_s1 + $0x1824] sm:$0xf]  ;;  %v13620_v37 = vpop.f32.mrf.mxu0 }
 0x186   :  { %5565 = vmatpush.bf16.msra.mxu0 %v9740_v13  ;;  %v10045_v13 = vld [vmem:[%s16307_s1 + $0xd4] sm:$0xf0]  ;;  %v9692_v0 = vor.u32 %v10758_v7, %v9689_v18  ;;  %v9673_v29 = vld [vmem:[%s16307_s1 + $0x1710] sm:$0xf0]  ;;  %v7103_v7 = vld [vmem:[%s16307_s1 + $0x2e8] sm:$0xf] }
 0x187   :  { %5527 = vmatpush.bf16.msrb.mxu1 %v9292_v20  ;;  %v6832_v59 = vor.u32 %v10045_v13, %v6831_v8  ;;  %v10041_v20 = vld [vmem:[%s16307_s1 + $0xb4] sm:$0xf0]  ;;  %v9801_v3 = vld [vmem:[%s16307_s1 + $0x1810] sm:$0xf0]  ;;  %v13593_v13 = vpop.f32.mrf.mxu3 }
 0x188   :  { %5541 = vmatpush.bf16.msrb.mxu2 %v9420_v23  ;;  %v6943_v23 = vld [vmem:[%s16307_s1 + $0x1a8] sm:$0xf]  ;;  %v10113_v18 = vld [vmem:[%s16307_s1 + $0x2f4] sm:$0xf0] }
 0x189   :  { %5555 = vmatpush.bf16.msrb.mxu3 %v9548_v42  ;;  %v13579_v42 = vpop.f32.mrf.mxu2  ;;  %v6944_v8 = vor.u32 %v10073_v28, %v6943_v23  ;;  %v6800_v23 = vor.u32 %v10037_v11, %v6799_v53  ;;  %v7104_v16 = vor.u32 %v10113_v18, %v7103_v7  ;;  %v10029_v7 = vld [vmem:[%s16307_s1 + $0x54] sm:$0xf0]  ;;  %v6895_v18 = vld [vmem:[%s16307_s1 + $0x148] sm:$0xf] }
 0x18a   :  { %5566 = vmatpush.bf16.msra.mxu0 %v9724_v49  ;;  %5528 = vmatmul.bf16.vlgmr.msrb.gmra.mxu1 %v12268_v26  ;;  %v10754_v49 = vld [vmem:[%s16307_s1 + $0x1704] sm:$0xf] }
 0x18b   :  { %5580 = vmatpush.bf16.msra.mxu1 %v9852_v9  ;;  %v6815_v9 = vld [vmem:[%s16307_s1 + $0xa8] sm:$0xf]  ;;  %5542 = vmatmul.bf16.vlgmr.msrb.gmra.mxu2 %v12281_v34 }
 0x18c   :  { %5590 = vmatpush.bf16.msra.mxu2 %v6848_v22  ;;  %v9817_v22 = vld [vmem:[%s16307_s1 + $0x1830] sm:$0xf0]  ;;  %5556 = vmatmul.bf16.vlgmr.msrb.gmra.mxu3 %v12279_v33  ;;  %v6816_v27 = vor.u32 %v10041_v20, %v6815_v9  ;;  %v10145_v9 = vld [vmem:[%s16307_s1 + $0x3f4] sm:$0xf0] }
 0x18d   :  { %5604 = vmatpush.bf16.msra.mxu3 %v6976_v25  ;;  %v9820_v14 = vor.u32 %v10790_v61, %v9817_v22  ;;  %v10786_v25 = vld [vmem:[%s16307_s1 + $0x1804] sm:$0xf]  ;;  %v7231_v22 = vld [vmem:[%s16307_s1 + $0x3e8] sm:$0xf] }
 0x18e   :  { %5567 = vmatpush.bf16.msra.mxu0 %v9708_v12  ;;  %v6927_v12 = vld [vmem:[%s16307_s1 + $0x188] sm:$0xf]  ;;  %v9804_v20 = vor.u32 %v10786_v25, %v9801_v3  ;;  %v10109_v25 = vld [vmem:[%s16307_s1 + $0x2d4] sm:$0xf0] }
 0x18f   :  { %5581 = vmatpush.bf16.msra.mxu1 %v9836_v54  ;;  %v5305_v54 = vpop.f32.mrf.mxu1  ;;  %v7215_v3 = vld [vmem:[%s16307_s1 + $0x3c8] sm:$0xf] }
 0x190   :  { %5591 = vmatpush.bf16.msra.mxu2 %v6832_v59  ;;  %v10069_v59 = vld [vmem:[%s16307_s1 + $0x194] sm:$0xf0]  ;;  %v5306_v61 = vadd.f32 %v5305_v54, %v13491_v6  ;;  %v6783_v6 = vld [vmem:[%s16307_s1 + $0x68] sm:$0xf] }
 0x191   :  { %5605 = vmatpush.bf16.msra.mxu3 %v6960_v2  ;;  %v9676_v2 = vor.u32 %v10754_v49, %v9673_v29  ;;  %v6928_v28 = vor.u32 %v10069_v59, %v6927_v12  ;;  %v6911_v49 = vld [vmem:[%s16307_s1 + $0x168] sm:$0xf]  ;;  %v5319_v12 = vpop.f32.mrf.mxu2 }
 0x192   :  { %5568 = vmatpush.bf16.msra.mxu0 %v9692_v0  ;;  %v10033_v0 = vld [vmem:[%s16307_s1 + $0x74] sm:$0xf0]  ;;  %v7087_v29 = vld [vmem:[%s16307_s1 + $0x2c8] sm:$0xf] }
 0x193   :  { %5582 = vmatpush.bf16.msra.mxu1 %v9820_v14  ;;  %v7232_v14 = vor.u32 %v10145_v9, %v7231_v22  ;;  %v6784_v53 = vor.u32 %v10033_v0, %v6783_v6  ;;  %v7088_v54 = vor.u32 %v10109_v25, %v7087_v29  ;;  %v6767_v59 = vld [vmem:[%s16307_s1 + $0x48] sm:$0xf]  ;;  %v10061_v22 = vld [vmem:[%s16307_s1 + $0x154] sm:$0xf0] }
 0x194   :  { %5592 = vmatpush.bf16.msra.mxu2 %v6816_v27  ;;  %v10065_v27 = vld [vmem:[%s16307_s1 + $0x174] sm:$0xf0]  ;;  %v7071_v9 = vld [vmem:[%s16307_s1 + $0x2a8] sm:$0xf]  ;;  %v6768_v0 = vor.u32 %v10029_v7, %v6767_v59 }
 0x195   :  { %5606 = vmatpush.bf16.msra.mxu3 %v6944_v8  ;;  %v10141_v8 = vld [vmem:[%s16307_s1 + $0x3d4] sm:$0xf0]  ;;  %v6912_v11 = vor.u32 %v10065_v27, %v6911_v49  ;;  %v6896_v49 = vor.u32 %v10061_v22, %v6895_v18  ;;  %v6751_v27 = vld [vmem:[%s16307_s1 + $0x28] sm:$0xf] }
 0x196   :  { %5569 = vmatpush.bf16.msra.mxu0 %v9676_v2  ;;  %v5320_v2 = vadd.f32 %v5319_v12, %v5306_v61  ;;  %v10137_v61 = vld [vmem:[%s16307_s1 + $0x3b4] sm:$0xf0]  ;;  %v6879_v25 = vld [vmem:[%s16307_s1 + $0x128] sm:$0xf]  ;;  %v5347_v12 = vpop.f32.mrf.mxu0 }
 0x197   :  { %5583 = vmatpush.bf16.msra.mxu1 %v9804_v20  ;;  %v10105_v20 = vld [vmem:[%s16307_s1 + $0x2b4] sm:$0xf0] }
 0x198   :  { %5593 = vmatpush.bf16.msra.mxu2 %v6800_v23  ;;  %v5333_v23 = vpop.f32.mrf.mxu3  ;;  %v10025_v29 = vld [vmem:[%s16307_s1 + $0x34] sm:$0xf0] }
 0x199   :  { %5607 = vmatpush.bf16.msra.mxu3 %v6928_v28  ;;  %5570 = vmatmul.bf16.vlgmr.msra.gmra.mxu0 %v12291_v48  ;;  %v7199_v28 = vld [vmem:[%s16307_s1 + $0x3a8] sm:$0xf]  ;;  %v5334_v6 = vadd.f32 %v5333_v23, %v5320_v2  ;;  %v10133_v59 = vld [vmem:[%s16307_s1 + $0x394] sm:$0xf0]  ;;  %v6752_v18 = vor.u32 %v10025_v29, %v6751_v27 }
 0x19a   :  { %5618 = vmatpush.bf16.msrb.mxu0 %v7104_v16  ;;  %v7216_v16 = vor.u32 %v10141_v8, %v7215_v3  ;;  %v7200_v3 = vor.u32 %v10137_v61, %v7199_v28  ;;  %v10057_v8 = vld [vmem:[%s16307_s1 + $0x134] sm:$0xf0]  ;;  %9862 = vmatmul.msk.bf16.vlgmr.msra.gmra.mxu1 %vm4886_vm0, %v12401_v19  ;;  %v6735_v2 = vld [vmem:[%s16307_s1 + $0x8] sm:$0xf] }
 0x19b   :  { %5632 = vmatpush.bf16.msrb.mxu1 %v7232_v14  ;;  %v7072_v14 = vor.u32 %v10105_v20, %v7071_v9  ;;  %v13697_v7 = vadd.f32 %v5347_v12, %v5334_v6  ;;  %v10021_v9 = vld [vmem:[%s16307_s1 + $0x14] sm:$0xf0]  ;;  %v6863_v20 = vld [vmem:[%s16307_s1 + $0x108] sm:$0xf] }
 0x19c   :  { %5594 = vmatpush.bf16.msra.mxu2 %v6784_v53  ;;  %v7055_v53 = vld [vmem:[%s16307_s1 + $0x288] sm:$0xf]  ;;  %v10053_v23 = vld [vmem:[%s16307_s1 + $0x114] sm:$0xf0]  ;;  %v6736_v29 = vor.u32 %v10021_v9, %v6735_v2 }
 0x19d   :  { %5608 = vmatpush.bf16.msra.mxu3 %v6912_v11  ;;  %v10101_v11 = vld [vmem:[%s16307_s1 + $0x294] sm:$0xf0]  ;;  %v7039_v61 = vld [vmem:[%s16307_s1 + $0x268] sm:$0xf] }
 0x19e   :  { %5619 = vmatpush.bf16.msrb.mxu0 %v7088_v54  ;;  %v7183_v54 = vld [vmem:[%s16307_s1 + $0x388] sm:$0xf]  ;;  %v7056_v22 = vor.u32 %v10101_v11, %v7055_v53  ;;  %v10097_v6 = vld [vmem:[%s16307_s1 + $0x274] sm:$0xf0] }
 0x19f   :  { %5633 = vmatpush.bf16.msrb.mxu1 %v7216_v16  ;;  %v6880_v16 = vor.u32 %v10057_v8, %v6879_v25  ;;  %v7184_v28 = vor.u32 %v10133_v59, %v7183_v54  ;;  %v10177_v27 = vld [vmem:[%s16307_s1 + $0x4f4] sm:$0xf0]  ;;  %v7487_v25 = vld [vmem:[%s16307_s1 + $0x5e8] sm:$0xf]  ;;  %v6864_v8 = vor.u32 %v10053_v23, %v6863_v20  ;;  %v7040_v53 = vor.u32 %v10097_v6, %v7039_v61  ;;  %v13753_v20 = vpop.f32.mrf.mxu1 }
 0x1a0   :  { %5595 = vmatpush.bf16.msra.mxu2 %v6768_v0  ;;  %v7167_v0 = vld [vmem:[%s16307_s1 + $0x368] sm:$0xf]  ;;  %v10093_v59 = vld [vmem:[%s16307_s1 + $0x254] sm:$0xf0]  ;;  %16334 = vst [vmem:[#allocation20_spill] sm:$0xff] %v13753_v20 }
 0x1a1   :  { %5609 = vmatpush.bf16.msra.mxu3 %v6896_v49  ;;  %v10129_v49 = vld [vmem:[%s16307_s1 + $0x374] sm:$0xf0]  ;;  %v7023_v54 = vld [vmem:[%s16307_s1 + $0x248] sm:$0xf] }
 0x1a2   :  { %5620 = vmatpush.bf16.msrb.mxu0 %v7072_v14  ;;  %v7359_v14 = vld [vmem:[%s16307_s1 + $0x4e8] sm:$0xf]  ;;  %v7168_v11 = vor.u32 %v10129_v49, %v7167_v0  ;;  %v10173_v9 = vld [vmem:[%s16307_s1 + $0x4d4] sm:$0xf0]  ;;  %v7024_v61 = vor.u32 %v10093_v59, %v7023_v54 }
 0x1a3   :  { %5634 = vmatpush.bf16.msrb.mxu1 %v7200_v3  ;;  %v10209_v3 = vld [vmem:[%s16307_s1 + $0x5f4] sm:$0xf0]  ;;  %v7360_v12 = vor.u32 %v10177_v27, %v7359_v14  ;;  %v7471_v23 = vld [vmem:[%s16307_s1 + $0x5c8] sm:$0xf] }
 0x1a4   :  { %5596 = vmatpush.bf16.msra.mxu2 %v6752_v18  ;;  %v7151_v18 = vld [vmem:[%s16307_s1 + $0x348] sm:$0xf]  ;;  %v7488_v2 = vor.u32 %v10209_v3, %v7487_v25  ;;  %v10089_v14 = vld [vmem:[%s16307_s1 + $0x234] sm:$0xf0] }
 0x1a5   :  { %5610 = vmatpush.bf16.msra.mxu3 %v6880_v16  ;;  %v10125_v16 = vld [vmem:[%s16307_s1 + $0x354] sm:$0xf0]  ;;  %v7007_v49 = vld [vmem:[%s16307_s1 + $0x228] sm:$0xf] }
 0x1a6   :  { %5621 = vmatpush.bf16.msrb.mxu0 %v7056_v22  ;;  %v7343_v22 = vld [vmem:[%s16307_s1 + $0x4c8] sm:$0xf]  ;;  %v7152_v6 = vor.u32 %v10125_v16, %v7151_v18  ;;  %v10121_v25 = vld [vmem:[%s16307_s1 + $0x334] sm:$0xf0] }
 0x1a7   :  { %5635 = vmatpush.bf16.msrb.mxu1 %v7184_v28  ;;  %v10205_v28 = vld [vmem:[%s16307_s1 + $0x5d4] sm:$0xf0]  ;;  %v7344_v0 = vor.u32 %v10173_v9, %v7343_v22  ;;  %v7135_v27 = vld [vmem:[%s16307_s1 + $0x328] sm:$0xf]  ;;  %v13799_v9 = vpop.f32.mrf.mxu2 }
 0x1a8   :  { %5597 = vmatpush.bf16.msra.mxu2 %v6736_v29  ;;  %v7472_v29 = vor.u32 %v10205_v28, %v7471_v23  ;;  %v7327_v3 = vld [vmem:[%s16307_s1 + $0x4a8] sm:$0xf]  ;;  %v7136_v59 = vor.u32 %v10121_v25, %v7135_v27  ;;  %v10117_v22 = vld [vmem:[%s16307_s1 + $0x314] sm:$0xf0]  ;;  %16335 = vst [vmem:[#allocation21_spill] sm:$0xff] %v13799_v9  ;;  %v13801_v23 = vpop.f32.mrf.mxu3 }
 0x1a9   :  { %5611 = vmatpush.bf16.msra.mxu3 %v6864_v8  ;;  %v10169_v8 = vld [vmem:[%s16307_s1 + $0x4b4] sm:$0xf0]  ;;  %v6991_v54 = vld [vmem:[%s16307_s1 + $0x208] sm:$0xf]  ;;  %16336 = vst [vmem:[#allocation22_spill] sm:$0xff] %v13801_v23 }
 0x1aa   :  { %5622 = vmatpush.bf16.msrb.mxu0 %v7040_v53  ;;  %v7455_v53 = vld [vmem:[%s16307_s1 + $0x5a8] sm:$0xf]  ;;  %v7328_v18 = vor.u32 %v10169_v8, %v7327_v3 }
 0x1ab   :  { %5636 = vmatpush.bf16.msrb.mxu1 %v7168_v11  ;;  %5598 = vmatmul.bf16.vlgmr.msra.gmra.mxu2 %v11122_v58  ;;  %v10201_v11 = vld [vmem:[%s16307_s1 + $0x5b4] sm:$0xf0]  ;;  %v7119_v16 = vld [vmem:[%s16307_s1 + $0x308] sm:$0xf] }
 0x1ac   :  { %5646 = vmatpush.bf16.msrb.mxu2 %v7360_v12  ;;  %5612 = vmatmul.bf16.vlgmr.msra.gmra.mxu3 %v11158_v10  ;;  %v7008_v12 = vor.u32 %v10089_v14, %v7007_v49  ;;  %v7456_v28 = vor.u32 %v10201_v11, %v7455_v53  ;;  %v5361_v49 = vpop.f32.mrf.mxu1  ;;  %v10197_v14 = vld [vmem:[%s16307_s1 + $0x594] sm:$0xf0]  ;;  %v7615_v27 = vld [vmem:[%s16307_s1 + $0x6e8] sm:$0xf]  ;;  %v7120_v11 = vor.u32 %v10117_v22, %v7119_v16  ;;  %v13846_v22 = vpop.f32.mrf.mxu0 }
 0x1ad   :  { %5660 = vmatpush.bf16.msrb.mxu3 %v7488_v2  ;;  %v10085_v2 = vld [vmem:[%s16307_s1 + $0x214] sm:$0xf0]  ;;  %v5362_v25 = vadd.f32 %v5361_v49, %v13697_v7  ;;  %v7743_v8 = vld [vmem:[%s16307_s1 + $0x7e8] sm:$0xf]  ;;  %16337 = vst [vmem:[#allocation23_spill] sm:$0xff] %v13846_v22 }
 0x1ae   :  { %5623 = vmatpush.bf16.msrb.mxu0 %v7024_v61  ;;  %v7311_v61 = vld [vmem:[%s16307_s1 + $0x488] sm:$0xf]  ;;  %v6992_v3 = vor.u32 %v10085_v2, %v6991_v54  ;;  %v10273_v53 = vld [vmem:[%s16307_s1 + $0x7f4] sm:$0xf0] }
 0x1af   :  { %5637 = vmatpush.bf16.msrb.mxu1 %v7152_v6  ;;  %v10165_v6 = vld [vmem:[%s16307_s1 + $0x494] sm:$0xf0]  ;;  %v7295_v7 = vld [vmem:[%s16307_s1 + $0x468] sm:$0xf]  ;;  %v7744_v2 = vor.u32 %v10273_v53, %v7743_v8  ;;  %v5375_v49 = vpop.f32.mrf.mxu2 }
 0x1b0   :  { %5647 = vmatpush.bf16.msrb.mxu2 %v7344_v0  ;;  %v7439_v0 = vld [vmem:[%s16307_s1 + $0x588] sm:$0xf]  ;;  %v7312_v23 = vor.u32 %v10165_v6, %v7311_v61  ;;  %v10237_v16 = vld [vmem:[%s16307_s1 + $0x6d4] sm:$0xf0] }
 0x1b1   :  { %5661 = vmatpush.bf16.msrb.mxu3 %v7472_v29  ;;  %v10241_v29 = vld [vmem:[%s16307_s1 + $0x6f4] sm:$0xf0]  ;;  %v7440_v9 = vor.u32 %v10197_v14, %v7439_v0  ;;  %v7423_v54 = vld [vmem:[%s16307_s1 + $0x568] sm:$0xf] }
 0x1b2   :  { %5624 = vmatpush.bf16.msrb.mxu0 %v7008_v12  ;;  %v7616_v20 = vor.u32 %v10241_v29, %v7615_v27  ;;  %v10161_v12 = vld [vmem:[%s16307_s1 + $0x474] sm:$0xf0]  ;;  %v5389_v27 = vpop.f32.mrf.mxu3  ;;  %v7279_v29 = vld [vmem:[%s16307_s1 + $0x448] sm:$0xf] }
 0x1b3   :  { %5638 = vmatpush.bf16.msrb.mxu1 %v7136_v59  ;;  %v10193_v59 = vld [vmem:[%s16307_s1 + $0x574] sm:$0xf0]  ;;  %v7296_v6 = vor.u32 %v10161_v12, %v7295_v7  ;;  %v7407_v8 = vld [vmem:[%s16307_s1 + $0x548] sm:$0xf] }
 0x1b4   :  { %5648 = vmatpush.bf16.msrb.mxu2 %v7328_v18  ;;  %v7599_v18 = vld [vmem:[%s16307_s1 + $0x6c8] sm:$0xf]  ;;  %v10269_v61 = vld [vmem:[%s16307_s1 + $0x7d4] sm:$0xf0]  ;;  %v7424_v0 = vor.u32 %v10193_v59, %v7423_v54 }
 0x1b5   :  { %5662 = vmatpush.bf16.msrb.mxu3 %v7456_v28  ;;  %v7727_v28 = vld [vmem:[%s16307_s1 + $0x7c8] sm:$0xf]  ;;  %v7600_v14 = vor.u32 %v10237_v16, %v7599_v18  ;;  %v10153_v16 = vld [vmem:[%s16307_s1 + $0x434] sm:$0xf0] }
 0x1b6   :  { %5625 = vmatpush.bf16.msrb.mxu0 %v6992_v3  ;;  %v10157_v3 = vld [vmem:[%s16307_s1 + $0x454] sm:$0xf0]  ;;  %v7583_v53 = vld [vmem:[%s16307_s1 + $0x6a8] sm:$0xf] }
 0x1b7   :  { %5639 = vmatpush.bf16.msrb.mxu1 %v7120_v11  ;;  %v10233_v11 = vld [vmem:[%s16307_s1 + $0x6b4] sm:$0xf0]  ;;  %v7711_v7 = vld [vmem:[%s16307_s1 + $0x7a8] sm:$0xf]  ;;  %v7280_v54 = vor.u32 %v10157_v3, %v7279_v29 }
 0x1b8   :  { %5649 = vmatpush.bf16.msrb.mxu2 %v7312_v23  ;;  %v5376_v23 = vadd.f32 %v5375_v49, %v5362_v25  ;;  %v10265_v25 = vld [vmem:[%s16307_s1 + $0x7b4] sm:$0xf0]  ;;  %v7584_v59 = vor.u32 %v10233_v11, %v7583_v53  ;;  %v7263_v18 = vld [vmem:[%s16307_s1 + $0x428] sm:$0xf] }
 0x1b9   :  { %5663 = vmatpush.bf16.msrb.mxu3 %v7440_v9  ;;  %v7728_v9 = vor.u32 %v10269_v61, %v7727_v28  ;;  %5626 = vmatmul.bf16.vlgmr.msrb.gmra.mxu0 %v11136_v1  ;;  %v7391_v28 = vld [vmem:[%s16307_s1 + $0x528] sm:$0xf]  ;;  %v7712_v61 = vor.u32 %v10265_v25, %v7711_v7  ;;  %v10229_v49 = vld [vmem:[%s16307_s1 + $0x694] sm:$0xf0] }
 0x1ba   :  { %5674 = vmatpush.bf16.msra.mxu0 %v7616_v20  ;;  %v10189_v20 = vld [vmem:[%s16307_s1 + $0x554] sm:$0xf0]  ;;  %5640 = vmatmul.bf16.vlgmr.msrb.gmra.mxu1 %v11172_v17  ;;  %v5390_v12 = vadd.f32 %v5389_v27, %v5376_v23  ;;  %v7695_v27 = vld [vmem:[%s16307_s1 + $0x788] sm:$0xf] }
 0x1bb   :  { %5688 = vmatpush.bf16.msra.mxu1 %v7744_v2  ;;  %v7408_v2 = vor.u32 %v10189_v20, %v7407_v8  ;;  %v10261_v29 = vld [vmem:[%s16307_s1 + $0x794] sm:$0xf0]  ;;  %v7264_v8 = vor.u32 %v10153_v16, %v7263_v18  ;;  %v7247_v23 = vld [vmem:[%s16307_s1 + $0x408] sm:$0xf] }
 0x1bc   :  { %5650 = vmatpush.bf16.msrb.mxu2 %v7296_v6  ;;  %v10185_v6 = vld [vmem:[%s16307_s1 + $0x534] sm:$0xf0]  ;;  %v7375_v11 = vld [vmem:[%s16307_s1 + $0x508] sm:$0xf]  ;;  %v7696_v25 = vor.u32 %v10261_v29, %v7695_v27 }
 0x1bd   :  { %5664 = vmatpush.bf16.msrb.mxu3 %v7424_v0  ;;  %v7567_v0 = vld [vmem:[%s16307_s1 + $0x688] sm:$0xf]  ;;  %v10149_v53 = vld [vmem:[%s16307_s1 + $0x414] sm:$0xf0] }
 0x1be   :  { %5675 = vmatpush.bf16.msra.mxu0 %v7600_v14  ;;  %v5403_v14 = vpop.f32.mrf.mxu0  ;;  %v7568_v20 = vor.u32 %v10229_v49, %v7567_v0  ;;  %v10181_v7 = vld [vmem:[%s16307_s1 + $0x514] sm:$0xf0]  ;;  %v7871_v18 = vld [vmem:[%s16307_s1 + $0x8e8] sm:$0xf] }
 0x1bf   :  { %5689 = vmatpush.bf16.msra.mxu1 %v7728_v9  ;;  %v13904_v3 = vadd.f32 %v5403_v14, %v5390_v12  ;;  %v7392_v9 = vor.u32 %v10185_v6, %v7391_v28  ;;  %v7551_v12 = vld [vmem:[%s16307_s1 + $0x668] sm:$0xf]  ;;  %v10305_v16 = vld [vmem:[%s16307_s1 + $0x8f4] sm:$0xf0]  ;;  %v7248_v28 = vor.u32 %v10149_v53, %v7247_v23  ;;  %v7376_v0 = vor.u32 %v10181_v7, %v7375_v11  ;;  %v13960_v7 = vpop.f32.mrf.mxu1 }
 0x1c0   :  { %5651 = vmatpush.bf16.msrb.mxu2 %v7280_v54  ;;  %v10225_v54 = vld [vmem:[%s16307_s1 + $0x674] sm:$0xf0]  ;;  %v7872_v27 = vor.u32 %v10305_v16, %v7871_v18  ;;  %v7535_v29 = vld [vmem:[%s16307_s1 + $0x648] sm:$0xf]  ;;  %16338 = vst [vmem:[#allocation24_spill] sm:$0xff] %v13960_v7 }
 0x1c1   :  { %5665 = vmatpush.bf16.msrb.mxu3 %v7408_v2  ;;  %v7679_v2 = vld [vmem:[%s16307_s1 + $0x768] sm:$0xf]  ;;  %v10337_v6 = vld [vmem:[%s16307_s1 + $0x9f4] sm:$0xf0]  ;;  %v7552_v49 = vor.u32 %v10225_v54, %v7551_v12 }
 0x1c2   :  { %5676 = vmatpush.bf16.msra.mxu0 %v7584_v59  ;;  %v10257_v59 = vld [vmem:[%s16307_s1 + $0x774] sm:$0xf0]  ;;  %v7663_v23 = vld [vmem:[%s16307_s1 + $0x748] sm:$0xf] }
 0x1c3   :  { %5690 = vmatpush.bf16.msra.mxu1 %v7712_v61  ;;  %v7999_v61 = vld [vmem:[%s16307_s1 + $0x9e8] sm:$0xf]  ;;  %v7680_v14 = vor.u32 %v10257_v59, %v7679_v2  ;;  %v10301_v11 = vld [vmem:[%s16307_s1 + $0x8d4] sm:$0xf0] }
 0x1c4   :  { %5652 = vmatpush.bf16.msrb.mxu2 %v7264_v8  ;;  %v10221_v8 = vld [vmem:[%s16307_s1 + $0x654] sm:$0xf0]  ;;  %v8000_v53 = vor.u32 %v10337_v6, %v7999_v61  ;;  %v7519_v18 = vld [vmem:[%s16307_s1 + $0x628] sm:$0xf] }
 0x1c5   :  { %5666 = vmatpush.bf16.msrb.mxu3 %v7392_v9  ;;  %v10253_v9 = vld [vmem:[%s16307_s1 + $0x754] sm:$0xf0]  ;;  %v7536_v54 = vor.u32 %v10221_v8, %v7535_v29  ;;  %v7503_v8 = vld [vmem:[%s16307_s1 + $0x608] sm:$0xf] }
 0x1c6   :  { %5677 = vmatpush.bf16.msra.mxu0 %v7568_v20  ;;  %v7855_v20 = vld [vmem:[%s16307_s1 + $0x8c8] sm:$0xf]  ;;  %v10333_v12 = vld [vmem:[%s16307_s1 + $0x9d4] sm:$0xf0]  ;;  %v7664_v2 = vor.u32 %v10253_v9, %v7663_v23 }
 0x1c7   :  { %5691 = vmatpush.bf16.msra.mxu1 %v7696_v25  ;;  %v7983_v25 = vld [vmem:[%s16307_s1 + $0x9c8] sm:$0xf]  ;;  %v7856_v59 = vor.u32 %v10301_v11, %v7855_v20  ;;  %v10217_v16 = vld [vmem:[%s16307_s1 + $0x634] sm:$0xf0] }
 0x1c8   :  { %5653 = vmatpush.bf16.msrb.mxu2 %v7248_v28  ;;  %v7647_v28 = vld [vmem:[%s16307_s1 + $0x728] sm:$0xf]  ;;  %v7984_v61 = vor.u32 %v10333_v12, %v7983_v25  ;;  %v10249_v6 = vld [vmem:[%s16307_s1 + $0x734] sm:$0xf0]  ;;  %v7520_v29 = vor.u32 %v10217_v16, %v7519_v18  ;;  %v14006_v25 = vpop.f32.mrf.mxu2  ;;  %v14008_v12 = vpop.f32.mrf.mxu3 }
 0x1c9   :  { %5667 = vmatpush.bf16.msrb.mxu3 %v7376_v0  ;;  %v7839_v0 = vld [vmem:[%s16307_s1 + $0x8a8] sm:$0xf]  ;;  %v7648_v23 = vor.u32 %v10249_v6, %v7647_v28  ;;  %v10213_v9 = vld [vmem:[%s16307_s1 + $0x614] sm:$0xf0]  ;;  %16339 = vst [vmem:[#allocation25_spill] sm:$0xff] %v14006_v25  ;;  %v5417_v16 = vpop.f32.mrf.mxu1 }
 0x1ca   :  { %5678 = vmatpush.bf16.msra.mxu0 %v7552_v49  ;;  %v10297_v49 = vld [vmem:[%s16307_s1 + $0x8b4] sm:$0xf0]  ;;  %v7631_v20 = vld [vmem:[%s16307_s1 + $0x708] sm:$0xf]  ;;  %16340 = vst [vmem:[#allocation26_spill] sm:$0xff] %v14008_v12 }
 0x1cb   :  { %5692 = vmatpush.bf16.msra.mxu1 %v7680_v14  ;;  %5654 = vmatmul.bf16.vlgmr.msrb.gmra.mxu2 %v11344_v39  ;;  %v7967_v14 = vld [vmem:[%s16307_s1 + $0x9a8] sm:$0xf]  ;;  %v10245_v11 = vld [vmem:[%s16307_s1 + $0x714] sm:$0xf0] }
 0x1cc   :  { %5702 = vmatpush.bf16.msra.mxu2 %v7872_v27  ;;  %5668 = vmatmul.bf16.vlgmr.msrb.gmra.mxu3 %v11357_v44  ;;  %v10329_v27 = vld [vmem:[%s16307_s1 + $0x9b4] sm:$0xf0]  ;;  %v7951_v18 = vld [vmem:[%s16307_s1 + $0x988] sm:$0xf]  ;;  %v7632_v12 = vor.u32 %v10245_v11, %v7631_v20  ;;  %v14053_v11 = vpop.f32.mrf.mxu0 }
 0x1cd   :  { %5716 = vmatpush.bf16.msra.mxu3 %v8000_v53  ;;  %v7840_v53 = vor.u32 %v10297_v49, %v7839_v0  ;;  %v10325_v28 = vld [vmem:[%s16307_s1 + $0x994] sm:$0xf0]  ;;  %v5418_v0 = vadd.f32 %v5417_v16, %v13904_v3  ;;  %v7504_v49 = vor.u32 %v10213_v9, %v7503_v8  ;;  %v7807_v3 = vld [vmem:[%s16307_s1 + $0x868] sm:$0xf]  ;;  %16341 = vst [vmem:[#allocation27_spill] sm:$0xff] %v14053_v11 }
 0x1ce   :  { %5679 = vmatpush.bf16.msra.mxu0 %v7536_v54  ;;  %v7968_v54 = vor.u32 %v10329_v27, %v7967_v14  ;;  %v10369_v6 = vld [vmem:[%s16307_s1 + $0xaf4] sm:$0xf0]  ;;  %v8255_v14 = vld [vmem:[%s16307_s1 + $0xbe8] sm:$0xf]  ;;  %v7952_v7 = vor.u32 %v10325_v28, %v7951_v18 }
 0x1cf   :  { %5693 = vmatpush.bf16.msra.mxu1 %v7664_v2  ;;  %v7823_v2 = vld [vmem:[%s16307_s1 + $0x888] sm:$0xf]  ;;  %v10401_v27 = vld [vmem:[%s16307_s1 + $0xbf4] sm:$0xf0] }
 0x1d0   :  { %5703 = vmatpush.bf16.msra.mxu2 %v7856_v59  ;;  %v10293_v59 = vld [vmem:[%s16307_s1 + $0x894] sm:$0xf0]  ;;  %v7935_v8 = vld [vmem:[%s16307_s1 + $0x968] sm:$0xf]  ;;  %v8256_v9 = vor.u32 %v10401_v27, %v8255_v14  ;;  %v5431_v16 = vpop.f32.mrf.mxu2 }
 0x1d1   :  { %5717 = vmatpush.bf16.msra.mxu3 %v7984_v61  ;;  %v8127_v61 = vld [vmem:[%s16307_s1 + $0xae8] sm:$0xf]  ;;  %v7824_v25 = vor.u32 %v10293_v59, %v7823_v2  ;;  %v10365_v20 = vld [vmem:[%s16307_s1 + $0xad4] sm:$0xf0] }
 0x1d2   :  { %5680 = vmatpush.bf16.msra.mxu0 %v7520_v29  ;;  %v8128_v22 = vor.u32 %v10369_v6, %v8127_v61  ;;  %v10289_v29 = vld [vmem:[%s16307_s1 + $0x874] sm:$0xf0]  ;;  %v5445_v61 = vpop.f32.mrf.mxu3  ;;  %v7791_v6 = vld [vmem:[%s16307_s1 + $0x848] sm:$0xf] }
 0x1d3   :  { %5694 = vmatpush.bf16.msra.mxu1 %v7648_v23  ;;  %v10321_v23 = vld [vmem:[%s16307_s1 + $0x974] sm:$0xf0]  ;;  %v7808_v59 = vor.u32 %v10289_v29, %v7807_v3  ;;  %v8095_v14 = vld [vmem:[%s16307_s1 + $0xaa8] sm:$0xf] }
 0x1d4   :  { %5704 = vmatpush.bf16.msra.mxu2 %v7840_v53  ;;  %v8111_v53 = vld [vmem:[%s16307_s1 + $0xac8] sm:$0xf]  ;;  %v10397_v2 = vld [vmem:[%s16307_s1 + $0xbd4] sm:$0xf0]  ;;  %v7936_v18 = vor.u32 %v10321_v23, %v7935_v8 }
 0x1d5   :  { %5718 = vmatpush.bf16.msra.mxu3 %v7968_v54  ;;  %v8239_v54 = vld [vmem:[%s16307_s1 + $0xbc8] sm:$0xf]  ;;  %v8112_v28 = vor.u32 %v10365_v20, %v8111_v53  ;;  %v10361_v27 = vld [vmem:[%s16307_s1 + $0xab4] sm:$0xf0] }
 0x1d6   :  { %5681 = vmatpush.bf16.msra.mxu0 %v7504_v49  ;;  %v10285_v49 = vld [vmem:[%s16307_s1 + $0x854] sm:$0xf0]  ;;  %v8223_v3 = vld [vmem:[%s16307_s1 + $0xba8] sm:$0xf]  ;;  %v8096_v23 = vor.u32 %v10361_v27, %v8095_v14 }
 0x1d7   :  { %5695 = vmatpush.bf16.msra.mxu1 %v7632_v12  ;;  %v7919_v12 = vld [vmem:[%s16307_s1 + $0x948] sm:$0xf]  ;;  %v7792_v8 = vor.u32 %v10285_v49, %v7791_v6  ;;  %v10281_v20 = vld [vmem:[%s16307_s1 + $0x834] sm:$0xf0] }
 0x1d8   :  { %5705 = vmatpush.bf16.msra.mxu2 %v7824_v25  ;;  %v10317_v25 = vld [vmem:[%s16307_s1 + $0x954] sm:$0xf0]  ;;  %v7775_v53 = vld [vmem:[%s16307_s1 + $0x828] sm:$0xf] }
 0x1d9   :  { %5719 = vmatpush.bf16.msra.mxu3 %v7952_v7  ;;  %5682 = vmatmul.bf16.vlgmr.msra.gmra.mxu0 %v11355_v43  ;;  %v8240_v7 = vor.u32 %v10397_v2, %v8239_v54  ;;  %v7903_v54 = vld [vmem:[%s16307_s1 + $0x928] sm:$0xf]  ;;  %v10389_v6 = vld [vmem:[%s16307_s1 + $0xb94] sm:$0xf0] }
 0x1da   :  { %5730 = vmatpush.bf16.msrb.mxu0 %v8128_v22  ;;  %v5432_v22 = vadd.f32 %v5431_v16, %v5418_v0  ;;  %5696 = vmatmul.bf16.vlgmr.msra.gmra.mxu1 %v11365_v47  ;;  %v10393_v0 = vld [vmem:[%s16307_s1 + $0xbb4] sm:$0xf0]  ;;  %v7887_v27 = vld [vmem:[%s16307_s1 + $0x908] sm:$0xf] }
 0x1db   :  { %5744 = vmatpush.bf16.msrb.mxu1 %v8256_v9  ;;  %v7920_v9 = vor.u32 %v10317_v25, %v7919_v12  ;;  %v8224_v2 = vor.u32 %v10393_v0, %v8223_v3  ;;  %v10357_v16 = vld [vmem:[%s16307_s1 + $0xa94] sm:$0xf0]  ;;  %v7776_v12 = vor.u32 %v10281_v20, %v7775_v53  ;;  %v8383_v53 = vld [vmem:[%s16307_s1 + $0xce8] sm:$0xf] }
 0x1dc   :  { %5706 = vmatpush.bf16.msra.mxu2 %v7808_v59  ;;  %v5446_v29 = vadd.f32 %v5445_v61, %v5432_v22  ;;  %v10313_v59 = vld [vmem:[%s16307_s1 + $0x934] sm:$0xf0]  ;;  %v8207_v61 = vld [vmem:[%s16307_s1 + $0xb88] sm:$0xf] }
 0x1dd   :  { %5720 = vmatpush.bf16.msra.mxu3 %v7936_v18  ;;  %v8079_v18 = vld [vmem:[%s16307_s1 + $0xa88] sm:$0xf]  ;;  %v10277_v14 = vld [vmem:[%s16307_s1 + $0x814] sm:$0xf0]  ;;  %v8208_v0 = vor.u32 %v10389_v6, %v8207_v61 }
 0x1de   :  { %5731 = vmatpush.bf16.msrb.mxu0 %v8112_v28  ;;  %v5459_v28 = vpop.f32.mrf.mxu0  ;;  %v7759_v22 = vld [vmem:[%s16307_s1 + $0x808] sm:$0xf]  ;;  %v8080_v25 = vor.u32 %v10357_v16, %v8079_v18  ;;  %v10309_v3 = vld [vmem:[%s16307_s1 + $0x914] sm:$0xf0] }
 0x1df   :  { %5745 = vmatpush.bf16.msrb.mxu1 %v8240_v7  ;;  %v14111_v49 = vadd.f32 %v5459_v28, %v5446_v29  ;;  %v7904_v7 = vor.u32 %v10313_v59, %v7903_v54  ;;  %v8063_v29 = vld [vmem:[%s16307_s1 + $0xa68] sm:$0xf]  ;;  %v10433_v20 = vld [vmem:[%s16307_s1 + $0xcf4] sm:$0xf0]  ;;  %v7760_v54 = vor.u32 %v10277_v14, %v7759_v22  ;;  %v7888_v18 = vor.u32 %v10309_v3, %v7887_v27  ;;  %v14167_v3 = vpop.f32.mrf.mxu1 }
 0x1e0   :  { %5707 = vmatpush.bf16.msra.mxu2 %v7792_v8  ;;  %v10353_v8 = vld [vmem:[%s16307_s1 + $0xa74] sm:$0xf0]  ;;  %v8384_v61 = vor.u32 %v10433_v20, %v8383_v53  ;;  %v8047_v6 = vld [vmem:[%s16307_s1 + $0xa48] sm:$0xf]  ;;  %16342 = vst [vmem:[#allocation28_spill] sm:$0xff] %v14167_v3 }
 0x1e1   :  { %5721 = vmatpush.bf16.msra.mxu3 %v7920_v9  ;;  %v8191_v9 = vld [vmem:[%s16307_s1 + $0xb68] sm:$0xf]  ;;  %v10465_v59 = vld [vmem:[%s16307_s1 + $0xdf4] sm:$0xf0]  ;;  %v8064_v16 = vor.u32 %v10353_v8, %v8063_v29 }
 0x1e2   :  { %5732 = vmatpush.bf16.msrb.mxu0 %v8096_v23  ;;  %v10385_v23 = vld [vmem:[%s16307_s1 + $0xb74] sm:$0xf0]  ;;  %v8175_v22 = vld [vmem:[%s16307_s1 + $0xb48] sm:$0xf] }
 0x1e3   :  { %5746 = vmatpush.bf16.msrb.mxu1 %v8224_v2  ;;  %v8511_v2 = vld [vmem:[%s16307_s1 + $0xde8] sm:$0xf]  ;;  %v8192_v28 = vor.u32 %v10385_v23, %v8191_v9  ;;  %v10429_v27 = vld [vmem:[%s16307_s1 + $0xcd4] sm:$0xf0] }
 0x1e4   :  { %5708 = vmatpush.bf16.msra.mxu2 %v7776_v12  ;;  %v10349_v12 = vld [vmem:[%s16307_s1 + $0xa54] sm:$0xf0]  ;;  %v8512_v14 = vor.u32 %v10465_v59, %v8511_v2  ;;  %v8031_v53 = vld [vmem:[%s16307_s1 + $0xa28] sm:$0xf] }
 0x1e5   :  { %5722 = vmatpush.bf16.msra.mxu3 %v7904_v7  ;;  %v10381_v7 = vld [vmem:[%s16307_s1 + $0xb54] sm:$0xf0]  ;;  %v8048_v8 = vor.u32 %v10349_v12, %v8047_v6  ;;  %v8015_v12 = vld [vmem:[%s16307_s1 + $0xa08] sm:$0xf] }
 0x1e6   :  { %5733 = vmatpush.bf16.msrb.mxu0 %v8080_v25  ;;  %v8367_v25 = vld [vmem:[%s16307_s1 + $0xcc8] sm:$0xf]  ;;  %v10461_v29 = vld [vmem:[%s16307_s1 + $0xdd4] sm:$0xf0]  ;;  %v8176_v9 = vor.u32 %v10381_v7, %v8175_v22 }
 0x1e7   :  { %5747 = vmatpush.bf16.msrb.mxu1 %v8208_v0  ;;  %v8495_v0 = vld [vmem:[%s16307_s1 + $0xdc8] sm:$0xf]  ;;  %v8368_v23 = vor.u32 %v10429_v27, %v8367_v25  ;;  %v10345_v20 = vld [vmem:[%s16307_s1 + $0xa34] sm:$0xf0] }
 0x1e8   :  { %5709 = vmatpush.bf16.msra.mxu2 %v7760_v54  ;;  %v8159_v54 = vld [vmem:[%s16307_s1 + $0xb28] sm:$0xf]  ;;  %v8496_v2 = vor.u32 %v10461_v29, %v8495_v0  ;;  %v10377_v59 = vld [vmem:[%s16307_s1 + $0xb34] sm:$0xf0]  ;;  %v8032_v6 = vor.u32 %v10345_v20, %v8031_v53  ;;  %v14213_v0 = vpop.f32.mrf.mxu2  ;;  %v14215_v29 = vpop.f32.mrf.mxu3 }
 0x1e9   :  { %5723 = vmatpush.bf16.msra.mxu3 %v7888_v18  ;;  %v8351_v18 = vld [vmem:[%s16307_s1 + $0xca8] sm:$0xf]  ;;  %v8160_v22 = vor.u32 %v10377_v59, %v8159_v54  ;;  %v10341_v7 = vld [vmem:[%s16307_s1 + $0xa14] sm:$0xf0]  ;;  %16343 = vst [vmem:[#allocation29_spill] sm:$0xff] %v14213_v0  ;;  %v5473_v20 = vpop.f32.mrf.mxu1 }
 0x1ea   :  { %5734 = vmatpush.bf16.msrb.mxu0 %v8064_v16  ;;  %v10425_v16 = vld [vmem:[%s16307_s1 + $0xcb4] sm:$0xf0]  ;;  %v8143_v25 = vld [vmem:[%s16307_s1 + $0xb08] sm:$0xf]  ;;  %16344 = vst [vmem:[#allocation30_spill] sm:$0xff] %v14215_v29 }
 0x1eb   :  { %5748 = vmatpush.bf16.msrb.mxu1 %v8192_v28  ;;  %5710 = vmatmul.bf16.vlgmr.msra.gmra.mxu2 %v11572_v31  ;;  %v8479_v28 = vld [vmem:[%s16307_s1 + $0xda8] sm:$0xf]  ;;  %v10373_v27 = vld [vmem:[%s16307_s1 + $0xb14] sm:$0xf0] }
 0x1ec   :  { %5758 = vmatpush.bf16.msrb.mxu2 %v8384_v61  ;;  %5724 = vmatmul.bf16.vlgmr.msra.gmra.mxu3 %v11585_v36  ;;  %v10457_v61 = vld [vmem:[%s16307_s1 + $0xdb4] sm:$0xf0]  ;;  %v8463_v53 = vld [vmem:[%s16307_s1 + $0xd88] sm:$0xf]  ;;  %v8144_v29 = vor.u32 %v10373_v27, %v8143_v25  ;;  %v14260_v27 = vpop.f32.mrf.mxu0 }
 0x1ed   :  { %5772 = vmatpush.bf16.msrb.mxu3 %v8512_v14  ;;  %v8352_v14 = vor.u32 %v10425_v16, %v8351_v18  ;;  %v10453_v54 = vld [vmem:[%s16307_s1 + $0xd94] sm:$0xf0]  ;;  %v5474_v18 = vadd.f32 %v5473_v20, %v14111_v49  ;;  %v8016_v16 = vor.u32 %v10341_v7, %v8015_v12  ;;  %v8319_v49 = vld [vmem:[%s16307_s1 + $0xc68] sm:$0xf]  ;;  %16345 = vst [vmem:[#allocation31_spill] sm:$0xff] %v14260_v27 }
 0x1ee   :  { %5735 = vmatpush.bf16.msrb.mxu0 %v8048_v8  ;;  %v8480_v8 = vor.u32 %v10457_v61, %v8479_v28  ;;  %v10497_v59 = vld [vmem:[%s16307_s1 + $0xef4] sm:$0xf0]  ;;  %v8767_v28 = vld [vmem:[%s16307_s1 + $0xfe8] sm:$0xf]  ;;  %v8464_v3 = vor.u32 %v10453_v54, %v8463_v53 }
 0x1ef   :  { %5749 = vmatpush.bf16.msrb.mxu1 %v8176_v9  ;;  %v8335_v9 = vld [vmem:[%s16307_s1 + $0xc88] sm:$0xf]  ;;  %v10529_v61 = vld [vmem:[%s16307_s1 + $0xff4] sm:$0xf0] }
 0x1f0   :  { %5759 = vmatpush.bf16.msrb.mxu2 %v8368_v23  ;;  %v10421_v23 = vld [vmem:[%s16307_s1 + $0xc94] sm:$0xf0]  ;;  %v8447_v12 = vld [vmem:[%s16307_s1 + $0xd68] sm:$0xf]  ;;  %v8768_v7 = vor.u32 %v10529_v61, %v8767_v28  ;;  %v5487_v20 = vpop.f32.mrf.mxu2 }
 0x1f1   :  { %5773 = vmatpush.bf16.msrb.mxu3 %v8496_v2  ;;  %v8639_v2 = vld [vmem:[%s16307_s1 + $0xee8] sm:$0xf]  ;;  %v8336_v0 = vor.u32 %v10421_v23, %v8335_v9  ;;  %v10493_v25 = vld [vmem:[%s16307_s1 + $0xed4] sm:$0xf0] }
 0x1f2   :  { %5736 = vmatpush.bf16.msrb.mxu0 %v8032_v6  ;;  %v8640_v11 = vor.u32 %v10497_v59, %v8639_v2  ;;  %v10417_v6 = vld [vmem:[%s16307_s1 + $0xc74] sm:$0xf0]  ;;  %v5501_v2 = vpop.f32.mrf.mxu3  ;;  %v8303_v59 = vld [vmem:[%s16307_s1 + $0xc48] sm:$0xf] }
 0x1f3   :  { %5750 = vmatpush.bf16.msrb.mxu1 %v8160_v22  ;;  %v10449_v22 = vld [vmem:[%s16307_s1 + $0xd74] sm:$0xf0]  ;;  %v8320_v23 = vor.u32 %v10417_v6, %v8319_v49  ;;  %v8607_v28 = vld [vmem:[%s16307_s1 + $0xea8] sm:$0xf] }
 0x1f4   :  { %5760 = vmatpush.bf16.msrb.mxu2 %v8352_v14  ;;  %v8623_v14 = vld [vmem:[%s16307_s1 + $0xec8] sm:$0xf]  ;;  %v10525_v9 = vld [vmem:[%s16307_s1 + $0xfd4] sm:$0xf0]  ;;  %v8448_v53 = vor.u32 %v10449_v22, %v8447_v12 }
 0x1f5   :  { %5774 = vmatpush.bf16.msrb.mxu3 %v8480_v8  ;;  %v8751_v8 = vld [vmem:[%s16307_s1 + $0xfc8] sm:$0xf]  ;;  %v8624_v54 = vor.u32 %v10493_v25, %v8623_v14  ;;  %v10489_v61 = vld [vmem:[%s16307_s1 + $0xeb4] sm:$0xf0] }
 0x1f6   :  { %5737 = vmatpush.bf16.msrb.mxu0 %v8016_v16  ;;  %v10413_v16 = vld [vmem:[%s16307_s1 + $0xc54] sm:$0xf0]  ;;  %v8735_v49 = vld [vmem:[%s16307_s1 + $0xfa8] sm:$0xf]  ;;  %v8608_v22 = vor.u32 %v10489_v61, %v8607_v28 }
 0x1f7   :  { %5751 = vmatpush.bf16.msrb.mxu1 %v8144_v29  ;;  %v8431_v29 = vld [vmem:[%s16307_s1 + $0xd48] sm:$0xf]  ;;  %v8304_v12 = vor.u32 %v10413_v16, %v8303_v59  ;;  %v10409_v25 = vld [vmem:[%s16307_s1 + $0xc34] sm:$0xf0] }
 0x1f8   :  { %5761 = vmatpush.bf16.msrb.mxu2 %v8336_v0  ;;  %v10445_v0 = vld [vmem:[%s16307_s1 + $0xd54] sm:$0xf0]  ;;  %v8287_v14 = vld [vmem:[%s16307_s1 + $0xc28] sm:$0xf] }
 0x1f9   :  { %5775 = vmatpush.bf16.msrb.mxu3 %v8464_v3  ;;  %5738 = vmatmul.bf16.vlgmr.msrb.gmra.mxu0 %v11583_v35  ;;  %v8752_v3 = vor.u32 %v10525_v9, %v8751_v8  ;;  %v8415_v8 = vld [vmem:[%s16307_s1 + $0xd28] sm:$0xf]  ;;  %v10517_v59 = vld [vmem:[%s16307_s1 + $0xf94] sm:$0xf0] }
 0x1fa   :  { %5786 = vmatpush.bf16.msra.mxu0 %v8640_v11  ;;  %v5488_v11 = vadd.f32 %v5487_v20, %v5474_v18  ;;  %5752 = vmatmul.bf16.vlgmr.msrb.gmra.mxu1 %v11593_v40  ;;  %v10521_v18 = vld [vmem:[%s16307_s1 + $0xfb4] sm:$0xf0]  ;;  %v8399_v61 = vld [vmem:[%s16307_s1 + $0xd08] sm:$0xf] }
 0x1fb   :  { %5800 = vmatpush.bf16.msra.mxu1 %v8768_v7  ;;  %v8432_v7 = vor.u32 %v10445_v0, %v8431_v29  ;;  %v8736_v9 = vor.u32 %v10521_v18, %v8735_v49  ;;  %v10485_v20 = vld [vmem:[%s16307_s1 + $0xe94] sm:$0xf0]  ;;  %v8288_v29 = vor.u32 %v10409_v25, %v8287_v14  ;;  %v8895_v14 = vld [vmem:[%s16307_s1 + $0x10e8] sm:$0xf] }
 0x1fc   :  { %5762 = vmatpush.bf16.msrb.mxu2 %v8320_v23  ;;  %v5502_v6 = vadd.f32 %v5501_v2, %v5488_v11  ;;  %v10441_v23 = vld [vmem:[%s16307_s1 + $0xd34] sm:$0xf0]  ;;  %v8719_v2 = vld [vmem:[%s16307_s1 + $0xf88] sm:$0xf] }
 0x1fd   :  { %5776 = vmatpush.bf16.msrb.mxu3 %v8448_v53  ;;  %v8591_v53 = vld [vmem:[%s16307_s1 + $0xe88] sm:$0xf]  ;;  %v10405_v28 = vld [vmem:[%s16307_s1 + $0xc14] sm:$0xf0]  ;;  %v8720_v18 = vor.u32 %v10517_v59, %v8719_v2 }
 0x1fe   :  { %5787 = vmatpush.bf16.msra.mxu0 %v8624_v54  ;;  %v5515_v54 = vpop.f32.mrf.mxu0  ;;  %v8271_v11 = vld [vmem:[%s16307_s1 + $0xc08] sm:$0xf]  ;;  %v8592_v0 = vor.u32 %v10485_v20, %v8591_v53  ;;  %v10437_v49 = vld [vmem:[%s16307_s1 + $0xd14] sm:$0xf0] }
 0x1ff   :  { %5801 = vmatpush.bf16.msra.mxu1 %v8752_v3  ;;  %v14318_v16 = vadd.f32 %v5515_v54, %v5502_v6  ;;  %v8416_v3 = vor.u32 %v10441_v23, %v8415_v8  ;;  %v8575_v6 = vld [vmem:[%s16307_s1 + $0xe68] sm:$0xf]  ;;  %v10561_v25 = vld [vmem:[%s16307_s1 + $0x10f4] sm:$0xf0]  ;;  %v8272_v8 = vor.u32 %v10405_v28, %v8271_v11  ;;  %v8400_v53 = vor.u32 %v10437_v49, %v8399_v61  ;;  %v14374_v49 = vpop.f32.mrf.mxu1 }
 0x200   :  { %5763 = vmatpush.bf16.msrb.mxu2 %v8304_v12  ;;  %v10481_v12 = vld [vmem:[%s16307_s1 + $0xe74] sm:$0xf0]  ;;  %v8896_v2 = vor.u32 %v10561_v25, %v8895_v14  ;;  %v8559_v59 = vld [vmem:[%s16307_s1 + $0xe48] sm:$0xf]  ;;  %16346 = vst [vmem:[#allocation32_spill] sm:$0xff] %v14374_v49 }
 0x201   :  { %5777 = vmatpush.bf16.msrb.mxu3 %v8432_v7  ;;  %v8703_v7 = vld [vmem:[%s16307_s1 + $0xf68] sm:$0xf]  ;;  %v10593_v23 = vld [vmem:[%s16307_s1 + $0x11f4] sm:$0xf0]  ;;  %v8576_v20 = vor.u32 %v10481_v12, %v8575_v6 }
 0x202   :  { %5788 = vmatpush.bf16.msra.mxu0 %v8608_v22  ;;  %v10513_v22 = vld [vmem:[%s16307_s1 + $0xf74] sm:$0xf0]  ;;  %v8687_v11 = vld [vmem:[%s16307_s1 + $0xf48] sm:$0xf] }
 0x203   :  { %5802 = vmatpush.bf16.msra.mxu1 %v8736_v9  ;;  %v9023_v9 = vld [vmem:[%s16307_s1 + $0x11e8] sm:$0xf]  ;;  %v8704_v54 = vor.u32 %v10513_v22, %v8703_v7  ;;  %v10557_v61 = vld [vmem:[%s16307_s1 + $0x10d4] sm:$0xf0] }
 0x204   :  { %5764 = vmatpush.bf16.msrb.mxu2 %v8288_v29  ;;  %v10477_v29 = vld [vmem:[%s16307_s1 + $0xe54] sm:$0xf0]  ;;  %v9024_v28 = vor.u32 %v10593_v23, %v9023_v9  ;;  %v8543_v14 = vld [vmem:[%s16307_s1 + $0xe28] sm:$0xf] }
 0x205   :  { %5778 = vmatpush.bf16.msrb.mxu3 %v8416_v3  ;;  %v10509_v3 = vld [vmem:[%s16307_s1 + $0xf54] sm:$0xf0]  ;;  %v8560_v12 = vor.u32 %v10477_v29, %v8559_v59  ;;  %v8527_v29 = vld [vmem:[%s16307_s1 + $0xe08] sm:$0xf] }
 0x206   :  { %5789 = vmatpush.bf16.msra.mxu0 %v8592_v0  ;;  %v8879_v0 = vld [vmem:[%s16307_s1 + $0x10c8] sm:$0xf]  ;;  %v10589_v6 = vld [vmem:[%s16307_s1 + $0x11d4] sm:$0xf0]  ;;  %v8688_v7 = vor.u32 %v10509_v3, %v8687_v11 }
 0x207   :  { %5803 = vmatpush.bf16.msra.mxu1 %v8720_v18  ;;  %v9007_v18 = vld [vmem:[%s16307_s1 + $0x11c8] sm:$0xf]  ;;  %v8880_v22 = vor.u32 %v10557_v61, %v8879_v0  ;;  %v10473_v25 = vld [vmem:[%s16307_s1 + $0xe34] sm:$0xf0] }
 0x208   :  { %5765 = vmatpush.bf16.msrb.mxu2 %v8272_v8  ;;  %v8671_v8 = vld [vmem:[%s16307_s1 + $0xf28] sm:$0xf]  ;;  %v9008_v9 = vor.u32 %v10589_v6, %v9007_v18  ;;  %v10505_v23 = vld [vmem:[%s16307_s1 + $0xf34] sm:$0xf0]  ;;  %v8544_v59 = vor.u32 %v10473_v25, %v8543_v14  ;;  %v14420_v18 = vpop.f32.mrf.mxu2  ;;  %v14422_v6 = vpop.f32.mrf.mxu3 }
 0x209   :  { %5779 = vmatpush.bf16.msrb.mxu3 %v8400_v53  ;;  %v8863_v53 = vld [vmem:[%s16307_s1 + $0x10a8] sm:$0xf]  ;;  %v8672_v11 = vor.u32 %v10505_v23, %v8671_v8  ;;  %v10469_v3 = vld [vmem:[%s16307_s1 + $0xe14] sm:$0xf0]  ;;  %16347 = vst [vmem:[#allocation33_spill] sm:$0xff] %v14420_v18  ;;  %v5529_v25 = vpop.f32.mrf.mxu1 }
 0x20a   :  { %5790 = vmatpush.bf16.msra.mxu0 %v8576_v20  ;;  %v10553_v20 = vld [vmem:[%s16307_s1 + $0x10b4] sm:$0xf0]  ;;  %v8655_v0 = vld [vmem:[%s16307_s1 + $0xf08] sm:$0xf]  ;;  %16348 = vst [vmem:[#allocation34_spill] sm:$0xff] %v14422_v6 }
 0x20b   :  { %5804 = vmatpush.bf16.msra.mxu1 %v8704_v54  ;;  %5766 = vmatmul.bf16.vlgmr.msrb.gmra.mxu2 %v11800_v32  ;;  %v8991_v54 = vld [vmem:[%s16307_s1 + $0x11a8] sm:$0xf]  ;;  %v10501_v61 = vld [vmem:[%s16307_s1 + $0xf14] sm:$0xf0] }
 0x20c   :  { %5814 = vmatpush.bf16.msra.mxu2 %v8896_v2  ;;  %5780 = vmatmul.bf16.vlgmr.msrb.gmra.mxu3 %v11813_v41  ;;  %v10585_v2 = vld [vmem:[%s16307_s1 + $0x11b4] sm:$0xf0]  ;;  %v8975_v14 = vld [vmem:[%s16307_s1 + $0x1188] sm:$0xf]  ;;  %v8656_v6 = vor.u32 %v10501_v61, %v8655_v0  ;;  %v14467_v61 = vpop.f32.mrf.mxu0 }
 0x20d   :  { %5828 = vmatpush.bf16.msra.mxu3 %v9024_v28  ;;  %v8864_v28 = vor.u32 %v10553_v20, %v8863_v53  ;;  %v10581_v8 = vld [vmem:[%s16307_s1 + $0x1194] sm:$0xf0]  ;;  %v5530_v53 = vadd.f32 %v5529_v25, %v14318_v16  ;;  %v8528_v20 = vor.u32 %v10469_v3, %v8527_v29  ;;  %v8831_v16 = vld [vmem:[%s16307_s1 + $0x1068] sm:$0xf]  ;;  %16349 = vst [vmem:[#allocation35_spill] sm:$0xff] %v14467_v61 }
 0x20e   :  { %5791 = vmatpush.bf16.msra.mxu0 %v8560_v12  ;;  %v8992_v12 = vor.u32 %v10585_v2, %v8991_v54  ;;  %v10625_v23 = vld [vmem:[%s16307_s1 + $0x12f4] sm:$0xf0]  ;;  %v9279_v54 = vld [vmem:[%s16307_s1 + $0x13e8] sm:$0xf]  ;;  %v8976_v49 = vor.u32 %v10581_v8, %v8975_v14 }
 0x20f   :  { %5805 = vmatpush.bf16.msra.mxu1 %v8688_v7  ;;  %v8847_v7 = vld [vmem:[%s16307_s1 + $0x1088] sm:$0xf]  ;;  %v10657_v2 = vld [vmem:[%s16307_s1 + $0x13f4] sm:$0xf0] }
 0x210   :  { %5815 = vmatpush.bf16.msra.mxu2 %v8880_v22  ;;  %v10549_v22 = vld [vmem:[%s16307_s1 + $0x1094] sm:$0xf0]  ;;  %v8959_v29 = vld [vmem:[%s16307_s1 + $0x1168] sm:$0xf]  ;;  %v9280_v3 = vor.u32 %v10657_v2, %v9279_v54  ;;  %v5543_v25 = vpop.f32.mrf.mxu2 }
 0x211   :  { %5829 = vmatpush.bf16.msra.mxu3 %v9008_v9  ;;  %v9151_v9 = vld [vmem:[%s16307_s1 + $0x12e8] sm:$0xf]  ;;  %v8848_v18 = vor.u32 %v10549_v22, %v8847_v7  ;;  %v10621_v0 = vld [vmem:[%s16307_s1 + $0x12d4] sm:$0xf0] }
 0x212   :  { %5792 = vmatpush.bf16.msra.mxu0 %v8544_v59  ;;  %v9152_v27 = vor.u32 %v10625_v23, %v9151_v9  ;;  %v10545_v59 = vld [vmem:[%s16307_s1 + $0x1074] sm:$0xf0]  ;;  %v5557_v9 = vpop.f32.mrf.mxu3  ;;  %v8815_v23 = vld [vmem:[%s16307_s1 + $0x1048] sm:$0xf] }
 0x213   :  { %5806 = vmatpush.bf16.msra.mxu1 %v8672_v11  ;;  %v10577_v11 = vld [vmem:[%s16307_s1 + $0x1174] sm:$0xf0]  ;;  %v8832_v22 = vor.u32 %v10545_v59, %v8831_v16  ;;  %v9119_v2 = vld [vmem:[%s16307_s1 + $0x12a8] sm:$0xf] }
 0x214   :  { %5816 = vmatpush.bf16.msra.mxu2 %v8864_v28  ;;  %v9135_v28 = vld [vmem:[%s16307_s1 + $0x12c8] sm:$0xf]  ;;  %v10653_v7 = vld [vmem:[%s16307_s1 + $0x13d4] sm:$0xf0]  ;;  %v8960_v14 = vor.u32 %v10577_v11, %v8959_v29 }
 0x215   :  { %5830 = vmatpush.bf16.msra.mxu3 %v8992_v12  ;;  %v9263_v12 = vld [vmem:[%s16307_s1 + $0x13c8] sm:$0xf]  ;;  %v9136_v8 = vor.u32 %v10621_v0, %v9135_v28  ;;  %v10573_v54 = vld [vmem:[%s16307_s1 + $0x1154] sm:$0xf0] }
 0x216   :  { %5793 = vmatpush.bf16.msra.mxu0 %v8528_v20  ;;  %v10541_v20 = vld [vmem:[%s16307_s1 + $0x1054] sm:$0xf0]  ;;  %v8799_v0 = vld [vmem:[%s16307_s1 + $0x1028] sm:$0xf] }
 0x217   :  { %5807 = vmatpush.bf16.msra.mxu1 %v8656_v6  ;;  %v8943_v6 = vld [vmem:[%s16307_s1 + $0x1148] sm:$0xf]  ;;  %v10617_v16 = vld [vmem:[%s16307_s1 + $0x12b4] sm:$0xf0] }
 0x218   :  { %5817 = vmatpush.bf16.msra.mxu2 %v8848_v18  ;;  %v14485_v18 = vpop.f32.mrf.mxu1  ;;  %v10649_v59 = vld [vmem:[%s16307_s1 + $0x13b4] sm:$0xf0]  ;;  %v8944_v11 = vor.u32 %v10573_v54, %v8943_v6  ;;  %v9120_v28 = vor.u32 %v10617_v16, %v9119_v2 }
 0x219   :  { %5831 = vmatpush.bf16.msra.mxu3 %v8976_v49  ;;  %5794 = vmatmul.bf16.vlgmr.msra.gmra.mxu0 %v11811_v38  ;;  %v9264_v49 = vor.u32 %v10653_v7, %v9263_v12  ;;  %16350 = vst [vmem:[#allocation36_spill] sm:$0xff] %v14485_v18  ;;  %v10537_v12 = vld [vmem:[%s16307_s1 + $0x1034] sm:$0xf0]  ;;  %v8927_v7 = vld [vmem:[%s16307_s1 + $0x1128] sm:$0xf] }
 0x21a   :  { %5842 = vmatpush.bf16.msrb.mxu0 %v9152_v27  ;;  %v5544_v27 = vadd.f32 %v5543_v25, %v5530_v53  ;;  %5808 = vmatmul.bf16.vlgmr.msra.gmra.mxu1 %v11821_v46  ;;  %v9247_v53 = vld [vmem:[%s16307_s1 + $0x13a8] sm:$0xf]  ;;  %v10533_v16 = vld [vmem:[%s16307_s1 + $0x1014] sm:$0xf0] }
 0x21b   :  { %5856 = vmatpush.bf16.msrb.mxu1 %v9280_v3  ;;  %v8816_v3 = vor.u32 %v10541_v20, %v8815_v23  ;;  %v9103_v25 = vld [vmem:[%s16307_s1 + $0x1288] sm:$0xf]  ;;  %v10645_v20 = vld [vmem:[%s16307_s1 + $0x1394] sm:$0xf0] }
 0x21c   :  { %5818 = vmatpush.bf16.msra.mxu2 %v8832_v22  ;;  %v5558_v29 = vadd.f32 %v5557_v9, %v5544_v27  ;;  %v9248_v22 = vor.u32 %v10649_v59, %v9247_v53  ;;  %v5571_v9 = vpop.f32.mrf.mxu0  ;;  %v9231_v23 = vld [vmem:[%s16307_s1 + $0x1388] sm:$0xf]  ;;  %v8800_v27 = vor.u32 %v10537_v12, %v8799_v0  ;;  %v10565_v59 = vld [vmem:[%s16307_s1 + $0x1114] sm:$0xf0] }
 0x21d   :  { %5832 = vmatpush.bf16.msra.mxu3 %v8960_v14  ;;  %v10569_v14 = vld [vmem:[%s16307_s1 + $0x1134] sm:$0xf0]  ;;  %v8911_v53 = vld [vmem:[%s16307_s1 + $0x1108] sm:$0xf] }
 0x21e   :  { %5843 = vmatpush.bf16.msrb.mxu0 %v9136_v8  ;;  %v10613_v8 = vld [vmem:[%s16307_s1 + $0x1294] sm:$0xf0]  ;;  %v5572_v6 = vadd.f32 %v5571_v9, %v5558_v29  ;;  %v8928_v54 = vor.u32 %v10569_v14, %v8927_v7  ;;  %v9232_v29 = vor.u32 %v10645_v20, %v9231_v23  ;;  %v9407_v12 = vld [vmem:[%s16307_s1 + $0x14e8] sm:$0xf]  ;;  %v8912_v23 = vor.u32 %v10565_v59, %v8911_v53 }
 0x21f   :  { %5857 = vmatpush.bf16.msrb.mxu1 %v9264_v49  ;;  %v8783_v49 = vld [vmem:[%s16307_s1 + $0x1008] sm:$0xf]  ;;  %v9104_v2 = vor.u32 %v10613_v8, %v9103_v25  ;;  %v10641_v0 = vld [vmem:[%s16307_s1 + $0x1374] sm:$0xf0] }
 0x220   :  { %5819 = vmatpush.bf16.msra.mxu2 %v8816_v3  ;;  %v9087_v3 = vld [vmem:[%s16307_s1 + $0x1268] sm:$0xf]  ;;  %v10689_v7 = vld [vmem:[%s16307_s1 + $0x14f4] sm:$0xf0]  ;;  %v8784_v14 = vor.u32 %v10533_v16, %v8783_v49 }
 0x221   :  { %5833 = vmatpush.bf16.msra.mxu3 %v8944_v11  ;;  %v10609_v11 = vld [vmem:[%s16307_s1 + $0x1274] sm:$0xf0]  ;;  %v9535_v25 = vld [vmem:[%s16307_s1 + $0x15e8] sm:$0xf]  ;;  %v9408_v61 = vor.u32 %v10689_v7, %v9407_v12 }
 0x222   :  { %5844 = vmatpush.bf16.msrb.mxu0 %v9120_v28  ;;  %v9215_v28 = vld [vmem:[%s16307_s1 + $0x1368] sm:$0xf]  ;;  %v10721_v8 = vld [vmem:[%s16307_s1 + $0x15f4] sm:$0xf0]  ;;  %v9088_v20 = vor.u32 %v10609_v11, %v9087_v3 }
 0x223   :  { %5858 = vmatpush.bf16.msrb.mxu1 %v9248_v22  ;;  %v5585_v22 = vpop.f32.mrf.mxu1  ;;  %v9216_v18 = vor.u32 %v10641_v0, %v9215_v28  ;;  %v10605_v49 = vld [vmem:[%s16307_s1 + $0x1254] sm:$0xf0]  ;;  %v9391_v16 = vld [vmem:[%s16307_s1 + $0x14c8] sm:$0xf] }
 0x224   :  { %5820 = vmatpush.bf16.msra.mxu2 %v8800_v27  ;;  %v14563_v9 = vadd.f32 %v5585_v22, %v5572_v6  ;;  %v9071_v27 = vld [vmem:[%s16307_s1 + $0x1248] sm:$0xf]  ;;  %v10637_v6 = vld [vmem:[%s16307_s1 + $0x1354] sm:$0xf0] }
 0x225   :  { %5834 = vmatpush.bf16.msra.mxu3 %v8928_v54  ;;  %v9199_v54 = vld [vmem:[%s16307_s1 + $0x1348] sm:$0xf]  ;;  %v10685_v53 = vld [vmem:[%s16307_s1 + $0x14d4] sm:$0xf0]  ;;  %v9072_v3 = vor.u32 %v10605_v49, %v9071_v27 }
 0x226   :  { %5845 = vmatpush.bf16.msrb.mxu0 %v9104_v2  ;;  %16351 = vst [vmem:[#allocation37_spill] sm:$0xff] %v14563_v9  ;;  %v9536_v2 = vor.u32 %v10721_v8, %v9535_v25  ;;  %v9519_v59 = vld [vmem:[%s16307_s1 + $0x15c8] sm:$0xf]  ;;  %v9200_v11 = vor.u32 %v10637_v6, %v9199_v54  ;;  %v9392_v28 = vor.u32 %v10685_v53, %v9391_v16  ;;  %v10601_v12 = vld [vmem:[%s16307_s1 + $0x1234] sm:$0xf0] }
 0x227   :  { %5859 = vmatpush.bf16.msrb.mxu1 %v9232_v29  ;;  %v10717_v29 = vld [vmem:[%s16307_s1 + $0x15d4] sm:$0xf0]  ;;  %v9055_v0 = vld [vmem:[%s16307_s1 + $0x1228] sm:$0xf] }
 0x228   :  { %5821 = vmatpush.bf16.msra.mxu2 %v8784_v14  ;;  %v9183_v7 = vld [vmem:[%s16307_s1 + $0x1328] sm:$0xf]  ;;  %v9520_v22 = vor.u32 %v10717_v29, %v9519_v59  ;;  %v10681_v14 = vld [vmem:[%s16307_s1 + $0x14b4] sm:$0xf0] }
 0x229   :  { %5835 = vmatpush.bf16.msra.mxu3 %v8912_v23  ;;  %v9503_v25 = vld [vmem:[%s16307_s1 + $0x15a8] sm:$0xf]  ;;  %v10713_v8 = vld [vmem:[%s16307_s1 + $0x15b4] sm:$0xf0]  ;;  %v9056_v23 = vor.u32 %v10601_v12, %v9055_v0 }
 0x22a   :  { %5846 = vmatpush.bf16.msrb.mxu0 %v9088_v20  ;;  %v9039_v20 = vld [vmem:[%s16307_s1 + $0x1208] sm:$0xf]  ;;  %v10597_v54 = vld [vmem:[%s16307_s1 + $0x1214] sm:$0xf0]  ;;  %v9504_v16 = vor.u32 %v10713_v8, %v9503_v25 }
 0x22b   :  { %5860 = vmatpush.bf16.msrb.mxu1 %v9216_v18  ;;  %5822 = vmatmul.bf16.vlgmr.msra.gmra.mxu2 %v12028_v51  ;;  %v9375_v18 = vld [vmem:[%s16307_s1 + $0x14a8] sm:$0xf]  ;;  %v10629_v6 = vld [vmem:[%s16307_s1 + $0x1314] sm:$0xf0]  ;;  %v9040_v0 = vor.u32 %v10597_v54, %v9039_v20 }
 0x22c   :  { %5870 = vmatpush.bf16.msrb.mxu2 %v9408_v61  ;;  %v10633_v61 = vld [vmem:[%s16307_s1 + $0x1334] sm:$0xf0]  ;;  %5836 = vmatmul.bf16.vlgmr.msra.gmra.mxu3 %v12041_v56  ;;  %v9376_v49 = vor.u32 %v10681_v14, %v9375_v18  ;;  %v9359_v53 = vld [vmem:[%s16307_s1 + $0x1488] sm:$0xf] }
 0x22d   :  { %5884 = vmatpush.bf16.msrb.mxu3 %v9536_v2  ;;  %v9184_v27 = vor.u32 %v10633_v61, %v9183_v7  ;;  %v9167_v2 = vld [vmem:[%s16307_s1 + $0x1308] sm:$0xf]  ;;  %v10677_v59 = vld [vmem:[%s16307_s1 + $0x1494] sm:$0xf0] }
 0x22e   :  { %5847 = vmatpush.bf16.msrb.mxu0 %v9072_v3  ;;  %v9487_v29 = vld [vmem:[%s16307_s1 + $0x1588] sm:$0xf]  ;;  %v10709_v3 = vld [vmem:[%s16307_s1 + $0x1594] sm:$0xf0]  ;;  %v9360_v61 = vor.u32 %v10677_v59, %v9359_v53 }
 0x22f   :  { %5861 = vmatpush.bf16.msrb.mxu1 %v9200_v11  ;;  %v9663_v11 = vld [vmem:[%s16307_s1 + $0x16e8] sm:$0xf]  ;;  %v10785_v7 = vld [vmem:[%s16307_s1 + $0x17f4] sm:$0xf0]  ;;  %v9488_v18 = vor.u32 %v10709_v3, %v9487_v29 }
 0x230   :  { %5871 = vmatpush.bf16.msrb.mxu2 %v9392_v28  ;;  %v10753_v28 = vld [vmem:[%s16307_s1 + $0x16f4] sm:$0xf0]  ;;  %v9791_v12 = vld [vmem:[%s16307_s1 + $0x17e8] sm:$0xf] }
 0x231   :  { %5885 = vmatpush.bf16.msrb.mxu3 %v9520_v22  ;;  %v9168_v22 = vor.u32 %v10629_v6, %v9167_v2  ;;  %v9664_v14 = vor.u32 %v10753_v28, %v9663_v11  ;;  %v9343_v25 = vld [vmem:[%s16307_s1 + $0x1468] sm:$0xf]  ;;  %v10673_v8 = vld [vmem:[%s16307_s1 + $0x1474] sm:$0xf0]  ;;  %v9792_v20 = vor.u32 %v10785_v7, %v9791_v12 }
 0x232   :  { %5848 = vmatpush.bf16.msrb.mxu0 %v9056_v23  ;;  %v9471_v23 = vld [vmem:[%s16307_s1 + $0x1568] sm:$0xf]  ;;  %v10749_v54 = vld [vmem:[%s16307_s1 + $0x16d4] sm:$0xf0] }
 0x233   :  { %5862 = vmatpush.bf16.msrb.mxu1 %v9184_v27  ;;  %v10705_v27 = vld [vmem:[%s16307_s1 + $0x1574] sm:$0xf0]  ;;  %v9775_v2 = vld [vmem:[%s16307_s1 + $0x17c8] sm:$0xf] }
 0x234   :  { %5872 = vmatpush.bf16.msrb.mxu2 %v9376_v49  ;;  %v9647_v49 = vld [vmem:[%s16307_s1 + $0x16c8] sm:$0xf]  ;;  %v10781_v6 = vld [vmem:[%s16307_s1 + $0x17d4] sm:$0xf0]  ;;  %v9472_v53 = vor.u32 %v10705_v27, %v9471_v23 }
 0x235   :  { %5886 = vmatpush.bf16.msrb.mxu3 %v9504_v16  ;;  %v9344_v16 = vor.u32 %v10673_v8, %v9343_v25  ;;  %v9648_v59 = vor.u32 %v10749_v54, %v9647_v49  ;;  %v9327_v29 = vld [vmem:[%s16307_s1 + $0x1448] sm:$0xf]  ;;  %v10669_v3 = vld [vmem:[%s16307_s1 + $0x1454] sm:$0xf0]  ;;  %v9776_v28 = vor.u32 %v10781_v6, %v9775_v2 }
 0x236   :  { %5849 = vmatpush.bf16.msrb.mxu0 %v9040_v0  ;;  %v9455_v11 = vld [vmem:[%s16307_s1 + $0x1548] sm:$0xf]  ;;  %v10701_v0 = vld [vmem:[%s16307_s1 + $0x1554] sm:$0xf0] }
 0x237   :  { %5863 = vmatpush.bf16.msrb.mxu1 %v9168_v22  ;;  %v9631_v12 = vld [vmem:[%s16307_s1 + $0x16a8] sm:$0xf]  ;;  %v10745_v7 = vld [vmem:[%s16307_s1 + $0x16b4] sm:$0xf0] }
 0x238   :  { %5873 = vmatpush.bf16.msrb.mxu2 %v9360_v61  ;;  %v9759_v22 = vld [vmem:[%s16307_s1 + $0x17a8] sm:$0xf]  ;;  %v10777_v61 = vld [vmem:[%s16307_s1 + $0x17b4] sm:$0xf0]  ;;  %v9632_v25 = vor.u32 %v10745_v7, %v9631_v12 }
 0x239   :  { %5887 = vmatpush.bf16.msrb.mxu3 %v9488_v18  ;;  %5850 = vmatmul.bf16.vlgmr.msrb.gmra.mxu0 %v12039_v55  ;;  %v9328_v18 = vor.u32 %v10669_v3, %v9327_v29  ;;  %v9311_v8 = vld [vmem:[%s16307_s1 + $0x1428] sm:$0xf]  ;;  %v10665_v23 = vld [vmem:[%s16307_s1 + $0x1434] sm:$0xf0]  ;;  %v9760_v27 = vor.u32 %v10777_v61, %v9759_v22 }
 0x23a   :  { %5898 = vmatpush.bf16.msra.mxu0 %v9664_v14  ;;  %5864 = vmatmul.bf16.vlgmr.msrb.gmra.mxu1 %v12049_v60  ;;  %v9456_v14 = vor.u32 %v10701_v0, %v9455_v11  ;;  %v10697_v49 = vld [vmem:[%s16307_s1 + $0x1534] sm:$0xf0]  ;;  %v9615_v54 = vld [vmem:[%s16307_s1 + $0x1688] sm:$0xf] }
 0x23b   :  { %5912 = vmatpush.bf16.msra.mxu1 %v9792_v20  ;;  %v9439_v20 = vld [vmem:[%s16307_s1 + $0x1528] sm:$0xf]  ;;  %v10741_v2 = vld [vmem:[%s16307_s1 + $0x1694] sm:$0xf0] }
 0x23c   :  { %5874 = vmatpush.bf16.msrb.mxu2 %v9344_v16  ;;  %v9743_v6 = vld [vmem:[%s16307_s1 + $0x1788] sm:$0xf]  ;;  %v10773_v16 = vld [vmem:[%s16307_s1 + $0x1794] sm:$0xf0]  ;;  %v9440_v29 = vor.u32 %v10697_v49, %v9439_v20  ;;  %v9616_v3 = vor.u32 %v10741_v2, %v9615_v54  ;;  %v6849_v20 = vld [vmem:[%s16307_s1 + $0xf8] sm:$0xf0] }
 0x23d   :  { %5888 = vmatpush.bf16.msrb.mxu3 %v9472_v53  ;;  %v9312_v53 = vor.u32 %v10665_v23, %v9311_v8  ;;  %v10661_v11 = vld [vmem:[%s16307_s1 + $0x1414] sm:$0xf0]  ;;  %v9744_v12 = vor.u32 %v10773_v16, %v9743_v6  ;;  %v9599_v7 = vld [vmem:[%s16307_s1 + $0x1668] sm:$0xf]  ;;  %v10047_v23 = vld [vmem:[%s16307_s1 + $0xec] sm:$0xf] }
 0x23e   :  { %5899 = vmatpush.bf16.msra.mxu0 %v9648_v59  ;;  %v9295_v59 = vld [vmem:[%s16307_s1 + $0x1408] sm:$0xf]  ;;  %v10693_v0 = vld [vmem:[%s16307_s1 + $0x1514] sm:$0xf0] }
 0x23f   :  { %5913 = vmatpush.bf16.msra.mxu1 %v9776_v28  ;;  %v9423_v28 = vld [vmem:[%s16307_s1 + $0x1508] sm:$0xf]  ;;  %v10737_v22 = vld [vmem:[%s16307_s1 + $0x1674] sm:$0xf0]  ;;  %v9296_v8 = vor.u32 %v10661_v11, %v9295_v59  ;;  %v6852_v59 = vor.u32 %v10047_v23, %v6849_v20 }
 0x240   :  { %5875 = vmatpush.bf16.msrb.mxu2 %v9328_v18  ;;  %v9727_v61 = vld [vmem:[%s16307_s1 + $0x1768] sm:$0xf]  ;;  %v10769_v18 = vld [vmem:[%s16307_s1 + $0x1774] sm:$0xf0]  ;;  %v9600_v49 = vor.u32 %v10737_v22, %v9599_v7 }
 0x241   :  { %5889 = vmatpush.bf16.msrb.mxu3 %v9456_v14  ;;  %v9855_v14 = vld [vmem:[%s16307_s1 + $0x1868] sm:$0xf]  ;;  %v9728_v54 = vor.u32 %v10769_v18, %v9727_v61  ;;  %v10733_v16 = vld [vmem:[%s16307_s1 + $0x1654] sm:$0xf0] }
 0x242   :  { %5900 = vmatpush.bf16.msra.mxu0 %v9632_v25  ;;  %v10801_v25 = vld [vmem:[%s16307_s1 + $0x1874] sm:$0xf0]  ;;  %v9583_v6 = vld [vmem:[%s16307_s1 + $0x1648] sm:$0xf] }
 0x243   :  { %5914 = vmatpush.bf16.msra.mxu1 %v9760_v27  ;;  %v9424_v27 = vor.u32 %v10693_v0, %v9423_v28  ;;  %v9856_v2 = vor.u32 %v10801_v25, %v9855_v14  ;;  %v10797_v11 = vld [vmem:[%s16307_s1 + $0x1854] sm:$0xf0]  ;;  %v10043_v28 = vld [vmem:[%s16307_s1 + $0xcc] sm:$0xf]  ;;  %v6833_v0 = vld [vmem:[%s16307_s1 + $0xd8] sm:$0xf0] }
 0x244   :  { %5876 = vmatpush.bf16.msrb.mxu2 %v9312_v53  ;;  %v9711_v53 = vld [vmem:[%s16307_s1 + $0x1748] sm:$0xf]  ;;  %v10729_v18 = vld [vmem:[%s16307_s1 + $0x1634] sm:$0xf0]  ;;  %v6836_v25 = vor.u32 %v10043_v28, %v6833_v0  ;;  %v10035_v0 = vld [vmem:[%s16307_s1 + $0x8c] sm:$0xf] }
 0x245   :  { %5890 = vmatpush.bf16.msrb.mxu3 %v9440_v29  ;;  %v10765_v29 = vld [vmem:[%s16307_s1 + $0x1754] sm:$0xf0]  ;;  %v9567_v61 = vld [vmem:[%s16307_s1 + $0x1628] sm:$0xf] }
 0x246   :  { %5901 = vmatpush.bf16.msra.mxu0 %v9616_v3  ;;  %v9839_v3 = vld [vmem:[%s16307_s1 + $0x1848] sm:$0xf]  ;;  %v9712_v7 = vor.u32 %v10765_v29, %v9711_v53  ;;  %v10793_v20 = vld [vmem:[%s16307_s1 + $0x1834] sm:$0xf0] }
 0x247   :  { %5915 = vmatpush.bf16.msra.mxu1 %v9744_v12  ;;  %v9584_v12 = vor.u32 %v10733_v16, %v9583_v6  ;;  %v9840_v22 = vor.u32 %v10797_v11, %v9839_v3  ;;  %v9695_v14 = vld [vmem:[%s16307_s1 + $0x1728] sm:$0xf]  ;;  %v10725_v6 = vld [vmem:[%s16307_s1 + $0x1614] sm:$0xf0] }
 0x248   :  { %5877 = vmatpush.bf16.msrb.mxu2 %v9296_v8  ;;  %v10761_v8 = vld [vmem:[%s16307_s1 + $0x1734] sm:$0xf0]  ;;  %v9823_v23 = vld [vmem:[%s16307_s1 + $0x1828] sm:$0xf] }
 0x249   :  { %5891 = vmatpush.bf16.msrb.mxu3 %v9424_v27  ;;  %v10039_v27 = vld [vmem:[%s16307_s1 + $0xac] sm:$0xf]  ;;  %v9696_v16 = vor.u32 %v10761_v8, %v9695_v14  ;;  %v9824_v53 = vor.u32 %v10793_v20, %v9823_v23  ;;  %v10757_v29 = vld [vmem:[%s16307_s1 + $0x1714] sm:$0xf0]  ;;  %v9807_v3 = vld [vmem:[%s16307_s1 + $0x1808] sm:$0xf] }
 0x24a   :  { %5902 = vmatpush.bf16.msra.mxu0 %v9600_v49  ;;  %v6817_v49 = vld [vmem:[%s16307_s1 + $0xb8] sm:$0xf0]  ;;  %v10789_v28 = vld [vmem:[%s16307_s1 + $0x1814] sm:$0xf0] }
 0x24b   :  { %5916 = vmatpush.bf16.msra.mxu1 %v9728_v54  ;;  %5878 = vmatmul.bf16.vlgmr.msrb.gmra.mxu2 %v12268_v26  ;;  %v9568_v54 = vor.u32 %v10729_v18, %v9567_v61  ;;  %v6820_v11 = vor.u32 %v10039_v27, %v6817_v49  ;;  %v10111_v61 = vld [vmem:[%s16307_s1 + $0x2ec] sm:$0xf]  ;;  %v7105_v14 = vld [vmem:[%s16307_s1 + $0x2f8] sm:$0xf0]  ;;  %v9808_v20 = vor.u32 %v10789_v28, %v9807_v3 }
 0x24c   :  { %5930 = vmatpush.bf16.msra.mxu2 %v9856_v2  ;;  %5892 = vmatmul.bf16.vlgmr.msrb.gmra.mxu3 %v12281_v34  ;;  %v9551_v2 = vld [vmem:[%s16307_s1 + $0x1608] sm:$0xf]  ;;  %v7233_v8 = vld [vmem:[%s16307_s1 + $0x3f8] sm:$0xf0]  ;;  %v10139_v3 = vld [vmem:[%s16307_s1 + $0x3cc] sm:$0xf] }
 0x24d   :  { %5940 = vmatpush.bf16.msra.mxu3 %v6852_v59  ;;  %v9679_v59 = vld [vmem:[%s16307_s1 + $0x1708] sm:$0xf]  ;;  %v9552_v18 = vor.u32 %v10725_v6, %v9551_v2  ;;  %v6785_v2 = vld [vmem:[%s16307_s1 + $0x78] sm:$0xf0]  ;;  %v7108_v6 = vor.u32 %v10111_v61, %v7105_v14 }
 0x24e   :  { %5903 = vmatpush.bf16.msra.mxu0 %v9584_v12  ;;  %v6801_v12 = vld [vmem:[%s16307_s1 + $0x98] sm:$0xf0]  ;;  %v9680_v23 = vor.u32 %v10757_v29, %v9679_v59  ;;  %v10107_v59 = vld [vmem:[%s16307_s1 + $0x2cc] sm:$0xf] }
 0x24f   :  { %5917 = vmatpush.bf16.msra.mxu1 %v9712_v7  ;;  %v10079_v7 = vld [vmem:[%s16307_s1 + $0x1ec] sm:$0xf]  ;;  %v6804_v27 = vor.u32 %v10035_v0, %v6801_v12  ;;  %v7089_v29 = vld [vmem:[%s16307_s1 + $0x2d8] sm:$0xf0] }
 0x250   :  { %5931 = vmatpush.bf16.msra.mxu2 %v9840_v22  ;;  %v6977_v22 = vld [vmem:[%s16307_s1 + $0x1f8] sm:$0xf0]  ;;  %v10027_v12 = vld [vmem:[%s16307_s1 + $0x4c] sm:$0xf] }
 0x251   :  { %5941 = vmatpush.bf16.msra.mxu3 %v6836_v25  ;;  %v10143_v25 = vld [vmem:[%s16307_s1 + $0x3ec] sm:$0xf]  ;;  %v6980_v49 = vor.u32 %v10079_v7, %v6977_v22  ;;  %v6769_v7 = vld [vmem:[%s16307_s1 + $0x58] sm:$0xf0]  ;;  %v7092_v22 = vor.u32 %v10107_v59, %v7089_v29 }
 0x252   :  { %5904 = vmatpush.bf16.msra.mxu0 %v9568_v54  ;;  %v10031_v54 = vld [vmem:[%s16307_s1 + $0x6c] sm:$0xf]  ;;  %v7236_v9 = vor.u32 %v10143_v25, %v7233_v8  ;;  %v6945_v14 = vld [vmem:[%s16307_s1 + $0x1b8] sm:$0xf0] }
 0x253   :  { %5918 = vmatpush.bf16.msra.mxu1 %v9696_v16  ;;  %v10075_v16 = vld [vmem:[%s16307_s1 + $0x1cc] sm:$0xf]  ;;  %v6788_v28 = vor.u32 %v10031_v54, %v6785_v2  ;;  %v6753_v54 = vld [vmem:[%s16307_s1 + $0x38] sm:$0xf0] }
 0x254   :  { %5932 = vmatpush.bf16.msra.mxu2 %v9824_v53  ;;  %v6961_v53 = vld [vmem:[%s16307_s1 + $0x1d8] sm:$0xf0]  ;;  %v10103_v25 = vld [vmem:[%s16307_s1 + $0x2ac] sm:$0xf] }
 0x255   :  { %5942 = vmatpush.bf16.msra.mxu3 %v6820_v11  ;;  %v7217_v11 = vld [vmem:[%s16307_s1 + $0x3d8] sm:$0xf0]  ;;  %v6964_v0 = vor.u32 %v10075_v16, %v6961_v53  ;;  %v10135_v8 = vld [vmem:[%s16307_s1 + $0x3ac] sm:$0xf] }
 0x256   :  { %5905 = vmatpush.bf16.msra.mxu0 %v9552_v18  ;;  %v7220_v61 = vor.u32 %v10139_v3, %v7217_v11  ;;  %v10071_v18 = vld [vmem:[%s16307_s1 + $0x1ac] sm:$0xf]  ;;  %v6929_v53 = vld [vmem:[%s16307_s1 + $0x198] sm:$0xf0] }
 0x257   :  { %5919 = vmatpush.bf16.msra.mxu1 %v9680_v23  ;;  %v7201_v23 = vld [vmem:[%s16307_s1 + $0x3b8] sm:$0xf0]  ;;  %v10067_v16 = vld [vmem:[%s16307_s1 + $0x18c] sm:$0xf] }
 0x258   :  { %5933 = vmatpush.bf16.msra.mxu2 %v9808_v20  ;;  %v6772_v20 = vor.u32 %v10027_v12, %v6769_v7  ;;  %v10099_v59 = vld [vmem:[%s16307_s1 + $0x28c] sm:$0xf]  ;;  %v7057_v29 = vld [vmem:[%s16307_s1 + $0x298] sm:$0xf0] }
 0x259   :  { %5943 = vmatpush.bf16.msra.mxu3 %v6804_v27  ;;  %5906 = vmatmul.bf16.vlgmr.msra.gmra.mxu0 %v12279_v33  ;;  %v6948_v27 = vor.u32 %v10071_v18, %v6945_v14  ;;  %v10131_v3 = vld [vmem:[%s16307_s1 + $0x38c] sm:$0xf]  ;;  %v7185_v11 = vld [vmem:[%s16307_s1 + $0x398] sm:$0xf0] }
 0x25a   :  { %5954 = vmatpush.bf16.msrb.mxu0 %v6980_v49  ;;  %5920 = vmatmul.bf16.vlgmr.msra.gmra.mxu1 %v12291_v48  ;;  %v10023_v49 = vld [vmem:[%s16307_s1 + $0x2c] sm:$0xf]  ;;  %v6737_v7 = vld [vmem:[%s16307_s1 + $0x18] sm:$0xf0] }
 0x25b   :  { %5968 = vmatpush.bf16.msrb.mxu1 %v7108_v6  ;;  %v7204_v6 = vor.u32 %v10135_v8, %v7201_v23  ;;  %9863 = vmatmul.msk.bf16.vlgmr.msra.gmra.mxu2 %vm4886_vm0, %v12401_v19  ;;  %v10019_v12 = vld [vmem:[%s16307_s1 + $0xc] sm:$0xf]  ;;  %v6913_v14 = vld [vmem:[%s16307_s1 + $0x178] sm:$0xf0] }
 0x25c   :  { %5982 = vmatpush.bf16.msrb.mxu2 %v7236_v9  ;;  %v7073_v9 = vld [vmem:[%s16307_s1 + $0x2b8] sm:$0xf0]  ;;  %v10063_v18 = vld [vmem:[%s16307_s1 + $0x16c] sm:$0xf] }
 0x25d   :  { %5944 = vmatpush.bf16.msra.mxu3 %v6788_v28  ;;  %v7076_v2 = vor.u32 %v10103_v25, %v7073_v9  ;;  %v6756_v28 = vor.u32 %v10023_v49, %v6753_v54  ;;  %v10095_v25 = vld [vmem:[%s16307_s1 + $0x26c] sm:$0xf]  ;;  %v7041_v9 = vld [vmem:[%s16307_s1 + $0x278] sm:$0xf0]  ;;  %v6740_v49 = vor.u32 %v10019_v12, %v6737_v7  ;;  %v6916_v54 = vor.u32 %v10063_v18, %v6913_v14 }
 0x25e   :  { %5955 = vmatpush.bf16.msrb.mxu0 %v6964_v0  ;;  %v6932_v0 = vor.u32 %v10067_v16, %v6929_v53  ;;  %v10127_v8 = vld [vmem:[%s16307_s1 + $0x36c] sm:$0xf]  ;;  %v7169_v23 = vld [vmem:[%s16307_s1 + $0x378] sm:$0xf0] }
 0x25f   :  { %5969 = vmatpush.bf16.msrb.mxu1 %v7092_v22  ;;  %v7060_v22 = vor.u32 %v10099_v59, %v7057_v29  ;;  %v10059_v16 = vld [vmem:[%s16307_s1 + $0x14c] sm:$0xf]  ;;  %v6897_v53 = vld [vmem:[%s16307_s1 + $0x158] sm:$0xf0] }
 0x260   :  { %5983 = vmatpush.bf16.msrb.mxu2 %v7220_v61  ;;  %v7188_v61 = vor.u32 %v10131_v3, %v7185_v11  ;;  %v10091_v59 = vld [vmem:[%s16307_s1 + $0x24c] sm:$0xf]  ;;  %v7025_v3 = vld [vmem:[%s16307_s1 + $0x258] sm:$0xf0]  ;;  %v6900_v7 = vor.u32 %v10059_v16, %v6897_v53 }
 0x261   :  { %5945 = vmatpush.bf16.msra.mxu3 %v6772_v20  ;;  %v10175_v20 = vld [vmem:[%s16307_s1 + $0x4ec] sm:$0xf]  ;;  %v7345_v12 = vld [vmem:[%s16307_s1 + $0x4d8] sm:$0xf0] }
 0x262   :  { %5956 = vmatpush.bf16.msrb.mxu0 %v6948_v27  ;;  %v7361_v27 = vld [vmem:[%s16307_s1 + $0x4f8] sm:$0xf0]  ;;  %v10123_v11 = vld [vmem:[%s16307_s1 + $0x34c] sm:$0xf] }
 0x263   :  { %5970 = vmatpush.bf16.msrb.mxu1 %v7076_v2  ;;  %v7044_v2 = vor.u32 %v10095_v25, %v7041_v9  ;;  %v7364_v29 = vor.u32 %v10175_v20, %v7361_v27  ;;  %v10055_v18 = vld [vmem:[%s16307_s1 + $0x12c] sm:$0xf]  ;;  %v6881_v14 = vld [vmem:[%s16307_s1 + $0x138] sm:$0xf0] }
 0x264   :  { %5984 = vmatpush.bf16.msrb.mxu2 %v7204_v6  ;;  %v7172_v6 = vor.u32 %v10127_v8, %v7169_v23  ;;  %v10087_v25 = vld [vmem:[%s16307_s1 + $0x22c] sm:$0xf]  ;;  %v7009_v8 = vld [vmem:[%s16307_s1 + $0x238] sm:$0xf0] }
 0x265   :  { %5946 = vmatpush.bf16.msra.mxu3 %v6756_v28  ;;  %v7153_v28 = vld [vmem:[%s16307_s1 + $0x358] sm:$0xf0]  ;;  %v10119_v23 = vld [vmem:[%s16307_s1 + $0x32c] sm:$0xf]  ;;  %v7012_v16 = vor.u32 %v10087_v25, %v7009_v8 }
 0x266   :  { %5957 = vmatpush.bf16.msrb.mxu0 %v6932_v0  ;;  %v10171_v0 = vld [vmem:[%s16307_s1 + $0x4cc] sm:$0xf]  ;;  %v7137_v20 = vld [vmem:[%s16307_s1 + $0x338] sm:$0xf0] }
 0x267   :  { %5971 = vmatpush.bf16.msrb.mxu1 %v7060_v22  ;;  %v7028_v22 = vor.u32 %v10091_v59, %v7025_v3  ;;  %v7348_v9 = vor.u32 %v10171_v0, %v7345_v12  ;;  %v10167_v27 = vld [vmem:[%s16307_s1 + $0x4ac] sm:$0xf]  ;;  %v7140_v53 = vor.u32 %v10119_v23, %v7137_v20  ;;  %v7313_v0 = vld [vmem:[%s16307_s1 + $0x498] sm:$0xf0] }
 0x268   :  { %5985 = vmatpush.bf16.msrb.mxu2 %v7188_v61  ;;  %v7156_v61 = vor.u32 %v10123_v11, %v7153_v28  ;;  %v10083_v59 = vld [vmem:[%s16307_s1 + $0x20c] sm:$0xf]  ;;  %v7121_v11 = vld [vmem:[%s16307_s1 + $0x318] sm:$0xf0] }
 0x269   :  { %5947 = vmatpush.bf16.msra.mxu3 %v6740_v49  ;;  %v7329_v49 = vld [vmem:[%s16307_s1 + $0x4b8] sm:$0xf0]  ;;  %v10163_v28 = vld [vmem:[%s16307_s1 + $0x48c] sm:$0xf] }
 0x26a   :  { %5958 = vmatpush.bf16.msrb.mxu0 %v6916_v54  ;;  %v6884_v54 = vor.u32 %v10055_v18, %v6881_v14  ;;  %v7332_v3 = vor.u32 %v10167_v27, %v7329_v49  ;;  %v10207_v12 = vld [vmem:[%s16307_s1 + $0x5ec] sm:$0xf]  ;;  %v7617_v18 = vld [vmem:[%s16307_s1 + $0x6f8] sm:$0xf0]  ;;  %v7316_v23 = vor.u32 %v10163_v28, %v7313_v0 }
 0x26b   :  { %5972 = vmatpush.bf16.msrb.mxu1 %v7044_v2  ;;  %v10051_v2 = vld [vmem:[%s16307_s1 + $0x10c] sm:$0xf]  ;;  %v7745_v25 = vld [vmem:[%s16307_s1 + $0x7f8] sm:$0xf0] }
 0x26c   :  { %5986 = vmatpush.bf16.msrb.mxu2 %v7172_v6  ;;  %5948 = vmatmul.bf16.vlgmr.msra.gmra.mxu3 %v11122_v58  ;;  %v6865_v6 = vld [vmem:[%s16307_s1 + $0x118] sm:$0xf0]  ;;  %v10271_v14 = vld [vmem:[%s16307_s1 + $0x7ec] sm:$0xf] }
 0x26d   :  { %5996 = vmatpush.bf16.msrb.mxu3 %v7364_v29  ;;  %v6993_v58 = vld [vmem:[%s16307_s1 + $0x218] sm:$0xf0]  ;;  %v10115_v29 = vld [vmem:[%s16307_s1 + $0x30c] sm:$0xf] }
 0x26e   :  { %5959 = vmatpush.bf16.msrb.mxu0 %v6900_v7  ;;  %v7489_v7 = vld [vmem:[%s16307_s1 + $0x5f8] sm:$0xf0]  ;;  %v7124_v8 = vor.u32 %v10115_v29, %v7121_v11  ;;  %v10159_v27 = vld [vmem:[%s16307_s1 + $0x46c] sm:$0xf] }
 0x26f   :  { %5973 = vmatpush.bf16.msrb.mxu1 %v7028_v22  ;;  %v10239_v22 = vld [vmem:[%s16307_s1 + $0x6ec] sm:$0xf]  ;;  %v7492_v20 = vor.u32 %v10207_v12, %v7489_v7  ;;  %v7297_v49 = vld [vmem:[%s16307_s1 + $0x478] sm:$0xf0] }
 0x270   :  { %5987 = vmatpush.bf16.msrb.mxu2 %v7156_v61  ;;  %v6868_v61 = vor.u32 %v10051_v2, %v6865_v6  ;;  %v7748_v2 = vor.u32 %v10271_v14, %v7745_v25  ;;  %v10203_v6 = vld [vmem:[%s16307_s1 + $0x5cc] sm:$0xf]  ;;  %v7729_v29 = vld [vmem:[%s16307_s1 + $0x7d8] sm:$0xf0] }
 0x271   :  { %5997 = vmatpush.bf16.msrb.mxu3 %v7348_v9  ;;  %v6996_v9 = vor.u32 %v10083_v59, %v6993_v58  ;;  %v7601_v59 = vld [vmem:[%s16307_s1 + $0x6d8] sm:$0xf0]  ;;  %v10267_v58 = vld [vmem:[%s16307_s1 + $0x7cc] sm:$0xf] }
 0x272   :  { %5960 = vmatpush.bf16.msrb.mxu0 %v6884_v54  ;;  %v7620_v54 = vor.u32 %v10239_v22, %v7617_v18  ;;  %v10155_v28 = vld [vmem:[%s16307_s1 + $0x44c] sm:$0xf]  ;;  %v7281_v0 = vld [vmem:[%s16307_s1 + $0x458] sm:$0xf0]  ;;  %v7732_v7 = vor.u32 %v10267_v58, %v7729_v29 }
 0x273   :  { %5974 = vmatpush.bf16.msrb.mxu1 %v7012_v16  ;;  %v7473_v16 = vld [vmem:[%s16307_s1 + $0x5d8] sm:$0xf0]  ;;  %v10199_v22 = vld [vmem:[%s16307_s1 + $0x5ac] sm:$0xf] }
 0x274   :  { %5988 = vmatpush.bf16.msrb.mxu2 %v7140_v53  ;;  %v10235_v53 = vld [vmem:[%s16307_s1 + $0x6cc] sm:$0xf]  ;;  %v7476_v11 = vor.u32 %v10203_v6, %v7473_v16  ;;  %v7585_v14 = vld [vmem:[%s16307_s1 + $0x6b8] sm:$0xf0] }
 0x275   :  { %5998 = vmatpush.bf16.msrb.mxu3 %v7332_v3  ;;  %v7300_v3 = vor.u32 %v10159_v27, %v7297_v49  ;;  %v7604_v12 = vor.u32 %v10235_v53, %v7601_v59  ;;  %v10231_v18 = vld [vmem:[%s16307_s1 + $0x6ac] sm:$0xf]  ;;  %v7265_v27 = vld [vmem:[%s16307_s1 + $0x438] sm:$0xf0] }
 0x276   :  { %5961 = vmatpush.bf16.msrb.mxu0 %v6868_v61  ;;  %v7457_v61 = vld [vmem:[%s16307_s1 + $0x5b8] sm:$0xf0]  ;;  %v10263_v25 = vld [vmem:[%s16307_s1 + $0x7ac] sm:$0xf]  ;;  %v7588_v49 = vor.u32 %v10231_v18, %v7585_v14 }
 0x277   :  { %5975 = vmatpush.bf16.msrb.mxu1 %v6996_v9  ;;  %v7713_v9 = vld [vmem:[%s16307_s1 + $0x7b8] sm:$0xf0]  ;;  %v10259_v6 = vld [vmem:[%s16307_s1 + $0x78c] sm:$0xf] }
 0x278   :  { %5989 = vmatpush.bf16.msrb.mxu2 %v7124_v8  ;;  %v7284_v8 = vor.u32 %v10155_v28, %v7281_v0  ;;  %v7697_v16 = vld [vmem:[%s16307_s1 + $0x798] sm:$0xf0]  ;;  %v10147_v58 = vld [vmem:[%s16307_s1 + $0x40c] sm:$0xf] }
 0x279   :  { %5999 = vmatpush.bf16.msrb.mxu3 %v7316_v23  ;;  %5962 = vmatmul.bf16.vlgmr.msrb.gmra.mxu0 %v11158_v10  ;;  %v7460_v23 = vor.u32 %v10199_v22, %v7457_v61  ;;  %v7441_v10 = vld [vmem:[%s16307_s1 + $0x598] sm:$0xf0]  ;;  %v10191_v28 = vld [vmem:[%s16307_s1 + $0x56c] sm:$0xf] }
 0x27a   :  { %6010 = vmatpush.bf16.msra.mxu0 %v7492_v20  ;;  %5976 = vmatmul.bf16.vlgmr.msrb.gmra.mxu1 %v11136_v1  ;;  %v10151_v20 = vld [vmem:[%s16307_s1 + $0x42c] sm:$0xf]  ;;  %v7249_v29 = vld [vmem:[%s16307_s1 + $0x418] sm:$0xf0] }
 0x27b   :  { %6024 = vmatpush.bf16.msra.mxu1 %v7620_v54  ;;  %5990 = vmatmul.bf16.vlgmr.msrb.gmra.mxu2 %v11172_v17  ;;  %v7716_v17 = vor.u32 %v10263_v25, %v7713_v9  ;;  %v10195_v1 = vld [vmem:[%s16307_s1 + $0x58c] sm:$0xf]  ;;  %v7268_v53 = vor.u32 %v10151_v20, %v7265_v27  ;;  %v7425_v0 = vld [vmem:[%s16307_s1 + $0x578] sm:$0xf0]  ;;  %v7252_v25 = vor.u32 %v10147_v58, %v7249_v29 }
 0x27c   :  { %6038 = vmatpush.bf16.msra.mxu2 %v7748_v2  ;;  %v10227_v54 = vld [vmem:[%s16307_s1 + $0x68c] sm:$0xf]  ;;  %v7569_v2 = vld [vmem:[%s16307_s1 + $0x698] sm:$0xf0]  ;;  %v7444_v59 = vor.u32 %v10195_v1, %v7441_v10  ;;  %v7428_v9 = vor.u32 %v10191_v28, %v7425_v0 }
 0x27d   :  { %6000 = vmatpush.bf16.msrb.mxu3 %v7300_v3  ;;  %v7572_v3 = vor.u32 %v10227_v54, %v7569_v2  ;;  %v10255_v22 = vld [vmem:[%s16307_s1 + $0x76c] sm:$0xf]  ;;  %v7681_v61 = vld [vmem:[%s16307_s1 + $0x778] sm:$0xf0] }
 0x27e   :  { %6011 = vmatpush.bf16.msra.mxu0 %v7476_v11  ;;  %v7700_v11 = vor.u32 %v10259_v6, %v7697_v16  ;;  %v10303_v18 = vld [vmem:[%s16307_s1 + $0x8ec] sm:$0xf]  ;;  %v7873_v14 = vld [vmem:[%s16307_s1 + $0x8f8] sm:$0xf0] }
 0x27f   :  { %6025 = vmatpush.bf16.msra.mxu1 %v7604_v12  ;;  %v10223_v12 = vld [vmem:[%s16307_s1 + $0x66c] sm:$0xf]  ;;  %v7409_v27 = vld [vmem:[%s16307_s1 + $0x558] sm:$0xf0] }
 0x280   :  { %6039 = vmatpush.bf16.msra.mxu2 %v7732_v7  ;;  %v7553_v7 = vld [vmem:[%s16307_s1 + $0x678] sm:$0xf0]  ;;  %v10187_v20 = vld [vmem:[%s16307_s1 + $0x54c] sm:$0xf] }
 0x281   :  { %6001 = vmatpush.bf16.msrb.mxu3 %v7284_v8  ;;  %v7556_v8 = vor.u32 %v10223_v12, %v7553_v7  ;;  %v7537_v1 = vld [vmem:[%s16307_s1 + $0x658] sm:$0xf0]  ;;  %v10251_v10 = vld [vmem:[%s16307_s1 + $0x74c] sm:$0xf]  ;;  %v7412_v16 = vor.u32 %v10187_v20, %v7409_v27 }
 0x282   :  { %6012 = vmatpush.bf16.msra.mxu0 %v7460_v23  ;;  %v7684_v23 = vor.u32 %v10255_v22, %v7681_v61  ;;  %v7665_v54 = vld [vmem:[%s16307_s1 + $0x758] sm:$0xf0]  ;;  %v10299_v2 = vld [vmem:[%s16307_s1 + $0x8cc] sm:$0xf] }
 0x283   :  { %6026 = vmatpush.bf16.msra.mxu1 %v7588_v49  ;;  %v10219_v49 = vld [vmem:[%s16307_s1 + $0x64c] sm:$0xf]  ;;  %v7857_v6 = vld [vmem:[%s16307_s1 + $0x8d8] sm:$0xf0] }
 0x284   :  { %6040 = vmatpush.bf16.msra.mxu2 %v7716_v17  ;;  %v7876_v17 = vor.u32 %v10303_v18, %v7873_v14  ;;  %v10183_v58 = vld [vmem:[%s16307_s1 + $0x52c] sm:$0xf]  ;;  %v7393_v29 = vld [vmem:[%s16307_s1 + $0x538] sm:$0xf0] }
 0x285   :  { %6002 = vmatpush.bf16.msrb.mxu3 %v7268_v53  ;;  %v7540_v53 = vor.u32 %v10219_v49, %v7537_v1  ;;  %v7521_v28 = vld [vmem:[%s16307_s1 + $0x638] sm:$0xf0]  ;;  %v10247_v0 = vld [vmem:[%s16307_s1 + $0x72c] sm:$0xf]  ;;  %v7396_v61 = vor.u32 %v10183_v58, %v7393_v29 }
 0x286   :  { %6013 = vmatpush.bf16.msra.mxu0 %v7444_v59  ;;  %v7668_v59 = vor.u32 %v10251_v10, %v7665_v54  ;;  %v7649_v12 = vld [vmem:[%s16307_s1 + $0x738] sm:$0xf0]  ;;  %v10295_v7 = vld [vmem:[%s16307_s1 + $0x8ac] sm:$0xf] }
 0x287   :  { %6027 = vmatpush.bf16.msra.mxu1 %v7572_v3  ;;  %v10215_v3 = vld [vmem:[%s16307_s1 + $0x62c] sm:$0xf]  ;;  %v7841_v22 = vld [vmem:[%s16307_s1 + $0x8b8] sm:$0xf0] }
 0x288   :  { %6041 = vmatpush.bf16.msra.mxu2 %v7700_v11  ;;  %v7860_v11 = vor.u32 %v10299_v2, %v7857_v6  ;;  %v10179_v18 = vld [vmem:[%s16307_s1 + $0x50c] sm:$0xf]  ;;  %v7377_v14 = vld [vmem:[%s16307_s1 + $0x518] sm:$0xf0]  ;;  %v7844_v20 = vor.u32 %v10295_v7, %v7841_v22 }
 0x289   :  { %6003 = vmatpush.bf16.msrb.mxu3 %v7252_v25  ;;  %v7652_v25 = vor.u32 %v10247_v0, %v7649_v12  ;;  %v7633_v27 = vld [vmem:[%s16307_s1 + $0x718] sm:$0xf0]  ;;  %v10291_v49 = vld [vmem:[%s16307_s1 + $0x88c] sm:$0xf]  ;;  %v7380_v2 = vor.u32 %v10179_v18, %v7377_v14 }
 0x28a   :  { %6014 = vmatpush.bf16.msra.mxu0 %v7428_v9  ;;  %v10211_v9 = vld [vmem:[%s16307_s1 + $0x60c] sm:$0xf]  ;;  %v8001_v10 = vld [vmem:[%s16307_s1 + $0x9f8] sm:$0xf0] }
 0x28b   :  { %6028 = vmatpush.bf16.msra.mxu1 %v7556_v8  ;;  %v7505_v8 = vld [vmem:[%s16307_s1 + $0x618] sm:$0xf0]  ;;  %v10335_v1 = vld [vmem:[%s16307_s1 + $0x9ec] sm:$0xf] }
 0x28c   :  { %6042 = vmatpush.bf16.msra.mxu2 %v7684_v23  ;;  %6004 = vmatmul.bf16.vlgmr.msrb.gmra.mxu3 %v11344_v39  ;;  %v7524_v39 = vor.u32 %v10215_v3, %v7521_v28  ;;  %v10243_v23 = vld [vmem:[%s16307_s1 + $0x70c] sm:$0xf]  ;;  %v8129_v6 = vld [vmem:[%s16307_s1 + $0xaf8] sm:$0xf0]  ;;  %v8004_v3 = vor.u32 %v10335_v1, %v8001_v10 }
 0x28d   :  { %6052 = vmatpush.bf16.msra.mxu3 %v7876_v17  ;;  %v7825_v17 = vld [vmem:[%s16307_s1 + $0x898] sm:$0xf0]  ;;  %v10367_v54 = vld [vmem:[%s16307_s1 + $0xaec] sm:$0xf]  ;;  %v7636_v58 = vor.u32 %v10243_v23, %v7633_v27 }
 0x28e   :  { %6015 = vmatpush.bf16.msra.mxu0 %v7412_v16  ;;  %v10399_v16 = vld [vmem:[%s16307_s1 + $0xbec] sm:$0xf]  ;;  %v7828_v29 = vor.u32 %v10291_v49, %v7825_v17  ;;  %v7809_v28 = vld [vmem:[%s16307_s1 + $0x878] sm:$0xf0]  ;;  %v8132_v0 = vor.u32 %v10367_v54, %v8129_v6 }
 0x28f   :  { %6029 = vmatpush.bf16.msra.mxu1 %v7540_v53  ;;  %v8257_v53 = vld [vmem:[%s16307_s1 + $0xbf8] sm:$0xf0]  ;;  %v10331_v7 = vld [vmem:[%s16307_s1 + $0x9cc] sm:$0xf] }
 0x290   :  { %6043 = vmatpush.bf16.msra.mxu2 %v7668_v59  ;;  %v7508_v59 = vor.u32 %v10211_v9, %v7505_v8  ;;  %v8260_v12 = vor.u32 %v10399_v16, %v8257_v53  ;;  %v7985_v22 = vld [vmem:[%s16307_s1 + $0x9d8] sm:$0xf0]  ;;  %v10395_v14 = vld [vmem:[%s16307_s1 + $0xbcc] sm:$0xf] }
 0x291   :  { %6053 = vmatpush.bf16.msra.mxu3 %v7860_v11  ;;  %v10287_v11 = vld [vmem:[%s16307_s1 + $0x86c] sm:$0xf]  ;;  %v8113_v18 = vld [vmem:[%s16307_s1 + $0xad8] sm:$0xf0]  ;;  %v7988_v9 = vor.u32 %v10331_v7, %v7985_v22 }
 0x292   :  { %6016 = vmatpush.bf16.msra.mxu0 %v7396_v61  ;;  %v10363_v61 = vld [vmem:[%s16307_s1 + $0xacc] sm:$0xf]  ;;  %v7793_v23 = vld [vmem:[%s16307_s1 + $0x858] sm:$0xf0] }
 0x293   :  { %6030 = vmatpush.bf16.msra.mxu1 %v7524_v39  ;;  %v8241_v39 = vld [vmem:[%s16307_s1 + $0xbd8] sm:$0xf0]  ;;  %v10283_v8 = vld [vmem:[%s16307_s1 + $0x84c] sm:$0xf] }
 0x294   :  { %6044 = vmatpush.bf16.msra.mxu2 %v7652_v25  ;;  %v7812_v25 = vor.u32 %v10287_v11, %v7809_v28  ;;  %v8244_v27 = vor.u32 %v10395_v14, %v8241_v39  ;;  %v10327_v49 = vld [vmem:[%s16307_s1 + $0x9ac] sm:$0xf]  ;;  %v7969_v17 = vld [vmem:[%s16307_s1 + $0x9b8] sm:$0xf0]  ;;  %v7796_v6 = vor.u32 %v10283_v8, %v7793_v23 }
 0x295   :  { %6054 = vmatpush.bf16.msra.mxu3 %v7844_v20  ;;  %v8116_v20 = vor.u32 %v10363_v61, %v8113_v18  ;;  %v10359_v1 = vld [vmem:[%s16307_s1 + $0xaac] sm:$0xf]  ;;  %v8097_v10 = vld [vmem:[%s16307_s1 + $0xab8] sm:$0xf0]  ;;  %v15327_v61 = vpop.f32.mrf.mxu2 }
 0x296   :  { %6017 = vmatpush.bf16.msra.mxu0 %v7380_v2  ;;  %v10391_v54 = vld [vmem:[%s16307_s1 + $0xbac] sm:$0xf]  ;;  %v8225_v2 = vld [vmem:[%s16307_s1 + $0xbb8] sm:$0xf0]  ;;  %v8100_v53 = vor.u32 %v10359_v1, %v8097_v10  ;;  %16352 = vst [vmem:[#allocation38_spill] sm:$0xff] %v15327_v61 }
 0x297   :  { %6031 = vmatpush.bf16.msra.mxu1 %v7508_v59  ;;  %v7777_v16 = vld [vmem:[%s16307_s1 + $0x838] sm:$0xf0]  ;;  %v8228_v59 = vor.u32 %v10391_v54, %v8225_v2  ;;  %v10387_v11 = vld [vmem:[%s16307_s1 + $0xb8c] sm:$0xf] }
 0x298   :  { %6045 = vmatpush.bf16.msra.mxu2 %v7636_v58  ;;  %v7953_v58 = vld [vmem:[%s16307_s1 + $0x998] sm:$0xf0]  ;;  %v10275_v7 = vld [vmem:[%s16307_s1 + $0x80c] sm:$0xf] }
 0x299   :  { %6055 = vmatpush.bf16.msra.mxu3 %v7828_v29  ;;  %6018 = vmatmul.bf16.vlgmr.msra.gmra.mxu0 %v11357_v44  ;;  %v7972_v44 = vor.u32 %v10327_v49, %v7969_v17  ;;  %v10355_v29 = vld [vmem:[%s16307_s1 + $0xa8c] sm:$0xf]  ;;  %v8209_v28 = vld [vmem:[%s16307_s1 + $0xb98] sm:$0xf0] }
 0x29a   :  { %6066 = vmatpush.bf16.msrb.mxu0 %v8004_v3  ;;  %6032 = vmatmul.bf16.vlgmr.msra.gmra.mxu1 %v11355_v43  ;;  %v10323_v43 = vld [vmem:[%s16307_s1 + $0x98c] sm:$0xf]  ;;  %v8081_v3 = vld [vmem:[%s16307_s1 + $0xa98] sm:$0xf0]  ;;  %v8212_v14 = vor.u32 %v10387_v11, %v8209_v28 }
 0x29b   :  { %6080 = vmatpush.bf16.msrb.mxu1 %v8132_v0  ;;  %6046 = vmatmul.bf16.vlgmr.msra.gmra.mxu2 %v11365_v47  ;;  %v10279_v47 = vld [vmem:[%s16307_s1 + $0x82c] sm:$0xf]  ;;  %v7761_v22 = vld [vmem:[%s16307_s1 + $0x818] sm:$0xf0]  ;;  %v8084_v18 = vor.u32 %v10355_v29, %v8081_v3 }
 0x29c   :  { %6094 = vmatpush.bf16.msrb.mxu2 %v8260_v12  ;;  %v7780_v0 = vor.u32 %v10279_v47, %v7777_v16  ;;  %v7956_v12 = vor.u32 %v10323_v43, %v7953_v58  ;;  %v10319_v39 = vld [vmem:[%s16307_s1 + $0x96c] sm:$0xf]  ;;  %v8065_v8 = vld [vmem:[%s16307_s1 + $0xa78] sm:$0xf0]  ;;  %v7764_v17 = vor.u32 %v10275_v7, %v7761_v22 }
 0x29d   :  { %6056 = vmatpush.bf16.msra.mxu3 %v7812_v25  ;;  %v7937_v25 = vld [vmem:[%s16307_s1 + $0x978] sm:$0xf0]  ;;  %v10383_v23 = vld [vmem:[%s16307_s1 + $0xb6c] sm:$0xf]  ;;  %v15377_v3 = vpop.f32.mrf.mxu2 }
 0x29e   :  { %6067 = vmatpush.bf16.msrb.mxu0 %v7988_v9  ;;  %v10351_v9 = vld [vmem:[%s16307_s1 + $0xa6c] sm:$0xf]  ;;  %v8385_v49 = vld [vmem:[%s16307_s1 + $0xcf8] sm:$0xf0]  ;;  %v7940_v1 = vor.u32 %v10319_v39, %v7937_v25 }
 0x29f   :  { %6081 = vmatpush.bf16.msrb.mxu1 %v8116_v20  ;;  %v8193_v20 = vld [vmem:[%s16307_s1 + $0xb78] sm:$0xf0]  ;;  %v8068_v10 = vor.u32 %v10351_v9, %v8065_v8  ;;  %v10315_v2 = vld [vmem:[%s16307_s1 + $0x94c] sm:$0xf] }
 0x2a0   :  { %6095 = vmatpush.bf16.msrb.mxu2 %v8244_v27  ;;  %v10431_v27 = vld [vmem:[%s16307_s1 + $0xcec] sm:$0xf]  ;;  %v8196_v54 = vor.u32 %v10383_v23, %v8193_v20  ;;  %v8049_v16 = vld [vmem:[%s16307_s1 + $0xa58] sm:$0xf0] }
 0x2a1   :  { %6057 = vmatpush.bf16.msra.mxu3 %v7796_v6  ;;  %v7921_v6 = vld [vmem:[%s16307_s1 + $0x958] sm:$0xf0]  ;;  %v8388_v47 = vor.u32 %v10431_v27, %v8385_v49  ;;  %v10427_v43 = vld [vmem:[%s16307_s1 + $0xccc] sm:$0xf]  ;;  %v15410_v27 = vpop.f32.mrf.mxu3 }
 0x2a2   :  { %6068 = vmatpush.bf16.msrb.mxu0 %v7972_v44  ;;  %v10347_v44 = vld [vmem:[%s16307_s1 + $0xa4c] sm:$0xf]  ;;  %v8369_v58 = vld [vmem:[%s16307_s1 + $0xcd8] sm:$0xf0]  ;;  %v7924_v29 = vor.u32 %v10315_v2, %v7921_v6  ;;  %16353 = vst [vmem:[#allocation39_spill] sm:$0xff] %v15410_v27 }
 0x2a3   :  { %6082 = vmatpush.bf16.msrb.mxu1 %v8100_v53  ;;  %v10379_v53 = vld [vmem:[%s16307_s1 + $0xb4c] sm:$0xf]  ;;  %v8052_v11 = vor.u32 %v10347_v44, %v8049_v16  ;;  %v8372_v22 = vor.u32 %v10427_v43, %v8369_v58  ;;  %v8161_v39 = vld [vmem:[%s16307_s1 + $0xb38] sm:$0xf0] }
 0x2a4   :  { %6096 = vmatpush.bf16.msrb.mxu2 %v8228_v59  ;;  %v8177_v59 = vld [vmem:[%s16307_s1 + $0xb58] sm:$0xf0]  ;;  %v10343_v7 = vld [vmem:[%s16307_s1 + $0xa2c] sm:$0xf] }
 0x2a5   :  { %6058 = vmatpush.bf16.msra.mxu3 %v7780_v0  ;;  %v8180_v28 = vor.u32 %v10379_v53, %v8177_v59  ;;  %v10311_v0 = vld [vmem:[%s16307_s1 + $0x92c] sm:$0xf]  ;;  %v8353_v9 = vld [vmem:[%s16307_s1 + $0xcb8] sm:$0xf0] }
 0x2a6   :  { %6069 = vmatpush.bf16.msrb.mxu0 %v7956_v12  ;;  %v7905_v12 = vld [vmem:[%s16307_s1 + $0x938] sm:$0xf0]  ;;  %v10423_v25 = vld [vmem:[%s16307_s1 + $0xcac] sm:$0xf] }
 0x2a7   :  { %6083 = vmatpush.bf16.msrb.mxu1 %v8084_v18  ;;  %v8033_v18 = vld [vmem:[%s16307_s1 + $0xa38] sm:$0xf0]  ;;  %v7908_v8 = vor.u32 %v10311_v0, %v7905_v12  ;;  %v10307_v23 = vld [vmem:[%s16307_s1 + $0x90c] sm:$0xf] }
 0x2a8   :  { %6097 = vmatpush.bf16.msrb.mxu2 %v8212_v14  ;;  %v10375_v14 = vld [vmem:[%s16307_s1 + $0xb2c] sm:$0xf]  ;;  %v7889_v20 = vld [vmem:[%s16307_s1 + $0x918] sm:$0xf0] }
 0x2a9   :  { %6059 = vmatpush.bf16.msra.mxu3 %v7764_v17  ;;  %v8164_v49 = vor.u32 %v10375_v14, %v8161_v39  ;;  %v10339_v17 = vld [vmem:[%s16307_s1 + $0xa0c] sm:$0xf]  ;;  %v8145_v2 = vld [vmem:[%s16307_s1 + $0xb18] sm:$0xf0]  ;;  %v7892_v43 = vor.u32 %v10307_v23, %v7889_v20  ;;  %v15456_v14 = vpop.f32.mrf.mxu1  ;;  %v15458_v39 = vpop.f32.mrf.mxu2 }
 0x2aa   :  { %6070 = vmatpush.bf16.msrb.mxu0 %v7940_v1  ;;  %v8017_v1 = vld [vmem:[%s16307_s1 + $0xa18] sm:$0xf0]  ;;  %v10419_v6 = vld [vmem:[%s16307_s1 + $0xc8c] sm:$0xf]  ;;  %16355 = vst [vmem:[#allocation41_spill] sm:$0xff] %v15456_v14 }
 0x2ab   :  { %6084 = vmatpush.bf16.msrb.mxu1 %v8068_v10  ;;  %v10371_v10 = vld [vmem:[%s16307_s1 + $0xb0c] sm:$0xf]  ;;  %v8337_v44 = vld [vmem:[%s16307_s1 + $0xc98] sm:$0xf0] }
 0x2ac   :  { %6098 = vmatpush.bf16.msrb.mxu2 %v8196_v54  ;;  %6060 = vmatmul.bf16.vlgmr.msra.gmra.mxu3 %v11572_v31  ;;  %v8036_v31 = vor.u32 %v10343_v7, %v8033_v18  ;;  %v8356_v54 = vor.u32 %v10423_v25, %v8353_v9  ;;  %v10463_v16 = vld [vmem:[%s16307_s1 + $0xdec] sm:$0xf]  ;;  %v8513_v53 = vld [vmem:[%s16307_s1 + $0xdf8] sm:$0xf0]  ;;  %v8148_v0 = vor.u32 %v10371_v10, %v8145_v2 }
 0x2ad   :  { %6108 = vmatpush.bf16.msrb.mxu3 %v8388_v47  ;;  %v15430_v47 = vpop.f32.mrf.mxu0  ;;  %v10495_v59 = vld [vmem:[%s16307_s1 + $0xeec] sm:$0xf]  ;;  %v8641_v58 = vld [vmem:[%s16307_s1 + $0xef8] sm:$0xf0]  ;;  %v8340_v12 = vor.u32 %v10419_v6, %v8337_v44  ;;  %v8516_v7 = vor.u32 %v10463_v16, %v8513_v53 }
 0x2ae   :  { %6071 = vmatpush.bf16.msrb.mxu0 %v7924_v29  ;;  %16354 = vst [vmem:[#allocation40_spill] sm:$0xff] %v15430_v47  ;;  %v10527_v29 = vld [vmem:[%s16307_s1 + $0xfec] sm:$0xf]  ;;  %v8321_v18 = vld [vmem:[%s16307_s1 + $0xc78] sm:$0xf0]  ;;  %v8644_v25 = vor.u32 %v10495_v59, %v8641_v58 }
 0x2af   :  { %6085 = vmatpush.bf16.msrb.mxu1 %v8052_v11  ;;  %v8769_v11 = vld [vmem:[%s16307_s1 + $0xff8] sm:$0xf0]  ;;  %v10491_v20 = vld [vmem:[%s16307_s1 + $0xecc] sm:$0xf] }
 0x2b0   :  { %6099 = vmatpush.bf16.msrb.mxu2 %v8180_v28  ;;  %v8020_v28 = vor.u32 %v10339_v17, %v8017_v1  ;;  %v8772_v9 = vor.u32 %v10527_v29, %v8769_v11  ;;  %v8497_v23 = vld [vmem:[%s16307_s1 + $0xdd8] sm:$0xf0]  ;;  %v15478_v1 = vpop.f32.mrf.mxu3  ;;  %v10411_v2 = vld [vmem:[%s16307_s1 + $0xc4c] sm:$0xf] }
 0x2b1   :  { %6109 = vmatpush.bf16.msrb.mxu3 %v8372_v22  ;;  %v10415_v22 = vld [vmem:[%s16307_s1 + $0xc6c] sm:$0xf]  ;;  %v8753_v17 = vld [vmem:[%s16307_s1 + $0xfd8] sm:$0xf0] }
 0x2b2   :  { %6072 = vmatpush.bf16.msrb.mxu0 %v7908_v8  ;;  %v10459_v8 = vld [vmem:[%s16307_s1 + $0xdcc] sm:$0xf]  ;;  %v8324_v10 = vor.u32 %v10415_v22, %v8321_v18  ;;  %v8305_v6 = vld [vmem:[%s16307_s1 + $0xc58] sm:$0xf0] }
 0x2b3   :  { %6086 = vmatpush.bf16.msrb.mxu1 %v8036_v31  ;;  %v8625_v31 = vld [vmem:[%s16307_s1 + $0xed8] sm:$0xf0]  ;;  %v10455_v59 = vld [vmem:[%s16307_s1 + $0xdac] sm:$0xf] }
 0x2b4   :  { %6100 = vmatpush.bf16.msrb.mxu2 %v8164_v49  ;;  %v10523_v49 = vld [vmem:[%s16307_s1 + $0xfcc] sm:$0xf]  ;;  %v8628_v16 = vor.u32 %v10491_v20, %v8625_v31  ;;  %v8609_v29 = vld [vmem:[%s16307_s1 + $0xeb8] sm:$0xf0]  ;;  %v15535_v31 = vpop.f32.mrf.mxu2 }
 0x2b5   :  { %6110 = vmatpush.bf16.msrb.mxu3 %v8356_v54  ;;  %v8500_v54 = vor.u32 %v10459_v8, %v8497_v23  ;;  %v15486_v44 = vpop.f32.mrf.mxu0  ;;  %v8756_v53 = vor.u32 %v10523_v49, %v8753_v17  ;;  %v10487_v58 = vld [vmem:[%s16307_s1 + $0xeac] sm:$0xf]  ;;  %v8593_v8 = vld [vmem:[%s16307_s1 + $0xe98] sm:$0xf0] }
 0x2b6   :  { %6073 = vmatpush.bf16.msrb.mxu0 %v7892_v43  ;;  %v8481_v43 = vld [vmem:[%s16307_s1 + $0xdb8] sm:$0xf0]  ;;  %v10519_v11 = vld [vmem:[%s16307_s1 + $0xfac] sm:$0xf]  ;;  %v8612_v22 = vor.u32 %v10487_v58, %v8609_v29 }
 0x2b7   :  { %6087 = vmatpush.bf16.msrb.mxu1 %v8020_v28  ;;  %v8737_v28 = vld [vmem:[%s16307_s1 + $0xfb8] sm:$0xf0]  ;;  %v10515_v23 = vld [vmem:[%s16307_s1 + $0xf8c] sm:$0xf] }
 0x2b8   :  { %6101 = vmatpush.bf16.msrb.mxu2 %v8148_v0  ;;  %v8308_v0 = vor.u32 %v10411_v2, %v8305_v6  ;;  %v8740_v18 = vor.u32 %v10519_v11, %v8737_v28  ;;  %v8721_v20 = vld [vmem:[%s16307_s1 + $0xf98] sm:$0xf0]  ;;  %v15543_v2 = vpop.f32.mrf.mxu3  ;;  %v10511_v29 = vld [vmem:[%s16307_s1 + $0xf6c] sm:$0xf] }
 0x2b9   :  { %6111 = vmatpush.bf16.msrb.mxu3 %v8340_v12  ;;  %6074 = vmatmul.bf16.vlgmr.msrb.gmra.mxu0 %v11585_v36  ;;  %v8484_v36 = vor.u32 %v10455_v59, %v8481_v43  ;;  %v8289_v12 = vld [vmem:[%s16307_s1 + $0xc38] sm:$0xf0]  ;;  %v10479_v43 = vld [vmem:[%s16307_s1 + $0xe6c] sm:$0xf] }
 0x2ba   :  { %6122 = vmatpush.bf16.msra.mxu0 %v8516_v7  ;;  %6088 = vmatmul.bf16.vlgmr.msrb.gmra.mxu1 %v11583_v35  ;;  %v15515_v7 = vpop.f32.mrf.mxu1  ;;  %v10451_v35 = vld [vmem:[%s16307_s1 + $0xd8c] sm:$0xf]  ;;  %v8449_v59 = vld [vmem:[%s16307_s1 + $0xd78] sm:$0xf0] }
 0x2bb   :  { %6136 = vmatpush.bf16.msra.mxu1 %v8644_v25  ;;  %6102 = vmatmul.bf16.vlgmr.msrb.gmra.mxu2 %v11593_v40  ;;  %v10407_v40 = vld [vmem:[%s16307_s1 + $0xc2c] sm:$0xf]  ;;  %v8465_v25 = vld [vmem:[%s16307_s1 + $0xd98] sm:$0xf0] }
 0x2bc   :  { %6150 = vmatpush.bf16.msra.mxu2 %v8772_v9  ;;  %v10483_v9 = vld [vmem:[%s16307_s1 + $0xe8c] sm:$0xf]  ;;  %v8292_v49 = vor.u32 %v10407_v40, %v8289_v12  ;;  %v8468_v17 = vor.u32 %v10451_v35, %v8465_v25  ;;  %v8577_v58 = vld [vmem:[%s16307_s1 + $0xe78] sm:$0xf0] }
 0x2bd   :  { %6112 = vmatpush.bf16.msrb.mxu3 %v8324_v10  ;;  %v10403_v10 = vld [vmem:[%s16307_s1 + $0xc0c] sm:$0xf]  ;;  %v8596_v6 = vor.u32 %v10483_v9, %v8593_v8  ;;  %v8705_v11 = vld [vmem:[%s16307_s1 + $0xf78] sm:$0xf0]  ;;  %v15563_v28 = vpop.f32.mrf.mxu0 }
 0x2be   :  { %6123 = vmatpush.bf16.msra.mxu0 %v8500_v54  ;;  %v8273_v54 = vld [vmem:[%s16307_s1 + $0xc18] sm:$0xf0]  ;;  %v10443_v35 = vld [vmem:[%s16307_s1 + $0xd4c] sm:$0xf] }
 0x2bf   :  { %6137 = vmatpush.bf16.msra.mxu1 %v8628_v16  ;;  %v8724_v16 = vor.u32 %v10515_v23, %v8721_v20  ;;  %v8276_v40 = vor.u32 %v10403_v10, %v8273_v54  ;;  %v8433_v25 = vld [vmem:[%s16307_s1 + $0xd58] sm:$0xf0]  ;;  %v10475_v9 = vld [vmem:[%s16307_s1 + $0xe4c] sm:$0xf] }
 0x2c0   :  { %6151 = vmatpush.bf16.msra.mxu2 %v8756_v53  ;;  %v10447_v53 = vld [vmem:[%s16307_s1 + $0xd6c] sm:$0xf]  ;;  %v8561_v23 = vld [vmem:[%s16307_s1 + $0xe58] sm:$0xf0] }
 0x2c1   :  { %6113 = vmatpush.bf16.msrb.mxu3 %v8308_v0  ;;  %v10559_v0 = vld [vmem:[%s16307_s1 + $0x10ec] sm:$0xf]  ;;  %v8452_v12 = vor.u32 %v10447_v53, %v8449_v59  ;;  %v8881_v54 = vld [vmem:[%s16307_s1 + $0x10d8] sm:$0xf0]  ;;  %v8564_v53 = vor.u32 %v10475_v9, %v8561_v23 }
 0x2c2   :  { %6124 = vmatpush.bf16.msra.mxu0 %v8484_v36  ;;  %v8897_v36 = vld [vmem:[%s16307_s1 + $0x10f8] sm:$0xf0]  ;;  %v10507_v20 = vld [vmem:[%s16307_s1 + $0xf4c] sm:$0xf] }
 0x2c3   :  { %6138 = vmatpush.bf16.msra.mxu1 %v8612_v22  ;;  %v8580_v22 = vor.u32 %v10479_v43, %v8577_v58  ;;  %v8900_v8 = vor.u32 %v10559_v0, %v8897_v36  ;;  %v10555_v10 = vld [vmem:[%s16307_s1 + $0x10cc] sm:$0xf]  ;;  %v8417_v58 = vld [vmem:[%s16307_s1 + $0xd38] sm:$0xf0] }
 0x2c4   :  { %6152 = vmatpush.bf16.msra.mxu2 %v8740_v18  ;;  %v8708_v18 = vor.u32 %v10511_v29, %v8705_v11  ;;  %v10439_v43 = vld [vmem:[%s16307_s1 + $0xd2c] sm:$0xf]  ;;  %v8884_v11 = vor.u32 %v10555_v10, %v8881_v54  ;;  %v8545_v0 = vld [vmem:[%s16307_s1 + $0xe38] sm:$0xf0] }
 0x2c5   :  { %6114 = vmatpush.bf16.msrb.mxu3 %v8292_v49  ;;  %v8689_v49 = vld [vmem:[%s16307_s1 + $0xf58] sm:$0xf0]  ;;  %v10471_v29 = vld [vmem:[%s16307_s1 + $0xe2c] sm:$0xf] }
 0x2c6   :  { %6125 = vmatpush.bf16.msra.mxu0 %v8468_v17  ;;  %v15589_v17 = vpop.f32.mrf.mxu1  ;;  %v8692_v59 = vor.u32 %v10507_v20, %v8689_v49  ;;  %v10503_v36 = vld [vmem:[%s16307_s1 + $0xf2c] sm:$0xf]  ;;  %v8401_v9 = vld [vmem:[%s16307_s1 + $0xd18] sm:$0xf0] }
 0x2c7   :  { %6139 = vmatpush.bf16.msra.mxu1 %v8596_v6  ;;  %v8436_v6 = vor.u32 %v10443_v35, %v8433_v25  ;;  %v8420_v35 = vor.u32 %v10439_v43, %v8417_v58  ;;  %v10435_v25 = vld [vmem:[%s16307_s1 + $0xd0c] sm:$0xf]  ;;  %v8529_v49 = vld [vmem:[%s16307_s1 + $0xe18] sm:$0xf0] }
 0x2c8   :  { %6153 = vmatpush.bf16.msra.mxu2 %v8724_v16  ;;  %v15597_v16 = vpop.f32.mrf.mxu2  ;;  %v10467_v20 = vld [vmem:[%s16307_s1 + $0xe0c] sm:$0xf]  ;;  %v9025_v58 = vld [vmem:[%s16307_s1 + $0x11f8] sm:$0xf0] }
 0x2c9   :  { %6115 = vmatpush.bf16.msrb.mxu3 %v8276_v40  ;;  %v8673_v40 = vld [vmem:[%s16307_s1 + $0xf38] sm:$0xf0]  ;;  %v10499_v10 = vld [vmem:[%s16307_s1 + $0xf0c] sm:$0xf] }
 0x2ca   :  { %6126 = vmatpush.bf16.msra.mxu0 %v8452_v12  ;;  %v15617_v12 = vpop.f32.mrf.mxu3  ;;  %v8676_v23 = vor.u32 %v10503_v36, %v8673_v40  ;;  %v10591_v43 = vld [vmem:[%s16307_s1 + $0x11ec] sm:$0xf]  ;;  %v9281_v40 = vld [vmem:[%s16307_s1 + $0x13f8] sm:$0xf0] }
 0x2cb   :  { %6140 = vmatpush.bf16.msra.mxu1 %v8580_v22  ;;  %v10551_v22 = vld [vmem:[%s16307_s1 + $0x10ac] sm:$0xf]  ;;  %v9028_v14 = vor.u32 %v10591_v43, %v9025_v58  ;;  %v8833_v27 = vld [vmem:[%s16307_s1 + $0x1078] sm:$0xf0]  ;;  %v15706_v43 = vld [vmem:[%s16309_s2] sm:$0xf] }
 0x2cc   :  { %6154 = vmatpush.bf16.msra.mxu2 %v8708_v18  ;;  %6116 = vmatmul.bf16.vlgmr.msrb.gmra.mxu3 %v11800_v32  ;;  %v8865_v18 = vld [vmem:[%s16307_s1 + $0x10b8] sm:$0xf0]  ;;  %v8548_v32 = vor.u32 %v10471_v29, %v8545_v0  ;;  %v10623_v29 = vld [vmem:[%s16307_s1 + $0x12ec] sm:$0xf]  ;;  %v835_v58 = vperm.slane %v15706_v43, 2 }
 0x2cd   :  { %6164 = vmatpush.bf16.msra.mxu3 %v8900_v8  ;;  %v15632_v8 = vpop.f32.mrf.mxu0  ;;  %v8868_v54 = vor.u32 %v10551_v22, %v8865_v18  ;;  %v9153_v0 = vld [vmem:[%s16307_s1 + $0x12f8] sm:$0xf0]  ;;  %v10655_v36 = vld [vmem:[%s16307_s1 + $0x13ec] sm:$0xf] }
 0x2ce   :  { %6127 = vmatpush.bf16.msra.mxu0 %v8436_v6  ;;  %v8657_v6 = vld [vmem:[%s16307_s1 + $0xf18] sm:$0xf0]  ;;  %v15670_v22 = vpop.f32.mrf.mxu1  ;;  %v10543_v47 = vld [vmem:[%s16307_s1 + $0x106c] sm:$0xf]  ;;  %v9156_v61 = vor.u32 %v10623_v29, %v9153_v0  ;;  %v9284_v19 = vor.u32 %v10655_v36, %v9281_v40 }
 0x2cf   :  { %6141 = vmatpush.bf16.msra.mxu1 %v8564_v53  ;;  %v10547_v53 = vld [vmem:[%s16307_s1 + $0x108c] sm:$0xf]  ;;  %v8836_v29 = vor.u32 %v10543_v47, %v8833_v27  ;;  %v8993_v27 = vld [vmem:[%s16307_s1 + $0x11b8] sm:$0xf0] }
 0x2d0   :  { %6155 = vmatpush.bf16.msra.mxu2 %v8692_v59  ;;  %v8849_v59 = vld [vmem:[%s16307_s1 + $0x1098] sm:$0xf0]  ;;  %v15672_v18 = vpop.f32.mrf.mxu2  ;;  %v10615_v47 = vld [vmem:[%s16307_s1 + $0x12ac] sm:$0xf] }
 0x2d1   :  { %6165 = vmatpush.bf16.msra.mxu3 %v8884_v11  ;;  %v8404_v11 = vor.u32 %v10435_v25, %v8401_v9  ;;  %v8660_v25 = vor.u32 %v10499_v10, %v8657_v6  ;;  %v8852_v9 = vor.u32 %v10547_v53, %v8849_v59  ;;  %v10651_v10 = vld [vmem:[%s16307_s1 + $0x13cc] sm:$0xf]  ;;  %v16356_v6 = vperm.slane %v12063_v4, 0 }
 0x2d2   :  { %6128 = vmatpush.bf16.msra.mxu0 %v8420_v35  ;;  %v8532_v35 = vor.u32 %v10467_v20, %v8529_v49  ;;  %v10619_v20 = vld [vmem:[%s16307_s1 + $0x12cc] sm:$0xf]  ;;  %v9137_v49 = vld [vmem:[%s16307_s1 + $0x12d8] sm:$0xf0]  ;;  %v15701_v59 = vpop.f32.mrf.mxu3 }
 0x2d3   :  { %6142 = vmatpush.bf16.msra.mxu1 %v8548_v32  ;;  %v10587_v32 = vld [vmem:[%s16307_s1 + $0x11cc] sm:$0xf]  ;;  %v4902_v53 = vadd.f32 %v12257_v21, %v16356_v6  ;;  %v8817_v21 = vld [vmem:[%s16307_s1 + $0x1058] sm:$0xf0]  ;;  %v9140_v36 = vor.u32 %v10619_v20, %v9137_v49 }
 0x2d4   :  { %6156 = vmatpush.bf16.msra.mxu2 %v8676_v23  ;;  %v9009_v23 = vld [vmem:[%s16307_s1 + $0x11d8] sm:$0xf0]  ;;  %v10539_v4 = vld [vmem:[%s16307_s1 + $0x104c] sm:$0xf] }
 0x2d5   :  { %6166 = vmatpush.bf16.msra.mxu3 %v8868_v54  ;;  %v9265_v54 = vld [vmem:[%s16307_s1 + $0x13d8] sm:$0xf0]  ;;  %v15715_v0 = vpop.f32.mrf.mxu0 }
 0x2d6   :  { %6129 = vmatpush.bf16.msra.mxu0 %v8404_v11  ;;  %v9012_v11 = vor.u32 %v10587_v32, %v9009_v23  ;;  %v9268_v40 = vor.u32 %v10651_v10, %v9265_v54  ;;  %v8801_v32 = vld [vmem:[%s16307_s1 + $0x1038] sm:$0xf0]  ;;  %v5600_v23 = vadd.f32 %v15377_v3, %v835_v58  ;;  %v15746_v20 = vpop.f32.mrf.mxu1  ;;  %v10579_v10 = vld [vmem:[%s16307_s1 + $0x118c] sm:$0xf] }
 0x2d7   :  { %6143 = vmatpush.bf16.msra.mxu1 %v8532_v35  ;;  %v9249_v35 = vld [vmem:[%s16307_s1 + $0x13b8] sm:$0xf0]  ;;  %v10611_v3 = vld [vmem:[%s16307_s1 + $0x128c] sm:$0xf] }
 0x2d8   :  { %6157 = vmatpush.bf16.msra.mxu2 %v8660_v25  ;;  %v4916_v25 = vadd.f32 %v12289_v45, %v4902_v53  ;;  %v15748_v49 = vpop.f32.mrf.mxu2  ;;  %v8977_v54 = vld [vmem:[%s16307_s1 + $0x1198] sm:$0xf0]  ;;  %v10643_v53 = vld [vmem:[%s16307_s1 + $0x138c] sm:$0xf] }
 0x2d9   :  { %6167 = vmatpush.bf16.msra.mxu3 %v8852_v9  ;;  %6130 = vmatmul.bf16.vlgmr.msra.gmra.mxu0 %v11813_v41  ;;  %v8820_v41 = vor.u32 %v10539_v4, %v8817_v21  ;;  %v10535_v9 = vld [vmem:[%s16307_s1 + $0x102c] sm:$0xf]  ;;  %v9105_v6 = vld [vmem:[%s16307_s1 + $0x1298] sm:$0xf0]  ;;  %v5602_v21 = vadd.f32 %v15458_v39, %v835_v58 }
 0x2da   :  { %6178 = vmatpush.bf16.msrb.mxu0 %v9028_v14  ;;  %v10583_v14 = vld [vmem:[%s16307_s1 + $0x11ac] sm:$0xf]  ;;  %6144 = vmatmul.bf16.vlgmr.msra.gmra.mxu1 %v11811_v38  ;;  %v15769_v4 = vpop.f32.mrf.mxu3 }
 0x2db   :  { %6192 = vmatpush.bf16.msrb.mxu1 %v9156_v61  ;;  %6158 = vmatmul.bf16.vlgmr.msra.gmra.mxu2 %v11821_v46  ;;  %v10647_v61 = vld [vmem:[%s16307_s1 + $0x13ac] sm:$0xf]  ;;  %v8996_v46 = vor.u32 %v10583_v14, %v8993_v27  ;;  %v8785_v27 = vld [vmem:[%s16307_s1 + $0x1018] sm:$0xf0] }
 0x2dc   :  { %6206 = vmatpush.bf16.msrb.mxu2 %v9284_v19  ;;  %v9121_v19 = vld [vmem:[%s16307_s1 + $0x12b8] sm:$0xf0]  ;;  %v9252_v45 = vor.u32 %v10647_v61, %v9249_v35  ;;  %v10531_v14 = vld [vmem:[%s16307_s1 + $0x100c] sm:$0xf] }
 0x2dd   :  { %6168 = vmatpush.bf16.msra.mxu3 %v8836_v29  ;;  %v9124_v38 = vor.u32 %v10615_v47, %v9121_v19  ;;  %v9233_v29 = vld [vmem:[%s16307_s1 + $0x1398] sm:$0xf0]  ;;  %v5614_v47 = vadd.f32 %v15478_v1, %v5600_v23  ;;  %v15779_v19 = vpop.f32.mrf.mxu0  ;;  %v10575_v58 = vld [vmem:[%s16307_s1 + $0x116c] sm:$0xf] }
 0x2de   :  { %6179 = vmatpush.bf16.msrb.mxu0 %v9012_v11  ;;  %v4930_v11 = vadd.f32 %v12321_v5, %v4916_v25  ;;  %v9108_v5 = vor.u32 %v10611_v3, %v9105_v6  ;;  %v9236_v39 = vor.u32 %v10643_v53, %v9233_v29  ;;  %v8961_v61 = vld [vmem:[%s16307_s1 + $0x1178] sm:$0xf0]  ;;  %v10607_v35 = vld [vmem:[%s16307_s1 + $0x126c] sm:$0xf]  ;;  %v15811_v3 = vpop.f32.mrf.mxu1 }
 0x2df   :  { %6193 = vmatpush.bf16.msrb.mxu1 %v9140_v36  ;;  %v8804_v36 = vor.u32 %v10535_v9, %v8801_v32  ;;  %v9089_v1 = vld [vmem:[%s16307_s1 + $0x1278] sm:$0xf0]  ;;  %v10639_v25 = vld [vmem:[%s16307_s1 + $0x136c] sm:$0xf]  ;;  %v16357_v9 = vperm.slane %v13400_v50, 1 }
 0x2e0   :  { %6207 = vmatpush.bf16.msrb.mxu2 %v9268_v40  ;;  %v8980_v40 = vor.u32 %v10579_v10, %v8977_v54  ;;  %v10687_v23 = vld [vmem:[%s16307_s1 + $0x14ec] sm:$0xf]  ;;  %v8788_v10 = vor.u32 %v10531_v14, %v8785_v27  ;;  %v8964_v54 = vor.u32 %v10575_v58, %v8961_v61  ;;  %v15813_v50 = vpop.f32.mrf.mxu2  ;;  %v9393_v27 = vld [vmem:[%s16307_s1 + $0x14d8] sm:$0xf0] }
 0x2e1   :  { %6169 = vmatpush.bf16.msra.mxu3 %v8820_v41  ;;  %v9217_v41 = vld [vmem:[%s16307_s1 + $0x1378] sm:$0xf0]  ;;  %v5252_v32 = vadd.f32 %v13526_v63, %v16357_v9  ;;  %v9092_v63 = vor.u32 %v10607_v35, %v9089_v1  ;;  %v10571_v53 = vld [vmem:[%s16307_s1 + $0x114c] sm:$0xf] }
 0x2e2   :  { %6180 = vmatpush.bf16.msrb.mxu0 %v8996_v46  ;;  %v4944_v46 = vadd.f32 %v12335_v15, %v4930_v11  ;;  %v5628_v15 = vadd.f32 %v15486_v44, %v5614_v47  ;;  %v9220_v6 = vor.u32 %v10639_v25, %v9217_v41  ;;  %v10603_v44 = vld [vmem:[%s16307_s1 + $0x124c] sm:$0xf]  ;;  %v9073_v11 = vld [vmem:[%s16307_s1 + $0x1258] sm:$0xf0]  ;;  %v15843_v61 = vpop.f32.mrf.mxu3 }
 0x2e3   :  { %6194 = vmatpush.bf16.msrb.mxu1 %v9124_v38  ;;  %v9409_v38 = vld [vmem:[%s16307_s1 + $0x14f8] sm:$0xf0]  ;;  %v10683_v14 = vld [vmem:[%s16307_s1 + $0x14cc] sm:$0xf]  ;;  %v5266_v47 = vadd.f32 %v13579_v42, %v5252_v32 }
 0x2e4   :  { %6208 = vmatpush.bf16.msrb.mxu2 %v9252_v45  ;;  %v5616_v45 = vadd.f32 %v15543_v2, %v5602_v21  ;;  %v8945_v2 = vld [vmem:[%s16307_s1 + $0x1158] sm:$0xf0]  ;;  %v9412_v29 = vor.u32 %v10687_v23, %v9409_v38  ;;  %v10635_v21 = vld [vmem:[%s16307_s1 + $0x134c] sm:$0xf]  ;;  %v5642_v58 = vadd.f32 %v15515_v7, %v5628_v15  ;;  %v9396_v7 = vor.u32 %v10683_v14, %v9393_v27 }
 0x2e5   :  { %6170 = vmatpush.bf16.msra.mxu3 %v8804_v36  ;;  %v9201_v36 = vld [vmem:[%s16307_s1 + $0x1358] sm:$0xf0]  ;;  %v10567_v1 = vld [vmem:[%s16307_s1 + $0x112c] sm:$0xf]  ;;  %v15863_v9 = vpop.f32.mrf.mxu0 }
 0x2e6   :  { %6181 = vmatpush.bf16.msrb.mxu0 %v8980_v40  ;;  %v4958_v40 = vadd.f32 %v12500_v57, %v4944_v46  ;;  %v9076_v57 = vor.u32 %v10603_v44, %v9073_v11  ;;  %v9204_v35 = vor.u32 %v10635_v21, %v9201_v36  ;;  %v8929_v42 = vld [vmem:[%s16307_s1 + $0x1138] sm:$0xf0]  ;;  %v10631_v41 = vld [vmem:[%s16307_s1 + $0x132c] sm:$0xf]  ;;  %v15902_v36 = vpop.f32.mrf.mxu1 }
 0x2e7   :  { %6195 = vmatpush.bf16.msrb.mxu1 %v9108_v5  ;;  %v5630_v5 = vadd.f32 %v15563_v28, %v5616_v45  ;;  %v10599_v28 = vld [vmem:[%s16307_s1 + $0x122c] sm:$0xf]  ;;  %v9057_v25 = vld [vmem:[%s16307_s1 + $0x1238] sm:$0xf0]  ;;  %v5280_v45 = vadd.f32 %v13593_v13, %v5266_v47 }
 0x2e8   :  { %6209 = vmatpush.bf16.msrb.mxu2 %v9236_v39  ;;  %v8948_v39 = vor.u32 %v10571_v53, %v8945_v2  ;;  %v9185_v46 = vld [vmem:[%s16307_s1 + $0x1338] sm:$0xf0]  ;;  %v10679_v32 = vld [vmem:[%s16307_s1 + $0x14ac] sm:$0xf]  ;;  %v4972_v38 = vadd.f32 %v12508_v62, %v4958_v40  ;;  %v15904_v40 = vpop.f32.mrf.mxu2 }
 0x2e9   :  { %6171 = vmatpush.bf16.msra.mxu3 %v8788_v10  ;;  %v9377_v23 = vld [vmem:[%s16307_s1 + $0x14b8] sm:$0xf0]  ;;  %v5644_v10 = vadd.f32 %v15589_v17, %v5630_v5  ;;  %v9188_v62 = vor.u32 %v10631_v41, %v9185_v46  ;;  %v10595_v13 = vld [vmem:[%s16307_s1 + $0x120c] sm:$0xf]  ;;  %v5294_v47 = vadd.f32 %v13620_v37, %v5280_v45 }
 0x2ea   :  { %6182 = vmatpush.bf16.msrb.mxu0 %v8964_v54  ;;  %v8932_v54 = vor.u32 %v10567_v1, %v8929_v42  ;;  %v8913_v15 = vld [vmem:[%s16307_s1 + $0x1118] sm:$0xf0]  ;;  %v10627_v53 = vld [vmem:[%s16307_s1 + $0x130c] sm:$0xf]  ;;  %v4986_v21 = vadd.f32 %v12549_v30, %v4972_v38 }
 0x2eb   :  { %6196 = vmatpush.bf16.msrb.mxu1 %v9092_v63  ;;  %v5656_v63 = vadd.f32 %v15535_v31, %v5642_v58  ;;  %v9041_v17 = vld [vmem:[%s16307_s1 + $0x1218] sm:$0xf0]  ;;  %v5658_v2 = vadd.f32 %v15597_v16, %v5644_v10  ;;  %v9380_v31 = vor.u32 %v10679_v32, %v9377_v23  ;;  %v10719_v16 = vld [vmem:[%s16307_s1 + $0x15ec] sm:$0xf] }
 0x2ec   :  { %6210 = vmatpush.bf16.msrb.mxu2 %v9220_v6  ;;  %6172 = vmatmul.bf16.vlgmr.msra.gmra.mxu3 %v12028_v51  ;;  %v10563_v51 = vld [vmem:[%s16307_s1 + $0x110c] sm:$0xf]  ;;  %v9060_v6 = vor.u32 %v10599_v28, %v9057_v25  ;;  %v9169_v44 = vld [vmem:[%s16307_s1 + $0x1318] sm:$0xf0]  ;;  %v9044_v37 = vor.u32 %v10595_v13, %v9041_v17 }
 0x2ed   :  { %6220 = vmatpush.bf16.msrb.mxu3 %v9412_v29  ;;  %v10675_v29 = vld [vmem:[%s16307_s1 + $0x148c] sm:$0xf]  ;;  %v9361_v11 = vld [vmem:[%s16307_s1 + $0x1498] sm:$0xf0]  ;;  %v8916_v30 = vor.u32 %v10563_v51, %v8913_v15  ;;  %v9172_v1 = vor.u32 %v10627_v53, %v9169_v44  ;;  %v5672_v42 = vadd.f32 %v15701_v59, %v5658_v2  ;;  %v15936_v46 = vpop.f32.mrf.mxu0 }
 0x2ee   :  { %6183 = vmatpush.bf16.msrb.mxu0 %v8948_v39  ;;  %v9537_v14 = vld [vmem:[%s16307_s1 + $0x15f8] sm:$0xf0]  ;;  %v10751_v27 = vld [vmem:[%s16307_s1 + $0x16ec] sm:$0xf]  ;;  %v9364_v28 = vor.u32 %v10675_v29, %v9361_v11 }
 0x2ef   :  { %6197 = vmatpush.bf16.msrb.mxu1 %v9076_v57  ;;  %v9665_v5 = vld [vmem:[%s16307_s1 + $0x16f8] sm:$0xf0]  ;;  %v10783_v39 = vld [vmem:[%s16307_s1 + $0x17ec] sm:$0xf]  ;;  %v5670_v57 = vadd.f32 %v15617_v12, %v5656_v63  ;;  %v5000_v12 = vadd.f32 %v12560_v52, %v4986_v21  ;;  %v5686_v10 = vadd.f32 %v15715_v0, %v5672_v42  ;;  %v16358_v63 = vld [vmem:[#allocation20_spill] sm:$0xff] }
 0x2f0   :  { %6211 = vmatpush.bf16.msrb.mxu2 %v9204_v35  ;;  %v9793_v58 = vld [vmem:[%s16307_s1 + $0x17f8] sm:$0xf0]  ;;  %v15926_v35 = vpop.f32.mrf.mxu3  ;;  %v10671_v25 = vld [vmem:[%s16307_s1 + $0x146c] sm:$0xf]  ;;  %v9668_v32 = vor.u32 %v10751_v27, %v9665_v5  ;;  %v15969_v44 = vpop.f32.mrf.mxu2 }
 0x2f1   :  { %6221 = vmatpush.bf16.msrb.mxu3 %v9396_v7  ;;  %v9540_v7 = vor.u32 %v10719_v16, %v9537_v14  ;;  %v9345_v41 = vld [vmem:[%s16307_s1 + $0x1478] sm:$0xf0]  ;;  %v9796_v23 = vor.u32 %v10783_v39, %v9793_v58  ;;  %v10715_v59 = vld [vmem:[%s16307_s1 + $0x15cc] sm:$0xf]  ;;  %v5014_v15 = vadd.f32 %v12707_v24, %v5000_v12  ;;  %v5700_v14 = vadd.f32 %v15746_v20, %v5686_v10 }
 0x2f2   :  { %6184 = vmatpush.bf16.msrb.mxu0 %v8932_v54  ;;  %v9521_v38 = vld [vmem:[%s16307_s1 + $0x15d8] sm:$0xf0]  ;;  %v10747_v45 = vld [vmem:[%s16307_s1 + $0x16cc] sm:$0xf]  ;;  %v9348_v0 = vor.u32 %v10671_v25, %v9345_v41 }
 0x2f3   :  { %6198 = vmatpush.bf16.msrb.mxu1 %v9060_v6  ;;  %v9649_v52 = vld [vmem:[%s16307_s1 + $0x16d8] sm:$0xf0]  ;;  %v10779_v54 = vld [vmem:[%s16307_s1 + $0x17cc] sm:$0xf]  ;;  %v5308_v6 = vadd.f32 %v16358_v63, %v5294_v47  ;;  %v9524_v13 = vor.u32 %v10715_v59, %v9521_v38  ;;  %v16362_v59 = vld [vmem:[#allocation4_spill] sm:$0xff] }
 0x2f4   :  { %6212 = vmatpush.bf16.msrb.mxu2 %v9188_v62  ;;  %v9777_v51 = vld [vmem:[%s16307_s1 + $0x17d8] sm:$0xf0]  ;;  %v5684_v62 = vadd.f32 %v15632_v8, %v5670_v57  ;;  %v10667_v17 = vld [vmem:[%s16307_s1 + $0x144c] sm:$0xf]  ;;  %v9652_v8 = vor.u32 %v10747_v45, %v9649_v52 }
 0x2f5   :  { %6222 = vmatpush.bf16.msrb.mxu3 %v9380_v31  ;;  %v9329_v53 = vld [vmem:[%s16307_s1 + $0x1458] sm:$0xf0]  ;;  %v15967_v31 = vpop.f32.mrf.mxu1  ;;  %v9780_v29 = vor.u32 %v10779_v54, %v9777_v51  ;;  %v10711_v11 = vld [vmem:[%s16307_s1 + $0x15ac] sm:$0xf]  ;;  %v16026_v52 = vpop.f32.mrf.mxu0 }
 0x2f6   :  { %6185 = vmatpush.bf16.msrb.mxu0 %v8916_v30  ;;  %v16359_v2 = vld [vmem:[#allocation21_spill] sm:$0xff]  ;;  %v10743_v16 = vld [vmem:[%s16307_s1 + $0x16ac] sm:$0xf]  ;;  %v5698_v20 = vadd.f32 %v15670_v22, %v5684_v62 }
 0x2f7   :  { %6199 = vmatpush.bf16.msrb.mxu1 %v9044_v37  ;;  %v5322_v24 = vadd.f32 %v16359_v2, %v5308_v6  ;;  %v9505_v21 = vld [vmem:[%s16307_s1 + $0x15b8] sm:$0xf0]  ;;  %v10775_v47 = vld [vmem:[%s16307_s1 + $0x17ac] sm:$0xf]  ;;  %v16364_v6 = vld [vmem:[#allocation24_spill] sm:$0xff] }
 0x2f8   :  { %6213 = vmatpush.bf16.msrb.mxu2 %v9172_v1  ;;  %v9633_v27 = vld [vmem:[%s16307_s1 + $0x16b8] sm:$0xf0]  ;;  %v16360_v5 = vld [vmem:[#allocation3_spill] sm:$0xff]  ;;  %v9508_v58 = vor.u32 %v10711_v11, %v9505_v21  ;;  %v16361_v1 = vld [vmem:[#allocation22_spill] sm:$0xff]  ;;  %v5712_v41 = vadd.f32 %v15672_v18, %v5698_v20 }
 0x2f9   :  { %6223 = vmatpush.bf16.msrb.mxu3 %v9364_v28  ;;  %6186 = vmatmul.bf16.vlgmr.msrb.gmra.mxu0 %v12041_v56  ;;  %v9761_v30 = vld [vmem:[%s16307_s1 + $0x17b8] sm:$0xf0]  ;;  %v5028_v39 = vadd.f32 %v16360_v5, %v5014_v15  ;;  %v5714_v56 = vadd.f32 %v15748_v49, %v5700_v14  ;;  %v10663_v57 = vld [vmem:[%s16307_s1 + $0x142c] sm:$0xf]  ;;  %v5336_v42 = vadd.f32 %v16361_v1, %v5322_v24  ;;  %v16003_v28 = vpop.f32.mrf.mxu3  ;;  %v16367_v1 = vld [vmem:[#allocation6_spill] sm:$0xff] }
 0x2fa   :  { %6234 = vmatpush.bf16.msra.mxu0 %v9540_v7  ;;  %6200 = vmatmul.bf16.vlgmr.msrb.gmra.mxu1 %v12039_v55  ;;  %v9313_v37 = vld [vmem:[%s16307_s1 + $0x1438] sm:$0xf0]  ;;  %v9636_v55 = vor.u32 %v10743_v16, %v9633_v27  ;;  %v9764_v22 = vor.u32 %v10775_v47, %v9761_v30  ;;  %v10707_v49 = vld [vmem:[%s16307_s1 + $0x158c] sm:$0xf]  ;;  %v5726_v2 = vadd.f32 %v15769_v4, %v5712_v41  ;;  %v16060_v4 = vpop.f32.mrf.mxu2  ;;  %v16368_v41 = vld [vmem:[#allocation26_spill] sm:$0xff] }
 0x2fb   :  { %6248 = vmatpush.bf16.msra.mxu1 %v9668_v32  ;;  %6214 = vmatmul.bf16.vlgmr.msrb.gmra.mxu2 %v12049_v60  ;;  %v9332_v60 = vor.u32 %v10667_v17, %v9329_v53  ;;  %v9489_v7 = vld [vmem:[%s16307_s1 + $0x1598] sm:$0xf0]  ;;  %v10739_v25 = vld [vmem:[%s16307_s1 + $0x168c] sm:$0xf]  ;;  %v5042_v38 = vadd.f32 %v16362_v59, %v5028_v39  ;;  %v5728_v18 = vadd.f32 %v15843_v61, %v5714_v56 }
 0x2fc   :  { %6262 = vmatpush.bf16.msra.mxu2 %v9796_v23  ;;  %v9617_v12 = vld [vmem:[%s16307_s1 + $0x1698] sm:$0xf0]  ;;  %v10771_v32 = vld [vmem:[%s16307_s1 + $0x178c] sm:$0xf]  ;;  %v9316_v54 = vor.u32 %v10663_v57, %v9313_v37  ;;  %v9492_v51 = vor.u32 %v10707_v49, %v9489_v7  ;;  %v5740_v5 = vadd.f32 %v15779_v19, %v5726_v2 }
 0x2fd   :  { %6224 = vmatpush.bf16.msrb.mxu3 %v9348_v0  ;;  %v9745_v23 = vld [vmem:[%s16307_s1 + $0x1798] sm:$0xf0]  ;;  %v16363_v45 = vld [vmem:[#allocation23_spill] sm:$0xff]  ;;  %v9620_v0 = vor.u32 %v10739_v25, %v9617_v12  ;;  %v5742_v24 = vadd.f32 %v15863_v9, %v5728_v18  ;;  %v16058_v47 = vpop.f32.mrf.mxu1 }
 0x2fe   :  { %6235 = vmatpush.bf16.msra.mxu0 %v9524_v13  ;;  %v5350_v10 = vadd.f32 %v16363_v45, %v5336_v42  ;;  %v10659_v15 = vld [vmem:[%s16307_s1 + $0x140c] sm:$0xf]  ;;  %v9297_v63 = vld [vmem:[%s16307_s1 + $0x1418] sm:$0xf0]  ;;  %v9748_v13 = vor.u32 %v10771_v32, %v9745_v23  ;;  %v16092_v32 = vpop.f32.mrf.mxu0  ;;  %v5754_v59 = vadd.f32 %v15811_v3, %v5740_v5 }
 0x2ff   :  { %6249 = vmatpush.bf16.msra.mxu1 %v9652_v8  ;;  %v10703_v61 = vld [vmem:[%s16307_s1 + $0x156c] sm:$0xf]  ;;  %v9473_v17 = vld [vmem:[%s16307_s1 + $0x1578] sm:$0xf0]  ;;  %v9300_v39 = vor.u32 %v10659_v15, %v9297_v63 }
 0x300   :  { %6263 = vmatpush.bf16.msra.mxu2 %v9780_v29  ;;  %v5364_v62 = vadd.f32 %v16364_v6, %v5350_v10  ;;  %v10735_v53 = vld [vmem:[%s16307_s1 + $0x166c] sm:$0xf]  ;;  %v9601_v8 = vld [vmem:[%s16307_s1 + $0x1678] sm:$0xf0]  ;;  %v9476_v20 = vor.u32 %v10703_v61, %v9473_v17 }
 0x301   :  { %6225 = vmatpush.bf16.msrb.mxu3 %v9332_v60  ;;  %v10767_v29 = vld [vmem:[%s16307_s1 + $0x176c] sm:$0xf]  ;;  %v9729_v11 = vld [vmem:[%s16307_s1 + $0x1778] sm:$0xf0]  ;;  %v16069_v56 = vpop.f32.mrf.mxu3  ;;  %v9604_v60 = vor.u32 %v10735_v53, %v9601_v8  ;;  %v16371_v53 = vld [vmem:[#allocation28_spill] sm:$0xff] }
 0x302   :  { %6236 = vmatpush.bf16.msra.mxu0 %v9508_v58  ;;  %v16365_v21 = vld [vmem:[#allocation5_spill] sm:$0xff]  ;;  %v10799_v9 = vld [vmem:[%s16307_s1 + $0x186c] sm:$0xf]  ;;  %v9732_v58 = vor.u32 %v10767_v29, %v9729_v11  ;;  %v16126_v8 = vpop.f32.mrf.mxu2  ;;  %v16372_v11 = vld [vmem:[#allocation8_spill] sm:$0xff] }
 0x303   :  { %6250 = vmatpush.bf16.msra.mxu1 %v9636_v55  ;;  %v5056_v16 = vadd.f32 %v16365_v21, %v5042_v38  ;;  %v16366_v14 = vld [vmem:[#allocation25_spill] sm:$0xff]  ;;  %v10699_v57 = vld [vmem:[%s16307_s1 + $0x154c] sm:$0xf]  ;;  %v5756_v55 = vadd.f32 %v15902_v36, %v5742_v24 }
 0x304   :  { %6264 = vmatpush.bf16.msra.mxu2 %v9764_v22  ;;  %v5378_v27 = vadd.f32 %v16366_v14, %v5364_v62  ;;  %v9857_v30 = vld [vmem:[%s16307_s1 + $0x1878] sm:$0xf0]  ;;  %v10731_v19 = vld [vmem:[%s16307_s1 + $0x164c] sm:$0xf]  ;;  %v5768_v62 = vadd.f32 %v15813_v50, %v5754_v59 }
 0x305   :  { %6226 = vmatpush.bf16.msrb.mxu3 %v9316_v54  ;;  %v9457_v37 = vld [vmem:[%s16307_s1 + $0x1558] sm:$0xf0]  ;;  %v5070_v42 = vadd.f32 %v16367_v1, %v5056_v16  ;;  %v9860_v22 = vor.u32 %v10799_v9, %v9857_v30  ;;  %v10763_v7 = vld [vmem:[%s16307_s1 + $0x174c] sm:$0xf]  ;;  %v5770_v38 = vadd.f32 %v15904_v40, %v5756_v55  ;;  %v16124_v24 = vpop.f32.mrf.mxu1 }
 0x306   :  { %6237 = vmatpush.bf16.msra.mxu0 %v9492_v51  ;;  %v9585_v49 = vld [vmem:[%s16307_s1 + $0x1658] sm:$0xf0]  ;;  %v5392_v12 = vadd.f32 %v16368_v41, %v5378_v27  ;;  %v10795_v36 = vld [vmem:[%s16307_s1 + $0x184c] sm:$0xf]  ;;  %v9460_v45 = vor.u32 %v10699_v57, %v9457_v37  ;;  %v5853_v41 = vpop.f32.mrf.mxu0 }
 0x307   :  { %6251 = vmatpush.bf16.msra.mxu1 %v9620_v0  ;;  %v9713_v25 = vld [vmem:[%s16307_s1 + $0x1758] sm:$0xf0]  ;;  %v16369_v10 = vld [vmem:[#allocation27_spill] sm:$0xff]  ;;  %v9588_v54 = vor.u32 %v10731_v19, %v9585_v49  ;;  %v5784_v16 = vadd.f32 %v16003_v28, %v5770_v38  ;;  %v16376_v38 = vld [vmem:[#allocation10_spill] sm:$0xff] }
 0x308   :  { %6265 = vmatpush.bf16.msra.mxu2 %v9748_v13  ;;  %v9841_v23 = vld [vmem:[%s16307_s1 + $0x1858] sm:$0xf0]  ;;  %v5406_v18 = vadd.f32 %v16369_v10, %v5392_v12  ;;  %v9716_v51 = vor.u32 %v10763_v7, %v9713_v25  ;;  %v10695_v15 = vld [vmem:[%s16307_s1 + $0x152c] sm:$0xf]  ;;  %v16375_v7 = vld [vmem:[#allocation30_spill] sm:$0xff] }
 0x309   :  { %6227 = vmatpush.bf16.msrb.mxu3 %v9300_v39  ;;  %v9441_v63 = vld [vmem:[%s16307_s1 + $0x1538] sm:$0xf0]  ;;  %v10727_v3 = vld [vmem:[%s16307_s1 + $0x162c] sm:$0xf]  ;;  %v9844_v0 = vor.u32 %v10795_v36, %v9841_v23  ;;  %v5839_v1 = vpop.f32.mrf.mxu3 }
 0x30a   :  { %6238 = vmatpush.bf16.msra.mxu0 %v9476_v20  ;;  %v16370_v40 = vld [vmem:[#allocation7_spill] sm:$0xff]  ;;  %v9569_v13 = vld [vmem:[%s16307_s1 + $0x1638] sm:$0xf0]  ;;  %v5420_v2 = vadd.f32 %v16371_v53, %v5406_v18  ;;  %v9444_v14 = vor.u32 %v10695_v15, %v9441_v63  ;;  %v5782_v20 = vadd.f32 %v15926_v35, %v5768_v62  ;;  %v16378_v63 = vld [vmem:[#allocation32_spill] sm:$0xff] }
 0x30b   :  { %6252 = vmatpush.bf16.msra.mxu1 %v9604_v60  ;;  %v5084_v6 = vadd.f32 %v16370_v40, %v5070_v42  ;;  %v10759_v61 = vld [vmem:[%s16307_s1 + $0x172c] sm:$0xf]  ;;  %v9697_v17 = vld [vmem:[%s16307_s1 + $0x1738] sm:$0xf0]  ;;  %v9572_v30 = vor.u32 %v10727_v3, %v9569_v13  ;;  %v5798_v60 = vadd.f32 %v16026_v52, %v5784_v16 }
 0x30c   :  { %6266 = vmatpush.bf16.msra.mxu2 %v9732_v58  ;;  %6228 = vmatmul.bf16.vlgmr.msrb.gmra.mxu3 %v12268_v26  ;;  %v10791_v50 = vld [vmem:[%s16307_s1 + $0x182c] sm:$0xf]  ;;  %v9825_v29 = vld [vmem:[%s16307_s1 + $0x1838] sm:$0xf0]  ;;  %v9700_v26 = vor.u32 %v10759_v61, %v9697_v17  ;;  %v5796_v35 = vadd.f32 %v15936_v46, %v5782_v20 }
 0x30d   :  { %6280 = vmatpush.bf16.msra.mxu3 %v9860_v22  ;;  %v5098_v21 = vadd.f32 %v16372_v11, %v5084_v6  ;;  %v16373_v27 = vld [vmem:[#allocation29_spill] sm:$0xff]  ;;  %v10691_v5 = vld [vmem:[%s16307_s1 + $0x150c] sm:$0xf]  ;;  %v9828_v58 = vor.u32 %v10791_v50, %v9825_v29  ;;  %v5812_v23 = vadd.f32 %v16058_v47, %v5798_v60  ;;  %v5867_v40 = vpop.f32.mrf.mxu1  ;;  %v5881_v6 = vpop.f32.mrf.mxu2  ;;  %v16381_v50 = vld [vmem:[#allocation12_spill] sm:$0xff] }
 0x30e   :  { %6239 = vmatpush.bf16.msra.mxu0 %v9460_v45  ;;  %v5434_v9 = vadd.f32 %v16373_v27, %v5420_v2  ;;  %v9425_v39 = vld [vmem:[%s16307_s1 + $0x1518] sm:$0xf0]  ;;  %v10723_v28 = vld [vmem:[%s16307_s1 + $0x160c] sm:$0xf]  ;;  %v5810_v47 = vadd.f32 %v15967_v31, %v5796_v35  ;;  %v10816_v31 = vld [vmem:[%s16310_s3 + $0x70] sm:$0xff]  ;;  %v5907_v11 = vpop.f32.mrf.mxu0 }
 0x30f   :  { %6253 = vmatpush.bf16.msra.mxu1 %v9588_v54  ;;  %v9553_v57 = vld [vmem:[%s16307_s1 + $0x1618] sm:$0xf0]  ;;  %v10755_v37 = vld [vmem:[%s16307_s1 + $0x170c] sm:$0xf]  ;;  %v9428_v52 = vor.u32 %v10691_v5, %v9425_v39  ;;  %v5826_v15 = vadd.f32 %v16060_v4, %v5812_v23  ;;  %v16382_v27 = vld [vmem:[#allocation34_spill] sm:$0xff] }
 0x310   :  { %6267 = vmatpush.bf16.msra.mxu2 %v9716_v51  ;;  %v9681_v19 = vld [vmem:[%s16307_s1 + $0x1718] sm:$0xf0]  ;;  %v10787_v22 = vld [vmem:[%s16307_s1 + $0x180c] sm:$0xf]  ;;  %v5448_v25 = vadd.f32 %v16375_v7, %v5434_v9  ;;  %v9556_v12 = vor.u32 %v10723_v28, %v9553_v57  ;;  %v5824_v62 = vadd.f32 %v15969_v44, %v5810_v47  ;;  %v10824_v44 = vld [vmem:[%s16310_s3 + $0xb0] sm:$0xff] }
 0x311   :  { %6281 = vmatpush.bf16.msra.mxu3 %v9844_v0  ;;  %v16374_v42 = vld [vmem:[#allocation9_spill] sm:$0xff]  ;;  %v9684_v36 = vor.u32 %v10755_v37, %v9681_v19  ;;  %v16377_v10 = vld [vmem:[#allocation31_spill] sm:$0xff]  ;;  %v10808_v0 = vld [vmem:[%s16310_s3 + $0x30] sm:$0xff]  ;;  %v5893_v53 = vpop.f32.mrf.mxu3  ;;  %v5840_v2 = vadd.f32 %v5839_v1, %v5826_v15 }
 0x312   :  { %v5112_v55 = vadd.f32 %v16374_v42, %v5098_v21  ;;  %6240 = vmatpush.bf16.msra.mxu0 %v9444_v14  ;;  %v9809_v49 = vld [vmem:[%s16307_s1 + $0x1818] sm:$0xf0]  ;;  %v5462_v18 = vadd.f32 %v16377_v10, %v5448_v25  ;;  %v16379_v4 = vld [vmem:[#allocation11_spill] sm:$0xff]  ;;  %v5838_v21 = vadd.f32 %v16069_v56, %v5824_v62  ;;  %v16383_v9 = vld [vmem:[#allocation2_spill] sm:$0xff] }
 0x313   :  { %6254 = vmatpush.bf16.msra.mxu1 %v9572_v30  ;;  %v10809_v46 = vld [vmem:[%s16310_s3 + $0x38] sm:$0xff]  ;;  %v9812_v51 = vor.u32 %v10787_v22, %v9809_v49  ;;  %v5854_v16 = vadd.f32 %v5853_v41, %v5840_v2  ;;  %v10807_v14 = vld [vmem:[%s16310_s3 + $0x28] sm:$0xff]  ;;  %v10806_v60 = vld [vmem:[%s16310_s3 + $0x20] sm:$0xff] }
 0x314   :  { %6268 = vmatpush.bf16.msra.mxu2 %v9700_v26  ;;  %v10817_v59 = vld [vmem:[%s16310_s3 + $0x78] sm:$0xff]  ;;  %v5126_v45 = vadd.f32 %v16376_v38, %v5112_v55  ;;  %v5476_v3 = vadd.f32 %v16378_v63, %v5462_v18  ;;  %v5852_v56 = vadd.f32 %v16092_v32, %v5838_v21  ;;  %v16385_v5 = vld [vmem:[#allocation35_spill] sm:$0xff]  ;;  %v16386_v57 = vld [vmem:[#allocation14_spill] sm:$0xff] }
 0x315   :  { %6282 = vmatpush.bf16.msra.mxu3 %v9828_v58  ;;  %v10825_v54 = vld [vmem:[%s16310_s3 + $0xb8] sm:$0xff]  ;;  %v5921_v28 = vpop.f32.mrf.mxu1  ;;  %v5868_v20 = vadd.f32 %v5867_v40, %v5854_v16  ;;  %v10814_v58 = vld [vmem:[%s16310_s3 + $0x60] sm:$0xff]  ;;  %v16387_v19 = vld [vmem:[#allocation36_spill] sm:$0xff]  ;;  %v5935_v1 = vpop.f32.mrf.mxu2 }
 0x316   :  { %6241 = vmatpush.bf16.msra.mxu0 %v9428_v52  ;;  %v5140_v13 = vadd.f32 %v16379_v4, %v5126_v45  ;;  %v16380_v61 = vld [vmem:[#allocation33_spill] sm:$0xff]  ;;  %v10822_v42 = vld [vmem:[%s16310_s3 + $0xa0] sm:$0xff]  ;;  %v5866_v55 = vadd.f32 %v16124_v24, %v5852_v56  ;;  %v5909_v23 = vpop.f32.mrf.mxu0  ;;  %v16391_v38 = vld [vmem:[#allocation39_spill] sm:$0xff] }
 0x317   :  { %6255 = vmatpush.bf16.msra.mxu1 %v9556_v12  ;;  %v5490_v17 = vadd.f32 %v16380_v61, %v5476_v3  ;;  %v16384_v30 = vld [vmem:[#allocation13_spill] sm:$0xff]  ;;  %v5882_v35 = vadd.f32 %v5881_v6, %v5868_v20  ;;  %v16388_v52 = vld [vmem:[#allocation38_spill] sm:$0xff]  ;;  %v16389_v12 = vld [vmem:[#allocation16_spill] sm:$0xff] }
 0x318   :  { %6269 = vmatpush.bf16.msra.mxu2 %v9684_v36  ;;  %v5154_v29 = vadd.f32 %v16381_v50, %v5140_v13  ;;  %v5880_v7 = vadd.f32 %v16126_v8, %v5866_v55  ;;  %v10805_v25 = vld [vmem:[%s16310_s3 + $0x18] sm:$0xff]  ;;  %v16392_v47 = vld [vmem:[#allocation40_spill] sm:$0xff]  ;;  %v16393_v6 = vld [vmem:[#allocation18_spill] sm:$0xff] }
 0x319   :  { %6283 = vmatpush.bf16.msra.mxu3 %v9812_v51  ;;  %6242 = vmatmul.bf16.vlgmr.msra.gmra.mxu0 %v12281_v34  ;;  %v10815_v34 = vld [vmem:[%s16310_s3 + $0x68] sm:$0xff]  ;;  %v5895_v49 = vpop.f32.mrf.mxu3  ;;  %v10813_v41 = vld [vmem:[%s16310_s3 + $0x58] sm:$0xff]  ;;  %v10812_v51 = vld [vmem:[%s16310_s3 + $0x50] sm:$0xff] }
 0x31a   :  { %6562 = vmatpush.bf16.msrb.mxu0 %v10809_v46  ;;  %6256 = vmatmul.bf16.vlgmr.msra.gmra.mxu1 %v12279_v33  ;;  %v5504_v33 = vadd.f32 %v16382_v27, %v5490_v17  ;;  %v5168_v26 = vadd.f32 %v16384_v30, %v5154_v29  ;;  %v10821_v24 = vld [vmem:[%s16310_s3 + $0x98] sm:$0xff]  ;;  %v5896_v46 = vadd.f32 %v5895_v49, %v5882_v35  ;;  %v10820_v3 = vld [vmem:[%s16310_s3 + $0x90] sm:$0xff]  ;;  %v10803_v4 = vld [vmem:[%s16310_s3 + $0x8] sm:$0xff] }
 0x31b   :  { %6576 = vmatpush.bf16.msrb.mxu1 %v10817_v59  ;;  %6270 = vmatmul.bf16.vlgmr.msra.gmra.mxu2 %v12291_v48  ;;  %v10823_v48 = vld [vmem:[%s16310_s3 + $0xa8] sm:$0xff]  ;;  %v16390_v8 = vld [vmem:[#allocation17_spill] sm:$0xff]  ;;  %v5894_v10 = vadd.f32 %v5893_v53, %v5880_v7  ;;  %v10802_v21 = vld [vmem:[%s16310_s3] sm:$0xff] }
 0x31c   :  { %6590 = vmatpush.bf16.msrb.mxu2 %v10825_v54  ;;  %9864 = vmatmul.msk.bf16.vlgmr.msra.gmra.mxu3 %vm4886_vm0, %v16383_v9  ;;  %v5518_v39 = vadd.f32 %v16385_v5, %v5504_v33  ;;  %v5182_v37 = vadd.f32 %v16386_v57, %v5168_v26  ;;  %v5910_v18 = vadd.f32 %v5909_v23, %v5896_v46  ;;  %v10804_v54 = vld [vmem:[%s16310_s3 + $0x10] sm:$0xff]  ;;  %v10811_v13 = vld [vmem:[%s16310_s3 + $0x48] sm:$0xff]  ;;  %v16395_v53 = vld [vmem:[#allocation41_spill] sm:$0xff] }
 0x31d   :  { %v5923_v63 = vpop.f32.mrf.mxu1  ;;  %v5908_v40 = vadd.f32 %v5907_v11, %v5894_v10  ;;  %v16394_v61 = vld [vmem:[#allocation19_spill] sm:$0xff]  ;;  %v10810_v16 = vld [vmem:[%s16310_s3 + $0x40] sm:$0xff]  ;;  %v16397_v56 = vld [vmem:[#allocation37_spill] sm:$0xff] }
 0x31e   :  { %6563 = vmatpush.bf16.msrb.mxu0 %v10808_v0  ;;  %v5532_v32 = vadd.f32 %v16387_v19, %v5518_v39  ;;  %v5196_v36 = vadd.f32 %v16389_v12, %v5182_v37  ;;  %v5937_v0 = vpop.f32.mrf.mxu2  ;;  %v10819_v2 = vld [vmem:[%s16310_s3 + $0x88] sm:$0xff]  ;;  %v10818_v27 = vld [vmem:[%s16310_s3 + $0x80] sm:$0xff]  ;;  %v6291_v30 = vmax.f32 %v16397_v56, 0.0 }
 0x31f   :  { %6577 = vmatpush.bf16.msrb.mxu1 %v10816_v31  ;;  %v5924_v31 = vadd.f32 %v5923_v63, %v5910_v18  ;;  %v5922_v50 = vadd.f32 %v5921_v28, %v5908_v40  ;;  %v16396_v9 = vld [vmem:[#allocation15_spill] sm:$0xff] }
 0x320   :  { %6591 = vmatpush.bf16.msrb.mxu2 %v10824_v44  ;;  %v5546_v22 = vadd.f32 %v16388_v52, %v5532_v32  ;;  %v5210_v59 = vadd.f32 %v16390_v8, %v5196_v36 }
 0x321   :  { %v5938_v29 = vadd.f32 %v5937_v0, %v5924_v31  ;;  %v5936_v11 = vadd.f32 %v5935_v1, %v5922_v50  ;;  %v5949_v5 = vpop.f32.mrf.mxu3 }
 0x322   :  { %6564 = vmatpush.bf16.msrb.mxu0 %v10807_v14  ;;  %v5560_v45 = vadd.f32 %v16391_v38, %v5546_v22  ;;  %v5224_v62 = vadd.f32 %v16393_v6, %v5210_v59 }
 0x323   :  { %6578 = vmatpush.bf16.msrb.mxu1 %v10815_v34  ;;  %v6296_v33 = vmax.f32 %v5938_v29, 0.0  ;;  %v6292_v26 = vmax.f32 %v5936_v11, 0.0 }
 0x324   :  { %6592 = vmatpush.bf16.msrb.mxu2 %v10823_v48  ;;  %v5574_v15 = vadd.f32 %v16392_v47, %v5560_v45  ;;  %v5238_v17 = vadd.f32 %v16394_v61, %v5224_v62  ;;  %v6290_v48 = vmax.f32 %v16396_v9, 0.0 }
 0x325   :  { %v6300_v20 = vpack.c.bf16 %v6296_v33, %v6292_v26  ;;  %v5977_v57 = vpop.f32.mrf.mxu1 }
 0x326   :  { %6565 = vmatpush.bf16.msrb.mxu0 %v10806_v60  ;;  %v5588_v44 = vadd.f32 %v16395_v53, %v5574_v15  ;;  %v6294_v14 = vmax.f32 %v5238_v17, 0.0  ;;  %v5963_v60 = vpop.f32.mrf.mxu0  ;;  %v5991_v37 = vpop.f32.mrf.mxu2  ;;  %v10831_v17 = vld [vmem:[%s16310_s3 + $0xe8] sm:$0xff] }
 0x327   :  { %6579 = vmatpush.bf16.msrb.mxu1 %v10814_v58 }
 0x328   :  { %6593 = vmatpush.bf16.msrb.mxu2 %v10822_v42  ;;  %v6295_v34 = vmax.f32 %v5588_v44, 0.0  ;;  %v6298_v39 = vpack.c.bf16 %v6294_v14, %v6290_v48 }
 0x329   :  { %v5951_v58 = vpop.f32.mrf.mxu3 }
 0x32a   :  { %6566 = vmatpush.bf16.msrb.mxu0 %v10805_v25  ;;  %v6299_v28 = vpack.c.bf16 %v6295_v34, %v6291_v30  ;;  %v836_v25 = vperm.slane %v15706_v43, 3  ;;  %v10833_v43 = vld [vmem:[%s16310_s3 + $0xf8] sm:$0xff]  ;;  %v10828_v30 = vld [vmem:[%s16310_s3 + $0xd0] sm:$0xff] }
 0x32b   :  { %6580 = vmatpush.bf16.msrb.mxu1 %v10813_v41  ;;  %6604 = vmatpush.bf16.msrb.mxu3 %v10833_v43 }
 0x32c   :  { %6594 = vmatpush.bf16.msrb.mxu2 %v10821_v24  ;;  %v5950_v12 = vadd.f32 %v5949_v5, %v836_v25  ;;  %v5952_v45 = vadd.f32 %v5951_v58, %v836_v25 }
 0x32d   :  { %v5979_v1 = vpop.f32.mrf.mxu1 }
 0x32e   :  { %6567 = vmatpush.bf16.msrb.mxu0 %v10804_v54  ;;  %v5965_v19 = vpop.f32.mrf.mxu0  ;;  %v5993_v42 = vpop.f32.mrf.mxu2  ;;  %v5964_v24 = vadd.f32 %v5963_v60, %v5950_v12  ;;  %v10827_v60 = vld [vmem:[%s16310_s3 + $0xc8] sm:$0xff] }
 0x32f   :  { %6581 = vmatpush.bf16.msrb.mxu1 %v10812_v51  ;;  %v5966_v51 = vadd.f32 %v5965_v19, %v5952_v45 }
 0x330   :  { %6595 = vmatpush.bf16.msrb.mxu2 %v10820_v3  ;;  %v5978_v59 = vadd.f32 %v5977_v57, %v5964_v24  ;;  %v10832_v3 = vld [vmem:[%s16310_s3 + $0xf0] sm:$0xff] }
 0x331   :  { %v6005_v32 = vpop.f32.mrf.mxu3  ;;  %v5980_v63 = vadd.f32 %v5979_v1, %v5966_v51  ;;  %6605 = vmatpush.bf16.msrb.mxu3 %v10832_v3  ;;  %v10826_v1 = vld [vmem:[%s16310_s3 + $0xc0] sm:$0xff] }
 0x332   :  { %6568 = vmatpush.bf16.msrb.mxu0 %v10803_v4  ;;  %v5992_v10 = vadd.f32 %v5991_v37, %v5978_v59 }
 0x333   :  { %6582 = vmatpush.bf16.msrb.mxu1 %v10811_v13  ;;  %v5994_v0 = vadd.f32 %v5993_v42, %v5980_v63 }
 0x334   :  { %6596 = vmatpush.bf16.msrb.mxu2 %v10819_v2  ;;  %v6006_v15 = vadd.f32 %v6005_v32, %v5992_v10  ;;  %v10830_v2 = vld [vmem:[%s16310_s3 + $0xe0] sm:$0xff] }
 0x335   :  { %v6033_v52 = vpop.f32.mrf.mxu1  ;;  %6606 = vmatpush.bf16.msrb.mxu3 %v10831_v17 }
 0x336   :  { %6569 = vmatpush.bf16.msrb.mxu0 %v10802_v21  ;;  %v6019_v55 = vpop.f32.mrf.mxu0  ;;  %v6047_v22 = vpop.f32.mrf.mxu2 }
 0x337   :  { %6583 = vmatpush.bf16.msrb.mxu1 %v10810_v16  ;;  %v6020_v6 = vadd.f32 %v6019_v55, %v6006_v15 }
 0x338   :  { %6597 = vmatpush.bf16.msrb.mxu2 %v10818_v27  ;;  %v10829_v27 = vld [vmem:[%s16310_s3 + $0xd8] sm:$0xff] }
 0x339   :  { %6570 = vmatmul.bf16.vlgmr.msrb.gmra.mxu0 %v6298_v39  ;;  %v6007_v35 = vpop.f32.mrf.mxu3  ;;  %v6034_v61 = vadd.f32 %v6033_v52, %v6020_v6  ;;  %6607 = vmatpush.bf16.msrb.mxu3 %v10830_v2 }
 0x33a   :  { %6584 = vmatmul.bf16.vlgmr.msrb.gmra.mxu1 %v6299_v28  ;;  %v6008_v13 = vadd.f32 %v6007_v35, %v5994_v0 }
 0x33b   :  { %6598 = vmatmul.bf16.vlgmr.msrb.gmra.mxu2 %v6300_v20  ;;  %v6048_v50 = vadd.f32 %v6047_v22, %v6034_v61 }
 0x33d   :  { %v6035_v41 = vpop.f32.mrf.mxu1  ;;  %6608 = vmatpush.bf16.msrb.mxu3 %v10829_v27 }
 0x33e   :  { %v6021_v49 = vpop.f32.mrf.mxu0  ;;  %v6049_v36 = vpop.f32.mrf.mxu2 }
 0x33f   :  { %v6022_v53 = vadd.f32 %v6021_v49, %v6008_v13 }
 0x341   :  { %v6061_v7 = vpop.f32.mrf.mxu3  ;;  %v6036_v29 = vadd.f32 %v6035_v41, %v6022_v53  ;;  %6609 = vmatpush.bf16.msrb.mxu3 %v10828_v30 }
 0x342   :  { %v6062_v11 = vadd.f32 %v6061_v7, %v6048_v50 }
 0x343   :  { %v6050_v14 = vadd.f32 %v6049_v36, %v6036_v29 }
 0x345   :  { %v6089_v8 = vpop.f32.mrf.mxu1  ;;  %6610 = vmatpush.bf16.msrb.mxu3 %v10827_v60 }
 0x346   :  { %v6075_v23 = vpop.f32.mrf.mxu0  ;;  %v6103_v38 = vpop.f32.mrf.mxu2 }
 0x347   :  { %v6076_v34 = vadd.f32 %v6075_v23, %v6062_v11  ;;  %v10834_v11 = vld [vmem:[%s16311_s4] ss:$0 sm:$0xff] }
 0x349   :  { %v6063_v46 = vpop.f32.mrf.mxu3  ;;  %v6090_v48 = vadd.f32 %v6089_v8, %v6076_v34  ;;  %6611 = vmatpush.bf16.msrb.mxu3 %v10826_v1 }
 0x34a   :  { %v6064_v9 = vadd.f32 %v6063_v46, %v6050_v14 }
 0x34b   :  { %v6104_v5 = vadd.f32 %v6103_v38, %v6090_v48 }
 0x34d   :  { %v6091_v47 = vpop.f32.mrf.mxu1 }
 0x34e   :  { %v6077_v18 = vpop.f32.mrf.mxu0  ;;  %v6105_v40 = vpop.f32.mrf.mxu2 }
 0x34f   :  { %v6078_v56 = vadd.f32 %v6077_v18, %v6064_v9 }
 0x351   :  { %v6117_v54 = vpop.f32.mrf.mxu3  ;;  %v6092_v28 = vadd.f32 %v6091_v47, %v6078_v56 }
 0x352   :  { %v6118_v20 = vadd.f32 %v6117_v54, %v6104_v5 }
 0x353   :  { %v6106_v37 = vadd.f32 %v6105_v40, %v6092_v28 }
 0x356   :  { %v6131_v62 = vpop.f32.mrf.mxu0 }
 0x357   :  { %v6145_v4 = vpop.f32.mrf.mxu1  ;;  %v6132_v19 = vadd.f32 %v6131_v62, %v6118_v20 }
 0x359   :  { %v6119_v31 = vpop.f32.mrf.mxu3  ;;  %v6146_v55 = vadd.f32 %v6145_v4, %v6132_v19 }
 0x35a   :  { %v6120_v32 = vadd.f32 %v6119_v31, %v6106_v37 }
 0x35e   :  { %v6159_v44 = vpop.f32.mrf.mxu2  ;;  %v6133_v21 = vpop.f32.mrf.mxu0 }
 0x35f   :  { %v6147_v33 = vpop.f32.mrf.mxu1  ;;  %v6134_v35 = vadd.f32 %v6133_v21, %v6120_v32  ;;  %v6160_v52 = vadd.f32 %v6159_v44, %v6146_v55 }
 0x361   :  { %v6148_v7 = vadd.f32 %v6147_v33, %v6134_v35 }
 0x366   :  { %v6161_v26 = vpop.f32.mrf.mxu2 }
 0x367   :  { %v6162_v12 = vadd.f32 %v6161_v26, %v6148_v7 }
 0x36f   :  { %v6173_v16 = vpop.f32.mrf.mxu3 }
 0x370   :  { %v6174_v25 = vadd.f32 %v6173_v16, %v6160_v52 }
 0x376   :  { %v6187_v39 = vpop.f32.mrf.mxu0 }
 0x377   :  { %v6175_v58 = vpop.f32.mrf.mxu3  ;;  %v6201_v57 = vpop.f32.mrf.mxu1  ;;  %v6188_v36 = vadd.f32 %v6187_v39, %v6174_v25 }
 0x378   :  { %v6176_v23 = vadd.f32 %v6175_v58, %v6162_v12 }
 0x379   :  { %v6202_v46 = vadd.f32 %v6201_v57, %v6188_v36 }
 0x37e   :  { %v6215_v42 = vpop.f32.mrf.mxu2  ;;  %v6189_v22 = vpop.f32.mrf.mxu0 }
 0x37f   :  { %v6203_v41 = vpop.f32.mrf.mxu1  ;;  %v6190_v8 = vadd.f32 %v6189_v22, %v6176_v23  ;;  %v6216_v45 = vadd.f32 %v6215_v42, %v6202_v46 }
 0x381   :  { %v6204_v18 = vadd.f32 %v6203_v41, %v6190_v8 }
 0x386   :  { %v6217_v24 = vpop.f32.mrf.mxu2 }
 0x387   :  { %v6218_v51 = vadd.f32 %v6217_v24, %v6204_v18 }
 0x38f   :  { %v6229_v49 = vpop.f32.mrf.mxu3 }
 0x390   :  { %v6230_v54 = vadd.f32 %v6229_v49, %v6216_v45 }
 0x396   :  { %v6243_v59 = vpop.f32.mrf.mxu0 }
 0x397   :  { %v6231_v38 = vpop.f32.mrf.mxu3  ;;  %v6257_v10 = vpop.f32.mrf.mxu1  ;;  %v6244_v47 = vadd.f32 %v6243_v59, %v6230_v54 }
 0x398   :  { %v6232_v43 = vadd.f32 %v6231_v38, %v6218_v51 }
 0x399   :  { %v6258_v40 = vadd.f32 %v6257_v10, %v6244_v47 }
 0x39e   :  { %v6271_v15 = vpop.f32.mrf.mxu2  ;;  %v6245_v63 = vpop.f32.mrf.mxu0 }
 0x39f   :  { %v6285_v3 = vpop.f32.mrf.mxu3  ;;  %v6246_v6 = vadd.f32 %v6245_v63, %v6232_v43  ;;  %v6272_v62 = vadd.f32 %v6271_v15, %v6258_v40  ;;  %v6259_v0 = vpop.f32.mrf.mxu1 }
 0x3a1   :  { %v6260_v31 = vadd.f32 %v6259_v0, %v6246_v6  ;;  %v6286_v13 = vadd.f32 %v6285_v3, %v6272_v62 }
 0x3a3   :  { %v6293_v44 = vmax.f32 %v6286_v13, 0.0 }
 0x3a6   :  { %v6273_v4 = vpop.f32.mrf.mxu2 }
 0x3a7   :  { %v6274_v61 = vadd.f32 %v6273_v4, %v6260_v31  ;;  %v6287_v17 = vpop.f32.mrf.mxu3 }
 0x3a9   :  { %v6288_v53 = vadd.f32 %v6287_v17, %v6274_v61 }
 0x3ab   :  { %v6297_v2 = vmax.f32 %v6288_v53, 0.0 }
 0x3ad   :  { %v6301_v50 = vpack.c.bf16 %v6297_v2, %v6293_v44 }
 0x3af   :  { %6612 = vmatmul.bf16.vlgmr.msrb.gmra.mxu3 %v6301_v50 }
 0x3b6   :  { %v6571_v29 = vpop.f32.mrf.mxu0 }
 0x3b7   :  { %v6572_v21 = vadd.f32 %v10834_v11, %v6571_v29  ;;  %v6585_v16 = vpop.f32.mrf.mxu1 }
 0x3b9   :  { %v6586_v34 = vadd.f32 %v6585_v16, %v6572_v21 }
 0x3be   :  { %v6599_v14 = vpop.f32.mrf.mxu2  ;;  %v6573_v27 = vpop.f32.mrf.mxu0 }
 0x3bf   :  { %v6600_v33 = vadd.f32 %v6599_v14, %v6586_v34  ;;  %v6574_v48 = vadd.f32 %v10834_v11, %v6573_v27  ;;  %v6587_v30 = vpop.f32.mrf.mxu1 }
 0x3c1   :  { %v6588_v5 = vadd.f32 %v6587_v30, %v6574_v48 }
 0x3c6   :  { %v6601_v26 = vpop.f32.mrf.mxu2 }
 0x3c7   :  { %v6602_v39 = vadd.f32 %v6601_v26, %v6588_v5 }
 0x432   :  { %v6613_v9 = vpop.f32.mrf.mxu3 }
 0x433   :  { %v6614_v56 = vadd.f32 %v6613_v9, %v6600_v33 }
 0x435   :  { %6619 = vst.msk [vmem:[%s16312_s5] sm:$0xff] %vm6618_vm1, %v6614_v56 }
 0x43a   :  { %v6615_v28 = vpop.f32.mrf.mxu3 }
 0x43b   :  { %v6616_v20 = vadd.f32 %v6615_v28, %v6602_v39 }
 0x43d   :  { %6620 = vst.msk [vmem:[%s16312_s5 + $0x8] sm:$0xff] %vm6618_vm1, %v6616_v20 }

</bundles_post_ra>
